<compile_context>
chip_gen: v5e
topology: v5e:2x2
jax: 0.10.0
libtpu: 0.0.40
codegen_flags: <defaults>
</compile_context>

<pallas_src>
import jax
import jax.numpy as jnp
from jax import lax
from jax.experimental import pallas as pl
from jax.experimental.pallas import tpu as pltpu


def _round_up(x, m):
    return ((x + m - 1) // m) * m


def _cdiv(a, b):
    return -(-a // b)


def _vmem_budget_bytes():
    """Generation-aware VMEM budget: ~60% of capacity, clamped to 32..96 MiB."""
    cap = 64 << 20
    try:
        cap = int(getattr(pltpu.get_tpu_info(), "vmem_capacity_bytes", cap))
    except Exception:
        pass
    return int(min(96 << 20, max(32 << 20, (cap * 3) // 5)))


# ----------------------------------------------------------------------------
# Kernel 1: rows on sublanes, classes on lanes (general C) -- PPC / PPD branch
# ----------------------------------------------------------------------------
def _choose_tm(n_rows, n_cls, num_chunks, tm_req, vmem_budget):
    """Row tile: as requested (default 1024), multiple of 8, VMEM-safe."""
    per_chunk = _cdiv(n_rows, num_chunks)
    tm = max(8, min(_round_up(tm_req, 8), _round_up(per_chunk, 8)))
    lanes = _round_up(max(n_cls, 1), 128)

    def need(t):
        # 2x double-buffered logits, 2x targets, 3 narrow accumulators, output
        # (everything lane-padded to 128).
        return (2 * t * lanes + 2 * t * 128 + 3 * t * 128 + 2 * 128) * 4

    while tm > 8 and need(tm) > vmem_budget // 2:
        tm = max(8, _round_up(tm // 2, 8))
    return tm


def masked_ce_and_ppd_sums(logits, targets, *, tm=1024, num_chunks=1):
    """Returns (ce_sum, ppd_sum, valid_count) over rows whose target != -1.

    logits: (N, C) float, targets: (N,) with -1 = ignore.  The ragged tail is
    masked in-kernel (no jnp.pad / extra HBM copy of the inputs).
    """
    n, c = logits.shape
    t2 = targets.reshape(n, 1).astype(jnp.int32)

    num_chunks = max(1, int(num_chunks))
    budget = _vmem_budget_bytes()
    tm = _choose_tm(n, c, num_chunks, tm, budget)
    steps = max(1, _cdiv(n, num_chunks * tm))

    def kernel(logits_ref, tgt_ref, out_ref, acc_ce, acc_ppd, acc_cnt):
        ci = pl.program_id(0)
        k = pl.program_id(1)

        @pl.when(k == 0)
        def _init():
            acc_ce[...] = jnp.zeros_like(acc_ce)
            acc_ppd[...] = jnp.zeros_like(acc_ppd)
            acc_cnt[...] = jnp.zeros_like(acc_cnt)

        x = logits_ref[...].astype(jnp.float32)            # (tm, C)
        t = tgt_ref[...]                                   # (tm, 1) int32

        # In-kernel ragged-tail mask: covers the partial last block and any
        # fully-OOB chunk-tail blocks (their garbage rows contribute nothing).
        row = (ci * steps + k) * tm + lax.broadcasted_iota(jnp.int32, t.shape, 0)
        valid = (t != -1) & (row < n)                      # (tm, 1)

        cls = lax.broadcasted_iota(jnp.int32, x.shape, 1)  # lane == class id
        hit = (cls == t) & valid                           # (tm, C) one-hot

        # Stable log-sum-exp over the class lanes + target-logit pick (one
        # extra lane reduce on the XLU); accumulate narrow (tm, 1) values
        # instead of three dense (tm, C) tiles.
        m = jnp.max(x, axis=1, keepdims=True)
        lse = m + jnp.log(jnp.sum(jnp.exp(x - m), axis=1, keepdims=True))
        picked = jnp.sum(jnp.where(hit, x, 0.0), axis=1, keepdims=True)

        acc_ce[...] += jnp.where(valid, lse - picked, 0.0)
        acc_ppd[...] += jnp.where(valid, (1.0 - picked) ** 2, 0.0)
        acc_cnt[...] += jnp.where(valid, 1.0, 0.0)

        @pl.when(k == pl.num_programs(1) - 1)
        def _finalize():
            ce_s = jnp.sum(acc_ce[...])
            ppd_s = jnp.sum(acc_ppd[...])
            cnt_s = jnp.sum(acc_cnt[...])
            lane = lax.broadcasted_iota(jnp.int32, out_ref.shape, 1)
            out_ref[...] = (jnp.where(lane == 0, ce_s, 0.0)
                            + jnp.where(lane == 1, ppd_s, 0.0)
                            + jnp.where(lane == 2, cnt_s, 0.0))

    # TODO(synk): on v7x set num_chunks=2 and swap "parallel" for
    # pltpu.CORE_PARALLEL so the chunk axis actually lands on both TensorCores.
    chunk_sem = "parallel" if num_chunks > 1 else "arbitrary"

    out = pl.pallas_call(
        kernel,
        out_shape=jax.ShapeDtypeStruct((1, 128 * num_chunks), jnp.float32),
        grid_spec=pltpu.PrefetchScalarGridSpec(
            num_scalar_prefetch=0,
            grid=(num_chunks, steps),
            in_specs=[
                pl.BlockSpec((tm, c), lambda ci, k: (ci * steps + k, 0)),
                pl.BlockSpec((tm, 1), lambda ci, k: (ci * steps + k, 0)),
            ],
            out_specs=pl.BlockSpec((1, 128), lambda ci, k: (0, ci)),
            scratch_shapes=[
                pltpu.VMEM((tm, 1), jnp.float32),   # per-row CE terms
                pltpu.VMEM((tm, 1), jnp.float32),   # per-row PPD terms
                pltpu.VMEM((tm, 1), jnp.float32),   # valid-row count
            ],
        ),
        compiler_params=pltpu.CompilerParams(
            dimension_semantics=(chunk_sem, "arbitrary"),
            vmem_limit_bytes=budget,
        ),
    )(logits, t2)

    totals = jnp.sum(out.reshape(num_chunks, 128)[:, :3], axis=0)
    return totals[0], totals[1], totals[2]


# ----------------------------------------------------------------------------
# Kernel 2: classes on sublanes, pixels on lanes -- segmentation CE branch
# ----------------------------------------------------------------------------
def seg_masked_ce_sum(pred, target, *, tn=8192):
    """Masked softmax-CE sums for channels-first logits.

    pred:   (B, K, D, H, W) float logits, straight out of the trilinear resize
            (channels-first, so the big upsampled tensor is never transposed).
    target: (B, D, H, W) int labels, -1 = ignore.
    Returns (ce_sum, valid_count).  K classes sit on the sublane axis and
    pixels stream along the 128-lane axis, so small K does not waste 128/K of
    every vector op the way a (rows, K) lane layout would.
    """
    b, k = pred.shape[0], pred.shape[1]
    dhw = 1
    for s in pred.shape[2:]:
        dhw *= s
    x = pred.reshape(b, k, dhw)
    t = target.reshape(b, 1, dhw).astype(jnp.int32)

    budget = _vmem_budget_bytes()
    # Keep double-buffered (1, K, tn) logits (+ targets + accumulators) well
    # inside the budget.
    cap = max(128, (budget // (6 * max(k, 1) * 4)) // 128 * 128)
    tn_cap = max(128, min(_round_up(tn, 128), cap))
    tn = dhw if dhw <= tn_cap else tn_cap
    steps = max(1, _cdiv(dhw, tn))

    def kernel(x_ref, t_ref, out_ref, acc_ce, acc_cnt):
        bi = pl.program_id(0)
        j = pl.program_id(1)

        @pl.when((bi == 0) & (j == 0))
        def _init():
            acc_ce[...] = jnp.zeros_like(acc_ce)
            acc_cnt[...] = jnp.zeros_like(acc_cnt)

        xv = x_ref[...].astype(jnp.float32)                 # (1, K, tn)
        tv = t_ref[...]                                     # (1, 1, tn)

        col = j * tn + lax.broadcasted_iota(jnp.int32, tv.shape, 2)
        valid = (tv != -1) & (col < dhw)                    # ragged-tail mask
        cls = lax.broadcasted_iota(jnp.int32, xv.shape, 1)  # sublane == class
        hit = (cls == tv) & valid                           # (1, K, tn)

        m = jnp.max(xv, axis=1, keepdims=True)              # (1, 1, tn)
        lse = m + jnp.log(jnp.sum(jnp.exp(xv - m), axis=1, keepdims=True))
        picked = jnp.sum(jnp.where(hit, xv, 0.0), axis=1, keepdims=True)

        acc_ce[...] += jnp.where(valid, lse - picked, 0.0)
        acc_cnt[...] += jnp.where(valid, 1.0, 0.0)

        @pl.when((bi == pl.num_programs(0) - 1) & (j == pl.num_programs(1) - 1))
        def _finalize():
            ce_s = jnp.sum(acc_ce[...])
            cnt_s = jnp.sum(acc_cnt[...])
            lane = lax.broadcasted_iota(jnp.int32, out_ref.shape, 1)
            out_ref[...] = (jnp.where(lane == 0, ce_s, 0.0)
                            + jnp.where(lane == 1, cnt_s, 0.0))

    out = pl.pallas_call(
        kernel,
        out_shape=jax.ShapeDtypeStruct((1, 128), jnp.float32),
        grid_spec=pltpu.PrefetchScalarGridSpec(
            num_scalar_prefetch=0,
            grid=(b, steps),
            in_specs=[
                pl.BlockSpec((1, k, tn), lambda bi, j: (bi, 0, j)),
                pl.BlockSpec((1, 1, tn), lambda bi, j: (bi, 0, j)),
            ],
            out_specs=pl.BlockSpec((1, 128), lambda bi, j: (0, 0)),
            scratch_shapes=[
                pltpu.VMEM((1, 1, tn), jnp.float32),   # per-pixel CE terms
                pltpu.VMEM((1, 1, tn), jnp.float32),   # valid-pixel count
            ],
        ),
        compiler_params=pltpu.CompilerParams(
            dimension_semantics=("arbitrary", "arbitrary"),
            vmem_limit_bytes=budget,
        ),
    )(x, t)

    return out[0, 0], out[0, 1]


# ----------------------------------------------------------------------------
# Full PixelPrototypeCELoss forward
# ----------------------------------------------------------------------------
def pixel_prototype_ce_loss(seg, contrast_logits, contrast_target, target,
                            *, loss_ppc_weight=0.01, loss_ppd_weight=0.001,
                            tm=1024, num_chunks=1):
    # --- PPC (prototype cross-entropy) + PPD (prototype distance), one pass ---
    ce_sum, ppd_sum, cnt = masked_ce_and_ppd_sums(
        contrast_logits, contrast_target, tm=tm, num_chunks=num_chunks)
    cnt = jnp.maximum(cnt, 1.0)   # guard all-ignored (torch would give NaN)
    loss_ppc = ce_sum / cnt
    loss_ppd = ppd_sum / cnt

    # --- segmentation CE on trilinearly upsampled logits (channels-first) ---
    b, k = seg.shape[0], seg.shape[1]
    d, h, w = target.shape[1], target.shape[2], target.shape[3]
    # TODO(synk): trilinear resampling (F.interpolate) is a gather-style op with
    # no clean Pallas tiling; it stays in XLA via jax.image.resize.
    pred = jax.image.resize(seg.astype(jnp.float32), (b, k, d, h, w),
                            method="trilinear", antialias=False)
    seg_ce_sum, seg_cnt = seg_masked_ce_sum(pred, target)
    loss_seg = seg_ce_sum / jnp.maximum(seg_cnt, 1.0)

    return loss_seg + loss_ppc_weight * loss_ppc + loss_ppd_weight * loss_ppd


# ----------------------------------------------------------------------------
# Pure-JAX reference (mirrors the PyTorch module)
# ----------------------------------------------------------------------------
def _masked_ce_ppd_ref(logits, targets):
    t = targets.reshape(-1).astype(jnp.int32)
    x = logits.astype(jnp.float32)
    valid = t != -1
    safe = jnp.where(valid, t, 0)
    picked = jnp.take_along_axis(x, safe[:, None], axis=1)[:, 0]
    m = jnp.max(x, axis=1)
    lse = m + jnp.log(jnp.sum(jnp.exp(x - m[:, None]), axis=1))
    cnt = jnp.maximum(jnp.sum(valid.astype(jnp.float32)), 1.0)
    ce = jnp.sum(jnp.where(valid, lse - picked, 0.0)) / cnt
    ppd = jnp.sum(jnp.where(valid, (1.0 - picked) ** 2, 0.0)) / cnt
    return ce, ppd


def pixel_prototype_ce_loss_ref(seg, contrast_logits, contrast_target, target,
                                loss_ppc_weight=0.01, loss_ppd_weight=0.001):
    loss_ppc, loss_ppd = _masked_ce_ppd_ref(contrast_logits, contrast_target)
    b, k = seg.shape[0], seg.shape[1]
    d, h, w = target.shape[1], target.shape[2], target.shape[3]
    pred = jax.image.resize(seg.astype(jnp.float32), (b, k, d, h, w),
                            method="trilinear", antialias=False)
    pred2d = jnp.moveaxis(pred, 1, -1).reshape(-1, k)
    loss_seg, _ = _masked_ce_ppd_ref(pred2d, target.reshape(-1))
    return loss_seg + loss_ppc_weight * loss_ppc + loss_ppd_weight * loss_ppd


if __name__ == "__main__":
    key = jax.random.PRNGKey(0)
    k1, k2, k3, k4 = jax.random.split(key, 4)

    B, K = 2, 4                      # batch, segmentation classes
    Ds, Hs, Ws = 6, 8, 8             # low-res seg logits
    d, h, w = 12, 16, 16             # target (label volume) resolution
    N, C = 333, 20                   # flattened pixels, #prototypes (ragged N)

    seg = jax.random.normal(k1, (B, K, Ds, Hs, Ws), dtype=jnp.float32)
    contrast_logits = jax.random.normal(k2, (N, C), dtype=jnp.float32)
    # prototype targets in [-1, C-1]; -1 means ignore (passed as float, like torch)
    contrast_target = jax.random.randint(k3, (N,), -1, C).astype(jnp.float32)
    # segmentation targets in [-1, K-1]; -1 means ignore
    target = jax.random.randint(k4, (B, d, h, w), -1, K).astype(jnp.int32)

    loss = jax.jit(pixel_prototype_ce_loss)(seg, contrast_logits,
                                            contrast_target, target)
    loss = jax.block_until_ready(loss)

    ref = pixel_prototype_ce_loss_ref(seg, contrast_logits,
                                      contrast_target, target)
    assert jnp.isfinite(loss), loss
    assert jnp.allclose(loss, ref, atol=1e-3, rtol=1e-3), (loss, ref)

    print("KERNEL_OK")
</pallas_src>

<mosaic_0001>
module attributes {stable_mosaic.version = 11 : i64} {
  func.func @kernel(%arg0: i32, %arg1: i32, %arg2: memref<1x4x3072xf32, #tpu.memory_space<vmem>>, %arg3: memref<1x1x3072xi32, #tpu.memory_space<vmem>>, %arg4: memref<1x128xf32, #tpu.memory_space<vmem>>, %arg5: memref<1x1x3072xf32, #tpu.memory_space<vmem>>, %arg6: memref<1x1x3072xf32, #tpu.memory_space<vmem>>) attributes {dimension_semantics = [#tpu.dimension_semantics<arbitrary>, #tpu.dimension_semantics<arbitrary>], iteration_bounds = array<i64: 2, 1>, scalar_prefetch = 0 : i64, scratch_operands = 2 : i64, tpu.core_type = #tpu.core_type<tc>, window_params = [{transform_indices = @transform_0, window_bounds = array<i64: 1, 4, 3072>}, {transform_indices = @transform_1, window_bounds = array<i64: 1, 1, 3072>}, {pipeline_mode = #tpu.pipeline_mode<synchronous>, transform_indices = @transform_2, window_bounds = array<i64: 1, 128>}]} {
    %c0_i32 = arith.constant 0 : i32
    %0 = arith.cmpi eq, %arg0, %c0_i32 : i32
    %c0_i32_0 = arith.constant 0 : i32
    %1 = arith.cmpi eq, %arg1, %c0_i32_0 : i32
    %2 = arith.andi %0, %1 : i1
    %3 = arith.extui %2 : i1 to i32
    %c0_i32_1 = arith.constant 0 : i32
    %4 = arith.cmpi ne, %3, %c0_i32_1 : i32
    scf.if %4 {
      %cst_28 = arith.constant 0.000000e+00 : f32
      %51 = vector.broadcast %cst_28 : f32 to vector<1x1x3072xf32>
      %c0_29 = arith.constant 0 : index
      %c0_30 = arith.constant 0 : index
      %c0_31 = arith.constant 0 : index
      %52 = vector.load %arg5[%c0_29, %c0_30, %c0_31] : memref<1x1x3072xf32, #tpu.memory_space<vmem>>, vector<1x1x3072xf32>
      tpu.vector_store %arg5[%c0_29, %c0_30, %c0_31], %51 {strides = array<i32>} : memref<1x1x3072xf32, #tpu.memory_space<vmem>>, vector<1x1x3072xf32>,
      %cst_32 = arith.constant 0.000000e+00 : f32
      %53 = vector.broadcast %cst_32 : f32 to vector<1x1x3072xf32>
      %c0_33 = arith.constant 0 : index
      %c0_34 = arith.constant 0 : index
      %c0_35 = arith.constant 0 : index
      %54 = vector.load %arg6[%c0_33, %c0_34, %c0_35] : memref<1x1x3072xf32, #tpu.memory_space<vmem>>, vector<1x1x3072xf32>
      tpu.vector_store %arg6[%c0_33, %c0_34, %c0_35], %53 {strides = array<i32>} : memref<1x1x3072xf32, #tpu.memory_space<vmem>>, vector<1x1x3072xf32>,
    } else {
    }
    %c0 = arith.constant 0 : index
    %c0_2 = arith.constant 0 : index
    %c0_3 = arith.constant 0 : index
    %5 = vector.load %arg2[%c0, %c0_2, %c0_3] : memref<1x4x3072xf32, #tpu.memory_space<vmem>>, vector<1x4x3072xf32>
    %c0_4 = arith.constant 0 : index
    %c0_5 = arith.constant 0 : index
    %c0_6 = arith.constant 0 : index
    %6 = vector.load %arg3[%c0_4, %c0_5, %c0_6] : memref<1x1x3072xi32, #tpu.memory_space<vmem>>, vector<1x1x3072xi32>
    %c3072_i32 = arith.constant 3072 : i32
    %7 = arith.muli %arg1, %c3072_i32 : i32
    %8 = tpu.iota {dimensions = array<i32: 2>} : vector<1x1x3072xi32>
    %9 = vector.broadcast %7 : i32 to vector<1x1x3072xi32>
    %10 = arith.addi %9, %8 : vector<1x1x3072xi32>
    %c-1_i32 = arith.constant -1 : i32
    %11 = vector.broadcast %c-1_i32 : i32 to vector<1x1x3072xi32>
    %12 = arith.cmpi ne, %6, %11 : vector<1x1x3072xi32>
    %c3072_i32_7 = arith.constant 3072 : i32
    %13 = vector.broadcast %c3072_i32_7 : i32 to vector<1x1x3072xi32>
    %14 = arith.cmpi slt, %10, %13 : vector<1x1x3072xi32>
    %15 = arith.andi %12, %14 : vector<1x1x3072xi1>
    %16 = tpu.iota {dimensions = array<i32: 1>} : vector<1x4x3072xi32>
    %17 = vector.broadcast %6 : vector<1x1x3072xi32> to vector<1x4x3072xi32>
    %18 = arith.cmpi eq, %16, %17 : vector<1x4x3072xi32>
    %19 = vector.broadcast %15 : vector<1x1x3072xi1> to vector<1x4x3072xi1>
    %20 = arith.andi %18, %19 : vector<1x4x3072xi1>
    %cst = arith.constant dense<0xFF800000> : vector<1x3072xf32>
    %21 = vector.multi_reduction <maximumf>, %5, %cst [1] : vector<1x4x3072xf32> to vector<1x3072xf32>
    %22 = vector.shape_cast %21 : vector<1x3072xf32> to vector<1x1x3072xf32>
    %23 = vector.broadcast %22 : vector<1x1x3072xf32> to vector<1x4x3072xf32>
    %24 = arith.subf %5, %23 : vector<1x4x3072xf32>
    %25 = math.exp %24 : vector<1x4x3072xf32>
    %cst_8 = arith.constant dense<0.000000e+00> : vector<1x3072xf32>
    %26 = vector.multi_reduction <add>, %25, %cst_8 [1] : vector<1x4x3072xf32> to vector<1x3072xf32>
    %27 = vector.shape_cast %26 : vector<1x3072xf32> to vector<1x1x3072xf32>
    %28 = math.log %27 : vector<1x1x3072xf32>
    %29 = arith.addf %22, %28 : vector<1x1x3072xf32>
    %cst_9 = arith.constant 0.000000e+00 : f32
    %30 = vector.broadcast %cst_9 : f32 to vector<1x4x3072xf32>
    %31 = arith.select %20, %5, %30 : vector<1x4x3072xi1>, vector<1x4x3072xf32>
    %cst_10 = arith.constant dense<0.000000e+00> : vector<1x3072xf32>
    %32 = vector.multi_reduction <add>, %31, %cst_10 [1] : vector<1x4x3072xf32> to vector<1x3072xf32>
    %33 = vector.shape_cast %32 : vector<1x3072xf32> to vector<1x1x3072xf32>
    %c0_11 = arith.constant 0 : index
    %c0_12 = arith.constant 0 : index
    %c0_13 = arith.constant 0 : index
    %34 = vector.load %arg5[%c0_11, %c0_12, %c0_13] : memref<1x1x3072xf32, #tpu.memory_space<vmem>>, vector<1x1x3072xf32>
    %35 = arith.subf %29, %33 : vector<1x1x3072xf32>
    %cst_14 = arith.constant 0.000000e+00 : f32
    %36 = vector.broadcast %cst_14 : f32 to vector<1x1x3072xf32>
    %37 = arith.select %15, %35, %36 : vector<1x1x3072xi1>, vector<1x1x3072xf32>
    %38 = arith.addf %34, %37 : vector<1x1x3072xf32>
    %c0_15 = arith.constant 0 : index
    %c0_16 = arith.constant 0 : index
    %c0_17 = arith.constant 0 : index
    %39 = vector.load %arg5[%c0_15, %c0_16, %c0_17] : memref<1x1x3072xf32, #tpu.memory_space<vmem>>, vector<1x1x3072xf32>
    tpu.vector_store %arg5[%c0_15, %c0_16, %c0_17], %38 {strides = array<i32>} : memref<1x1x3072xf32, #tpu.memory_space<vmem>>, vector<1x1x3072xf32>,
    %c0_18 = arith.constant 0 : index
    %c0_19 = arith.constant 0 : index
    %c0_20 = arith.constant 0 : index
    %40 = vector.load %arg6[%c0_18, %c0_19, %c0_20] : memref<1x1x3072xf32, #tpu.memory_space<vmem>>, vector<1x1x3072xf32>
    %cst_21 = arith.constant 1.000000e+00 : f32
    %cst_22 = arith.constant 0.000000e+00 : f32
    %41 = vector.broadcast %cst_21 : f32 to vector<1x1x3072xf32>
    %42 = vector.broadcast %cst_22 : f32 to vector<1x1x3072xf32>
    %43 = arith.select %15, %41, %42 : vector<1x1x3072xi1>, vector<1x1x3072xf32>
    %44 = arith.addf %40, %43 : vector<1x1x3072xf32>
    %c0_23 = arith.constant 0 : index
    %c0_24 = arith.constant 0 : index
    %c0_25 = arith.constant 0 : index
    %45 = vector.load %arg6[%c0_23, %c0_24, %c0_25] : memref<1x1x3072xf32, #tpu.memory_space<vmem>>, vector<1x1x3072xf32>
    tpu.vector_store %arg6[%c0_23, %c0_24, %c0_25], %44 {strides = array<i32>} : memref<1x1x3072xf32, #tpu.memory_space<vmem>>, vector<1x1x3072xf32>,
    %c1_i32 = arith.constant 1 : i32
    %46 = arith.cmpi eq, %arg0, %c1_i32 : i32
    %c0_i32_26 = arith.constant 0 : i32
    %47 = arith.cmpi eq, %arg1, %c0_i32_26 : i32
    %48 = arith.andi %46, %47 : i1
    %49 = arith.extui %48 : i1 to i32
    %c0_i32_27 = arith.constant 0 : i32
    %50 = arith.cmpi ne, %49, %c0_i32_27 : i32
    scf.if %50 {
      %c0_28 = arith.constant 0 : index
      %c0_29 = arith.constant 0 : index
      %c0_30 = arith.constant 0 : index
      %51 = vector.load %arg5[%c0_28, %c0_29, %c0_30] : memref<1x1x3072xf32, #tpu.memory_space<vmem>>, vector<1x1x3072xf32>
      %52 = vector.shape_cast %51 : vector<1x1x3072xf32> to vector<1x1x1x3072xf32>
      %cst_31 = arith.constant dense<0.000000e+00> : vector<1xf32>
      %53 = vector.multi_reduction <add>, %52, %cst_31 [1, 2, 3] : vector<1x1x1x3072xf32> to vector<1xf32>
      %54 = vector.shape_cast %53 : vector<1xf32> to vector<1x1x1x1xf32>
      %55 = vector.extract %54[0, 0, 0, 0] : f32 from vector<1x1x1x1xf32>
      %c0_32 = arith.constant 0 : index
      %c0_33 = arith.constant 0 : index
      %c0_34 = arith.constant 0 : index
      %56 = vector.load %arg6[%c0_32, %c0_33, %c0_34] : memref<1x1x3072xf32, #tpu.memory_space<vmem>>, vector<1x1x3072xf32>
      %57 = vector.shape_cast %56 : vector<1x1x3072xf32> to vector<1x1x1x3072xf32>
      %cst_35 = arith.constant dense<0.000000e+00> : vector<1xf32>
      %58 = vector.multi_reduction <add>, %57, %cst_35 [1, 2, 3] : vector<1x1x1x3072xf32> to vector<1xf32>
      %59 = vector.shape_cast %58 : vector<1xf32> to vector<1x1x1x1xf32>
      %60 = vector.extract %59[0, 0, 0, 0] : f32 from vector<1x1x1x1xf32>
      %61 = tpu.iota {dimensions = array<i32: 1>} : vector<1x128xi32>
      %c0_i32_36 = arith.constant 0 : i32
      %62 = vector.broadcast %c0_i32_36 : i32 to vector<1x128xi32>
      %63 = arith.cmpi eq, %61, %62 : vector<1x128xi32>
      %cst_37 = arith.constant 0.000000e+00 : f32
      %64 = vector.broadcast %55 : f32 to vector<1x128xf32>
      %65 = vector.broadcast %cst_37 : f32 to vector<1x128xf32>
      %66 = arith.select %63, %64, %65 : vector<1x128xi1>, vector<1x128xf32>
      %c1_i32_38 = arith.constant 1 : i32
      %67 = vector.broadcast %c1_i32_38 : i32 to vector<1x128xi32>
      %68 = arith.cmpi eq, %61, %67 : vector<1x128xi32>
      %cst_39 = arith.constant 0.000000e+00 : f32
      %69 = vector.broadcast %60 : f32 to vector<1x128xf32>
      %70 = vector.broadcast %cst_39 : f32 to vector<1x128xf32>
      %71 = arith.select %68, %69, %70 : vector<1x128xi1>, vector<1x128xf32>
      %72 = arith.addf %66, %71 : vector<1x128xf32>
      %c0_40 = arith.constant 0 : index
      %c0_41 = arith.constant 0 : index
      %73 = vector.load %arg4[%c0_40, %c0_41] : memref<1x128xf32, #tpu.memory_space<vmem>>, vector<1x128xf32>
      tpu.vector_store %arg4[%c0_40, %c0_41], %72 {strides = array<i32>} : memref<1x128xf32, #tpu.memory_space<vmem>>, vector<1x128xf32>,
    } else {
    }
    return
  }
  func.func @transform_0(%arg0: i32, %arg1: i32) -> (i32, i32, i32) {
    %c0_i32 = arith.constant 0 : i32
    %c0_i32_0 = arith.constant 0 : i32
    return %arg0, %c0_i32, %arg1 : i32, i32, i32
  }
  func.func @transform_1(%arg0: i32, %arg1: i32) -> (i32, i32, i32) {
    %c0_i32 = arith.constant 0 : i32
    %c0_i32_0 = arith.constant 0 : i32
    return %arg0, %c0_i32, %arg1 : i32, i32, i32
  }
  func.func @transform_2(%arg0: i32, %arg1: i32) -> (i32, i32) {
    %c0_i32 = arith.constant 0 : i32
    %c0_i32_0 = arith.constant 0 : i32
    %c0_i32_1 = arith.constant 0 : i32
    return %c0_i32, %c0_i32_0 : i32, i32
  }
}

module attributes {stable_mosaic.version = 11 : i64} {
  func.func @kernel(%arg0: i32, %arg1: i32, %arg2: memref<336x20xf32, #tpu.memory_space<vmem>>, %arg3: memref<336x1xi32, #tpu.memory_space<vmem>>, %arg4: memref<1x128xf32, #tpu.memory_space<vmem>>, %arg5: memref<336x1xf32, #tpu.memory_space<vmem>>, %arg6: memref<336x1xf32, #tpu.memory_space<vmem>>, %arg7: memref<336x1xf32, #tpu.memory_space<vmem>>) attributes {dimension_semantics = [#tpu.dimension_semantics<arbitrary>, #tpu.dimension_semantics<arbitrary>], iteration_bounds = array<i64: 1, 1>, scalar_prefetch = 0 : i64, scratch_operands = 3 : i64, tpu.core_type = #tpu.core_type<tc>, window_params = [{transform_indices = @transform_0, window_bounds = array<i64: 336, 20>}, {transform_indices = @transform_1, window_bounds = array<i64: 336, 1>}, {transform_indices = @transform_2, window_bounds = array<i64: 1, 128>}]} {
    %c0_i32 = arith.constant 0 : i32
    %0 = arith.cmpi eq, %arg1, %c0_i32 : i32
    %1 = arith.extui %0 : i1 to i32
    %c0_i32_0 = arith.constant 0 : i32
    %2 = arith.cmpi ne, %1, %c0_i32_0 : i32
    scf.if %2 {
      %cst_26 = arith.constant 0.000000e+00 : f32
      %57 = vector.broadcast %cst_26 : f32 to vector<336x1xf32>
      %c0_27 = arith.constant 0 : index
      %c0_28 = arith.constant 0 : index
      %58 = vector.load %arg5[%c0_27, %c0_28] : memref<336x1xf32, #tpu.memory_space<vmem>>, vector<336x1xf32>
      tpu.vector_store %arg5[%c0_27, %c0_28], %57 {strides = array<i32>} : memref<336x1xf32, #tpu.memory_space<vmem>>, vector<336x1xf32>,
      %cst_29 = arith.constant 0.000000e+00 : f32
      %59 = vector.broadcast %cst_29 : f32 to vector<336x1xf32>
      %c0_30 = arith.constant 0 : index
      %c0_31 = arith.constant 0 : index
      %60 = vector.load %arg6[%c0_30, %c0_31] : memref<336x1xf32, #tpu.memory_space<vmem>>, vector<336x1xf32>
      tpu.vector_store %arg6[%c0_30, %c0_31], %59 {strides = array<i32>} : memref<336x1xf32, #tpu.memory_space<vmem>>, vector<336x1xf32>,
      %cst_32 = arith.constant 0.000000e+00 : f32
      %61 = vector.broadcast %cst_32 : f32 to vector<336x1xf32>
      %c0_33 = arith.constant 0 : index
      %c0_34 = arith.constant 0 : index
      %62 = vector.load %arg7[%c0_33, %c0_34] : memref<336x1xf32, #tpu.memory_space<vmem>>, vector<336x1xf32>
      tpu.vector_store %arg7[%c0_33, %c0_34], %61 {strides = array<i32>} : memref<336x1xf32, #tpu.memory_space<vmem>>, vector<336x1xf32>,
    } else {
    }
    %c0 = arith.constant 0 : index
    %c0_1 = arith.constant 0 : index
    %3 = vector.load %arg2[%c0, %c0_1] : memref<336x20xf32, #tpu.memory_space<vmem>>, vector<336x20xf32>
    %c0_2 = arith.constant 0 : index
    %c0_3 = arith.constant 0 : index
    %4 = vector.load %arg3[%c0_2, %c0_3] : memref<336x1xi32, #tpu.memory_space<vmem>>, vector<336x1xi32>
    %c1_i32 = arith.constant 1 : i32
    %5 = arith.muli %arg0, %c1_i32 : i32
    %6 = arith.addi %5, %arg1 : i32
    %c336_i32 = arith.constant 336 : i32
    %7 = arith.muli %6, %c336_i32 : i32
    %8 = tpu.iota {dimensions = array<i32: 0>} : vector<336x1xi32>
    %9 = vector.broadcast %7 : i32 to vector<336x1xi32>
    %10 = arith.addi %9, %8 : vector<336x1xi32>
    %c-1_i32 = arith.constant -1 : i32
    %11 = vector.broadcast %c-1_i32 : i32 to vector<336x1xi32>
    %12 = arith.cmpi ne, %4, %11 : vector<336x1xi32>
    %c333_i32 = arith.constant 333 : i32
    %13 = vector.broadcast %c333_i32 : i32 to vector<336x1xi32>
    %14 = arith.cmpi slt, %10, %13 : vector<336x1xi32>
    %15 = arith.andi %12, %14 : vector<336x1xi1>
    %16 = tpu.iota {dimensions = array<i32: 1>} : vector<336x20xi32>
    %17 = vector.broadcast %4 : vector<336x1xi32> to vector<336x20xi32>
    %18 = arith.cmpi eq, %16, %17 : vector<336x20xi32>
    %19 = vector.broadcast %15 : vector<336x1xi1> to vector<336x20xi1>
    %20 = arith.andi %18, %19 : vector<336x20xi1>
    %cst = arith.constant dense<0xFF800000> : vector<336xf32>
    %21 = vector.multi_reduction <maximumf>, %3, %cst [1] : vector<336x20xf32> to vector<336xf32>
    %22 = vector.shape_cast %21 : vector<336xf32> to vector<336x1xf32>
    %23 = vector.broadcast %22 : vector<336x1xf32> to vector<336x20xf32>
    %24 = arith.subf %3, %23 : vector<336x20xf32>
    %25 = math.exp %24 : vector<336x20xf32>
    %cst_4 = arith.constant dense<0.000000e+00> : vector<336xf32>
    %26 = vector.multi_reduction <add>, %25, %cst_4 [1] : vector<336x20xf32> to vector<336xf32>
    %27 = vector.shape_cast %26 : vector<336xf32> to vector<336x1xf32>
    %28 = math.log %27 : vector<336x1xf32>
    %29 = arith.addf %22, %28 : vector<336x1xf32>
    %cst_5 = arith.constant 0.000000e+00 : f32
    %30 = vector.broadcast %cst_5 : f32 to vector<336x20xf32>
    %31 = arith.select %20, %3, %30 : vector<336x20xi1>, vector<336x20xf32>
    %cst_6 = arith.constant dense<0.000000e+00> : vector<336xf32>
    %32 = vector.multi_reduction <add>, %31, %cst_6 [1] : vector<336x20xf32> to vector<336xf32>
    %33 = vector.shape_cast %32 : vector<336xf32> to vector<336x1xf32>
    %c0_7 = arith.constant 0 : index
    %c0_8 = arith.constant 0 : index
    %34 = vector.load %arg5[%c0_7, %c0_8] : memref<336x1xf32, #tpu.memory_space<vmem>>, vector<336x1xf32>
    %35 = arith.subf %29, %33 : vector<336x1xf32>
    %cst_9 = arith.constant 0.000000e+00 : f32
    %36 = vector.broadcast %cst_9 : f32 to vector<336x1xf32>
    %37 = arith.select %15, %35, %36 : vector<336x1xi1>, vector<336x1xf32>
    %38 = arith.addf %34, %37 : vector<336x1xf32>
    %c0_10 = arith.constant 0 : index
    %c0_11 = arith.constant 0 : index
    %39 = vector.load %arg5[%c0_10, %c0_11] : memref<336x1xf32, #tpu.memory_space<vmem>>, vector<336x1xf32>
    tpu.vector_store %arg5[%c0_10, %c0_11], %38 {strides = array<i32>} : memref<336x1xf32, #tpu.memory_space<vmem>>, vector<336x1xf32>,
    %c0_12 = arith.constant 0 : index
    %c0_13 = arith.constant 0 : index
    %40 = vector.load %arg6[%c0_12, %c0_13] : memref<336x1xf32, #tpu.memory_space<vmem>>, vector<336x1xf32>
    %cst_14 = arith.constant 1.000000e+00 : f32
    %41 = vector.broadcast %cst_14 : f32 to vector<336x1xf32>
    %42 = arith.subf %41, %33 : vector<336x1xf32>
    %43 = arith.mulf %42, %42 : vector<336x1xf32>
    %cst_15 = arith.constant 0.000000e+00 : f32
    %44 = vector.broadcast %cst_15 : f32 to vector<336x1xf32>
    %45 = arith.select %15, %43, %44 : vector<336x1xi1>, vector<336x1xf32>
    %46 = arith.addf %40, %45 : vector<336x1xf32>
    %c0_16 = arith.constant 0 : index
    %c0_17 = arith.constant 0 : index
    %47 = vector.load %arg6[%c0_16, %c0_17] : memref<336x1xf32, #tpu.memory_space<vmem>>, vector<336x1xf32>
    tpu.vector_store %arg6[%c0_16, %c0_17], %46 {strides = array<i32>} : memref<336x1xf32, #tpu.memory_space<vmem>>, vector<336x1xf32>,
    %c0_18 = arith.constant 0 : index
    %c0_19 = arith.constant 0 : index
    %48 = vector.load %arg7[%c0_18, %c0_19] : memref<336x1xf32, #tpu.memory_space<vmem>>, vector<336x1xf32>
    %cst_20 = arith.constant 1.000000e+00 : f32
    %cst_21 = arith.constant 0.000000e+00 : f32
    %49 = vector.broadcast %cst_20 : f32 to vector<336x1xf32>
    %50 = vector.broadcast %cst_21 : f32 to vector<336x1xf32>
    %51 = arith.select %15, %49, %50 : vector<336x1xi1>, vector<336x1xf32>
    %52 = arith.addf %48, %51 : vector<336x1xf32>
    %c0_22 = arith.constant 0 : index
    %c0_23 = arith.constant 0 : index
    %53 = vector.load %arg7[%c0_22, %c0_23] : memref<336x1xf32, #tpu.memory_space<vmem>>, vector<336x1xf32>
    tpu.vector_store %arg7[%c0_22, %c0_23], %52 {strides = array<i32>} : memref<336x1xf32, #tpu.memory_space<vmem>>, vector<336x1xf32>,
    %c0_i32_24 = arith.constant 0 : i32
    %54 = arith.cmpi eq, %arg1, %c0_i32_24 : i32
    %55 = arith.extui %54 : i1 to i32
    %c0_i32_25 = arith.constant 0 : i32
    %56 = arith.cmpi ne, %55, %c0_i32_25 : i32
    scf.if %56 {
      %c0_26 = arith.constant 0 : index
      %c0_27 = arith.constant 0 : index
      %57 = vector.load %arg5[%c0_26, %c0_27] : memref<336x1xf32, #tpu.memory_space<vmem>>, vector<336x1xf32>
      %58 = vector.shape_cast %57 : vector<336x1xf32> to vector<1x336x1xf32>
      %cst_28 = arith.constant dense<0.000000e+00> : vector<1xf32>
      %59 = vector.multi_reduction <add>, %58, %cst_28 [1, 2] : vector<1x336x1xf32> to vector<1xf32>
      %60 = vector.shape_cast %59 : vector<1xf32> to vector<1x1x1xf32>
      %61 = vector.extract %60[0, 0, 0] : f32 from vector<1x1x1xf32>
      %c0_29 = arith.constant 0 : index
      %c0_30 = arith.constant 0 : index
      %62 = vector.load %arg6[%c0_29, %c0_30] : memref<336x1xf32, #tpu.memory_space<vmem>>, vector<336x1xf32>
      %63 = vector.shape_cast %62 : vector<336x1xf32> to vector<1x336x1xf32>
      %cst_31 = arith.constant dense<0.000000e+00> : vector<1xf32>
      %64 = vector.multi_reduction <add>, %63, %cst_31 [1, 2] : vector<1x336x1xf32> to vector<1xf32>
      %65 = vector.shape_cast %64 : vector<1xf32> to vector<1x1x1xf32>
      %66 = vector.extract %65[0, 0, 0] : f32 from vector<1x1x1xf32>
      %c0_32 = arith.constant 0 : index
      %c0_33 = arith.constant 0 : index
      %67 = vector.load %arg7[%c0_32, %c0_33] : memref<336x1xf32, #tpu.memory_space<vmem>>, vector<336x1xf32>
      %68 = vector.shape_cast %67 : vector<336x1xf32> to vector<1x336x1xf32>
      %cst_34 = arith.constant dense<0.000000e+00> : vector<1xf32>
      %69 = vector.multi_reduction <add>, %68, %cst_34 [1, 2] : vector<1x336x1xf32> to vector<1xf32>
      %70 = vector.shape_cast %69 : vector<1xf32> to vector<1x1x1xf32>
      %71 = vector.extract %70[0, 0, 0] : f32 from vector<1x1x1xf32>
      %72 = tpu.iota {dimensions = array<i32: 1>} : vector<1x128xi32>
      %c0_i32_35 = arith.constant 0 : i32
      %73 = vector.broadcast %c0_i32_35 : i32 to vector<1x128xi32>
      %74 = arith.cmpi eq, %72, %73 : vector<1x128xi32>
      %cst_36 = arith.constant 0.000000e+00 : f32
      %75 = vector.broadcast %61 : f32 to vector<1x128xf32>
      %76 = vector.broadcast %cst_36 : f32 to vector<1x128xf32>
      %77 = arith.select %74, %75, %76 : vector<1x128xi1>, vector<1x128xf32>
      %c1_i32_37 = arith.constant 1 : i32
      %78 = vector.broadcast %c1_i32_37 : i32 to vector<1x128xi32>
      %79 = arith.cmpi eq, %72, %78 : vector<1x128xi32>
      %cst_38 = arith.constant 0.000000e+00 : f32
      %80 = vector.broadcast %66 : f32 to vector<1x128xf32>
      %81 = vector.broadcast %cst_38 : f32 to vector<1x128xf32>
      %82 = arith.select %79, %80, %81 : vector<1x128xi1>, vector<1x128xf32>
      %83 = arith.addf %77, %82 : vector<1x128xf32>
      %c2_i32 = arith.constant 2 : i32
      %84 = vector.broadcast %c2_i32 : i32 to vector<1x128xi32>
      %85 = arith.cmpi eq, %72, %84 : vector<1x128xi32>
      %cst_39 = arith.constant 0.000000e+00 : f32
      %86 = vector.broadcast %71 : f32 to vector<1x128xf32>
      %87 = vector.broadcast %cst_39 : f32 to vector<1x128xf32>
      %88 = arith.select %85, %86, %87 : vector<1x128xi1>, vector<1x128xf32>
      %89 = arith.addf %83, %88 : vector<1x128xf32>
      %c0_40 = arith.constant 0 : index
      %c0_41 = arith.constant 0 : index
      %90 = vector.load %arg4[%c0_40, %c0_41] : memref<1x128xf32, #tpu.memory_space<vmem>>, vector<1x128xf32>
      tpu.vector_store %arg4[%c0_40, %c0_41], %89 {strides = array<i32>} : memref<1x128xf32, #tpu.memory_space<vmem>>, vector<1x128xf32>,
    } else {
    }
    return
  }
  func.func @transform_0(%arg0: i32, %arg1: i32) -> (i32, i32) {
    %c1_i32 = arith.constant 1 : i32
    %0 = arith.muli %arg0, %c1_i32 : i32
    %1 = arith.addi %0, %arg1 : i32
    %c0_i32 = arith.constant 0 : i32
    %c0_i32_0 = arith.constant 0 : i32
    return %1, %c0_i32 : i32, i32
  }
  func.func @transform_1(%arg0: i32, %arg1: i32) -> (i32, i32) {
    %c1_i32 = arith.constant 1 : i32
    %0 = arith.muli %arg0, %c1_i32 : i32
    %1 = arith.addi %0, %arg1 : i32
    %c0_i32 = arith.constant 0 : i32
    %c0_i32_0 = arith.constant 0 : i32
    return %1, %c0_i32 : i32, i32
  }
  func.func @transform_2(%arg0: i32, %arg1: i32) -> (i32, i32) {
    %c0_i32 = arith.constant 0 : i32
    %c0_i32_0 = arith.constant 0 : i32
    return %c0_i32, %arg0 : i32, i32
  }
}

</mosaic_0001>

<bundles_post_ra>
// kernel: pixel_prototype_ce_loss.3
= control target key start
LH: loop header
LB: loop body
LE: loop exit
PB: predicated region body
PF: predicated region fallthrough
CT: control target
= control target key end

     0   :  { %s1975_s9 = smov 0   ;;  %s1977_s10 = smov 0   ;;  %s3072_s0 = inlined_call_operand.vmem [shape: f32[2,4,3072], index: 0, kind: input, shape index: {}]   ;;  %s3073_s1 = inlined_call_operand.vmem [shape: s32[2,1,3072], index: 1, kind: input, shape index: {}]   ;;  %s3074_s2 = inlined_call_operand.vmem [shape: f32[1,128], index: 2, kind: output, shape index: {}]  }
   0x1   :  { %s1979_s11 = smov 0  }
   0x2 LB: > { %s24_s12 = sadd.s32 1, %s1950_s10  ;;  %p1818_p0 = scmp.ge.s32.totalorder %s1954_s11, 1  ;;  %s1954_s11 = sphi %s1979_s11, %s12_s11   ;;  %s1950_s10 = sphi %s1977_s10, %s3395_s10   ;;  %s1946_s9 = sphi %s1975_s9, %s3394_s9  }
   0x3   : > { %p26_p1 = scmp.ge.s32.totalorder %s24_s12, 2  ;;  %p142_p2 = scmp.lt.s32.totalorder %s1954_s11, 3 }
   0x5   : > { %s3397_s12 = smov (%p26_p1, %s24_s12), 0  ;;  %p143_p3 = pnand %p1818_p0, %p142_p2 }
   0x7   : > { %146 = sbr.rel (%p143_p3) target bundleno = 510 (0x1fe), region = 28 }
   0xc   : > { %p172_p4 = scmp.lt.s32.totalorder %s1946_s9, 1  ;;  %p190_p5 = scmp.eq.s32.totalorder %s1946_s9, 0 }
   0xd   : > { %v1956_v0 = vmov (%p190_p5), 0.0  }
   0xe   : > { %s173_s13 = scalar_select %p172_p4, %s1946_s9, 1  ;;  %196 = vst [vmem:[#allocation2 + $0x10] sm:$0xff] (%p190_p5), %v1956_v0 }
   0xf   : > { %195 = sbr.rel (!%p190_p5) target bundleno = 20 (0x14), region = 32  ;;  %197 = vst [vmem:[#allocation2] sm:$0xff] (%p190_p5), %v1956_v0 }
  0x10   : > { %s1826_s14 = smul.u32 96, %s173_s13  ;;  %198 = vst [vmem:[#allocation2 + $0x8] sm:$0xff] (%p190_p5), %v1956_v0 }
  0x11   : > { %s1827_s15 = smul.u32 24, %s173_s13  ;;  %199 = vst [vmem:[#allocation3 + $0x8] sm:$0xff] (%p190_p5), %v1956_v0 }
  0x12   : > { %s2001_s18 = scalar_lea.vmem %s3072_s0, %s1826_s14  ;;  %200 = vst [vmem:[#allocation3] sm:$0xff] (%p190_p5), %v1956_v0 }
  0x13   : > { %s2006_s21 = scalar_lea.vmem %s3073_s1, %s1827_s15  ;;  %201 = vst [vmem:[#allocation3 + $0x10] sm:$0xff] (%p190_p5), %v1956_v0 }
  0x14 PF: > { %v2009_v1 = vld [vmem:[%s2001_s18] sm:$0xff]  ;;  %v2012_v2 = vld [vmem:[%s2001_s18 + $0x8] sm:$0xff]  ;;  %v2015_v3 = vld [vmem:[%s2001_s18 + $0x10] sm:$0xff]  ;;  %p1525_p6 = scmp.eq.s32.totalorder %s1946_s9, 1  ;;  %vm3101_vm0 = vcmask 1043456   ;;  %vm3099_vm1 = vcmask 1040384  }
  0x15   : > { %511 = vst [vmem:[#allocation1] ss:$2 sm:$0xff] %v2009_v1  ;;  %v2020_v4 = vld [vmem:[%s2001_s18 + $0x18] sm:$0xff]  ;;  %v2030_v17 = vld [vmem:[%s2001_s18 + $0x20] sm:$0xff]  ;;  %v2034_v23 = vld [vmem:[%s2001_s18 + $0x28] sm:$0xff]  ;;  %vm3098_vm2 = vcmask 1042434  }
  0x16   : > { %513 = vst [vmem:[#allocation1 + $0x10] ss:$2 sm:$0xff] %v2012_v2  ;;  %v2038_v28 = vld [vmem:[%s2001_s18 + $0x30] sm:$0xff]  ;;  %v2044_v38 = vld [vmem:[%s2001_s18 + $0x38] sm:$0xff]  ;;  %vm3096_vm3 = vcmask 1041408   ;;  %vm3095_vm4 = vcmask 1044484  }
  0x17   : > { %515 = vst [vmem:[#allocation1 + $0x20] ss:$2 sm:$0xff] %v2015_v3  ;;  %vm3094_vm5 = vcmask 1046534   ;;  %vm3093_vm6 = vcmask 1045508  }
  0x18   : > { %517 = vst [vmem:[#allocation1 + $0x30] ss:$2 sm:$0xff] %v2020_v4 }
  0x1c   : > { %v518_v5 = vld.sshfl [vmem:[#allocation1] sm:$0xff pattern:$0x75316420]  ;;  %v519_v6 = vld.sshfl [vmem:[#allocation1 + $0x8] sm:$0xff pattern:$0x75316420] }
  0x1d   : > { %v574_v7 = vsel %vm3101_vm0, %v518_v5, -inf  ;;  %v581_v8 = vsel %vm3101_vm0, %v519_v6, -inf  ;;  %v520_v9 = vld.sshfl [vmem:[#allocation1 + $0x10] sm:$0xff pattern:$0x75316420] }
  0x1e   : > { %v575_v10 = vrot.slane %v574_v7, 4  ;;  %v582_v11 = vrot.slane %v581_v8, 4  ;;  %v521_v12 = vld.sshfl [vmem:[#allocation1 + $0x18] sm:$0xff pattern:$0x75316420]  ;;  %v588_v13 = vsel %vm3101_vm0, %v520_v9, -inf }
  0x1f   : > { %v589_v14 = vrot.slane %v588_v13, 4  ;;  %v595_v15 = vsel %vm3101_vm0, %v521_v12, -inf  ;;  %v522_v16 = vld.sshfl [vmem:[#allocation1 + $0x20] sm:$0xff pattern:$0x75316420] }
  0x20   : > { %v576_v18 = vmax.f32 %v574_v7, %v575_v10  ;;  %v583_v19 = vmax.f32 %v581_v8, %v582_v11  ;;  %v596_v20 = vrot.slane %v595_v15, 4  ;;  %v523_v21 = vld.sshfl [vmem:[#allocation1 + $0x28] sm:$0xff pattern:$0x75316420]  ;;  %v602_v22 = vsel %vm3101_vm0, %v522_v16, -inf }
  0x21   : > { %v590_v24 = vmax.f32 %v588_v13, %v589_v14  ;;  %v603_v25 = vrot.slane %v602_v22, 4  ;;  %v609_v26 = vsel %vm3101_vm0, %v523_v21, -inf  ;;  %v524_v27 = vld.sshfl [vmem:[#allocation1 + $0x30] sm:$0xff pattern:$0x75316420] }
  0x22   : > { %v577_v29 = vrot.slane %v576_v18, 2  ;;  %v584_v30 = vrot.slane %v583_v19, 2  ;;  %v597_v31 = vmax.f32 %v595_v15, %v596_v20  ;;  %v610_v32 = vrot.slane %v609_v26, 4  ;;  %v525_v33 = vld.sshfl [vmem:[#allocation1 + $0x38] sm:$0xff pattern:$0x75316420] }
  0x23   : > { %v591_v34 = vrot.slane %v590_v24, 2  ;;  %v604_v35 = vmax.f32 %v602_v22, %v603_v25  ;;  %v616_v36 = vsel %vm3101_vm0, %v524_v27, -inf  ;;  %v623_v37 = vsel %vm3101_vm0, %v525_v33, -inf  ;;  %526 = vst [vmem:[#allocation1] ss:$2 sm:$0xff] %v2030_v17 }
  0x24   : > { %v578_v39 = vmax.f32 %v576_v18, %v577_v29  ;;  %v585_v40 = vmax.f32 %v583_v19, %v584_v30  ;;  %v598_v41 = vrot.slane %v597_v31, 2  ;;  %v611_v42 = vmax.f32 %v609_v26, %v610_v32  ;;  %527 = vst [vmem:[#allocation1 + $0x10] ss:$2 sm:$0xff] %v2034_v23  ;;  %v2072_v29 = vld [vmem:[%s2001_s18 + $0x40] sm:$0xff] }
  0x25   : > { %v592_v43 = vmax.f32 %v590_v24, %v591_v34  ;;  %v605_v44 = vrot.slane %v604_v35, 2  ;;  %v617_v45 = vrot.slane %v616_v36, 4  ;;  %v624_v46 = vrot.slane %v623_v37, 4  ;;  %528 = vst [vmem:[#allocation1 + $0x20] ss:$2 sm:$0xff] %v2038_v28 }
  0x26   : > { %v579_v47 = vrot.slane %v578_v39, 1  ;;  %v586_v48 = vrot.slane %v585_v40, 1  ;;  %v599_v49 = vmax.f32 %v597_v31, %v598_v41  ;;  %v612_v50 = vrot.slane %v611_v42, 2  ;;  %529 = vst [vmem:[#allocation1 + $0x30] ss:$2 sm:$0xff] %v2044_v38 }
  0x27   : > { %v593_v51 = vrot.slane %v592_v43, 1  ;;  %v606_v52 = vmax.f32 %v604_v35, %v605_v44  ;;  %v618_v53 = vmax.f32 %v616_v36, %v617_v45  ;;  %v625_v54 = vmax.f32 %v623_v37, %v624_v46  ;;  %v2080_v36 = vld [vmem:[%s2001_s18 + $0x48] sm:$0xff] }
  0x28   : > { %v2049_v55 = vmax.f32 %v585_v40, %v586_v48  ;;  %v600_v56 = vrot.slane %v599_v49, 1  ;;  %v613_v57 = vmax.f32 %v611_v42, %v612_v50  ;;  %v2051_v58 = vmax.f32 %v578_v39, %v579_v47 }
  0x29   : > { %v607_v59 = vrot.slane %v606_v52, 1  ;;  %v619_v60 = vrot.slane %v618_v53, 2  ;;  %v626_v61 = vrot.slane %v625_v54, 2  ;;  %v2054_v63 = vmax.f32 %v592_v43, %v593_v51  ;;  %v2086_v43 = vld [vmem:[%s2001_s18 + $0x50] sm:$0xff] }
  0x2a   : > { %v766_v62 = vrot.slane %v2049_v55, 4  ;;  %v2056_v0 = vmax.f32 %v599_v49, %v600_v56  ;;  %v614_v5 = vrot.slane %v613_v57, 1  ;;  %v530_v6 = vld.sshfl [vmem:[#allocation1] sm:$0xff pattern:$0x75316420] }
  0x2b   : > { %v2058_v7 = vmax.f32 %v606_v52, %v607_v59  ;;  %v620_v8 = vmax.f32 %v618_v53, %v619_v60  ;;  %v627_v9 = vmax.f32 %v625_v54, %v626_v61  ;;  %v531_v10 = vld.sshfl [vmem:[#allocation1 + $0x8] sm:$0xff pattern:$0x75316420]  ;;  %v630_v11 = vsel %vm3101_vm0, %v530_v6, -inf  ;;  %v2093_v52 = vld [vmem:[%s2001_s18 + $0x58] sm:$0xff] }
  0x2c   : > { %v778_v12 = vsel %vm3101_vm0, %v2051_v58, %v766_v62  ;;  %v767_v13 = vrot.slane %v2056_v0, 4  ;;  %v2064_v14 = vmax.f32 %v613_v57, %v614_v5  ;;  %v631_v15 = vrot.slane %v630_v11, 4  ;;  %v532_v21 = vld.sshfl [vmem:[#allocation1 + $0x10] sm:$0xff pattern:$0x75316420] }
  0x2d   : > { %v802_v16 = vsub.f32 %v2009_v1, %v778_v12  ;;  %v621_v18 = vrot.slane %v620_v8, 1  ;;  %v628_v19 = vrot.slane %v627_v9, 1  ;;  %v637_v20 = vsel %vm3101_vm0, %v531_v10, -inf  ;;  %v533_v27 = vld.sshfl [vmem:[#allocation1 + $0x18] sm:$0xff pattern:$0x75316420] }
  0x2e   : > { %v779_v22 = vsel %vm3101_vm0, %v2054_v63, %v767_v13  ;;  %v768_v24 = vrot.slane %v2064_v14, 4  ;;  %v632_v25 = vmax.f32 %v630_v11, %v631_v15  ;;  %v638_v26 = vrot.slane %v637_v20, 4  ;;  %v534_v34 = vld.sshfl [vmem:[#allocation1 + $0x20] sm:$0xff pattern:$0x75316420] }
  0x2f   : > { %v814_v30 = vmul.f32 1.442695, %v802_v16  ;;  %v803_v31 = vsub.f32 %v2012_v2, %v779_v22  ;;  %v2075_v32 = vmax.f32 %v620_v8, %v621_v18  ;;  %v2077_v33 = vmax.f32 %v627_v9, %v628_v19  ;;  %v535_v35 = vld.sshfl [vmem:[#allocation1 + $0x28] sm:$0xff pattern:$0x75316420] }
  0x30   : > { %v780_v37 = vsel %vm3101_vm0, %v2058_v7, %v768_v24  ;;  %v633_v39 = vrot.slane %v632_v25, 2  ;;  %v639_v40 = vmax.f32 %v637_v20, %v638_v26  ;;  %v644_v41 = vsel %vm3101_vm0, %v532_v21, -inf  ;;  %v536_v42 = vld.sshfl [vmem:[#allocation1 + $0x30] sm:$0xff pattern:$0x75316420] }
  0x31   : > { %1860 = vpow2.f32 %v814_v30  ;;  %v816_v44 = vmul.f32 1.442695, %v803_v31  ;;  %v804_v45 = vsub.f32 %v2015_v3, %v780_v37  ;;  %v769_v46 = vrot.slane %v2077_v33, 4  ;;  %v537_v47 = vld.sshfl [vmem:[#allocation1 + $0x38] sm:$0xff pattern:$0x75316420] }
  0x32   : > { %v634_v48 = vmax.f32 %v632_v25, %v633_v39  ;;  %v640_v49 = vrot.slane %v639_v40, 2  ;;  %v645_v50 = vrot.slane %v644_v41, 4  ;;  %v651_v51 = vsel %vm3101_vm0, %v533_v27, -inf  ;;  %538 = vst [vmem:[#allocation1] ss:$2 sm:$0xff] %v2072_v29 }
  0x33   : > { %1862 = vpow2.f32 %v816_v44  ;;  %v818_v53 = vmul.f32 1.442695, %v804_v45  ;;  %v781_v54 = vsel %vm3101_vm0, %v2075_v32, %v769_v46  ;;  %v652_v56 = vrot.slane %v651_v51, 4  ;;  %539 = vst [vmem:[#allocation1 + $0x10] ss:$2 sm:$0xff] %v2080_v36 }
  0x34   : > { %v805_v57 = vsub.f32 %v2020_v4, %v781_v54  ;;  %v635_v59 = vrot.slane %v634_v48, 1  ;;  %v641_v60 = vmax.f32 %v639_v40, %v640_v49  ;;  %v646_v61 = vmax.f32 %v644_v41, %v645_v50  ;;  %540 = vst [vmem:[#allocation1 + $0x20] ss:$2 sm:$0xff] %v2086_v43 }
  0x35   : > { %1864 = vpow2.f32 %v818_v53  ;;  %v653_v62 = vmax.f32 %v651_v51, %v652_v56  ;;  %v658_v5 = vsel %vm3101_vm0, %v534_v34, -inf  ;;  %v665_v6 = vsel %vm3101_vm0, %v535_v35, -inf  ;;  %541 = vst [vmem:[#allocation1 + $0x30] ss:$2 sm:$0xff] %v2093_v52 }
  0x36   : > { %v820_v8 = vmul.f32 1.442695, %v805_v57  ;;  %v2103_v9 = vmax.f32 %v634_v48, %v635_v59  ;;  %v642_v10 = vrot.slane %v641_v60, 1  ;;  %v647_v11 = vrot.slane %v646_v61, 2 }
  0x37   : > { %v1861_v12 = vpop.eup %1860  ;;  %v654_v13 = vrot.slane %v653_v62, 2  ;;  %v659_v15 = vrot.slane %v658_v5, 4  ;;  %v666_v16 = vrot.slane %v665_v6, 4  ;;  %v672_v18 = vsel %vm3101_vm0, %v536_v42, -inf }
  0x38   : > { %3106 = vst [vmem:[#allocation4_spill] sm:$0xff] %v2103_v9  ;;  %1866 = vpow2.f32 %v820_v8  ;;  %v2106_v19 = vmax.f32 %v641_v60, %v642_v10  ;;  %v648_v20 = vmax.f32 %v646_v61, %v647_v11  ;;  %v673_v21 = vrot.slane %v672_v18, 4 }
  0x39   : > { %v1863_v22 = vpop.eup %1862  ;;  %v655_v24 = vmax.f32 %v653_v62, %v654_v13  ;;  %v660_v25 = vmax.f32 %v658_v5, %v659_v15  ;;  %v667_v26 = vmax.f32 %v665_v6, %v666_v16  ;;  %v679_v27 = vsel %vm3101_vm0, %v537_v47, -inf  ;;  %v542_v30 = vld.sshfl [vmem:[#allocation1] sm:$0xff pattern:$0x75316420] }
  0x3a   : > { %3107 = vst [vmem:[#allocation5_spill] sm:$0xff] %v2106_v19  ;;  %v770_v31 = vrot.slane %v2106_v19, 4  ;;  %v649_v34 = vrot.slane %v648_v20, 1  ;;  %v674_v35 = vmax.f32 %v672_v18, %v673_v21  ;;  %v680_v37 = vrot.slane %v679_v27, 4 }
  0x3b   : > { %v543_v39 = vld.sshfl [vmem:[#allocation1 + $0x8] sm:$0xff pattern:$0x75316420]  ;;  %v1865_v40 = vpop.eup %1864  ;;  %v656_v41 = vrot.slane %v655_v24, 1  ;;  %v661_v42 = vrot.slane %v660_v25, 2  ;;  %v668_v44 = vrot.slane %v667_v26, 2 }
  0x3c   : > { %v686_v45 = vsel %vm3101_vm0, %v542_v30, -inf  ;;  %850 = vst [vmem:[#allocation1] ss:$2 sm:$0xff] %v1861_v12  ;;  %v782_v46 = vsel %vm3101_vm0, %v2103_v9, %v770_v31  ;;  %v2113_v48 = vmax.f32 %v648_v20, %v649_v34  ;;  %v675_v47 = vrot.slane %v674_v35, 2 }
  0x3d   : > { %v681_v49 = vmax.f32 %v679_v27, %v680_v37  ;;  %v806_v50 = vsub.f32 %v2030_v17, %v782_v46  ;;  %v2116_v51 = vmax.f32 %v655_v24, %v656_v41  ;;  %v662_v53 = vmax.f32 %v660_v25, %v661_v42  ;;  %v544_v56 = vld.sshfl [vmem:[#allocation1 + $0x10] sm:$0xff pattern:$0x75316420]  ;;  %v545_v57 = vld.sshfl [vmem:[#allocation1 + $0x18] sm:$0xff pattern:$0x75316420] }
  0x3e   : > { %3108 = vst [vmem:[#allocation6_spill] sm:$0xff] %v2113_v48  ;;  %v669_v54 = vmax.f32 %v667_v26, %v668_v44  ;;  %v1867_v59 = vpop.eup %1866  ;;  %v676_v60 = vmax.f32 %v674_v35, %v675_v47  ;;  %v687_v62 = vrot.slane %v686_v45, 4  ;;  %v693_v5 = vsel %vm3101_vm0, %v543_v39, -inf  ;;  %v546_v6 = vld.sshfl [vmem:[#allocation1 + $0x20] sm:$0xff pattern:$0x75316420] }
  0x3f   : > { %3109 = vst [vmem:[#allocation7_spill] sm:$0xff] %v2116_v51  ;;  %v682_v61 = vrot.slane %v681_v49, 2  ;;  %v822_v8 = vmul.f32 1.442695, %v806_v50  ;;  %v771_v10 = vrot.slane %v2116_v51, 4  ;;  %v663_v11 = vrot.slane %v662_v53, 1 }
  0x40   : > { %852 = vst [vmem:[#allocation1 + $0x10] ss:$2 sm:$0xff] %v1863_v22  ;;  %v670_v12 = vrot.slane %v669_v54, 1  ;;  %v677_v13 = vrot.slane %v676_v60, 1  ;;  %v688_v16 = vmax.f32 %v686_v45, %v687_v62  ;;  %v694_v18 = vrot.slane %v693_v5, 4 }
  0x41   : > { %v683_v15 = vmax.f32 %v681_v49, %v682_v61  ;;  %v547_v20 = vld.sshfl [vmem:[#allocation1 + $0x28] sm:$0xff pattern:$0x75316420]  ;;  %1868 = vpow2.f32 %v822_v8  ;;  %v783_v21 = vsel %vm3101_vm0, %v2113_v48, %v771_v10  ;;  %v2122_v24 = vmax.f32 %v662_v53, %v663_v11  ;;  %v548_v22 = vld.sshfl [vmem:[#allocation1 + $0x30] sm:$0xff pattern:$0x75316420] }
  0x42   : > { %v2124_v25 = vmax.f32 %v669_v54, %v670_v12  ;;  %854 = vst [vmem:[#allocation1 + $0x20] ss:$2 sm:$0xff] %v1865_v40  ;;  %v807_v26 = vsub.f32 %v2034_v23, %v783_v21  ;;  %v2127_v27 = vmax.f32 %v676_v60, %v677_v13  ;;  %v689_v31 = vrot.slane %v688_v16, 2  ;;  %v549_v34 = vld.sshfl [vmem:[#allocation1 + $0x38] sm:$0xff pattern:$0x75316420] }
  0x43   : > { %3110 = vst [vmem:[#allocation8_spill] sm:$0xff] %v2122_v24  ;;  %v684_v30 = vrot.slane %v683_v15, 1  ;;  %v695_v37 = vmax.f32 %v693_v5, %v694_v18  ;;  %v700_v39 = vsel %vm3101_vm0, %v544_v56, -inf  ;;  %v707_v41 = vsel %vm3101_vm0, %v545_v57, -inf }
  0x44   : > { %3111 = vst [vmem:[#allocation9_spill] sm:$0xff] %v2124_v25  ;;  %v772_v35 = vrot.slane %v2124_v25, 4  ;;  %v824_v42 = vmul.f32 1.442695, %v807_v26  ;;  %v690_v40 = vmax.f32 %v688_v16, %v689_v31  ;;  %v701_v45 = vrot.slane %v700_v39, 4 }
  0x45   : > { %3112 = vst [vmem:[#allocation10_spill] sm:$0xff] %v2127_v27  ;;  %v2132_v44 = vmax.f32 %v683_v15, %v684_v30  ;;  %v2134_v46 = vld.sshfl [vmem:[#allocation1] sm:$0xff pattern:$0x75316420]  ;;  %v696_v49 = vrot.slane %v695_v37, 2  ;;  %v708_v50 = vrot.slane %v707_v41, 4 }
  0x46   : > { %856 = vst [vmem:[#allocation1 + $0x30] ss:$2 sm:$0xff] %v1867_v59  ;;  %v784_v47 = vsel %vm3101_vm0, %v2122_v24, %v772_v35  ;;  %v714_v53 = vsel %vm3101_vm0, %v546_v6, -inf  ;;  %v2139_v54 = vld.sshfl [vmem:[#allocation1 + $0x8] sm:$0xff pattern:$0x75316420]  ;;  %1870 = vpow2.f32 %v824_v42  ;;  %v702_v62 = vmax.f32 %v700_v39, %v701_v45 }
  0x47   : > { %3113 = vst [vmem:[#allocation11_spill] sm:$0xff] %v2132_v44  ;;  %v808_v56 = vsub.f32 %v2038_v28, %v784_v47  ;;  %v773_v57 = vrot.slane %v2132_v44, 4  ;;  %v691_v59 = vrot.slane %v690_v40, 1  ;;  %v1869_v60 = vpop.eup %1868  ;;  %v697_v61 = vmax.f32 %v695_v37, %v696_v49  ;;  %v2149_v21 = vld.sshfl [vmem:[#allocation1 + $0x10] sm:$0xff pattern:$0x75316420] }
  0x48   : > { %v709_v5 = vmax.f32 %v707_v41, %v708_v50  ;;  %v715_v8 = vrot.slane %v714_v53, 4  ;;  %v721_v6 = vsel %vm3101_vm0, %v547_v20, -inf  ;;  %865 = vst [vmem:[#allocation1] ss:$2 sm:$0xff] %v1869_v60  ;;  %v703_v16 = vrot.slane %v702_v62, 2 }
  0x49   : > { %v826_v10 = vmul.f32 1.442695, %v808_v56  ;;  %v785_v11 = vsel %vm3101_vm0, %v2127_v27, %v773_v57  ;;  %v2145_v12 = vmax.f32 %v690_v40, %v691_v59  ;;  %v698_v15 = vrot.slane %v697_v61, 1  ;;  %v2152_v35 = vld.sshfl [vmem:[#allocation1 + $0x18] sm:$0xff pattern:$0x75316420] }
  0x4a   : > { %v809_v13 = vsub.f32 %v2044_v38, %v785_v11  ;;  %v710_v18 = vrot.slane %v709_v5, 2  ;;  %v716_v26 = vmax.f32 %v714_v53, %v715_v8  ;;  %v722_v30 = vrot.slane %v721_v6, 4  ;;  %v2157_v50 = vld.sshfl [vmem:[#allocation1 + $0x20] sm:$0xff pattern:$0x75316420] }
  0x4b   : > { %3114 = vst [vmem:[#allocation12_spill] sm:$0xff] %v2145_v12  ;;  %1872 = vpow2.f32 %v826_v10  ;;  %v728_v31 = vsel %vm3101_vm0, %v548_v22, -inf  ;;  %v2154_v39 = vmax.f32 %v697_v61, %v698_v15  ;;  %v704_v41 = vmax.f32 %v702_v62, %v703_v16  ;;  %v2160_v62 = vld.sshfl [vmem:[#allocation1 + $0x28] sm:$0xff pattern:$0x75316420] }
  0x4c   : > { %v828_v37 = vmul.f32 1.442695, %v809_v13  ;;  %v711_v20 = vmax.f32 %v709_v5, %v710_v18  ;;  %v1871_v42 = vpop.eup %1870  ;;  %v717_v40 = vrot.slane %v716_v26, 2  ;;  %v723_v45 = vmax.f32 %v721_v6, %v722_v30 }
  0x4d   : > { %3115 = vst [vmem:[#allocation13_spill] sm:$0xff] %v2154_v39  ;;  %v729_v47 = vrot.slane %v728_v31, 4  ;;  %v735_v49 = vsel %vm3101_vm0, %v549_v34, -inf  ;;  %v774_v53 = vrot.slane %v2154_v39, 4  ;;  %v705_v56 = vrot.slane %v704_v41, 1 }
  0x4e   : > { %1874 = vpow2.f32 %v828_v37  ;;  %v712_v22 = vrot.slane %v711_v20, 1  ;;  %866 = vst [vmem:[#allocation1 + $0x10] ss:$2 sm:$0xff] %v1871_v42  ;;  %v718_v57 = vmax.f32 %v716_v26, %v717_v40  ;;  %v724_v59 = vrot.slane %v723_v45, 2 }
  0x4f   : > { %v730_v60 = vmax.f32 %v728_v31, %v729_v47  ;;  %v736_v61 = vrot.slane %v735_v49, 4  ;;  %v786_v5 = vsel %vm3101_vm0, %v2145_v12, %v774_v53  ;;  %v2166_v34 = vld.sshfl [vmem:[#allocation1 + $0x30] sm:$0xff pattern:$0x75316420]  ;;  %v2171_v16 = vmax.f32 %v704_v41, %v705_v56 }
  0x50   : > { %v2164_v8 = vmax.f32 %v711_v20, %v712_v22  ;;  %v810_v11 = vsub.f32 %v2072_v29, %v786_v5  ;;  %v725_v6 = vmax.f32 %v723_v45, %v724_v59  ;;  %v2169_v15 = vld.sshfl [vmem:[#allocation1 + $0x38] sm:$0xff pattern:$0x75316420]  ;;  %v719_v26 = vrot.slane %v718_v57, 1 }
  0x51   : > { %v1873_v10 = vpop.eup %1872  ;;  %v731_v13 = vrot.slane %v730_v60, 2  ;;  %3117 = vst [vmem:[#allocation15_spill] sm:$0xff] %v2171_v16  ;;  %v737_v30 = vmax.f32 %v735_v49, %v736_v61  ;;  %v1957_v22 = vmov 1   ;;  %v2182_v5 = vld.sshfl [vmem:[#allocation1] sm:$0xff pattern:$0x75316420] }
  0x52   : > { %3116 = vst [vmem:[#allocation14_spill] sm:$0xff] %v2164_v8  ;;  %v775_v18 = vrot.slane %v2164_v8, 4  ;;  %v830_v31 = vmul.f32 1.442695, %v810_v11  ;;  %v726_v37 = vrot.slane %v725_v6, 1  ;;  %v2179_v41 = vmax.f32 %v718_v57, %v719_v26 }
  0x53   : > { %867 = vst [vmem:[#allocation1 + $0x20] ss:$2 sm:$0xff] %v1873_v10  ;;  %v732_v40 = vmax.f32 %v730_v60, %v731_v13  ;;  %v738_v47 = vrot.slane %v737_v30, 2  ;;  %v319_v49 = vrot.slane %v1957_v22, 7  ;;  %v320_v10 = vrot.slane %v1957_v22, 6 }
  0x54   : > { %v1875_v20 = vpop.eup %1874  ;;  %v787_v42 = vsel %vm3101_vm0, %v2171_v16, %v775_v18  ;;  %1876 = vpow2.f32 %v830_v31  ;;  %v2177_v53 = vmax.f32 %v725_v6, %v726_v37  ;;  %3119 = vst [vmem:[#allocation17_spill] sm:$0xff] %v2179_v41  ;;  %v321_v60 = vrot.slane %v1957_v22, 5  ;;  %v2186_v6 = vld.sshfl [vmem:[#allocation1 + $0x8] sm:$0xff pattern:$0x75316420] }
  0x55   : > { %v811_v45 = vsub.f32 %v2080_v36, %v787_v42  ;;  %868 = vst [vmem:[#allocation1 + $0x30] ss:$2 sm:$0xff] %v1875_v20  ;;  %v739_v56 = vmax.f32 %v737_v30, %v738_v47  ;;  %v733_v11 = vrot.slane %v732_v40, 1  ;;  %v322_v18 = vrot.slane %v1957_v22, 4 }
  0x56   : > { %3118 = vst [vmem:[#allocation16_spill] sm:$0xff] %v2177_v53  ;;  %v776_v61 = vrot.slane %v2177_v53, 4  ;;  %v323_v31 = vrot.slane %v1957_v22, 3  ;;  %v324_v26 = vrot.slane %v1957_v22, 2  ;;  %v325_v30 = vrot.slane %v1957_v22, 1  ;;  %v2197_v22 = vld [vmem:[%s2006_s21] sm:$0xff] }
  0x57   : > { %v832_v59 = vmul.f32 1.442695, %v811_v45  ;;  %v740_v13 = vrot.slane %v739_v56, 1  ;;  %v341_v42 = vsel %vm3099_vm1, 1, %v319_v49  ;;  %v343_v45 = vsel %vm3098_vm2, %v320_v10, %v321_v60 }
  0x58   : > { %v788_v57 = vsel %vm3101_vm0, %v2179_v41, %v776_v61  ;;  %v2193_v61 = vmax.f32 %v732_v40, %v733_v11  ;;  %v2202_v49 = vld.sshfl [vmem:[#allocation1 + $0x18] sm:$0xff pattern:$0x75316420]  ;;  %v349_v10 = vsel %vm3094_vm5, %v324_v26, %v325_v30  ;;  %vm268_vm7 = vcmp.ne.s32.totalorder %v2197_v22, 4294967295 }
  0x59   : > { %1878 = vpow2.f32 %v832_v59  ;;  %v812_v37 = vsub.f32 %v2086_v43, %v788_v57  ;;  %v2189_v20 = vmax.f32 %v739_v56, %v740_v13  ;;  %v347_v56 = vsel %vm3095_vm4, %v322_v18, %v323_v31  ;;  %v2200_v13 = vld.sshfl [vmem:[#allocation1 + $0x10] sm:$0xff pattern:$0x75316420] }
  0x5a   : > { %v1877_v47 = vpop.eup %1876  ;;  %3121 = vst [vmem:[#allocation19_spill] sm:$0xff] %v2193_v61  ;;  %v345_v57 = vsel %vm3096_vm3, %v341_v42, %v343_v45  ;;  %v218_v18 = vlaneseq  ;;  %v2217_v26 = vld.sshfl [vmem:[#allocation1 + $0x28] sm:$0xff pattern:$0x75316420] }
  0x5b   : > { %3120 = vst [vmem:[#allocation18_spill] sm:$0xff] %v2189_v20  ;;  %v834_v59 = vmul.f32 1.442695, %v812_v37  ;;  %v777_v53 = vrot.slane %v2189_v20, 4  ;;  %v351_v37 = vsel %vm3093_vm6, %v347_v56, %v349_v10  ;;  %v927_v20 = vsel %vm3101_vm0, %v2149_v21, 0.0 }
  0x5c   : > { %877 = vst [vmem:[#allocation1] ss:$2 sm:$0xff] %v1877_v47  ;;  %v2212_v31 = vsel %vm3101_vm0, %v345_v57, %v351_v37  ;;  %v2214_v47 = vld.sshfl [vmem:[#allocation1 + $0x20] sm:$0xff pattern:$0x75316420]  ;;  %v2232_v57 = vshrl.u32 %v218_v18, 7 }
  0x5d   : > { %1880 = vpow2.f32 %v834_v59  ;;  %v789_v40 = vsel %vm3101_vm0, %v2193_v61, %v777_v53  ;;  %vm3100_vm8 = vcmp.ne.s32.totalorder %v2212_v31, 0  ;;  %v2219_v53 = vand.u32 127, %v218_v18  ;;  %v2234_v10 = vld.sshfl [vmem:[#allocation1 + $0x30] sm:$0xff pattern:$0x75316420] }
  0x5e   : > { %v813_v11 = vsub.f32 %v2093_v52, %v789_v40  ;;  %vm2227_vm9 = vmand %vm268_vm7, %vm3100_vm8  ;;  %v3125_v59 = vmov 0  ;;  %v2236_v40 = vld.sshfl [vmem:[#allocation1 + $0x38] sm:$0xff pattern:$0x75316420]  ;;  %v3079_v18 = vmov 0  }
  0x5f   : > { %v1879_v60 = vpop.eup %1878  ;;  %3122 = vst [vmem:[#allocation20_spill] sm:$0xff] %v2219_v53  ;;  %v3126_v59 = vsel %vm2227_vm9, 4294967295, %v3125_v59  ;;  %v913_v53 = vsel %vm3101_vm0, %v2134_v46, 0.0  ;;  %v934_v46 = vsel %vm3101_vm0, %v2152_v35, 0.0 }
  0x60   : > { %878 = vst [vmem:[#allocation1 + $0x10] ss:$2 sm:$0xff] %v1879_v60  ;;  %v836_v42 = vmul.f32 1.442695, %v813_v11  ;;  %v935_v8 = vrot.slane %v934_v46, 4 }
  0x62   : > { %1882 = vpow2.f32 %v836_v42  ;;  %v948_v42 = vsel %vm3101_vm0, %v2160_v62, 0.0 }
  0x63   : > { %v2221_v30 = vld.sshfl [vmem:[#allocation1] sm:$0xff pattern:$0x75316420]  ;;  %v2223_v45 = vld.sshfl [vmem:[#allocation1 + $0x8] sm:$0xff pattern:$0x75316420]  ;;  %v1881_v56 = vpop.eup %1880 }
  0x64   : > { %3123 = vst [vmem:[#allocation21_spill] sm:$0xff] %v2221_v30  ;;  %v949_v27 = vrot.slane %v948_v42, 4 }
  0x65   : > { %3124 = vst [vmem:[#allocation22_spill] sm:$0xff] %v2223_v45 }
  0x66   : > { %1153 = vst [vmem:[#allocation1] ss:$2 sm:$0xff] %v2009_v1  ;;  %v920_v1 = vsel %vm3101_vm0, %v2139_v54, 0.0  ;;  %v941_v54 = vsel %vm3101_vm0, %v2157_v50, 0.0 }
  0x67   : > { %879 = vst [vmem:[#allocation1 + $0x20] ss:$2 sm:$0xff] %v1881_v56  ;;  %v2248_v56 = vsel %vm2227_vm9, 1, %v3079_v18  ;;  %v2250_v61 = vld.sshfl [vmem:[#allocation1 + $0x10] sm:$0xff pattern:$0x75316420] }
  0x68   : > { %3127 = vst [vmem:[#allocation23_spill] sm:$0xff] %v2250_v61  ;;  %v2252_v60 = vld.sshfl [vmem:[#allocation1 + $0x18] sm:$0xff pattern:$0x75316420]  ;;  %v1883_v37 = vpop.eup %1882  ;;  %v427_v18 = vperm.slane %v2248_v56, 0  ;;  %v428_v11 = vperm.slane %v2248_v56, 1 }
  0x69   : > { %3128 = vst [vmem:[#allocation24_spill] sm:$0xff] %v2252_v60  ;;  %v429_v41 = vperm.slane %v2248_v56, 2  ;;  %v914_v60 = vrot.slane %v913_v53, 4  ;;  %v928_v61 = vrot.slane %v927_v20, 4  ;;  %v942_v35 = vrot.slane %v941_v54, 4 }
  0x6a   : > { %1155 = vst [vmem:[#allocation1 + $0x10] ss:$2 sm:$0xff] %v2012_v2  ;;  %v430_v2 = vperm.slane %v2248_v56, 3  ;;  %vm2298_vm10 = vcmp.eq.s32.totalorder %v427_v18, 1  ;;  %vm2302_vm11 = vcmp.eq.s32.totalorder %v428_v11, 1  ;;  %v3139_v11 = vperm.slane %v2197_v22, 0 }
  0x6b   : > { %880 = vst [vmem:[#allocation1 + $0x30] ss:$2 sm:$0xff] %v1883_v37  ;;  %v921_v37 = vrot.slane %v920_v1, 4  ;;  %v915_v45 = vadd.f32 %v914_v60, %v913_v53  ;;  %v929_v44 = vadd.f32 %v928_v61, %v927_v20  ;;  %vm2306_vm12 = vcmp.eq.s32.totalorder %v429_v41, 1 }
  0x6c   : > { %v943_v20 = vadd.f32 %v942_v35, %v941_v54  ;;  %vm2320_vm13 = vcmp.eq.s32.totalorder %v2232_v57, %v3139_v11  ;;  %vm2328_vm14 = vcmp.eq.s32.totalorder %v430_v2, 1  ;;  %v3155_v2 = vperm.slane %v2197_v22, 4 }
  0x6d   : > { %v2270_v16 = vld.sshfl [vmem:[#allocation1] sm:$0xff pattern:$0x75316420]  ;;  %v2272_v21 = vld.sshfl [vmem:[#allocation1 + $0x8] sm:$0xff pattern:$0x75316420]  ;;  %v922_v30 = vadd.f32 %v921_v37, %v920_v1  ;;  %vm3171_vm8 = vmand %vm2320_vm13, %vm2298_vm10 }
  0x6e   : > { %v2274_v39 = vld.sshfl [vmem:[#allocation1 + $0x20] sm:$0xff pattern:$0x75316420]  ;;  %v2276_v12 = vld.sshfl [vmem:[#allocation1 + $0x28] sm:$0xff pattern:$0x75316420]  ;;  %vm2365_vm5 = vcmp.eq.s32.totalorder %v2232_v57, %v3155_v2 }
  0x6f   : > { %3129 = vst [vmem:[#allocation25_spill] sm:$0xff] %v2274_v39  ;;  %v916_v62 = vrot.slane %v915_v45, 2  ;;  %v930_v51 = vrot.slane %v929_v44, 2  ;;  %v944_v54 = vrot.slane %v943_v20, 2  ;;  %v3176_v53 = vperm.slane %v2197_v22, 7 }
  0x70   : > { %3130 = vst [vmem:[#allocation26_spill] sm:$0xff] %v2276_v12  ;;  %v955_v12 = vsel %vm3101_vm0, %v2166_v34, 0.0  ;;  %v923_v34 = vrot.slane %v922_v30, 2 }
  0x71   : > { %1157 = vst [vmem:[#allocation1 + $0x20] ss:$2 sm:$0xff] %v2015_v3  ;;  %v2288_v39 = vld.sshfl [vmem:[#allocation1 + $0x10] sm:$0xff pattern:$0x75316420]  ;;  %v956_v25 = vrot.slane %v955_v12, 4  ;;  %v917_v60 = vadd.f32 %v916_v62, %v915_v45  ;;  %v950_v45 = vadd.f32 %v949_v27, %v948_v42  ;;  %vm2439_vm10 = vcmp.eq.s32.totalorder %v2232_v57, %v3176_v53 }
  0x72   : > { %1168 = vst [vmem:[#allocation1] ss:$2 sm:$0xff] %v2030_v17  ;;  %v2290_v3 = vld.sshfl [vmem:[#allocation1 + $0x18] sm:$0xff pattern:$0x75316420]  ;;  %v936_v17 = vadd.f32 %v935_v8, %v934_v46  ;;  %v924_v1 = vadd.f32 %v923_v34, %v922_v30  ;;  %v931_v46 = vadd.f32 %v930_v51, %v929_v44  ;;  %v945_v44 = vadd.f32 %v944_v54, %v943_v20 }
  0x73   : > { %1169 = vst [vmem:[#allocation1 + $0x10] ss:$2 sm:$0xff] %v2034_v23  ;;  %v2293_v50 = vld.sshfl [vmem:[#allocation1 + $0x30] sm:$0xff pattern:$0x75316420]  ;;  %v957_v30 = vadd.f32 %v956_v25, %v955_v12  ;;  %v3146_v27 = vperm.slane %v2197_v22, 1 }
  0x74   : > { %3131 = vst [vmem:[#allocation27_spill] sm:$0xff] %v2293_v50  ;;  %v2295_v24 = vld.sshfl [vmem:[#allocation1 + $0x38] sm:$0xff pattern:$0x75316420]  ;;  %v937_v48 = vrot.slane %v936_v17, 2  ;;  %v925_v50 = vrot.slane %v924_v1, 1 }
  0x75   : > { %3132 = vst [vmem:[#allocation28_spill] sm:$0xff] %v2295_v24  ;;  %v918_v24 = vrot.slane %v917_v60, 1  ;;  %vm2344_vm15 = vcmp.eq.s32.totalorder %v2232_v57, %v3146_v27  ;;  %v3149_v42 = vperm.slane %v2197_v22, 2  ;;  %v946_v54 = vrot.slane %v945_v44, 1 }
  0x76   : > { %1159 = vst [vmem:[#allocation1 + $0x30] ss:$2 sm:$0xff] %v2020_v4  ;;  %v938_v18 = vadd.f32 %v937_v48, %v936_v17  ;;  %v932_v48 = vrot.slane %v931_v46, 1  ;;  %v962_v17 = vsel %vm3101_vm0, %v2169_v15, 0.0  ;;  %v951_v27 = vrot.slane %v950_v45, 2 }
  0x77   : > { %v919_v34 = vadd.f32 %v918_v24, %v917_v60  ;;  %vm2351_vm7 = vcmp.eq.s32.totalorder %v2232_v57, %v3149_v42  ;;  %v926_v60 = vadd.f32 %v925_v50, %v924_v1  ;;  %v958_v42 = vrot.slane %v957_v30, 2 }
  0x78   : > { %v2310_v61 = vld.sshfl [vmem:[#allocation1 + $0x20] sm:$0xff pattern:$0x75316420]  ;;  %v2312_v4 = vld.sshfl [vmem:[#allocation1 + $0x28] sm:$0xff pattern:$0x75316420]  ;;  %v933_v9 = vadd.f32 %v932_v48, %v931_v46  ;;  %v952_v46 = vadd.f32 %v951_v27, %v950_v45  ;;  %v947_v27 = vadd.f32 %v946_v54, %v945_v44 }
  0x79   : > { %1170 = vst [vmem:[#allocation1 + $0x20] ss:$2 sm:$0xff] %v2038_v28  ;;  %v2315_v37 = vld.sshfl [vmem:[#allocation1] sm:$0xff pattern:$0x75316420]  ;;  %v939_v11 = vrot.slane %v938_v18, 1  ;;  %1884 = vlog2.f32 %v919_v34  ;;  %v959_v48 = vadd.f32 %v958_v42, %v957_v30 }
  0x7a   : > { %v2324_v35 = vld.sshfl [vmem:[#allocation1 + $0x8] sm:$0xff pattern:$0x75316420]  ;;  %v2326_v51 = vld.sshfl [vmem:[#allocation1 + $0x10] sm:$0xff pattern:$0x75316420]  ;;  %1886 = vlog2.f32 %v926_v60 }
  0x7b   : > { %3142 = vst [vmem:[#allocation29_spill] sm:$0xff] %v2326_v51  ;;  %v2334_v62 = vld.sshfl [vmem:[#allocation1 + $0x18] sm:$0xff pattern:$0x75316420]  ;;  %v3162_v50 = vperm.slane %v2197_v22, 5  ;;  %v3168_v34 = vperm.slane %v2248_v56, 5  ;;  %1888 = vlog2.f32 %v933_v9 }
  0x7c   : > { %3145 = vst [vmem:[#allocation30_spill] sm:$0xff] %v2334_v62  ;;  %v963_v62 = vrot.slane %v962_v17, 4  ;;  %v3172_v45 = vperm.slane %v2248_v56, 6  ;;  %v953_v42 = vrot.slane %v952_v46, 1 }
  0x7d   : > { %1180 = vst [vmem:[#allocation1] ss:$2 sm:$0xff] %v2072_v29  ;;  %v2337_v19 = vld.sshfl [vmem:[#allocation1 + $0x30] sm:$0xff pattern:$0x75316420]  ;;  %v3152_v29 = vperm.slane %v2197_v22, 3  ;;  %vm2388_vm2 = vcmp.eq.s32.totalorder %v2232_v57, %v3162_v50 }
  0x7e   : > { %v2339_v25 = vld.sshfl [vmem:[#allocation1 + $0x38] sm:$0xff pattern:$0x75316420]  ;;  %1181 = vst [vmem:[#allocation1 + $0x10] ss:$2 sm:$0xff] %v2080_v36  ;;  %v3165_v36 = vperm.slane %v2197_v22, 6 }
  0x7f   : > { %vm2358_vm6 = vcmp.eq.s32.totalorder %v2232_v57, %v3152_v29  ;;  %1171 = vst [vmem:[#allocation1 + $0x30] ss:$2 sm:$0xff] %v2044_v38  ;;  %v3158_v29 = vperm.slane %v2248_v56, 4  ;;  %vm2406_vm0 = vcmp.eq.s32.totalorder %v3168_v34, 1  ;;  %vm2422_vm9 = vcmp.eq.s32.totalorder %v3172_v45, 1 }
  0x80   : > { %v2381_v38 = vld.sshfl [vmem:[#allocation1 + $0x20] sm:$0xff pattern:$0x75316420]  ;;  %v2383_v51 = vld.sshfl [vmem:[#allocation1 + $0x28] sm:$0xff pattern:$0x75316420]  ;;  %vm2395_vm1 = vcmp.eq.s32.totalorder %v2232_v57, %v3165_v36  ;;  %v940_v36 = vadd.f32 %v939_v11, %v938_v18 }
  0x81   : > { %vm2377_vm3 = vcmp.eq.s32.totalorder %v3158_v29, 1  ;;  %3161 = vst [vmem:[#allocation31_spill] sm:$0xff] %v2383_v51  ;;  %v964_v51 = vadd.f32 %v963_v62, %v962_v17  ;;  %v960_v18 = vrot.slane %v959_v48, 1  ;;  %v3179_v17 = vperm.slane %v2248_v56, 7 }
  0x82   : > { %1182 = vst [vmem:[#allocation1 + $0x20] ss:$2 sm:$0xff] %v2086_v43  ;;  %v1216_v43 = vsel %vm3171_vm8, %v2270_v16, 0.0  ;;  %vm3175_vm8 = vmand %vm2344_vm15, %vm2302_vm11  ;;  %vm3183_vm15 = vcmask 1043456   ;;  %1890 = vlog2.f32 %v940_v36 }
  0x83   : > { %v965_v41 = vrot.slane %v964_v51, 2  ;;  %v1217_v16 = vsel %vm3175_vm8, %v2272_v21, 0.0  ;;  %vm2445_vm13 = vcmp.eq.s32.totalorder %v3179_v17, 1  ;;  %vm479_vm4 = vmand %vm2365_vm5, %vm2377_vm3  ;;  %v1240_v22 = vsel %vm3183_vm15, %v1216_v43, 0.0  ;;  %v1885_v21 = vpop.eup %1884 }
  0x84   : > { %vm3182_vm11 = vmand %vm2351_vm7, %vm2306_vm12  ;;  %1892 = vlog2.f32 %v947_v27  ;;  %v1241_v8 = vrot.slane %v1240_v22, 4  ;;  %v961_v15 = vadd.f32 %v960_v18, %v959_v48  ;;  %v1887_v60 = vpop.eup %1886  ;;  %v1082_v54 = vmul.f32 0.6931472, %v1885_v21 }
  0x85   : > { %v1218_v9 = vsel %vm3182_vm11, %v2288_v39, 0.0  ;;  %vm480_vm8 = vmand %vm2388_vm2, %vm2406_vm0  ;;  %v966_v11 = vadd.f32 %v965_v41, %v964_v51  ;;  %v954_v39 = vadd.f32 %v953_v42, %v952_v46  ;;  %v1220_v46 = vsel %vm479_vm4, %v2310_v61, 0.0  ;;  %v1889_v48 = vpop.eup %1888 }
  0x86   : > { %v2460_v56 = vld.sshfl [vmem:[#allocation1 + $0x30] sm:$0xff pattern:$0x75316420]  ;;  %v2462_v23 = vld.sshfl [vmem:[#allocation1 + $0x38] sm:$0xff pattern:$0x75316420]  ;;  %vm481_vm12 = vmand %vm2395_vm1, %vm2422_vm9  ;;  %v1242_v20 = vadd.f32 %v1241_v8, %v1240_v22  ;;  %v2506_v29 = vadd.f32 %v1082_v54, %v2051_v58 }
  0x87   : > { %1183 = vst [vmem:[#allocation1 + $0x30] ss:$2 sm:$0xff] %v2093_v52  ;;  %vm3184_vm7 = vmmov %vm3183_vm15  ;;  %v967_v36 = vrot.slane %v966_v11, 1  ;;  %v1221_v28 = vsel %vm480_vm8, %v2312_v4, 0.0  ;;  %1894 = vlog2.f32 %v954_v39  ;;  %v1084_v45 = vmul.f32 0.6931472, %v1887_v60 }
  0x88   : > { %v1247_v12 = vsel %vm3184_vm7, %v1217_v16, 0.0  ;;  %vm482_vm11 = vmand %vm2439_vm10, %vm2445_vm13  ;;  %v1254_v34 = vsel %vm3184_vm7, %v1218_v9, 0.0  ;;  %v1891_v43 = vpop.eup %1890  ;;  %1896 = vlog2.f32 %v961_v15  ;;  %v1086_v27 = vmul.f32 0.6931472, %v1889_v48 }
  0x89   : > { %v1248_v51 = vrot.slane %v1247_v12, 4  ;;  %vm3185_vm15 = vmand %vm2358_vm6, %vm2328_vm14  ;;  %v1223_v61 = vsel %vm482_vm11, %v2339_v25, 0.0  ;;  %v1255_v2 = vrot.slane %v1254_v34, 4  ;;  %v1088_v16 = vmul.f32 0.6931472, %v1891_v43 }
  0x8a   : > { %v1219_v52 = vsel %vm3185_vm15, %v2290_v3, 0.0  ;;  %v1222_v3 = vsel %vm481_vm12, %v2337_v19, 0.0  ;;  %vm3186_vm3 = vmmov %vm3184_vm7  ;;  %v1893_v4 = vpop.eup %1892  ;;  %v968_v19 = vadd.f32 %v967_v36, %v966_v11  ;;  %v1243_v53 = vrot.slane %v1242_v20, 2 }
  0x8b   : > { %v1249_v24 = vadd.f32 %v1248_v51, %v1247_v12  ;;  %v1261_v50 = vsel %vm3186_vm3, %v1219_v52, 0.0  ;;  %v1256_v30 = vadd.f32 %v1255_v2, %v1254_v34  ;;  %vm3187_vm0 = vmmov %vm3186_vm3  ;;  %v1090_v62 = vmul.f32 0.6931472, %v1893_v4 }
  0x8c   : > { %v1262_v42 = vrot.slane %v1261_v50, 4  ;;  %v1268_v41 = vsel %vm3187_vm0, %v1220_v46, 0.0  ;;  %vm3188_vm1 = vmmov %vm3187_vm0  ;;  %v1130_v9 = vadd.f32 %v1084_v45, %v2049_v55  ;;  %v1131_v58 = vadd.f32 %v1086_v27, %v2054_v63 }
  0x8d   : > { %v1250_v1 = vrot.slane %v1249_v24, 2  ;;  %v1275_v25 = vsel %vm3188_vm1, %v1221_v28, 0.0  ;;  %v1257_v44 = vrot.slane %v1256_v30, 2  ;;  %v1269_v22 = vrot.slane %v1268_v41, 4  ;;  %v1895_v39 = vpop.eup %1894  ;;  %vm3189_vm2 = vmmov %vm3187_vm0 }
  0x8e   : > { %v1263_v17 = vadd.f32 %v1262_v42, %v1261_v50  ;;  %v1276_v21 = vrot.slane %v1275_v25, 4  ;;  %v1897_v15 = vpop.eup %1896  ;;  %1898 = vlog2.f32 %v968_v19  ;;  %v1282_v54 = vsel %vm3189_vm2, %v1222_v3, 0.0  ;;  %vm3190_vm4 = vmmov %vm3187_vm0 }
  0x8f   : > { %v1251_v18 = vadd.f32 %v1250_v1, %v1249_v24  ;;  %v1258_v12 = vadd.f32 %v1257_v44, %v1256_v30  ;;  %v1270_v51 = vadd.f32 %v1269_v22, %v1268_v41  ;;  %v1244_v52 = vadd.f32 %v1243_v53, %v1242_v20  ;;  %vm3205_vm3 = vmmov %vm3187_vm0 }
  0x90   : > { %v1264_v11 = vrot.slane %v1263_v17, 2  ;;  %v1277_v60 = vadd.f32 %v1276_v21, %v1275_v25  ;;  %v1283_v48 = vrot.slane %v1282_v54, 4  ;;  %v1132_v55 = vadd.f32 %v1088_v16, %v2056_v0 }
  0x91   : > { %v1252_v8 = vrot.slane %v1251_v18, 1  ;;  %v1259_v46 = vrot.slane %v1258_v12, 1  ;;  %v1271_v36 = vrot.slane %v1270_v51, 2  ;;  %v1289_v24 = vsel %vm3190_vm4, %v1223_v61, 0.0  ;;  %vm3210_vm4 = vmmov %vm3187_vm0 }
  0x92   : > { %v1265_v34 = vadd.f32 %v1264_v11, %v1263_v17  ;;  %v1278_v28 = vrot.slane %v1277_v60, 2  ;;  %v1284_v45 = vadd.f32 %v1283_v48, %v1282_v54  ;;  %v1092_v1 = vmul.f32 0.6931472, %v1895_v39  ;;  %v2517_v17 = vld [vmem:[%s2006_s21 + $0x8] sm:$0xff] }
  0x93   : > { %v1253_v63 = vadd.f32 %v1252_v8, %v1251_v18  ;;  %v1260_v2 = vadd.f32 %v1259_v46, %v1258_v12  ;;  %v1272_v50 = vadd.f32 %v1271_v36, %v1270_v51  ;;  %v1290_v27 = vrot.slane %v1289_v24, 4 }
  0x94   : > { %v1266_v43 = vrot.slane %v1265_v34, 1  ;;  %v1279_v4 = vadd.f32 %v1278_v28, %v1277_v60  ;;  %v1094_v3 = vmul.f32 0.6931472, %v1897_v15  ;;  %v1245_v20 = vrot.slane %v1244_v52, 1  ;;  %v1899_v19 = vpop.eup %1898 }
  0x95   : > { %v1285_v42 = vrot.slane %v1284_v45, 2  ;;  %v1133_v0 = vadd.f32 %v1090_v62, %v2058_v7  ;;  %v1273_v41 = vrot.slane %v1272_v50, 1  ;;  %v1291_v16 = vadd.f32 %v1290_v27, %v1289_v24 }
  0x96   : > { %v1267_v30 = vadd.f32 %v1266_v43, %v1265_v34  ;;  %v1280_v25 = vrot.slane %v1279_v4, 1  ;;  %v1412_v18 = vsub.f32 %v1130_v9, %v1253_v63  ;;  %v1413_v53 = vsub.f32 %v1131_v58, %v1260_v2 }
  0x97   : > { %v1286_v61 = vadd.f32 %v1285_v42, %v1284_v45  ;;  %v1134_v22 = vadd.f32 %v1092_v1, %v2064_v14  ;;  %v1274_v21 = vadd.f32 %v1273_v41, %v1272_v50  ;;  %v1292_v8 = vrot.slane %v1291_v16, 2 }
  0x98   : > { %v1414_v44 = vsub.f32 %v1132_v55, %v1267_v30  ;;  %v1281_v39 = vadd.f32 %v1280_v25, %v1279_v4  ;;  %v1096_v12 = vmul.f32 0.6931472, %v1899_v19  ;;  %v1135_v11 = vadd.f32 %v1094_v3, %v2075_v32 }
  0x99   : > { %v1246_v15 = vadd.f32 %v1245_v20, %v1244_v52  ;;  %v1287_v51 = vrot.slane %v1286_v61, 1  ;;  %v1293_v7 = vadd.f32 %v1292_v8, %v1291_v16  ;;  %v1415_v62 = vsub.f32 %v1133_v0, %v1274_v21  ;;  %v1408_v21 = vld [vmem:[#allocation2 + $0x10] sm:$0xff] }
  0x9a   : > { %v1416_v60 = vsub.f32 %v1134_v22, %v1281_v39  ;;  %vm269_vm5 = vcmp.ne.s32.totalorder %v2517_v17, 4294967295  ;;  %v1459_v58 = vrot.slane %v1412_v18, 7  ;;  %v1460_v54 = vrot.slane %v1413_v53, 6 }
  0x9b   : > { %v1288_v9 = vadd.f32 %v1287_v51, %v1286_v61  ;;  %v1461_v46 = vrot.slane %v1414_v44, 5  ;;  %v1294_v34 = vrot.slane %v1293_v7, 1  ;;  %v1411_v14 = vsub.f32 %v2506_v29, %v1246_v15 }
  0x9c   : > { %vm3191_vm6 = vcmp.ne.s32.totalorder %v2212_v31, 0  ;;  %v1136_v32 = vadd.f32 %v1096_v12, %v2077_v33  ;;  %v1462_v36 = vrot.slane %v1415_v62, 4  ;;  %v1463_v28 = vrot.slane %v1416_v60, 3 }
  0x9d   : > { %v1417_v48 = vsub.f32 %v1135_v11, %v1288_v9  ;;  %vm2525_vm9 = vmand %vm269_vm5, %vm3191_vm6  ;;  %v1295_v52 = vadd.f32 %v1294_v34, %v1293_v7  ;;  %vm3194_vm14 = vcmask 1040384   ;;  %vm3195_vm10 = vcmask 1042434  }
  0x9e   : > { %v1480_v24 = vsel %vm3194_vm14, %v1411_v14, %v1459_v58  ;;  %v1481_v63 = vsel %vm3195_vm10, %v1460_v54, %v1461_v46  ;;  %v384_v2 = vperm.slane %v2517_v17, 0  ;;  %v385_v29 = vperm.slane %v2517_v17, 1  ;;  %vm3211_vm5 = vmmov %vm3187_vm0 }
  0x9f   : > { %v1418_v43 = vsub.f32 %v1136_v32, %v1295_v52  ;;  %v1464_v45 = vrot.slane %v1417_v48, 2  ;;  %v386_v1 = vperm.slane %v2517_v17, 2  ;;  %v3196_v50 = vmov 0  }
  0xa0   : > { %v2538_v4 = vsel %vm2525_vm9, 1, %v3196_v50  ;;  %v387_v33 = vperm.slane %v2517_v17, 3  ;;  %v388_v27 = vperm.slane %v2517_v17, 4  ;;  %v389_v3 = vperm.slane %v2517_v17, 5 }
  0xa1   : > { %v435_v20 = vperm.slane %v2538_v4, 0  ;;  %v1465_v30 = vrot.slane %v1418_v43, 1  ;;  %vm3197_vm13 = vcmask 1041408   ;;  %vm3198_vm8 = vcmask 1044484  }
  0xa2   : > { %v1482_v42 = vsel %vm3197_vm13, %v1480_v24, %v1481_v63  ;;  %v1483_v19 = vsel %vm3198_vm8, %v1462_v36, %v1463_v28  ;;  %v436_v0 = vperm.slane %v2538_v4, 1  ;;  %v390_v41 = vperm.slane %v2517_v17, 6  ;;  %vm3217_vm13 = vmmov %vm3187_vm0 }
  0xa3   : > { %v391_v25 = vperm.slane %v2517_v17, 7  ;;  %v437_v16 = vperm.slane %v2538_v4, 2  ;;  %v438_v61 = vperm.slane %v2538_v4, 3  ;;  %vm3199_vm12 = vcmask 1046534  }
  0xa4   : > { %v1484_v18 = vsel %vm3199_vm12, %v1464_v45, %v1465_v30  ;;  %v439_v53 = vperm.slane %v2538_v4, 4  ;;  %v440_v44 = vperm.slane %v2538_v4, 5  ;;  %v441_v22 = vperm.slane %v2538_v4, 6 }
  0xa5   : > { %vm3200_vm11 = vcmask 1045508   ;;  %vm2557_vm15 = vcmp.eq.s32.totalorder %v2232_v57, %v384_v2  ;;  %v442_v12 = vperm.slane %v2538_v4, 7  ;;  %vm2562_vm7 = vcmp.eq.s32.totalorder %v435_v20, 1 }
  0xa6   : > { %v1485_v39 = vsel %vm3200_vm11, %v1483_v19, %v1484_v18  ;;  %v969_v15 = vsel %vm3205_vm3, %v2182_v5, 0.0  ;;  %vm2570_vm1 = vcmp.eq.s32.totalorder %v2232_v57, %v385_v29  ;;  %vm2574_vm2 = vcmp.eq.s32.totalorder %v436_v0, 1  ;;  %vm3222_vm11 = vmmov %vm3187_vm0 }
  0xa7   : > { %v1486_v51 = vsel %vm3187_vm0, %v1482_v42, %v1485_v39  ;;  %v970_v60 = vrot.slane %v969_v15, 4  ;;  %v976_v9 = vsel %vm3210_vm4, %v2186_v6, 0.0  ;;  %v983_v58 = vsel %vm3211_vm5, %v2200_v13, 0.0  ;;  %vm3223_vm3 = vmmov %vm3187_vm0 }
  0xa8   : > { %vm3212_vm6 = vnez %v3126_v59  ;;  %vm2585_vm14 = vcmp.eq.s32.totalorder %v2232_v57, %v386_v1  ;;  %vm2589_vm10 = vcmp.eq.s32.totalorder %v437_v16, 1  ;;  %v977_v34 = vrot.slane %v976_v9, 4 }
  0xa9   : > { %v1504_v5 = vsel %vm3212_vm6, %v1486_v51, 0.0  ;;  %v984_v14 = vrot.slane %v983_v58, 4  ;;  %v990_v6 = vsel %vm3217_vm13, %v2202_v49, 0.0  ;;  %vm2596_vm8 = vcmp.eq.s32.totalorder %v2232_v57, %v387_v33  ;;  %vm3228_vm13 = vmmov %vm3187_vm0 }
  0xaa   : > { %v1507_v48 = vadd.f32 %v1504_v5, %v1408_v21  ;;  %vm2600_vm12 = vcmp.eq.s32.totalorder %v438_v61, 1  ;;  %v971_v52 = vadd.f32 %v970_v60, %v969_v15  ;;  %v991_v36 = vrot.slane %v990_v6, 4 }
  0xab   : > { %v997_v28 = vsel %vm3222_vm11, %v2214_v47, 0.0  ;;  %v978_v24 = vadd.f32 %v977_v34, %v976_v9  ;;  %v985_v63 = vadd.f32 %v984_v14, %v983_v58  ;;  %v1004_v49 = vsel %vm3223_vm3, %v2217_v26, 0.0  ;;  %vm483_vm11 = vmand %vm2557_vm15, %vm2562_vm7 }
  0xac   : > { %v998_v2 = vrot.slane %v997_v28, 4  ;;  %1510 = vst [vmem:[#allocation2 + $0x10] sm:$0xff] %v1507_v48  ;;  %v972_v29 = vrot.slane %v971_v52, 2  ;;  %v992_v43 = vadd.f32 %v991_v36, %v990_v6  ;;  %v1005_v45 = vrot.slane %v1004_v49, 4  ;;  %vm3239_vm7 = vmand %vm2585_vm14, %vm2589_vm10 }
  0xad   : > { %v1011_v1 = vsel %vm3187_vm0, %v2234_v10, 0.0  ;;  %vm2611_vm4 = vcmp.eq.s32.totalorder %v2232_v57, %v388_v27  ;;  %v979_v20 = vrot.slane %v978_v24, 2  ;;  %v986_v47 = vrot.slane %v985_v63, 2  ;;  %vm486_vm0 = vmand %vm2596_vm8, %vm2600_vm12 }
  0xae   : > { %v999_v30 = vadd.f32 %v998_v2, %v997_v28  ;;  %v1012_v42 = vrot.slane %v1011_v1, 4  ;;  %vm2616_vm5 = vcmp.eq.s32.totalorder %v2232_v57, %v389_v3  ;;  %v973_v26 = vadd.f32 %v972_v29, %v971_v52  ;;  %vm3235_vm8 = vmand %vm2570_vm1, %vm2574_vm2  ;;  %v3253_v29 = vld [vmem:[#allocation6_spill] sm:$0xff] }
  0xaf   : > { %v993_v0 = vrot.slane %v992_v43, 2  ;;  %v1006_v16 = vadd.f32 %v1005_v45, %v1004_v49  ;;  %v1018_v10 = vsel %vm3228_vm13, %v2236_v40, 0.0  ;;  %v980_v61 = vadd.f32 %v979_v20, %v978_v24 }
  0xb0   : > { %v987_v27 = vadd.f32 %v986_v47, %v985_v63  ;;  %v1000_v18 = vrot.slane %v999_v30, 2  ;;  %v1013_v21 = vadd.f32 %v1012_v42, %v1011_v1  ;;  %v974_v39 = vrot.slane %v973_v26, 1 }
  0xb1   : > { %v994_v15 = vadd.f32 %v993_v0, %v992_v43  ;;  %v1007_v51 = vrot.slane %v1006_v16, 2  ;;  %v1019_v60 = vrot.slane %v1018_v10, 4  ;;  %v981_v9 = vrot.slane %v980_v61, 1  ;;  %v3249_v0 = vld [vmem:[#allocation31_spill] sm:$0xff] }
  0xb2   : > { %v988_v58 = vrot.slane %v987_v27, 1  ;;  %v1001_v3 = vadd.f32 %v1000_v18, %v999_v30  ;;  %v1014_v5 = vrot.slane %v1013_v21, 2  ;;  %v975_v34 = vadd.f32 %v974_v39, %v973_v26 }
  0xb3   : > { %v995_v14 = vrot.slane %v994_v15, 1  ;;  %v1008_v40 = vadd.f32 %v1007_v51, %v1006_v16  ;;  %v1020_v6 = vadd.f32 %v1019_v60, %v1018_v10  ;;  %v982_v48 = vadd.f32 %v981_v9, %v980_v61 }
  0xb4   : > { %v989_v52 = vadd.f32 %v988_v58, %v987_v27  ;;  %v1002_v36 = vrot.slane %v1001_v3, 1  ;;  %v1015_v28 = vadd.f32 %v1014_v5, %v1013_v21  ;;  %1900 = vlog2.f32 %v975_v34 }
  0xb5   : > { %v996_v24 = vadd.f32 %v995_v14, %v994_v15  ;;  %v1009_v63 = vrot.slane %v1008_v40, 1  ;;  %v1021_v2 = vrot.slane %v1020_v6, 2  ;;  %vm2636_vm13 = vcmp.eq.s32.totalorder %v439_v53, 1 }
  0xb6   : > { %vm2642_vm3 = vcmp.eq.s32.totalorder %v440_v44, 1  ;;  %v1003_v43 = vadd.f32 %v1002_v36, %v1001_v3  ;;  %1902 = vlog2.f32 %v982_v48  ;;  %v1016_v45 = vrot.slane %v1015_v28, 1  ;;  %vm487_vm15 = vmand %vm2611_vm4, %vm2636_vm13 }
  0xb7   : > { %v1022_v1 = vadd.f32 %v1021_v2, %v1020_v6  ;;  %1904 = vlog2.f32 %v989_v52  ;;  %v1224_v53 = vsel %vm483_vm11, %v2315_v37, 0.0  ;;  %vm2659_vm6 = vcmp.eq.s32.totalorder %v2232_v57, %v390_v41  ;;  %v3238_v41 = vld [vmem:[#allocation29_spill] sm:$0xff]  ;;  %vm488_vm14 = vmand %vm2616_vm5, %vm2642_vm3  ;;  %v3250_v6 = vld [vmem:[#allocation4_spill] sm:$0xff] }
  0xb8   : > { %1906 = vlog2.f32 %v996_v24  ;;  %v1225_v13 = vsel %vm3235_vm8, %v2324_v35, 0.0  ;;  %vm2671_vm12 = vcmp.eq.s32.totalorder %v441_v22, 1  ;;  %v1010_v37 = vadd.f32 %v1009_v63, %v1008_v40  ;;  %v3240_v35 = vld [vmem:[#allocation30_spill] sm:$0xff]  ;;  %v3251_v24 = vld [vmem:[#allocation5_spill] sm:$0xff] }
  0xb9   : > { %v1226_v11 = vsel %vm3239_vm7, %v3238_v41, 0.0  ;;  %v1227_v7 = vsel %vm486_vm0, %v3240_v35, 0.0  ;;  %vm2689_vm1 = vcmp.eq.s32.totalorder %v2232_v57, %v391_v25  ;;  %vm2695_vm2 = vcmp.eq.s32.totalorder %v442_v12, 1  ;;  %vm489_vm0 = vmand %vm2659_vm6, %vm2671_vm12 }
  0xba   : > { %v1023_v54 = vrot.slane %v1022_v1, 1  ;;  %vm3245_vm10 = vcmask 1043456   ;;  %v1901_v17 = vpop.eup %1900  ;;  %v1017_v32 = vadd.f32 %v1016_v45, %v1015_v28  ;;  %1908 = vlog2.f32 %v1003_v43 }
  0xbb   : > { %v1296_v46 = vsel %vm3245_vm10, %v1224_v53, 0.0  ;;  %vm3246_vm11 = vmmov %vm3245_vm10  ;;  %v1228_v4 = vsel %vm487_vm15, %v2381_v38, 0.0  ;;  %1910 = vlog2.f32 %v1010_v37  ;;  %v1229_v33 = vsel %vm488_vm14, %v3249_v0, 0.0  ;;  %v3254_v53 = vld [vmem:[#allocation7_spill] sm:$0xff] }
  0xbc   : > { %v1297_v25 = vrot.slane %v1296_v46, 4  ;;  %v1303_v20 = vsel %vm3246_vm11, %v1225_v13, 0.0  ;;  %v1903_v47 = vpop.eup %1902  ;;  %vm3247_vm8 = vmmov %vm3245_vm10  ;;  %v1024_v61 = vadd.f32 %v1023_v54, %v1022_v1  ;;  %v1098_v27 = vmul.f32 0.6931472, %v1901_v17 }
  0xbd   : > { %v1304_v12 = vrot.slane %v1303_v20, 4  ;;  %v1310_v30 = vsel %vm3247_vm8, %v1226_v11, 0.0  ;;  %vm3248_vm7 = vmmov %vm3247_vm8  ;;  %v1905_v26 = vpop.eup %1904  ;;  %v1100_v39 = vmul.f32 0.6931472, %v1903_v47  ;;  %v1230_v15 = vsel %vm489_vm0, %v2460_v56, 0.0 }
  0xbe   : > { %v1317_v42 = vsel %vm3248_vm7, %v1227_v7, 0.0  ;;  %vm490_vm10 = vmand %vm2689_vm1, %vm2695_vm2  ;;  %v1298_v38 = vadd.f32 %v1297_v25, %v1296_v46  ;;  %v1311_v16 = vrot.slane %v1310_v30, 4  ;;  %v1907_v10 = vpop.eup %1906  ;;  %v1102_v60 = vmul.f32 0.6931472, %v1905_v26 }
  0xbf   : > { %v1305_v18 = vadd.f32 %v1304_v12, %v1303_v20  ;;  %v1318_v21 = vrot.slane %v1317_v42, 4  ;;  %v1231_v9 = vsel %vm490_vm10, %v2462_v23, 0.0  ;;  %v1104_v34 = vmul.f32 0.6931472, %v1907_v10  ;;  %vm3252_vm6 = vmmov %vm3248_vm7 }
  0xc0   : > { %v1299_v19 = vrot.slane %v1298_v38, 2  ;;  %v1312_v51 = vadd.f32 %v1311_v16, %v1310_v30  ;;  %v1909_v5 = vpop.eup %1908  ;;  %1912 = vlog2.f32 %v1017_v32  ;;  %v1137_v48 = vadd.f32 %v1098_v27, %v3250_v6  ;;  %vm3255_vm4 = vmmov %vm3252_vm6  ;;  %v3260_v6 = vld [vmem:[#allocation8_spill] sm:$0xff] }
  0xc1   : > { %v1306_v58 = vrot.slane %v1305_v18, 2  ;;  %v1319_v3 = vadd.f32 %v1318_v21, %v1317_v42  ;;  %1914 = vlog2.f32 %v1024_v61  ;;  %v1911_v28 = vpop.eup %1910  ;;  %v1138_v56 = vadd.f32 %v1100_v39, %v3251_v24  ;;  %vm3256_vm5 = vmmov %vm3255_vm4 }
  0xc2   : > { %v1300_v14 = vadd.f32 %v1299_v19, %v1298_v38  ;;  %v1313_v40 = vrot.slane %v1312_v51, 2  ;;  %v1324_v49 = vsel %vm3252_vm6, %v1228_v4, 0.0  ;;  %v1106_v23 = vmul.f32 0.6931472, %v1909_v5  ;;  %vm3257_vm3 = vmmov %vm3255_vm4 }
  0xc3   : > { %v1307_v52 = vadd.f32 %v1306_v58, %v1305_v18  ;;  %v1320_v36 = vrot.slane %v1319_v3, 2  ;;  %v1139_v43 = vadd.f32 %v1102_v60, %v3253_v29  ;;  %v1140_v44 = vadd.f32 %v1104_v34, %v3254_v53  ;;  %vm3271_vm7 = vmmov %vm3257_vm3 }
  0xc4   : > { %v1301_v63 = vrot.slane %v1300_v14, 1  ;;  %v1314_v2 = vadd.f32 %v1313_v40, %v1312_v51  ;;  %v1325_v8 = vrot.slane %v1324_v49, 4  ;;  %v1331_v37 = vsel %vm3255_vm4, %v1229_v33, 0.0  ;;  %v2743_v51 = vld [vmem:[%s2006_s21 + $0x10] sm:$0xff]  ;;  %vm3277_vm4 = vmmov %vm3257_vm3 }
  0xc5   : > { %v1308_v45 = vrot.slane %v1307_v52, 1  ;;  %v1321_v1 = vadd.f32 %v1320_v36, %v1319_v3  ;;  %v1332_v7 = vrot.slane %v1331_v37, 4  ;;  %v1338_v46 = vsel %vm3256_vm5, %v1230_v15, 0.0 }
  0xc6   : > { %v1315_v13 = vrot.slane %v1314_v2, 1  ;;  %v1302_v41 = vadd.f32 %v1301_v63, %v1300_v14  ;;  %v1913_v22 = vpop.eup %1912  ;;  %v1326_v54 = vadd.f32 %v1325_v8, %v1324_v49  ;;  %v1345_v17 = vsel %vm3257_vm3, %v1231_v9, 0.0  ;;  %v3263_v49 = vld [vmem:[#allocation10_spill] sm:$0xff] }
  0xc7   : > { %v1309_v11 = vadd.f32 %v1308_v45, %v1307_v52  ;;  %v1322_v35 = vrot.slane %v1321_v1, 1  ;;  %v1915_v32 = vpop.eup %1914  ;;  %v1333_v20 = vadd.f32 %v1332_v7, %v1331_v37  ;;  %v1339_v47 = vrot.slane %v1338_v46, 4  ;;  %v3264_v45 = vld [vmem:[#allocation11_spill] sm:$0xff] }
  0xc8   : > { %v1316_v62 = vadd.f32 %v1315_v13, %v1314_v2  ;;  %v1346_v4 = vrot.slane %v1345_v17, 4  ;;  %v1108_v12 = vmul.f32 0.6931472, %v1911_v28  ;;  %v1327_v30 = vrot.slane %v1326_v54, 2  ;;  %v3262_v28 = vld [vmem:[#allocation9_spill] sm:$0xff] }
  0xc9   : > { %v1323_v25 = vadd.f32 %v1322_v35, %v1321_v1  ;;  %v1420_v42 = vsub.f32 %v1138_v56, %v1309_v11  ;;  %v1334_v0 = vrot.slane %v1333_v20, 2  ;;  %v1340_v33 = vadd.f32 %v1339_v47, %v1338_v46  ;;  %v1409_v47 = vld [vmem:[#allocation2] sm:$0xff] }
  0xca   : > { %v1421_v26 = vsub.f32 %v1139_v43, %v1316_v62  ;;  %v1347_v38 = vadd.f32 %v1346_v4, %v1345_v17  ;;  %v1328_v10 = vadd.f32 %v1327_v30, %v1326_v54  ;;  %v1419_v61 = vsub.f32 %v1137_v48, %v1302_v41 }
  0xcb   : > { %v1422_v16 = vsub.f32 %v1140_v44, %v1323_v25  ;;  %v1466_v27 = vrot.slane %v1420_v42, 7  ;;  %v1335_v21 = vadd.f32 %v1334_v0, %v1333_v20  ;;  %v1341_v39 = vrot.slane %v1340_v33, 2 }
  0xcc   : > { %v1467_v18 = vrot.slane %v1421_v26, 6  ;;  %v1348_v15 = vrot.slane %v1347_v38, 2  ;;  %v1110_v60 = vmul.f32 0.6931472, %v1913_v22  ;;  %v1112_v9 = vmul.f32 0.6931472, %v1915_v32 }
  0xcd   : > { %v1468_v19 = vrot.slane %v1422_v16, 5  ;;  %v1329_v58 = vrot.slane %v1328_v10, 1  ;;  %vm3258_vm13 = vcmask 1040384   ;;  %v1336_v5 = vrot.slane %v1335_v21, 1 }
  0xce   : > { %v1487_v3 = vsel %vm3258_vm13, %v1419_v61, %v1466_v27  ;;  %v1342_v34 = vadd.f32 %v1341_v39, %v1340_v33  ;;  %v1349_v14 = vadd.f32 %v1348_v15, %v1347_v38  ;;  %vm3259_vm12 = vcmask 1042434   ;;  %vm3283_vm13 = vmmov %vm3277_vm4 }
  0xcf   : > { %v1488_v40 = vsel %vm3259_vm12, %v1467_v18, %v1468_v19  ;;  %v1141_v48 = vadd.f32 %v1106_v23, %v3260_v6  ;;  %v1330_v52 = vadd.f32 %v1329_v58, %v1328_v10  ;;  %vm3261_vm15 = vcmask 1041408   ;;  %v3276_v18 = vld [vmem:[#allocation21_spill] sm:$0xff]  ;;  %vm3285_vm12 = vmmov %vm3277_vm4 }
  0xd0   : > { %v1489_v36 = vsel %vm3261_vm15, %v1487_v3, %v1488_v40  ;;  %vm270_vm1 = vcmp.ne.s32.totalorder %v2743_v51, 4294967295  ;;  %v1142_v24 = vadd.f32 %v1108_v12, %v3262_v28  ;;  %v1337_v56 = vadd.f32 %v1336_v5, %v1335_v21  ;;  %v3284_v3 = vld [vmem:[#allocation23_spill] sm:$0xff] }
  0xd1   : > { %v1343_v63 = vrot.slane %v1342_v34, 1  ;;  %v1350_v2 = vrot.slane %v1349_v14, 1  ;;  %v1143_v29 = vadd.f32 %v1110_v60, %v3263_v49  ;;  %v1423_v43 = vsub.f32 %v1141_v48, %v1330_v52  ;;  %v3290_v48 = vld [vmem:[#allocation24_spill] sm:$0xff] }
  0xd2   : > { %v1144_v1 = vadd.f32 %v1112_v9, %v3264_v45  ;;  %v1424_v13 = vsub.f32 %v1142_v24, %v1337_v56  ;;  %vm3265_vm2 = vcmp.ne.s32.totalorder %v2212_v31, 0  ;;  %v3266_v23 = vmov 0  ;;  %v3282_v9 = vld [vmem:[#allocation22_spill] sm:$0xff] }
  0xd3   : > { %v1344_v53 = vadd.f32 %v1343_v63, %v1342_v34  ;;  %v1351_v44 = vadd.f32 %v1350_v2, %v1349_v14  ;;  %vm2755_vm14 = vmand %vm270_vm1, %vm3265_vm2  ;;  %v1469_v8 = vrot.slane %v1423_v43, 4  ;;  %vm3268_vm11 = vcmask 1044484   ;;  %v1188_v14 = vld.sshfl [vmem:[#allocation1 + $0x20] sm:$0xff pattern:$0x75316420] }
  0xd4   : > { %v3267_v23 = vsel %vm2755_vm14, 4294967295, %v3266_v23  ;;  %v1470_v11 = vrot.slane %v1424_v13, 3  ;;  %v2762_v35 = vsel %vm2755_vm14, 1, %v3196_v50  ;;  %v392_v54 = vperm.slane %v2743_v51, 0  ;;  %vm3291_vm2 = vmmov %vm3277_vm4 }
  0xd5   : > { %v1425_v37 = vsub.f32 %v1143_v29, %v1344_v53  ;;  %v1426_v41 = vsub.f32 %v1144_v1, %v1351_v44  ;;  %v393_v31 = vperm.slane %v2743_v51, 1  ;;  %v394_v46 = vperm.slane %v2743_v51, 2  ;;  %v3298_v29 = vld [vmem:[#allocation26_spill] sm:$0xff]  ;;  %v3300_v44 = vld [vmem:[#allocation27_spill] sm:$0xff] }
  0xd6   : > { %v1490_v62 = vsel %vm3268_vm11, %v1469_v8, %v1470_v11  ;;  %v443_v17 = vperm.slane %v2762_v35, 0  ;;  %vm3269_vm0 = vcmask 1046534   ;;  %v395_v25 = vperm.slane %v2743_v51, 3  ;;  %vm3293_vm11 = vmmov %vm3291_vm2 }
  0xd7   : > { %v1471_v7 = vrot.slane %v1425_v37, 2  ;;  %v1472_v22 = vrot.slane %v1426_v41, 1  ;;  %v396_v20 = vperm.slane %v2743_v51, 4  ;;  %v444_v50 = vperm.slane %v2762_v35, 1 }
  0xd8   : > { %vm3270_vm8 = vcmask 1045508   ;;  %v397_v12 = vperm.slane %v2743_v51, 5  ;;  %v398_v30 = vperm.slane %v2743_v51, 6  ;;  %v445_v42 = vperm.slane %v2762_v35, 2 }
  0xd9   : > { %v1491_v32 = vsel %vm3269_vm0, %v1471_v7, %v1472_v22  ;;  %v399_v0 = vperm.slane %v2743_v51, 7  ;;  %v446_v33 = vperm.slane %v2762_v35, 3  ;;  %v447_v38 = vperm.slane %v2762_v35, 4 }
  0xda   : > { %v1492_v4 = vsel %vm3270_vm8, %v1490_v62, %v1491_v32  ;;  %vm2784_vm10 = vcmp.eq.s32.totalorder %v2232_v57, %v392_v54  ;;  %v448_v61 = vperm.slane %v2762_v35, 5  ;;  %vm2789_vm6 = vcmp.eq.s32.totalorder %v443_v17, 1  ;;  %v3302_v54 = vld [vmem:[#allocation28_spill] sm:$0xff] }
  0xdb   : > { %v1493_v26 = vsel %vm3271_vm7, %v1489_v36, %v1492_v4  ;;  %v1025_v21 = vsel %vm3277_vm4, %v3276_v18, 0.0  ;;  %vm2796_vm5 = vcmp.eq.s32.totalorder %v2232_v57, %v393_v31  ;;  %vm2800_vm3 = vcmp.eq.s32.totalorder %v444_v50, 1  ;;  %v3292_v36 = vld [vmem:[#allocation25_spill] sm:$0xff]  ;;  %vm3299_vm7 = vmmov %vm3291_vm2 }
  0xdc   : > { %v1505_v16 = vsel %vm2525_vm9, %v1493_v26, 0.0  ;;  %v1026_v60 = vrot.slane %v1025_v21, 4  ;;  %v1032_v58 = vsel %vm3283_vm13, %v3282_v9, 0.0  ;;  %v1039_v5 = vsel %vm3285_vm12, %v3284_v3, 0.0  ;;  %vm3301_vm4 = vmmov %vm3291_vm2 }
  0xdd   : > { %v1508_v39 = vadd.f32 %v1505_v16, %v1409_v47  ;;  %vm2809_vm15 = vcmp.eq.s32.totalorder %v2232_v57, %v394_v46  ;;  %vm2813_vm1 = vcmp.eq.s32.totalorder %v445_v42, 1  ;;  %v1033_v40 = vrot.slane %v1032_v58, 4  ;;  %vm3303_vm13 = vmmov %vm3291_vm2 }
  0xde   : > { %v1040_v6 = vrot.slane %v1039_v5, 4  ;;  %v1046_v52 = vsel %vm3291_vm2, %v3290_v48, 0.0  ;;  %v1053_v28 = vsel %vm3293_vm11, %v3292_v36, 0.0  ;;  %vm2822_vm0 = vcmp.eq.s32.totalorder %v2232_v57, %v395_v25  ;;  %vm491_vm11 = vmand %vm2784_vm10, %vm2789_vm6 }
  0xdf   : > { %1511 = vst [vmem:[#allocation2] sm:$0xff] %v1508_v39  ;;  %vm2826_vm8 = vcmp.eq.s32.totalorder %v446_v33, 1  ;;  %v1027_v63 = vadd.f32 %v1026_v60, %v1025_v21  ;;  %v1047_v2 = vrot.slane %v1046_v52, 4  ;;  %v1054_v49 = vrot.slane %v1053_v28, 4  ;;  %vm3312_vm14 = vmand %vm2796_vm5, %vm2800_vm3 }
  0xe0   : > { %v1060_v43 = vsel %vm3299_vm7, %v3298_v29, 0.0  ;;  %v1034_v45 = vadd.f32 %v1033_v40, %v1032_v58  ;;  %v1041_v1 = vadd.f32 %v1040_v6, %v1039_v5  ;;  %v1067_v13 = vsel %vm3301_vm4, %v3300_v44, 0.0  ;;  %v1184_v6 = vld.sshfl [vmem:[#allocation1] sm:$0xff pattern:$0x75316420]  ;;  %vm494_vm4 = vmand %vm2822_vm0, %vm2826_vm8 }
  0xe1   : > { %v1061_v53 = vrot.slane %v1060_v43, 4  ;;  %v1028_v8 = vrot.slane %v1027_v63, 2  ;;  %v1048_v37 = vadd.f32 %v1047_v2, %v1046_v52  ;;  %v1055_v41 = vadd.f32 %v1054_v49, %v1053_v28  ;;  %v1187_v44 = vld.sshfl [vmem:[#allocation1 + $0x18] sm:$0xff pattern:$0x75316420]  ;;  %vm3313_vm0 = vmand %vm2809_vm15, %vm2813_vm1 }
  0xe2   : > { %v1068_v11 = vrot.slane %v1067_v13, 4  ;;  %v1035_v7 = vrot.slane %v1034_v45, 2  ;;  %v1042_v22 = vrot.slane %v1041_v1, 2  ;;  %v1074_v31 = vsel %vm3303_vm13, %v3302_v54, 0.0 }
  0xe3   : > { %v1062_v62 = vadd.f32 %v1061_v53, %v1060_v43  ;;  %vm2837_vm12 = vcmp.eq.s32.totalorder %v2232_v57, %v396_v20  ;;  %v1029_v17 = vadd.f32 %v1028_v8, %v1027_v63  ;;  %v1049_v32 = vrot.slane %v1048_v37, 2  ;;  %v1185_v63 = vld.sshfl [vmem:[#allocation1 + $0x8] sm:$0xff pattern:$0x75316420] }
  0xe4   : > { %v1056_v25 = vrot.slane %v1055_v41, 2  ;;  %v1069_v50 = vadd.f32 %v1068_v11, %v1067_v13  ;;  %vm2842_vm2 = vcmp.eq.s32.totalorder %v2232_v57, %v397_v12  ;;  %v1036_v4 = vadd.f32 %v1035_v7, %v1034_v45  ;;  %v1186_v43 = vld.sshfl [vmem:[#allocation1 + $0x10] sm:$0xff pattern:$0x75316420] }
  0xe5   : > { %v1043_v42 = vadd.f32 %v1042_v22, %v1041_v1  ;;  %v1063_v26 = vrot.slane %v1062_v62, 2  ;;  %v1075_v33 = vrot.slane %v1074_v31, 4  ;;  %v1030_v16 = vrot.slane %v1029_v17, 1 }
  0xe6   : > { %v1050_v18 = vadd.f32 %v1049_v32, %v1048_v37  ;;  %v1057_v21 = vadd.f32 %v1056_v25, %v1055_v41  ;;  %v1070_v20 = vrot.slane %v1069_v50, 2  ;;  %v1037_v39 = vrot.slane %v1036_v4, 1 }
  0xe7   : > { %v1044_v60 = vrot.slane %v1043_v42, 1  ;;  %v1064_v9 = vadd.f32 %v1063_v26, %v1062_v62  ;;  %v1076_v58 = vadd.f32 %v1075_v33, %v1074_v31  ;;  %v1031_v12 = vadd.f32 %v1030_v16, %v1029_v17  ;;  %v1190_v17 = vld.sshfl [vmem:[#allocation1 + $0x30] sm:$0xff pattern:$0x75316420] }
  0xe8   : > { %v1051_v3 = vrot.slane %v1050_v18, 1  ;;  %v1058_v5 = vrot.slane %v1057_v21, 1  ;;  %v1071_v40 = vadd.f32 %v1070_v20, %v1069_v50  ;;  %v1038_v48 = vadd.f32 %v1037_v39, %v1036_v4  ;;  %v1191_v4 = vld.sshfl [vmem:[#allocation1 + $0x38] sm:$0xff pattern:$0x75316420] }
  0xe9   : > { %v1045_v52 = vadd.f32 %v1044_v60, %v1043_v42  ;;  %v1065_v36 = vrot.slane %v1064_v9, 1  ;;  %v1077_v28 = vrot.slane %v1076_v58, 2  ;;  %v449_v2 = vperm.slane %v2762_v35, 6 }
  0xea   : > { %v450_v49 = vperm.slane %v2762_v35, 7  ;;  %v1052_v29 = vadd.f32 %v1051_v3, %v1050_v18  ;;  %1916 = vlog2.f32 %v1031_v12  ;;  %vm2862_vm13 = vcmp.eq.s32.totalorder %v447_v38, 1 }
  0xeb   : > { %vm2868_vm7 = vcmp.eq.s32.totalorder %v448_v61, 1  ;;  %v1078_v53 = vadd.f32 %v1077_v28, %v1076_v58  ;;  %1918 = vlog2.f32 %v1038_v48  ;;  %v1059_v13 = vadd.f32 %v1058_v5, %v1057_v21  ;;  %vm495_vm3 = vmand %vm2837_vm12, %vm2862_vm13  ;;  %v3327_v28 = vld [vmem:[#allocation12_spill] sm:$0xff] }
  0xec   : > { %1920 = vlog2.f32 %v1045_v52  ;;  %v1232_v35 = vsel %vm491_vm11, %v1184_v6, 0.0  ;;  %v1233_v38 = vsel %vm3312_vm14, %v1185_v63, 0.0  ;;  %v1066_v61 = vadd.f32 %v1065_v36, %v1064_v9  ;;  %vm496_vm8 = vmand %vm2842_vm2, %vm2868_vm7 }
  0xed   : > { %v1072_v24 = vrot.slane %v1071_v40, 1  ;;  %1922 = vlog2.f32 %v1052_v29  ;;  %v1234_v56 = vsel %vm3313_vm0, %v1186_v43, 0.0  ;;  %vm2894_vm10 = vcmp.eq.s32.totalorder %v2232_v57, %v398_v30 }
  0xee   : > { %vm2898_vm6 = vcmp.eq.s32.totalorder %v449_v2, 1  ;;  %vm2902_vm14 = vcmp.eq.s32.totalorder %v450_v49, 1  ;;  %v1235_v19 = vsel %vm494_vm4, %v1187_v44, 0.0  ;;  %vm2909_vm5 = vcmp.eq.s32.totalorder %v2232_v57, %v399_v0  ;;  %v1189_v57 = vld.sshfl [vmem:[#allocation1 + $0x28] sm:$0xff pattern:$0x75316420] }
  0xef   : > { %v1079_v30 = vrot.slane %v1078_v53, 1  ;;  %vm3322_vm15 = vcmask 1043456   ;;  %1924 = vlog2.f32 %v1059_v13  ;;  %v1073_v22 = vadd.f32 %v1072_v24, %v1071_v40  ;;  %vm497_vm0 = vmand %vm2894_vm10, %vm2898_vm6  ;;  %v3328_v2 = vld [vmem:[#allocation13_spill] sm:$0xff]  ;;  %v3329_v13 = vld [vmem:[#allocation15_spill] sm:$0xff] }
  0xf0   : > { %v1352_v8 = vsel %vm3322_vm15, %v1232_v35, 0.0  ;;  %vm3323_vm1 = vmmov %vm3322_vm15  ;;  %v1917_v41 = vpop.eup %1916  ;;  %1926 = vlog2.f32 %v1066_v61  ;;  %v1236_v42 = vsel %vm495_vm3, %v1188_v14, 0.0  ;;  %v1237_v26 = vsel %vm496_vm8, %v1189_v57, 0.0 }
  0xf1   : > { %v1359_v37 = vsel %vm3323_vm1, %v1233_v38, 0.0  ;;  %v1353_v51 = vrot.slane %v1352_v8, 4  ;;  %vm3324_vm11 = vmmov %vm3323_vm1  ;;  %v1919_v7 = vpop.eup %1918  ;;  %v1080_v18 = vadd.f32 %v1079_v30, %v1078_v53  ;;  %v1114_v21 = vmul.f32 0.6931472, %v1917_v41  ;;  %v3330_v38 = vld [vmem:[#allocation14_spill] sm:$0xff] }
  0xf2   : > { %v1360_v0 = vrot.slane %v1359_v37, 4  ;;  %v1366_v11 = vsel %vm3324_vm11, %v1234_v56, 0.0  ;;  %vm3325_vm4 = vmmov %vm3323_vm1  ;;  %v1921_v31 = vpop.eup %1920  ;;  %v1116_v46 = vmul.f32 0.6931472, %v1919_v7  ;;  %1928 = vlog2.f32 %v1073_v22  ;;  %v3334_v7 = vld [vmem:[#allocation17_spill] sm:$0xff] }
  0xf3   : > { %v1367_v62 = vrot.slane %v1366_v11, 4  ;;  %v1373_v54 = vsel %vm3325_vm4, %v1235_v19, 0.0  ;;  %v1923_v50 = vpop.eup %1922  ;;  %v1354_v33 = vadd.f32 %v1353_v51, %v1352_v8  ;;  %vm498_vm15 = vmand %vm2909_vm5, %vm2902_vm14  ;;  %v1238_v47 = vsel %vm497_vm0, %v1190_v17, 0.0 }
  0xf4   : > { %v1361_v32 = vadd.f32 %v1360_v0, %v1359_v37  ;;  %v1374_v25 = vrot.slane %v1373_v54, 4  ;;  %v1118_v58 = vmul.f32 0.6931472, %v1921_v31  ;;  %v1120_v12 = vmul.f32 0.6931472, %v1923_v50  ;;  %vm3326_vm12 = vmmov %vm3323_vm1 }
  0xf5   : > { %v1368_v16 = vadd.f32 %v1367_v62, %v1366_v11  ;;  %v1925_v9 = vpop.eup %1924  ;;  %v1380_v5 = vsel %vm3326_vm12, %v1236_v42, 0.0  ;;  %v1239_v6 = vsel %vm498_vm15, %v1191_v4, 0.0  ;;  %v1355_v48 = vrot.slane %v1354_v33, 2  ;;  %vm3331_vm2 = vmmov %vm3323_vm1 }
  0xf6   : > { %v1362_v20 = vrot.slane %v1361_v32, 2  ;;  %v1375_v60 = vadd.f32 %v1374_v25, %v1373_v54  ;;  %v1927_v40 = vpop.eup %1926  ;;  %1930 = vlog2.f32 %v1080_v18  ;;  %v2950_v63 = vadd.f32 %v1114_v21, %v3327_v28  ;;  %vm3332_vm7 = vmmov %vm3323_vm1  ;;  %v1513_v25 = vld [vmem:[#allocation3 + $0x8] sm:$0xff] }
  0xf7   : > { %v1369_v39 = vrot.slane %v1368_v16, 2  ;;  %v1146_v49 = vadd.f32 %v1116_v46, %v3328_v2  ;;  %v1122_v43 = vmul.f32 0.6931472, %v1925_v9  ;;  %v1381_v53 = vrot.slane %v1380_v5, 4  ;;  %vm3333_vm13 = vmmov %vm3323_vm1 }
  0xf8   : > { %v1363_v3 = vadd.f32 %v1362_v20, %v1361_v32  ;;  %v1376_v36 = vrot.slane %v1375_v60, 2  ;;  %v1124_v44 = vmul.f32 0.6931472, %v1927_v40  ;;  %v1147_v35 = vadd.f32 %v1118_v58, %v3329_v13  ;;  %v1929_v56 = vpop.eup %1928  ;;  %v1514_v20 = vld [vmem:[#allocation3] sm:$0xff]  ;;  %vm3346_vm11 = vmmov %vm3331_vm2 }
  0xf9   : > { %v1370_v52 = vadd.f32 %v1369_v39, %v1368_v16  ;;  %v1148_v61 = vadd.f32 %v1120_v12, %v3330_v38  ;;  %v1387_v24 = vsel %vm3331_vm2, %v1237_v26, 0.0  ;;  %v1356_v10 = vadd.f32 %v1355_v48, %v1354_v33 }
  0xfa   : > { %v1364_v29 = vrot.slane %v1363_v3, 1  ;;  %v1377_v1 = vadd.f32 %v1376_v36, %v1375_v60  ;;  %v1382_v15 = vadd.f32 %v1381_v53, %v1380_v5  ;;  %v1388_v19 = vrot.slane %v1387_v24, 4  ;;  %v3337_v36 = vld [vmem:[#allocation16_spill] sm:$0xff]  ;;  %v3338_v53 = vld [vmem:[#allocation19_spill] sm:$0xff] }
  0xfb   : > { %v1371_v45 = vrot.slane %v1370_v52, 1  ;;  %v1394_v14 = vsel %vm3332_vm7, %v1238_v47, 0.0  ;;  %v1401_v8 = vsel %vm3333_vm13, %v1239_v6, 0.0  ;;  %v1126_v11 = vmul.f32 0.6931472, %v1929_v56  ;;  %v1515_v47 = vld [vmem:[#allocation3 + $0x10] sm:$0xff] }
  0xfc   : > { %v1378_v27 = vrot.slane %v1377_v1, 1  ;;  %v1365_v34 = vadd.f32 %v1364_v29, %v1363_v3  ;;  %v1383_v41 = vrot.slane %v1382_v15, 2  ;;  %v1389_v57 = vadd.f32 %v1388_v19, %v1387_v24  ;;  %v1931_v0 = vpop.eup %1930 }
  0xfd   : > { %v1372_v30 = vadd.f32 %v1371_v45, %v1370_v52  ;;  %v1395_v51 = vrot.slane %v1394_v14, 4  ;;  %v1149_v22 = vadd.f32 %v1122_v43, %v3334_v7  ;;  %v1402_v62 = vrot.slane %v1401_v8, 4 }
  0xfe   : > { %v1379_v37 = vadd.f32 %v1378_v27, %v1377_v1  ;;  %v1357_v54 = vrot.slane %v1356_v10, 1  ;;  %v1384_v31 = vadd.f32 %v1383_v41, %v1382_v15  ;;  %v1390_v17 = vrot.slane %v1389_v57, 2 }
  0xff   : > { %v1396_v32 = vadd.f32 %v1395_v51, %v1394_v14  ;;  %v1403_v50 = vadd.f32 %v1402_v62, %v1401_v8  ;;  %v1428_v4 = vsub.f32 %v1146_v49, %v1365_v34  ;;  %v1429_v42 = vsub.f32 %v1147_v35, %v1372_v30  ;;  %v1410_v51 = vld [vmem:[#allocation2 + $0x8] sm:$0xff] }
 0x100   : > { %v1959_v26 = vmov 0.0   ;;  %vm3335_vm10 = vnez %v3126_v59  ;;  %v1385_v16 = vrot.slane %v1384_v31, 1  ;;  %v1391_v18 = vadd.f32 %v1390_v17, %v1389_v57 }
 0x101   : > { %v1516_v33 = vsel %vm3335_vm10, 1.0, %v1959_v26  ;;  %v1397_v21 = vrot.slane %v1396_v32, 2  ;;  %v1430_v46 = vsub.f32 %v1148_v61, %v1379_v37  ;;  %v1404_v39 = vrot.slane %v1403_v50, 2  ;;  %v3339_v61 = vld [vmem:[#allocation18_spill] sm:$0xff] }
 0x102   : > { %v1519_v60 = vadd.f32 %v1516_v33, %v1513_v25  ;;  %v1517_v9 = vsel %vm2525_vm9, 1.0, %v1959_v26  ;;  %vm3336_vm6 = vnez %v3267_v23  ;;  %v1128_v12 = vmul.f32 0.6931472, %v1931_v0 }
 0x103   : > { %v1518_v58 = vsel %vm3336_vm6, 1.0, %v1959_v26  ;;  %v1386_v3 = vadd.f32 %v1385_v16, %v1384_v31  ;;  %v1392_v5 = vrot.slane %v1391_v18, 1  ;;  %v1398_v40 = vadd.f32 %v1397_v21, %v1396_v32  ;;  %v2985_v21 = vld [vmem:[#allocation2] sm:$0xff] (%p1525_p6) }
 0x104   : > { %v1358_v59 = vadd.f32 %v1357_v54, %v1356_v10  ;;  %v1405_v6 = vadd.f32 %v1404_v39, %v1403_v50  ;;  %1522 = vst [vmem:[#allocation3 + $0x8] sm:$0xff] %v1519_v60  ;;  %v1520_v48 = vadd.f32 %v1517_v9, %v1514_v20  ;;  %v1521_v52 = vadd.f32 %v1518_v58, %v1515_v47 }
 0x105   : > { %v1150_v28 = vadd.f32 %v1124_v44, %v3337_v36  ;;  %v1393_v2 = vadd.f32 %v1392_v5, %v1391_v18  ;;  %v1399_v49 = vrot.slane %v1398_v40, 1  ;;  %v1431_v29 = vsub.f32 %v1149_v22, %v1386_v3  ;;  %v1530_v22 = vld [vmem:[#allocation2 + $0x10] sm:$0xff] (%p1525_p6) }
 0x106   : > { %v1406_v43 = vrot.slane %v1405_v6, 1  ;;  %v1473_v55 = vrot.slane %v1428_v4, 7  ;;  %v1474_v45 = vrot.slane %v1429_v42, 6  ;;  %v1475_v1 = vrot.slane %v1430_v46, 5  ;;  %1523 = vst [vmem:[#allocation3] sm:$0xff] %v1520_v48 }
 0x107   : > { %v1151_v13 = vadd.f32 %v1126_v11, %v3338_v53  ;;  %v1400_v35 = vadd.f32 %v1399_v49, %v1398_v40  ;;  %v1432_v38 = vsub.f32 %v1150_v28, %v1393_v2  ;;  %1524 = vst [vmem:[#allocation3 + $0x10] sm:$0xff] %v1521_v52  ;;  %v1152_v24 = vadd.f32 %v1128_v12, %v3339_v61 }
 0x108   : > { %v1407_v56 = vadd.f32 %v1406_v43, %v1405_v6  ;;  %v1427_v10 = vsub.f32 %v2950_v63, %v1358_v59  ;;  %v1476_v27 = vrot.slane %v1431_v29, 4  ;;  %vm3340_vm9 = vcmask 1040384  }
 0x109   : > { %v1433_v44 = vsub.f32 %v1151_v13, %v1400_v35  ;;  %v1477_v15 = vrot.slane %v1432_v38, 3  ;;  %vm3341_vm14 = vcmask 1042434   ;;  %vm3342_vm5 = vcmask 1044484  }
 0x10a   : > { %v1434_v19 = vsub.f32 %v1152_v24, %v1407_v56  ;;  %v1494_v34 = vsel %vm3340_vm9, %v1427_v10, %v1473_v55  ;;  %v1495_v30 = vsel %vm3341_vm14, %v1474_v45, %v1475_v1  ;;  %vm3343_vm3 = vcmask 1041408  }
 0x10b   : > { %v1478_v14 = vrot.slane %v1433_v44, 2  ;;  %v1497_v37 = vsel %vm3342_vm5, %v1476_v27, %v1477_v15  ;;  %v1496_v41 = vsel %vm3343_vm3, %v1494_v34, %v1495_v30  ;;  %vm3344_vm1 = vcmask 1046534   ;;  %v1640_v20 = vld [vmem:[#allocation3 + $0x8] sm:$0xff] (%p1525_p6) }
 0x10c   : > { %v1479_v8 = vrot.slane %v1434_v19, 1  ;;  %vm3345_vm8 = vcmask 1045508   ;;  %v1536_v62 = vperm.slane (%p1525_p6), %v1530_v22, 0  ;;  %v1537_v54 = vperm.slane (%p1525_p6), %v1530_v22, 1 }
 0x10d   : > { %v1538_v31 = vperm.slane (%p1525_p6), %v1530_v22, 2  ;;  %v1539_v17 = vperm.slane (%p1525_p6), %v1530_v22, 3  ;;  %v1540_v32 = vperm.slane (%p1525_p6), %v1530_v22, 4  ;;  %vm3347_vm4 = vcmask (%p1525_p6), 1040384   ;;  %v3005_v34 = vld [vmem:[#allocation3] sm:$0xff] (%p1525_p6) }
 0x10e   : > { %v1498_v57 = vsel %vm3344_vm1, %v1478_v14, %v1479_v8  ;;  %v1584_v25 = vsel (%p1525_p6), %vm3347_vm4, %v1536_v62, 0.0  ;;  %vm3348_vm0 = vmmov (%p1525_p6), %vm3347_vm4  ;;  %v1541_v23 = vperm.slane (%p1525_p6), %v1530_v22, 5  ;;  %v1542_v16 = vperm.slane (%p1525_p6), %v1530_v22, 6 }
 0x10f   : > { %v1499_v0 = vsel %vm3345_vm8, %v1497_v37, %v1498_v57  ;;  %v1585_v50 = vsel (%p1525_p6), %vm3348_vm0, %v1537_v54, 0.0  ;;  %vm3349_vm15 = vmmov (%p1525_p6), %vm3348_vm0  ;;  %v1543_v47 = vperm.slane (%p1525_p6), %v1530_v22, 7  ;;  %v1544_v9 = vperm.slane (%p1525_p6), %v2985_v21, 0 }
 0x110   : > { %v1500_v63 = vsel %vm3346_vm11, %v1496_v41, %v1499_v0  ;;  %1529 = sbr.rel (!%p1525_p6) target bundleno = 510 (0x1fe), region = 36  ;;  %v1587_v4 = vsel (%p1525_p6), %vm3349_vm15, %v1538_v31, 0.0  ;;  %v1586_v42 = vadd.f32 (%p1525_p6), %v1585_v50, %v1584_v25  ;;  %vm3350_vm12 = vmmov (%p1525_p6), %vm3348_vm0  ;;  %v1646_v12 = vperm.slane (%p1525_p6), %v1640_v20, 0 }
 0x111   : > { %v1506_v11 = vsel %vm3336_vm6, %v1500_v63, 0.0  ;;  %v1589_v26 = vsel (%p1525_p6), %vm3350_vm12, %v1539_v17, 0.0  ;;  %vm3351_vm2 = vmmov (%p1525_p6), %vm3348_vm0  ;;  %v1647_v5 = vperm.slane (%p1525_p6), %v1640_v20, 1  ;;  %v1648_v40 = vperm.slane (%p1525_p6), %v1640_v20, 2 }
 0x112   : > { %v1509_v7 = vadd.f32 %v1506_v11, %v1410_v51  ;;  %v1588_v33 = vadd.f32 (%p1525_p6), %v1587_v4, %v1586_v42  ;;  %v1591_v18 = vsel (%p1525_p6), %vm3351_vm2, %v1540_v32, 0.0  ;;  %vm3352_vm7 = vmmov (%p1525_p6), %vm3348_vm0  ;;  %v1545_v59 = vperm.slane (%p1525_p6), %v2985_v21, 1 }
 0x113   : > { %v1593_v39 = vsel (%p1525_p6), %vm3352_vm7, %v1541_v23, 0.0  ;;  %vm3353_vm13 = vmmov (%p1525_p6), %vm3348_vm0  ;;  %v1649_v52 = vperm.slane (%p1525_p6), %v1640_v20, 3  ;;  %v1546_v36 = vperm.slane (%p1525_p6), %v2985_v21, 2  ;;  %v1650_v29 = vperm.slane (%p1525_p6), %v1640_v20, 4 }
 0x114   : > { %1512 = vst [vmem:[#allocation2 + $0x8] sm:$0xff] %v1509_v7  ;;  %v1590_v46 = vadd.f32 (%p1525_p6), %v1589_v26, %v1588_v33  ;;  %v1595_v58 = vsel (%p1525_p6), %vm3353_vm13, %v1542_v16, 0.0  ;;  %vm3354_vm10 = vmmov (%p1525_p6), %vm3348_vm0  ;;  %v1547_v45 = vperm.slane (%p1525_p6), %v2985_v21, 3  ;;  %v1651_v35 = vperm.slane (%p1525_p6), %v1640_v20, 5 }
 0x115   : > { %v1597_v6 = vsel %vm3354_vm10, %v1543_v47, 0.0  ;;  %vm3355_vm6 = vmmov %vm3348_vm0  ;;  %v1548_v61 = vperm.slane %v2985_v21, 4  ;;  %v1652_v27 = vperm.slane %v1640_v20, 6  ;;  %v1549_v15 = vperm.slane %v2985_v21, 5 }
 0x116   : > { %v1592_v60 = vadd.f32 %v1591_v18, %v1590_v46  ;;  %v1599_v28 = vsel %vm3355_vm6, %v1544_v9, 0.0  ;;  %vm3356_vm9 = vmmov %vm3348_vm0  ;;  %v1653_v8 = vperm.slane %v1640_v20, 7  ;;  %v1703_v37 = vsel %vm3348_vm0, %v1651_v35, 0.0 }
 0x117   : > { %v1694_v2 = vsel %vm3356_vm9, %v1646_v12, 0.0  ;;  %vm3357_vm14 = vmmov %vm3348_vm0  ;;  %v1550_v41 = vperm.slane %v2985_v21, 6  ;;  %v1654_v11 = vperm.slane %v3005_v34, 0  ;;  %v1551_v22 = vperm.slane %v2985_v21, 7 }
 0x118   : > { %v1594_v3 = vadd.f32 %v1593_v39, %v1592_v60  ;;  %v1695_v43 = vsel %vm3357_vm14, %v1647_v5, 0.0  ;;  %vm3358_vm5 = vmmov %vm3348_vm0  ;;  %v1655_v17 = vperm.slane %v3005_v34, 1  ;;  %v1656_v23 = vperm.slane %v3005_v34, 2 }
 0x119   : > { %v1697_v55 = vsel %vm3358_vm5, %v1648_v40, 0.0  ;;  %vm3359_vm3 = vmmov %vm3348_vm0  ;;  %v1696_v53 = vadd.f32 %v1695_v43, %v1694_v2  ;;  %v1657_v46 = vperm.slane %v3005_v34, 3 }
 0x11a   : > { %v1596_v48 = vadd.f32 %v1595_v58, %v1594_v3  ;;  %v1601_v1 = vsel %vm3359_vm3, %v1545_v59, 0.0  ;;  %vm3360_vm1 = vmmov %vm3348_vm0  ;;  %v1658_v58 = vperm.slane %v3005_v34, 4 }
 0x11b   : > { %v1699_v38 = vsel %vm3360_vm1, %v1649_v52, 0.0  ;;  %vm3361_vm8 = vmmov %vm3348_vm0  ;;  %v1698_v56 = vadd.f32 %v1697_v55, %v1696_v53  ;;  %v3010_v0 = vld [vmem:[#allocation2 + $0x8] sm:$0xff] }
 0x11c   : > { %v1598_v49 = vadd.f32 %v1597_v6, %v1596_v48  ;;  %v1603_v24 = vsel %vm3361_vm8, %v1546_v36, 0.0  ;;  %vm3362_vm11 = vmmov %vm3348_vm0  ;;  %v1552_v25 = vperm.slane %v3010_v0, 0  ;;  %v1553_v33 = vperm.slane %v3010_v0, 1 }
 0x11d   : > { %v1701_v44 = vsel %vm3362_vm11, %v1650_v29, 0.0  ;;  %vm3363_vm4 = vmmov %vm3348_vm0  ;;  %v1700_v30 = vadd.f32 %v1699_v38, %v1698_v56  ;;  %v1554_v47 = vperm.slane %v3010_v0, 2  ;;  %v1555_v3 = vperm.slane %v3010_v0, 3 }
 0x11e   : > { %v1600_v13 = vadd.f32 %v1599_v28, %v1598_v49  ;;  %v1605_v19 = vsel %vm3363_vm4, %v1547_v45, 0.0  ;;  %vm3364_vm15 = vmmov %vm3348_vm0  ;;  %v1659_v6 = vperm.slane %v3005_v34, 5  ;;  %v1556_v52 = vperm.slane %v3010_v0, 4  ;;  %v1642_v45 = vld [vmem:[#allocation3 + $0x10] sm:$0xff] }
 0x11f   : > { %v1607_v57 = vsel %vm3364_vm15, %v1548_v61, 0.0  ;;  %v1702_v51 = vadd.f32 %v1701_v44, %v1700_v30  ;;  %vm3365_vm12 = vmmov %vm3348_vm0  ;;  %v1660_v49 = vperm.slane %v3005_v34, 6  ;;  %v1557_v43 = vperm.slane %v3010_v0, 5 }
 0x120   : > { %v1602_v10 = vadd.f32 %v1601_v1, %v1600_v13  ;;  %v1705_v7 = vsel %vm3365_vm12, %v1652_v27, 0.0  ;;  %vm3366_vm2 = vmmov %vm3348_vm0  ;;  %v1661_v13 = vperm.slane %v3005_v34, 7  ;;  %v1719_v35 = vsel %vm3348_vm0, %v1659_v6, 0.0 }
 0x121   : > { %v1609_v62 = vsel %vm3366_vm2, %v1549_v15, 0.0  ;;  %v1704_v54 = vadd.f32 %v1703_v37, %v1702_v51  ;;  %vm3367_vm7 = vmmov %vm3348_vm0  ;;  %v1558_v38 = vperm.slane %v3010_v0, 6  ;;  %v1559_v44 = vperm.slane %v3010_v0, 7 }
 0x122   : > { %v1604_v14 = vadd.f32 %v1603_v24, %v1602_v10  ;;  %v1707_v32 = vsel %vm3367_vm7, %v1653_v8, 0.0  ;;  %vm3368_vm13 = vmmov %vm3348_vm0  ;;  %v1662_v10 = vperm.slane %v1642_v45, 0 }
 0x123   : > { %v1611_v50 = vsel %vm3368_vm13, %v1550_v41, 0.0  ;;  %v1706_v4 = vadd.f32 %v1705_v7, %v1704_v54  ;;  %vm3369_vm10 = vmmov %vm3348_vm0 }
 0x124   : > { %v1606_v63 = vadd.f32 %v1605_v19, %v1604_v14  ;;  %v1709_v26 = vsel %vm3369_vm10, %v1654_v11, 0.0  ;;  %vm3370_vm6 = vmmov %vm3348_vm0  ;;  %v1663_v14 = vperm.slane %v1642_v45, 1 }
 0x125   : > { %v1613_v16 = vsel %vm3370_vm6, %v1551_v22, 0.0  ;;  %v1708_v18 = vadd.f32 %v1707_v32, %v1706_v4  ;;  %vm3371_vm9 = vmmov %vm3348_vm0  ;;  %v1665_v22 = vperm.slane %v1642_v45, 3 }
 0x126   : > { %v1608_v31 = vadd.f32 %v1607_v57, %v1606_v63  ;;  %v1711_v20 = vsel %vm3371_vm9, %v1655_v17, 0.0  ;;  %vm3372_vm14 = vmmov %vm3348_vm0  ;;  %v1664_v57 = vperm.slane %v1642_v45, 2 }
 0x127   : > { %v1615_v39 = vsel %vm3372_vm14, %v1552_v25, 0.0  ;;  %v1710_v60 = vadd.f32 %v1709_v26, %v1708_v18  ;;  %vm3373_vm5 = vmmov %vm3348_vm0  ;;  %v1667_v25 = vperm.slane %v1642_v45, 5 }
 0x128   : > { %v1610_v42 = vadd.f32 %v1609_v62, %v1608_v31  ;;  %v1713_v12 = vsel %vm3373_vm5, %v1656_v23, 0.0  ;;  %vm3374_vm3 = vmmov %vm3348_vm0  ;;  %v1666_v31 = vperm.slane %v1642_v45, 4 }
 0x129   : > { %v1617_v5 = vsel %vm3374_vm3, %v1553_v33, 0.0  ;;  %v1712_v40 = vadd.f32 %v1711_v20, %v1710_v60  ;;  %vm3375_vm1 = vmmov %vm3348_vm0  ;;  %v1669_v33 = vperm.slane %v1642_v45, 7 }
 0x12a   : > { %v1612_v21 = vadd.f32 %v1611_v50, %v1610_v42  ;;  %v1715_v48 = vsel %vm3375_vm1, %v1657_v46, 0.0  ;;  %vm3376_vm8 = vmmov %vm3348_vm0  ;;  %v1668_v42 = vperm.slane %v1642_v45, 6 }
 0x12b   : > { %v1619_v36 = vsel %vm3376_vm8, %v1554_v47, 0.0  ;;  %v1714_v28 = vadd.f32 %v1713_v12, %v1712_v40  ;;  %vm3377_vm11 = vmmov %vm3348_vm0 }
 0x12c   : > { %v1614_v9 = vadd.f32 %v1613_v16, %v1612_v21  ;;  %v1717_v29 = vsel %vm3377_vm11, %v1658_v58, 0.0  ;;  %vm3378_vm4 = vmmov %vm3348_vm0 }
 0x12d   : > { %v1621_v55 = vsel %vm3378_vm4, %v1555_v3, 0.0  ;;  %v1716_v1 = vadd.f32 %v1715_v48, %v1714_v28  ;;  %vm3379_vm15 = vmmov %vm3348_vm0 }
 0x12e   : > { %v1616_v59 = vadd.f32 %v1615_v39, %v1614_v9  ;;  %v1623_v61 = vsel %vm3379_vm15, %v1556_v52, 0.0  ;;  %vm3380_vm12 = vmmov %vm3348_vm0 }
 0x12f   : > { %v1718_v24 = vadd.f32 %v1717_v29, %v1716_v1  ;;  %v1721_v27 = vsel %vm3380_vm12, %v1660_v49, 0.0  ;;  %vm3381_vm2 = vmmov %vm3348_vm0  ;;  %v3393_v49 = vld [vmem:[#allocation20_spill] sm:$0xff] }
 0x130   : > { %v1618_v2 = vadd.f32 %v1617_v5, %v1616_v59  ;;  %v1625_v15 = vsel %vm3381_vm2, %v1557_v43, 0.0  ;;  %vm3382_vm7 = vmmov %vm3348_vm0  ;;  %vm1750_vm4 = vcmp.eq.s32.totalorder %v3393_v49, 0 }
 0x131   : > { %v1720_v19 = vadd.f32 %v1719_v35, %v1718_v24  ;;  %v1723_v34 = vsel %vm3382_vm7, %v1661_v13, 0.0  ;;  %vm3383_vm13 = vmmov %vm3348_vm0 }
 0x132   : > { %v1620_v53 = vadd.f32 %v1619_v36, %v1618_v2  ;;  %v1627_v8 = vsel %vm3383_vm13, %v1558_v38, 0.0  ;;  %vm3384_vm10 = vmmov %vm3348_vm0 }
 0x133   : > { %v1722_v37 = vadd.f32 %v1721_v27, %v1720_v19  ;;  %v1725_v51 = vsel %vm3384_vm10, %v1662_v10, 0.0  ;;  %vm3385_vm6 = vmmov %vm3348_vm0 }
 0x134   : > { %v1622_v56 = vadd.f32 %v1621_v55, %v1620_v53  ;;  %v1629_v63 = vsel %vm3385_vm6, %v1559_v44, 0.0  ;;  %vm3386_vm9 = vmmov %vm3348_vm0 }
 0x135   : > { %v1724_v11 = vadd.f32 %v1723_v34, %v1722_v37  ;;  %v1727_v0 = vsel %vm3386_vm9, %v1663_v14, 0.0  ;;  %vm3387_vm14 = vmmov %vm3348_vm0 }
 0x136   : > { %v1624_v30 = vadd.f32 %v1623_v61, %v1622_v56  ;;  %v1729_v17 = vsel %vm3387_vm14, %v1664_v57, 0.0  ;;  %vm3388_vm5 = vmmov %vm3348_vm0 }
 0x137   : > { %v1726_v62 = vadd.f32 %v1725_v51, %v1724_v11  ;;  %v1731_v50 = vsel %vm3388_vm5, %v1665_v22, 0.0  ;;  %vm3389_vm3 = vmmov %vm3348_vm0 }
 0x138   : > { %v1626_v41 = vadd.f32 %v1625_v15, %v1624_v30  ;;  %v1733_v23 = vsel %vm3389_vm3, %v1666_v31, 0.0  ;;  %vm3390_vm1 = vmmov %vm3348_vm0 }
 0x139   : > { %v1728_v32 = vadd.f32 %v1727_v0, %v1726_v62  ;;  %v1735_v16 = vsel %vm3390_vm1, %v1667_v25, 0.0  ;;  %vm3391_vm8 = vmmov %vm3348_vm0 }
 0x13a   : > { %v1628_v7 = vadd.f32 %v1627_v8, %v1626_v41  ;;  %v1737_v21 = vsel %vm3391_vm8, %v1668_v42, 0.0  ;;  %vm3392_vm11 = vmmov %vm3348_vm0  ;;  %vm1753_vm0 = vcmp.eq.s32.totalorder %v3393_v49, 1 }
 0x13b   : > { %v1730_v4 = vadd.f32 %v1729_v17, %v1728_v32  ;;  %v1739_v20 = vsel %vm3392_vm11, %v1669_v33, 0.0 }
 0x13c   : > { %v1630_v54 = vadd.f32 %v1629_v63, %v1628_v7 }
 0x13d   : > { %v1732_v26 = vadd.f32 %v1731_v50, %v1730_v4 }
 0x13e   : > { %1631 = vadd.xlane.f32.xlu0 %v1630_v54 }
 0x13f   : > { %v1734_v18 = vadd.f32 %v1733_v23, %v1732_v26 }
 0x141   : > { %v1736_v46 = vadd.f32 %v1735_v16, %v1734_v18 }
 0x143   : > { %v1738_v47 = vadd.f32 %v1737_v21, %v1736_v46 }
 0x145   : > { %v1740_v39 = vadd.f32 %v1739_v20, %v1738_v47 }
 0x147   : > { %1741 = vadd.xlane.f32.xlu0 %v1740_v39 }
 0x1b1   : > { %v1632_v60 = vpop.xlane.xlu0 %1631 }
 0x1b2   : > { %v1633_v9 = vrot.slane %v1632_v60, 4 }
 0x1b4   : > { %v1634_v58 = vadd.f32 %v1633_v9, %v1632_v60 }
 0x1b6   : > { %v1635_v12 = vrot.slane %v1634_v58, 2 }
 0x1b8   : > { %v1636_v3 = vadd.f32 %v1635_v12, %v1634_v58 }
 0x1ba   : > { %v1637_v5 = vrot.slane %v1636_v3, 1  ;;  %v1742_v59 = vpop.xlane.xlu0 %1741 }
 0x1bb   : > { %v1743_v6 = vrot.slane %v1742_v59, 4 }
 0x1bc   : > { %v1638_v40 = vadd.f32 %v1637_v5, %v1636_v3 }
 0x1bd   : > { %v1744_v48 = vadd.f32 %v1743_v6, %v1742_v59 }
 0x1be   : > { %1828 = vpush %v1638_v40 }
 0x1bf   : > { %v1745_v52 = vrot.slane %v1744_v48, 2 }
 0x1c1   : > { %v1746_v36 = vadd.f32 %v1745_v52, %v1744_v48 }
 0x1c3   : > { %v1747_v28 = vrot.slane %v1746_v36, 1 }
 0x1c5   : > { %v1748_v2 = vadd.f32 %v1747_v28, %v1746_v36 }
 0x1c7   : > { %1830 = vpush %v1748_v2 }
 0x1ef   : > { %s1829_s22 = spop %1828 }
 0x1f0   : > { %v1751_v29 = vstv %s1829_s22 }
 0x1f1   : > { %v1752_v55 = vsel %vm1750_vm4, %v1751_v29, 0.0 }
 0x1f8   : > { %s1831_s23 = spop %1830 }
 0x1f9   : > { %v1754_v43 = vstv %s1831_s23 }
 0x1fa   : > { %v1755_v45 = vsel %vm1753_vm0, %v1754_v43, 0.0 }
 0x1fb   : > { %v1756_v1 = vadd.f32 %v1755_v45, %v1752_v55 }
 0x1fd   : > { %1757 = vst [vmem:[%s3074_s2] sm:$0x1] %v1756_v1 }
 0x1fe PF: > { %s12_s11 = sadd.s32 1, %s1954_s11   ;;  %s3394_s9 = smov %s1950_s10 }
 0x1ff   : > { %p9_p7 = scmp.ge.s32.totalorder %s12_s11, 4   ;;  %s3395_s10 = smov %s3397_s12 }
 0x201   :  { %11 = sbr.rel (!%p9_p7) target bundleno = 2 (0x2), region = 74 }

// kernel: pixel_prototype_ce_loss.2
= control target key start
LH: loop header
LB: loop body
LE: loop exit
PB: predicated region body
PF: predicated region fallthrough
CT: control target
= control target key end

     0   :  { %vm59_vm0 = vcmask 7168   ;;  %v5328_v0 = vmov 0   ;;  %v2839_v1 = vmov 0.0   ;;  %s5325_s1 = inlined_call_operand.vmem [shape: s32[333,1], index: 1, kind: input, shape index: {}]   ;;  %s5326_s0 = inlined_call_operand.vmem [shape: f32[333,20], index: 0, kind: input, shape index: {}]   ;;  %s5327_s2 = inlined_call_operand.vmem [shape: f32[1,128], index: 2, kind: output, shape index: {}]  }
   0x1   :  { %2653 = vset.pattern.permute.xlu2 %v5328_v0  ;;  %2652 = vset.pattern.permute.xlu1 %v5328_v0  ;;  %148 = vst.msk [vmem:[#allocation4 + $0x20] sm:$0xff] %vm59_vm0, %v2839_v1  ;;  %v2862_v2 = vld [vmem:[%s5325_s1 + $0x20] sm:$0xff]  ;;  %v2867_v3 = vld [vmem:[%s5325_s1 + $0x10] sm:$0xff]  ;;  %v2897_v6 = vld [vmem:[%s5325_s1 + $0x28] sm:$0xff] }
   0x2   :  { %5511 = vst [vmem:[#allocation5_spill] sm:$0xff] %v2862_v2  ;;  %v2872_v4 = vld [vmem:[%s5325_s1] sm:$0xff]  ;;  %2651 = vset.pattern.permute.xlu0 %v5328_v0  ;;  %499 = vperm.xlu2 %2653, %v2862_v2   ;;  %vm5355_vm1 = vcmp.ne.s32.totalorder %v2862_v2, 4294967295  ;;  %v2904_v8 = vld [vmem:[%s5325_s1 + $0x18] sm:$0xff]  ;;  %v2909_v9 = vld [vmem:[%s5325_s1 + $0x8] sm:$0xff]  ;;  %vm5356_vm2 = vcmp.ne.s32.totalorder %v2867_v3, 4294967295 }
   0x3   :  { %5512 = vst [vmem:[#allocation6_spill] sm:$0xff] %v2867_v3  ;;  %493 = vperm.xlu1 %2652, %v2867_v3   ;;  %487 = vperm.xlu0 %2651, %v2872_v4   ;;  %v2088_v5 = vsel %vm5355_vm1, 1.0, %v2839_v1  ;;  %v2930_v11 = vld [vmem:[%s5325_s1 + $0x40] sm:$0xff]  ;;  %v2937_v12 = vld [vmem:[%s5325_s1 + $0x38] sm:$0xff]  ;;  %v2942_v13 = vld [vmem:[%s5325_s1 + $0x30] sm:$0xff]  ;;  %vm5366_vm3 = vcmp.ne.s32.totalorder %v2872_v4, 4294967295 }
   0x4   :  { %5513 = vst [vmem:[#allocation7_spill] sm:$0xff] %v2872_v4  ;;  %v2964_v14 = vld [vmem:[%s5325_s1 + $0x58] sm:$0xff]  ;;  %v2971_v15 = vld [vmem:[%s5325_s1 + $0x50] sm:$0xff]  ;;  %v2976_v16 = vld [vmem:[%s5325_s1 + $0x48] sm:$0xff]  ;;  %vm5365_vm4 = vcmp.ne.s32.totalorder %v2909_v9, 4294967295  ;;  %v656_v49 = vsel %vm5356_vm2, 1, %v5328_v0 }
   0x5   :  { %60 = vst.msk [vmem:[#allocation2] sm:$0xff] %vm59_vm0, %v2839_v1  ;;  %v2998_v17 = vld [vmem:[%s5325_s1 + $0x70] sm:$0xff]  ;;  %v3005_v18 = vld [vmem:[%s5325_s1 + $0x68] sm:$0xff]  ;;  %v3010_v19 = vld [vmem:[%s5325_s1 + $0x60] sm:$0xff]  ;;  %v655_v50 = vsel %vm5365_vm4, 1, %v5328_v0  ;;  %v654_v51 = vsel %vm5366_vm3, 1, %v5328_v0 }
   0x6   :  { %61 = vst.msk [vmem:[#allocation2 + $0x8] sm:$0xff] %vm59_vm0, %v2839_v1  ;;  %v3032_v20 = vld [vmem:[%s5325_s1 + $0x88] sm:$0xff]  ;;  %v3039_v21 = vld [vmem:[%s5325_s1 + $0x80] sm:$0xff]  ;;  %v3044_v22 = vld [vmem:[%s5325_s1 + $0x78] sm:$0xff]  ;;  %vm5353_vm5 = vcmp.ne.s32.totalorder %v2897_v6, 4294967295  ;;  %vm5362_vm6 = vcmp.ne.s32.totalorder %v2904_v8, 4294967295 }
   0x7   :  { %62 = vst.msk [vmem:[#allocation2 + $0x10] sm:$0xff] %vm59_vm0, %v2839_v1  ;;  %v3066_v23 = vld [vmem:[%s5325_s1 + $0xa0] sm:$0xff]  ;;  %v3073_v24 = vld [vmem:[%s5325_s1 + $0x98] sm:$0xff]  ;;  %v3078_v25 = vld [vmem:[%s5325_s1 + $0x90] sm:$0xff]  ;;  %v659_v54 = vsel %vm5353_vm5, 1, %v5328_v0  ;;  %v658_v56 = vsel %vm5355_vm1, 1, %v5328_v0 }
   0x8   :  { %63 = vst.msk [vmem:[#allocation2 + $0x18] sm:$0xff] %vm59_vm0, %v2839_v1  ;;  %v2046_v7 = vld [vmem:[#allocation4 + $0x20] sm:$0xff]  ;;  %v3100_v26 = vld [vmem:[%s5325_s1 + $0xb8] sm:$0xff]  ;;  %v3107_v27 = vld [vmem:[%s5325_s1 + $0xb0] sm:$0xff]  ;;  %v657_v57 = vsel %vm5362_vm6, 1, %v5328_v0  ;;  %v2086_v59 = vsel %vm5356_vm2, 1.0, %v2839_v1 }
   0x9   :  { %64 = vst.msk [vmem:[#allocation2 + $0x20] sm:$0xff] %vm59_vm0, %v2839_v1  ;;  %v2130_v10 = vadd.f32 %v2088_v5, %v2046_v7  ;;  %v3112_v28 = vld [vmem:[%s5325_s1 + $0xa8] sm:$0xff]  ;;  %v3134_v29 = vld [vmem:[%s5325_s1 + $0xd0] sm:$0xff]  ;;  %v3146_v31 = vld [vmem:[%s5325_s1 + $0xc0] sm:$0xff]  ;;  %v2084_v61 = vsel %vm5366_vm3, 1.0, %v2839_v1  ;;  %v2089_v63 = vsel %vm5353_vm5, 1.0, %v2839_v1 }
   0xa   :  { %65 = vst.msk [vmem:[#allocation2 + $0x28] sm:$0xff] %vm59_vm0, %v2839_v1  ;;  %502 = vperm.xlu2 %2653, %v2897_v6   ;;  %v3141_v30 = vld [vmem:[%s5325_s1 + $0xc8] sm:$0xff]  ;;  %v3175_v33 = vld [vmem:[%s5325_s1 + $0xe0] sm:$0xff]  ;;  %v3180_v34 = vld [vmem:[%s5325_s1 + $0xd8] sm:$0xff]  ;;  %vm5344_vm7 = vcmp.ne.s32.totalorder %v2930_v11, 4294967295  ;;  %vm5345_vm8 = vcmp.ne.s32.totalorder %v2937_v12, 4294967295 }
   0xb   :  { %5514 = vst [vmem:[#allocation8_spill] sm:$0xff] %v2897_v6  ;;  %496 = vperm.xlu1 %2652, %v2904_v8   ;;  %490 = vperm.xlu0 %2651, %v2909_v9   ;;  %v3168_v32 = vld [vmem:[%s5325_s1 + $0xe8] sm:$0xff]  ;;  %v3202_v35 = vld [vmem:[%s5325_s1 + $0x100] sm:$0xff]  ;;  %v3209_v36 = vld [vmem:[%s5325_s1 + $0xf8] sm:$0xff]  ;;  %vm5354_vm9 = vcmp.ne.s32.totalorder %v2942_v13, 4294967295  ;;  %v2091_v0 = vsel %vm5345_vm8, 1.0, %v2839_v1 }
   0xc   :  { %66 = vst.msk [vmem:[#allocation2 + $0x30] sm:$0xff] %vm59_vm0, %v2839_v1  ;;  %v3214_v37 = vld [vmem:[%s5325_s1 + $0xf0] sm:$0xff]  ;;  %v3236_v38 = vld [vmem:[%s5325_s1 + $0x118] sm:$0xff]  ;;  %v3248_v40 = vld [vmem:[%s5325_s1 + $0x108] sm:$0xff]  ;;  %v5552_v6 = vmov 0   ;;  %vm5346_vm10 = vcmp.ne.s32.totalorder %v2964_v14, 4294967295 }
   0xd   :  { %5515 = vst [vmem:[#allocation9_spill] sm:$0xff] %v2904_v8  ;;  %v3243_v39 = vld [vmem:[%s5325_s1 + $0x110] sm:$0xff]  ;;  %v3277_v42 = vld [vmem:[%s5325_s1 + $0x128] sm:$0xff]  ;;  %v3282_v43 = vld [vmem:[%s5325_s1 + $0x120] sm:$0xff]  ;;  %v662_v2 = vsel %vm5344_vm7, 1, %v5552_v6  ;;  %vm5349_vm11 = vcmp.ne.s32.totalorder %v2971_v15, 4294967295 }
   0xe   :  { %5516 = vst [vmem:[#allocation10_spill] sm:$0xff] %v2909_v9  ;;  %v3270_v41 = vld [vmem:[%s5325_s1 + $0x130] sm:$0xff]  ;;  %v3306_v45 = vld [vmem:[%s5325_s1 + $0x148] sm:$0xff]  ;;  %v3313_v46 = vld [vmem:[%s5325_s1 + $0x140] sm:$0xff]  ;;  %vm5352_vm12 = vcmp.ne.s32.totalorder %v2976_v16, 4294967295  ;;  %vm5359_vm13 = vcmp.ne.s32.totalorder %v2998_v17, 4294967295 }
   0xf   :  { %67 = vst.msk [vmem:[#allocation2 + $0x38] sm:$0xff] %vm59_vm0, %v2839_v1  ;;  %v3318_v47 = vld [vmem:[%s5325_s1 + $0x138] sm:$0xff]  ;;  %vm5360_vm14 = vcmp.ne.s32.totalorder %v3005_v18, 4294967295  ;;  %vm5361_vm15 = vcmp.ne.s32.totalorder %v3010_v19, 4294967295  ;;  %vm376_vm5 = vcmp.ne.s32.totalorder %v3078_v25, 4294967295  ;;  %vm5510_vm1 = vcmp.ne.s32.totalorder %v3107_v27, 4294967295 }
  0x10   :  { %68 = vst.msk [vmem:[#allocation2 + $0x40] sm:$0xff] %vm59_vm0, %v2839_v1  ;;  %vm379_vm2 = vcmp.ne.s32.totalorder %v3112_v28, 4294967295  ;;  %vm5369_vm3 = vcmp.ne.s32.totalorder %v3180_v34, 4294967295  ;;  %v3933_v4 = vld [vmem:[%s5326_s0 + $0x78] sm:$0xff] }
  0x11   :  { %2172 = vst.msk [vmem:[#allocation4 + $0x20] sm:$0xff] %vm59_vm0, %v2130_v10  ;;  %v2087_v10 = vsel %vm5362_vm6, 1.0, %v2839_v1  ;;  %vm5388_vm6 = vcmp.ne.s32.totalorder %v3168_v32, 4294967295 }
  0x12   :  { %69 = vst.msk [vmem:[#allocation2 + $0x48] sm:$0xff] %vm59_vm0, %v2839_v1  ;;  %511 = vperm.xlu2 %2653, %v2930_v11  }
  0x13   :  { %70 = vst.msk [vmem:[#allocation2 + $0x50] sm:$0xff] %vm59_vm0, %v2839_v1  ;;  %508 = vperm.xlu1 %2652, %v2937_v12   ;;  %505 = vperm.xlu0 %2651, %v2942_v13  }
  0x14   :  { %71 = vst.msk [vmem:[#allocation2 + $0x58] sm:$0xff] %vm59_vm0, %v2839_v1 }
  0x15   :  { %72 = vst.msk [vmem:[#allocation2 + $0x60] sm:$0xff] %vm59_vm0, %v2839_v1 }
  0x16   :  { %5517 = vst [vmem:[#allocation11_spill] sm:$0xff] %v2930_v11 }
  0x17   :  { %73 = vst.msk [vmem:[#allocation2 + $0x68] sm:$0xff] %vm59_vm0, %v2839_v1 }
  0x18   :  { %5518 = vst [vmem:[#allocation12_spill] sm:$0xff] %v2937_v12  ;;  %v2094_v12 = vsel %vm5349_vm11, 1.0, %v2839_v1 }
  0x19   :  { %5519 = vst [vmem:[#allocation13_spill] sm:$0xff] %v2942_v13 }
  0x1a   :  { %74 = vst.msk [vmem:[#allocation2 + $0x70] sm:$0xff] %vm59_vm0, %v2839_v1  ;;  %520 = vperm.xlu2 %2653, %v2964_v14  }
  0x1b   :  { %75 = vst.msk [vmem:[#allocation2 + $0x78] sm:$0xff] %vm59_vm0, %v2839_v1  ;;  %517 = vperm.xlu1 %2652, %v2971_v15   ;;  %514 = vperm.xlu0 %2651, %v2976_v16  }
  0x1c   :  { %76 = vst.msk [vmem:[#allocation2 + $0x80] sm:$0xff] %vm59_vm0, %v2839_v1 }
  0x1d   :  { %77 = vst.msk [vmem:[#allocation2 + $0x88] sm:$0xff] %vm59_vm0, %v2839_v1 }
  0x1e   :  { %78 = vst.msk [vmem:[#allocation2 + $0x90] sm:$0xff] %vm59_vm0, %v2839_v1 }
  0x1f   :  { %79 = vst.msk [vmem:[#allocation2 + $0x98] sm:$0xff] %vm59_vm0, %v2839_v1 }
  0x20   :  { %80 = vst.msk [vmem:[#allocation2 + $0xa0] sm:$0xff] %vm59_vm0, %v2839_v1 }
  0x21   :  { %5520 = vst [vmem:[#allocation14_spill] sm:$0xff] %v2964_v14 }
  0x22   :  { %81 = vst.msk [vmem:[#allocation2 + $0xa8] sm:$0xff] %vm59_vm0, %v2839_v1  ;;  %529 = vperm.xlu2 %2653, %v2998_v17  }
  0x23   :  { %5521 = vst [vmem:[#allocation15_spill] sm:$0xff] %v2971_v15  ;;  %526 = vperm.xlu1 %2652, %v3005_v18   ;;  %523 = vperm.xlu0 %2651, %v3010_v19  }
  0x24   :  { %5522 = vst [vmem:[#allocation16_spill] sm:$0xff] %v2976_v16 }
  0x25   :  { %82 = vst.msk [vmem:[#allocation2 + $0xb0] sm:$0xff] %vm59_vm0, %v2839_v1 }
  0x26   :  { %83 = vst.msk [vmem:[#allocation2 + $0xb8] sm:$0xff] %vm59_vm0, %v2839_v1 }
  0x27   :  { %84 = vst.msk [vmem:[#allocation2 + $0xc0] sm:$0xff] %vm59_vm0, %v2839_v1 }
  0x28   :  { %85 = vst.msk [vmem:[#allocation2 + $0xc8] sm:$0xff] %vm59_vm0, %v2839_v1 }
  0x29   :  { %86 = vst.msk [vmem:[#allocation2 + $0xd0] sm:$0xff] %vm59_vm0, %v2839_v1 }
  0x2a   :  { %87 = vst.msk [vmem:[#allocation2 + $0xd8] sm:$0xff] %vm59_vm0, %v2839_v1  ;;  %538 = vperm.xlu2 %2653, %v3032_v20  }
  0x2b   :  { %88 = vst.msk [vmem:[#allocation2 + $0xe0] sm:$0xff] %vm59_vm0, %v2839_v1  ;;  %535 = vperm.xlu1 %2652, %v3039_v21   ;;  %532 = vperm.xlu0 %2651, %v3044_v22  }
  0x2c   :  { %5523 = vst [vmem:[#allocation17_spill] sm:$0xff] %v2998_v17 }
  0x2d   :  { %89 = vst.msk [vmem:[#allocation2 + $0xe8] sm:$0xff] %vm59_vm0, %v2839_v1 }
  0x2e   :  { %5524 = vst [vmem:[#allocation18_spill] sm:$0xff] %v3005_v18 }
  0x2f   :  { %5525 = vst [vmem:[#allocation19_spill] sm:$0xff] %v3010_v19 }
  0x30   :  { %90 = vst.msk [vmem:[#allocation2 + $0xf0] sm:$0xff] %vm59_vm0, %v2839_v1 }
  0x31   :  { %91 = vst.msk [vmem:[#allocation2 + $0xf8] sm:$0xff] %vm59_vm0, %v2839_v1 }
  0x32   :  { %92 = vst.msk [vmem:[#allocation2 + $0x100] sm:$0xff] %vm59_vm0, %v2839_v1  ;;  %547 = vperm.xlu2 %2653, %v3066_v23  }
  0x33   :  { %93 = vst.msk [vmem:[#allocation2 + $0x108] sm:$0xff] %vm59_vm0, %v2839_v1  ;;  %544 = vperm.xlu1 %2652, %v3073_v24   ;;  %541 = vperm.xlu0 %2651, %v3078_v25  }
  0x34   :  { %94 = vst.msk [vmem:[#allocation2 + $0x110] sm:$0xff] %vm59_vm0, %v2839_v1 }
  0x35   :  { %95 = vst.msk [vmem:[#allocation2 + $0x118] sm:$0xff] %vm59_vm0, %v2839_v1 }
  0x36   :  { %96 = vst.msk [vmem:[#allocation2 + $0x120] sm:$0xff] %vm59_vm0, %v2839_v1 }
  0x37   :  { %5526 = vst [vmem:[#allocation20_spill] sm:$0xff] %v3032_v20 }
  0x38   :  { %97 = vst.msk [vmem:[#allocation2 + $0x128] sm:$0xff] %vm59_vm0, %v2839_v1 }
  0x39   :  { %5527 = vst [vmem:[#allocation21_spill] sm:$0xff] %v3039_v21 }
  0x3a   :  { %5528 = vst [vmem:[#allocation22_spill] sm:$0xff] %v3044_v22  ;;  %556 = vperm.xlu2 %2653, %v3100_v26  }
  0x3b   :  { %98 = vst.msk [vmem:[#allocation2 + $0x130] sm:$0xff] %vm59_vm0, %v2839_v1  ;;  %553 = vperm.xlu1 %2652, %v3107_v27   ;;  %550 = vperm.xlu0 %2651, %v3112_v28  }
  0x3c   :  { %99 = vst.msk [vmem:[#allocation2 + $0x138] sm:$0xff] %vm59_vm0, %v2839_v1 }
  0x3d   :  { %100 = vst.msk [vmem:[#allocation2 + $0x140] sm:$0xff] %vm59_vm0, %v2839_v1 }
  0x3e   :  { %101 = vst.msk [vmem:[#allocation2 + $0x148] sm:$0xff] %vm59_vm0, %v2839_v1 }
  0x3f   :  { %102 = vst.msk [vmem:[#allocation3] sm:$0xff] %vm59_vm0, %v2839_v1 }
  0x40   :  { %103 = vst.msk [vmem:[#allocation3 + $0x8] sm:$0xff] %vm59_vm0, %v2839_v1 }
  0x41   :  { %104 = vst.msk [vmem:[#allocation3 + $0x10] sm:$0xff] %vm59_vm0, %v2839_v1 }
  0x42   :  { %5529 = vst [vmem:[#allocation23_spill] sm:$0xff] %v3066_v23  ;;  %565 = vperm.xlu2 %2653, %v3134_v29  }
  0x43   :  { %105 = vst.msk [vmem:[#allocation3 + $0x18] sm:$0xff] %vm59_vm0, %v2839_v1  ;;  %562 = vperm.xlu1 %2652, %v3141_v30   ;;  %559 = vperm.xlu0 %2651, %v3146_v31  }
  0x44   :  { %5530 = vst [vmem:[#allocation24_spill] sm:$0xff] %v3073_v24 }
  0x45   :  { %5531 = vst [vmem:[#allocation25_spill] sm:$0xff] %v3078_v25  ;;  %v3831_v25 = vld [vmem:[%s5326_s0 + $0x18] sm:$0xff] }
  0x46   :  { %106 = vst.msk [vmem:[#allocation3 + $0x20] sm:$0xff] %vm59_vm0, %v2839_v1 }
  0x47   :  { %107 = vst.msk [vmem:[#allocation3 + $0x28] sm:$0xff] %vm59_vm0, %v2839_v1 }
  0x48   :  { %108 = vst.msk [vmem:[#allocation3 + $0x30] sm:$0xff] %vm59_vm0, %v2839_v1 }
  0x49   :  { %109 = vst.msk [vmem:[#allocation3 + $0x38] sm:$0xff] %vm59_vm0, %v2839_v1 }
  0x4a   :  { %110 = vst.msk [vmem:[#allocation3 + $0x40] sm:$0xff] %vm59_vm0, %v2839_v1  ;;  %574 = vperm.xlu2 %2653, %v3168_v32  }
  0x4b   :  { %111 = vst.msk [vmem:[#allocation3 + $0x48] sm:$0xff] %vm59_vm0, %v2839_v1  ;;  %571 = vperm.xlu1 %2652, %v3175_v33   ;;  %568 = vperm.xlu0 %2651, %v3180_v34  }
  0x4c   :  { %112 = vst.msk [vmem:[#allocation3 + $0x50] sm:$0xff] %vm59_vm0, %v2839_v1 }
  0x4d   :  { %5532 = vst [vmem:[#allocation26_spill] sm:$0xff] %v3100_v26 }
  0x4e   :  { %113 = vst.msk [vmem:[#allocation3 + $0x58] sm:$0xff] %vm59_vm0, %v2839_v1 }
  0x4f   :  { %5533 = vst [vmem:[#allocation27_spill] sm:$0xff] %v3107_v27 }
  0x50   :  { %5534 = vst [vmem:[#allocation28_spill] sm:$0xff] %v3112_v28 }
  0x51   :  { %114 = vst.msk [vmem:[#allocation3 + $0x60] sm:$0xff] %vm59_vm0, %v2839_v1 }
  0x52   :  { %115 = vst.msk [vmem:[#allocation3 + $0x68] sm:$0xff] %vm59_vm0, %v2839_v1  ;;  %583 = vperm.xlu2 %2653, %v3202_v35  }
  0x53   :  { %116 = vst.msk [vmem:[#allocation3 + $0x70] sm:$0xff] %vm59_vm0, %v2839_v1  ;;  %580 = vperm.xlu1 %2652, %v3209_v36   ;;  %577 = vperm.xlu0 %2651, %v3214_v37  }
  0x54   :  { %117 = vst.msk [vmem:[#allocation3 + $0x78] sm:$0xff] %vm59_vm0, %v2839_v1 }
  0x55   :  { %118 = vst.msk [vmem:[#allocation3 + $0x80] sm:$0xff] %vm59_vm0, %v2839_v1 }
  0x56   :  { %119 = vst.msk [vmem:[#allocation3 + $0x88] sm:$0xff] %vm59_vm0, %v2839_v1 }
  0x57   :  { %120 = vst.msk [vmem:[#allocation3 + $0x90] sm:$0xff] %vm59_vm0, %v2839_v1 }
  0x58   :  { %5535 = vst [vmem:[#allocation29_spill] sm:$0xff] %v3134_v29 }
  0x59   :  { %121 = vst.msk [vmem:[#allocation3 + $0x98] sm:$0xff] %vm59_vm0, %v2839_v1 }
  0x5a   :  { %5536 = vst [vmem:[#allocation30_spill] sm:$0xff] %v3141_v30  ;;  %592 = vperm.xlu2 %2653, %v3236_v38  }
  0x5b   :  { %5537 = vst [vmem:[#allocation31_spill] sm:$0xff] %v3146_v31  ;;  %589 = vperm.xlu1 %2652, %v3243_v39   ;;  %586 = vperm.xlu0 %2651, %v3248_v40  }
  0x5c   :  { %122 = vst.msk [vmem:[#allocation3 + $0xa0] sm:$0xff] %vm59_vm0, %v2839_v1  ;;  %v3295_v44 = vpop.permute.xlu2 %499 }
  0x5d   :  { %123 = vst.msk [vmem:[#allocation3 + $0xa8] sm:$0xff] %vm59_vm0, %v2839_v1 }
  0x5e   :  { %124 = vst.msk [vmem:[#allocation3 + $0xb0] sm:$0xff] %vm59_vm0, %v2839_v1 }
  0x5f   :  { %125 = vst.msk [vmem:[#allocation3 + $0xb8] sm:$0xff] %vm59_vm0, %v2839_v1 }
  0x60   :  { %126 = vst.msk [vmem:[#allocation3 + $0xc0] sm:$0xff] %vm59_vm0, %v2839_v1 }
  0x61   :  { %127 = vst.msk [vmem:[#allocation3 + $0xc8] sm:$0xff] %vm59_vm0, %v2839_v1 }
  0x62   :  { %128 = vst.msk [vmem:[#allocation3 + $0xd0] sm:$0xff] %vm59_vm0, %v2839_v1  ;;  %601 = vperm.xlu2 %2653, %v3270_v41  }
  0x63   :  { %5538 = vst [vmem:[#allocation32_spill] sm:$0xff] %v3168_v32  ;;  %598 = vperm.xlu1 %2652, %v3277_v42   ;;  %595 = vperm.xlu0 %2651, %v3282_v43  }
  0x64   :  { %129 = vst.msk [vmem:[#allocation3 + $0xd8] sm:$0xff] %vm59_vm0, %v2839_v1  ;;  %v3338_v48 = vpop.permute.xlu2 %502 }
  0x65   :  { %5539 = vst [vmem:[#allocation33_spill] sm:$0xff] %v3175_v33 }
  0x66   :  { %5540 = vst [vmem:[#allocation34_spill] sm:$0xff] %v3180_v34 }
  0x67   :  { %130 = vst.msk [vmem:[#allocation3 + $0xe0] sm:$0xff] %vm59_vm0, %v2839_v1 }
  0x68   :  { %131 = vst.msk [vmem:[#allocation3 + $0xe8] sm:$0xff] %vm59_vm0, %v2839_v1 }
  0x69   :  { %132 = vst.msk [vmem:[#allocation3 + $0xf0] sm:$0xff] %vm59_vm0, %v2839_v1 }
  0x6a   :  { %133 = vst.msk [vmem:[#allocation3 + $0xf8] sm:$0xff] %vm59_vm0, %v2839_v1  ;;  %610 = vperm.xlu2 %2653, %v3306_v45  }
  0x6b   :  { %134 = vst.msk [vmem:[#allocation3 + $0x100] sm:$0xff] %vm59_vm0, %v2839_v1  ;;  %607 = vperm.xlu1 %2652, %v3313_v46   ;;  %604 = vperm.xlu0 %2651, %v3318_v47  }
  0x6c   :  { %135 = vst.msk [vmem:[#allocation3 + $0x108] sm:$0xff] %vm59_vm0, %v2839_v1  ;;  %v3378_v55 = vpop.permute.xlu2 %511 }
  0x6d   :  { %136 = vst.msk [vmem:[#allocation3 + $0x110] sm:$0xff] %vm59_vm0, %v2839_v1 }
  0x6e   :  { %5541 = vst [vmem:[#allocation35_spill] sm:$0xff] %v3202_v35 }
  0x6f   :  { %137 = vst.msk [vmem:[#allocation3 + $0x118] sm:$0xff] %vm59_vm0, %v2839_v1 }
  0x70   :  { %5542 = vst [vmem:[#allocation36_spill] sm:$0xff] %v3209_v36 }
  0x71   :  { %5543 = vst [vmem:[#allocation37_spill] sm:$0xff] %v3214_v37 }
  0x72   :  { %138 = vst.msk [vmem:[#allocation3 + $0x120] sm:$0xff] %vm59_vm0, %v2839_v1  ;;  %703 = vperm.xlu2 %2653, %v656_v49  }
  0x73   :  { %139 = vst.msk [vmem:[#allocation3 + $0x128] sm:$0xff] %vm59_vm0, %v2839_v1  ;;  %700 = vperm.xlu1 %2652, %v655_v50   ;;  %697 = vperm.xlu0 %2651, %v654_v51   ;;  %v2085_v51 = vsel %vm5365_vm4, 1.0, %v2839_v1  ;;  %vm5385_vm4 = vcmp.ne.s32.totalorder %v3175_v33, 4294967295 }
  0x74   :  { %140 = vst.msk [vmem:[#allocation3 + $0x130] sm:$0xff] %vm59_vm0, %v2839_v1  ;;  %v3452_v13 = vpop.permute.xlu2 %520 }
  0x75   :  { %141 = vst.msk [vmem:[#allocation3 + $0x138] sm:$0xff] %vm59_vm0, %v2839_v1  ;;  %v3365_v52 = vpop.permute.xlu1 %493  ;;  %v3367_v53 = vpop.permute.xlu0 %487 }
  0x76   :  { %142 = vst.msk [vmem:[#allocation3 + $0x140] sm:$0xff] %vm59_vm0, %v2839_v1 }
  0x77   :  { %143 = vst.msk [vmem:[#allocation3 + $0x148] sm:$0xff] %vm59_vm0, %v2839_v1 }
  0x78   :  { %144 = vst.msk [vmem:[#allocation4] sm:$0xff] %vm59_vm0, %v2839_v1 }
  0x79   :  { %5544 = vst [vmem:[#allocation38_spill] sm:$0xff] %v3236_v38 }
  0x7a   :  { %145 = vst.msk [vmem:[#allocation4 + $0x8] sm:$0xff] %vm59_vm0, %v2839_v1  ;;  %712 = vperm.xlu2 %2653, %v659_v54  }
  0x7b   :  { %5545 = vst [vmem:[#allocation39_spill] sm:$0xff] %v3243_v39  ;;  %709 = vperm.xlu1 %2652, %v658_v56   ;;  %706 = vperm.xlu0 %2651, %v657_v57  }
  0x7c   :  { %5546 = vst [vmem:[#allocation40_spill] sm:$0xff] %v3248_v40 }
  0x7d   :  { %146 = vst.msk [vmem:[#allocation4 + $0x10] sm:$0xff] %vm59_vm0, %v2839_v1  ;;  %v3414_v54 = vpop.permute.xlu1 %496  ;;  %v3416_v56 = vpop.permute.xlu0 %490 }
  0x7e   :  { %147 = vst.msk [vmem:[#allocation4 + $0x18] sm:$0xff] %vm59_vm0, %v2839_v1 }
  0x7f   :  { %149 = vst.msk [vmem:[#allocation4 + $0x28] sm:$0xff] %vm59_vm0, %v2839_v1  ;;  %v2042_v60 = vld [vmem:[#allocation4] sm:$0xff] }
  0x80   :  { %150 = vst.msk [vmem:[#allocation4 + $0x30] sm:$0xff] %vm59_vm0, %v2839_v1  ;;  %v2126_v49 = vadd.f32 %v2084_v61, %v2042_v60 }
  0x81   :  { %151 = vst.msk [vmem:[#allocation4 + $0x38] sm:$0xff] %vm59_vm0, %v2839_v1  ;;  %v2043_v50 = vld [vmem:[#allocation4 + $0x8] sm:$0xff] }
  0x82   :  { %152 = vst.msk [vmem:[#allocation4 + $0x40] sm:$0xff] %vm59_vm0, %v2839_v1  ;;  %721 = vperm.xlu2 %2653, %v662_v2   ;;  %v2098_v2 = vsel %vm5359_vm13, 1.0, %v2839_v1 }
  0x83   :  { %153 = vst.msk [vmem:[#allocation4 + $0x48] sm:$0xff] %vm59_vm0, %v2839_v1 }
  0x84   :  { %5547 = vst [vmem:[#allocation41_spill] sm:$0xff] %v3270_v41  ;;  %v2044_v58 = vld [vmem:[#allocation4 + $0x10] sm:$0xff] }
  0x85   :  { %154 = vst.msk [vmem:[#allocation4 + $0x50] sm:$0xff] %vm59_vm0, %v2839_v1  ;;  %v2128_v5 = vadd.f32 %v2086_v59, %v2044_v58  ;;  %v2045_v7 = vld [vmem:[#allocation4 + $0x18] sm:$0xff]  ;;  %v2092_v59 = vsel %vm5344_vm7, 1.0, %v2839_v1  ;;  %vm5367_vm7 = vcmp.ne.s32.totalorder %v3032_v20, 4294967295 }
  0x86   :  { %5548 = vst [vmem:[#allocation42_spill] sm:$0xff] %v3277_v42  ;;  %v2047_v62 = vld [vmem:[#allocation4 + $0x28] sm:$0xff]  ;;  %v2129_v60 = vadd.f32 %v2087_v10, %v2045_v7  ;;  %v2090_v7 = vsel %vm5354_vm9, 1.0, %v2839_v1  ;;  %v660_v10 = vsel %vm5354_vm9, 1, %v5552_v6  ;;  %vm5499_vm9 = vcmp.ne.s32.totalorder %v3100_v26, 4294967295 }
  0x87   :  { %5549 = vst [vmem:[#allocation43_spill] sm:$0xff] %v3282_v43  ;;  %v2131_v57 = vadd.f32 %v2089_v63, %v2047_v62  ;;  %v661_v62 = vsel %vm5345_vm8, 1, %v5552_v6  ;;  %v2127_v63 = vadd.f32 %v2085_v51, %v2043_v50  ;;  %v2048_v3 = vld [vmem:[#allocation4 + $0x30] sm:$0xff]  ;;  %715 = vperm.xlu0 %2651, %v660_v10   ;;  %vm5368_vm8 = vcmp.ne.s32.totalorder %v3039_v21, 4294967295  ;;  %v3813_v26 = vld [vmem:[%s5326_s0 + $0x8] sm:$0xff] }
  0x88   :  { %155 = vst.msk [vmem:[#allocation4 + $0x58] sm:$0xff] %vm59_vm0, %v2839_v1  ;;  %v2049_v61 = vld [vmem:[#allocation4 + $0x38] sm:$0xff]  ;;  %718 = vperm.xlu1 %2652, %v661_v62   ;;  %v3469_v62 = vpop.permute.xlu1 %508 }
  0x89   :  { %156 = vst.msk [vmem:[#allocation4 + $0x60] sm:$0xff] %vm59_vm0, %v2839_v1  ;;  %v2050_v58 = vld [vmem:[#allocation4 + $0x40] sm:$0xff]  ;;  %v2133_v50 = vadd.f32 %v2091_v0, %v2049_v61  ;;  %v2097_v61 = vsel %vm5360_vm14, 1.0, %v2839_v1 }
  0x8a   :  { %157 = vst.msk [vmem:[#allocation4 + $0x68] sm:$0xff] %vm59_vm0, %v2839_v1  ;;  %v2134_v11 = vadd.f32 %v2092_v59, %v2050_v58  ;;  %v2051_v58 = vld [vmem:[#allocation4 + $0x48] sm:$0xff]  ;;  %v2093_v59 = vsel %vm5352_vm12, 1.0, %v2839_v1 }
  0x8b   :  { %158 = vst.msk [vmem:[#allocation4 + $0x70] sm:$0xff] %vm59_vm0, %v2839_v1 }
  0x8c   :  { %159 = vst.msk [vmem:[#allocation4 + $0x78] sm:$0xff] %vm59_vm0, %v2839_v1  ;;  %v2052_v51 = vld [vmem:[#allocation4 + $0x50] sm:$0xff] }
  0x8d   :  { %160 = vst.msk [vmem:[#allocation4 + $0x80] sm:$0xff] %vm59_vm0, %v2839_v1 }
  0x8e   :  { %161 = vst.msk [vmem:[#allocation4 + $0x88] sm:$0xff] %vm59_vm0, %v2839_v1 }
  0x8f   :  { %162 = vst.msk [vmem:[#allocation4 + $0x90] sm:$0xff] %vm59_vm0, %v2839_v1  ;;  %v2053_v8 = vld [vmem:[#allocation4 + $0x58] sm:$0xff] }
  0x90   :  { %5550 = vst [vmem:[#allocation44_spill] sm:$0xff] %v3313_v46 }
  0x91   :  { %5551 = vst [vmem:[#allocation45_spill] sm:$0xff] %v3318_v47 }
  0x92   :  { %163 = vst.msk [vmem:[#allocation4 + $0x98] sm:$0xff] %vm59_vm0, %v2839_v1 }
  0x93   :  { %164 = vst.msk [vmem:[#allocation4 + $0xa0] sm:$0xff] %vm59_vm0, %v2839_v1  ;;  %v2057_v14 = vld [vmem:[#allocation4 + $0x78] sm:$0xff] }
  0x94   :  { %165 = vst.msk [vmem:[#allocation4 + $0xa8] sm:$0xff] %vm59_vm0, %v2839_v1 }
  0x95   :  { %166 = vst.msk [vmem:[#allocation4 + $0xb0] sm:$0xff] %vm59_vm0, %v2839_v1 }
  0x96   :  { %167 = vst.msk [vmem:[#allocation4 + $0xb8] sm:$0xff] %vm59_vm0, %v2839_v1 }
  0x97   :  { %168 = vst.msk [vmem:[#allocation4 + $0xc0] sm:$0xff] %vm59_vm0, %v2839_v1 }
  0x98   :  { %169 = vst.msk [vmem:[#allocation4 + $0xc8] sm:$0xff] %vm59_vm0, %v2839_v1 }
  0x99   :  { %170 = vst.msk [vmem:[#allocation4 + $0xd0] sm:$0xff] %vm59_vm0, %v2839_v1 }
  0x9a   :  { %171 = vst.msk [vmem:[#allocation4 + $0xd8] sm:$0xff] %vm59_vm0, %v2839_v1  ;;  %v2062_v15 = vld [vmem:[#allocation4 + $0xa0] sm:$0xff] }
  0x9b   :  { %172 = vst.msk [vmem:[#allocation4 + $0xe0] sm:$0xff] %vm59_vm0, %v2839_v1 }
  0x9c   :  { %173 = vst.msk [vmem:[#allocation4 + $0xe8] sm:$0xff] %vm59_vm0, %v2839_v1 }
  0x9d   :  { %174 = vst.msk [vmem:[#allocation4 + $0xf0] sm:$0xff] %vm59_vm0, %v2839_v1 }
  0x9e   :  { %175 = vst.msk [vmem:[#allocation4 + $0xf8] sm:$0xff] %vm59_vm0, %v2839_v1 }
  0x9f   :  { %176 = vst.msk [vmem:[#allocation4 + $0x100] sm:$0xff] %vm59_vm0, %v2839_v1  ;;  %v2067_v17 = vld [vmem:[#allocation4 + $0xc8] sm:$0xff] }
  0xa0   :  { %177 = vst.msk [vmem:[#allocation4 + $0x108] sm:$0xff] %vm59_vm0, %v2839_v1 }
  0xa1   :  { %178 = vst.msk [vmem:[#allocation4 + $0x110] sm:$0xff] %vm59_vm0, %v2839_v1 }
  0xa2   :  { %179 = vst.msk [vmem:[#allocation4 + $0x118] sm:$0xff] %vm59_vm0, %v2839_v1 }
  0xa3   :  { %180 = vst.msk [vmem:[#allocation4 + $0x120] sm:$0xff] %vm59_vm0, %v2839_v1 }
  0xa4   :  { %181 = vst.msk [vmem:[#allocation4 + $0x128] sm:$0xff] %vm59_vm0, %v2839_v1 }
  0xa5   :  { %182 = vst.msk [vmem:[#allocation4 + $0x130] sm:$0xff] %vm59_vm0, %v2839_v1 }
  0xa6   :  { %183 = vst.msk [vmem:[#allocation4 + $0x138] sm:$0xff] %vm59_vm0, %v2839_v1 }
  0xa7   :  { %184 = vst.msk [vmem:[#allocation4 + $0x140] sm:$0xff] %vm59_vm0, %v2839_v1 }
  0xa8   :  { %185 = vst.msk [vmem:[#allocation4 + $0x148] sm:$0xff] %vm59_vm0, %v2839_v1 }
  0xa9   :  { %2170 = vst.msk [vmem:[#allocation4 + $0x10] sm:$0xff] %vm59_vm0, %v2128_v5  ;;  %v2095_v5 = vsel %vm5346_vm10, 1.0, %v2839_v1 }
  0xaa   :  { %2168 = vst.msk [vmem:[#allocation4] sm:$0xff] %vm59_vm0, %v2126_v49  ;;  %v2132_v49 = vadd.f32 %v2090_v7, %v2048_v3  ;;  %v2137_v0 = vadd.f32 %v2095_v5, %v2053_v8  ;;  %v2136_v3 = vadd.f32 %v2094_v12, %v2052_v51  ;;  %v3471_v8 = vpop.permute.xlu0 %505  ;;  %v2054_v7 = vld [vmem:[#allocation4 + $0x60] sm:$0xff]  ;;  %v665_v12 = vsel %vm5346_vm10, 1, %v5552_v6  ;;  %v2059_v5 = vld [vmem:[#allocation4 + $0x88] sm:$0xff] }
  0xab   :  { %2173 = vst.msk [vmem:[#allocation4 + $0x28] sm:$0xff] %vm59_vm0, %v2131_v57  ;;  %v2056_v57 = vld [vmem:[#allocation4 + $0x70] sm:$0xff]  ;;  %v664_v51 = vsel %vm5349_vm11, 1, %v5552_v6  ;;  %vm5370_vm10 = vcmp.ne.s32.totalorder %v3044_v22, 4294967295  ;;  %vm378_vm11 = vcmp.ne.s32.totalorder %v3066_v23, 4294967295  ;;  %730 = vperm.xlu2 %2653, %v665_v12   ;;  %v2078_v21 = vld [vmem:[#allocation4 + $0x120] sm:$0xff] }
  0xac   :  { %2171 = vst.msk [vmem:[#allocation4 + $0x18] sm:$0xff] %vm59_vm0, %v2129_v60  ;;  %v2055_v60 = vld [vmem:[#allocation4 + $0x68] sm:$0xff]  ;;  %v2140_v10 = vadd.f32 %v2098_v2, %v2056_v57  ;;  %v663_v57 = vsel %vm5352_vm12, 1, %v5552_v6  ;;  %vm377_vm12 = vcmp.ne.s32.totalorder %v3073_v24, 4294967295  ;;  %727 = vperm.xlu1 %2652, %v664_v51   ;;  %v2060_v12 = vld [vmem:[#allocation4 + $0x90] sm:$0xff]  ;;  %v3822_v23 = vld [vmem:[%s5326_s0] sm:$0xff] }
  0xad   :  { %2169 = vst.msk [vmem:[#allocation4 + $0x8] sm:$0xff] %vm59_vm0, %v2127_v63  ;;  %v2135_v63 = vadd.f32 %v2093_v59, %v2051_v58  ;;  %v2139_v58 = vadd.f32 %v2097_v61, %v2055_v60  ;;  %v2058_v59 = vld [vmem:[#allocation4 + $0x80] sm:$0xff]  ;;  %724 = vperm.xlu0 %2651, %v663_v57   ;;  %v2065_v57 = vld [vmem:[#allocation4 + $0xb8] sm:$0xff]  ;;  %v3838_v22 = vld [vmem:[%s5326_s0 + $0x28] sm:$0xff] }
  0xae   :  { %2176 = vst.msk [vmem:[#allocation4 + $0x40] sm:$0xff] %vm59_vm0, %v2134_v11  ;;  %v2096_v11 = vsel %vm5361_vm15, 1.0, %v2839_v1 }
  0xaf   :  { %2175 = vst.msk [vmem:[#allocation4 + $0x38] sm:$0xff] %vm59_vm0, %v2133_v50  ;;  %v2101_v50 = vsel %vm5367_vm7, 1.0, %v2839_v1  ;;  %v2138_v2 = vadd.f32 %v2096_v11, %v2054_v7  ;;  %v2061_v7 = vld [vmem:[#allocation4 + $0x98] sm:$0xff]  ;;  %v2103_v11 = vsel %vm377_vm12, 1.0, %v2839_v1 }
  0xb0   :  { %2174 = vst.msk [vmem:[#allocation4 + $0x30] sm:$0xff] %vm59_vm0, %v2132_v49  ;;  %v2100_v49 = vsel %vm5368_vm8, 1.0, %v2839_v1  ;;  %v2143_v60 = vadd.f32 %v2101_v50, %v2059_v5  ;;  %v3516_v5 = vpop.permute.xlu2 %529 }
  0xb1   :  { %2179 = vst.msk [vmem:[#allocation4 + $0x58] sm:$0xff] %vm59_vm0, %v2137_v0  ;;  %v2099_v0 = vsel %vm5370_vm10, 1.0, %v2839_v1  ;;  %v2142_v61 = vadd.f32 %v2100_v49, %v2058_v59  ;;  %v3519_v59 = vpop.permute.xlu1 %517  ;;  %v667_v49 = vsel %vm5360_vm14, 1, %v5552_v6  ;;  %vm5498_vm14 = vcmp.ne.s32.totalorder %v3141_v30, 4294967295 }
  0xb2   :  { %2178 = vst.msk [vmem:[#allocation4 + $0x50] sm:$0xff] %vm59_vm0, %v2136_v3  ;;  %v2104_v3 = vsel %vm378_vm11, 1.0, %v2839_v1  ;;  %v3521_v51 = vpop.permute.xlu0 %514 }
  0xb3   :  { %2177 = vst.msk [vmem:[#allocation4 + $0x48] sm:$0xff] %vm59_vm0, %v2135_v63  ;;  %v2141_v63 = vadd.f32 %v2099_v0, %v2057_v14  ;;  %v2146_v50 = vadd.f32 %v2104_v3, %v2062_v15  ;;  %v2145_v14 = vadd.f32 %v2103_v11, %v2061_v7  ;;  %v2064_v0 = vld [vmem:[#allocation4 + $0xb0] sm:$0xff]  ;;  %v2106_v3 = vsel %vm5510_vm1, 1.0, %v2839_v1  ;;  %v2063_v7 = vld [vmem:[#allocation4 + $0xa8] sm:$0xff] }
  0xb4   :  { %2182 = vst.msk [vmem:[#allocation4 + $0x70] sm:$0xff] %vm59_vm0, %v2140_v10  ;;  %v2102_v10 = vsel %vm376_vm5, 1.0, %v2839_v1  ;;  %v666_v11 = vsel %vm5361_vm15, 1, %v5552_v6  ;;  %vm5509_vm15 = vcmp.ne.s32.totalorder %v3146_v31, 4294967295  ;;  %736 = vperm.xlu1 %2652, %v667_v49   ;;  %v2069_v49 = vld [vmem:[#allocation4 + $0xd8] sm:$0xff] }
  0xb5   :  { %2181 = vst.msk [vmem:[#allocation4 + $0x68] sm:$0xff] %vm59_vm0, %v2139_v58  ;;  %v668_v58 = vsel %vm5359_vm13, 1, %v5552_v6  ;;  %v2144_v15 = vadd.f32 %v2102_v10, %v2060_v12  ;;  %v2148_v12 = vadd.f32 %v2106_v3, %v2064_v0  ;;  %v2068_v10 = vld [vmem:[#allocation4 + $0xd0] sm:$0xff]  ;;  %vm5397_vm13 = vcmp.ne.s32.totalorder %v3134_v29, 4294967295  ;;  %733 = vperm.xlu0 %2651, %v666_v11  }
  0xb6   :  { %5553 = vst [vmem:[#allocation46_spill] sm:$0xff] %v3516_v5  ;;  %739 = vperm.xlu2 %2653, %v668_v58   ;;  %v2108_v58 = vsel %vm5509_vm15, 1.0, %v2839_v1  ;;  %v224_v5 = vld [vmem:[%s5326_s0 + $0x130] sm:$0xff] }
  0xb7   :  { %2180 = vst.msk [vmem:[#allocation4 + $0x60] sm:$0xff] %vm59_vm0, %v2138_v2  ;;  %v2107_v2 = vsel %vm5499_vm9, 1.0, %v2839_v1 }
  0xb8   :  { %2185 = vst.msk [vmem:[#allocation4 + $0x88] sm:$0xff] %vm59_vm0, %v2143_v60  ;;  %v2149_v60 = vadd.f32 %v2107_v2, %v2065_v57  ;;  %v2110_v57 = vsel %vm5397_vm13, 1.0, %v2839_v1  ;;  %v2066_v2 = vld [vmem:[#allocation4 + $0xc0] sm:$0xff] }
  0xb9   :  { %2184 = vst.msk [vmem:[#allocation4 + $0x80] sm:$0xff] %vm59_vm0, %v2142_v61  ;;  %v2105_v61 = vsel %vm379_vm2, 1.0, %v2839_v1  ;;  %v2150_v3 = vadd.f32 %v2108_v58, %v2066_v2  ;;  %v2111_v2 = vsel %vm5369_vm3, 1.0, %v2839_v1  ;;  %vm5372_vm3 = vcmp.ne.s32.totalorder %v3214_v37, 4294967295 }
  0xba   :  { %2183 = vst.msk [vmem:[#allocation4 + $0x78] sm:$0xff] %vm59_vm0, %v2141_v63  ;;  %v2147_v63 = vadd.f32 %v2105_v61, %v2063_v7  ;;  %v2070_v7 = vld [vmem:[#allocation4 + $0xe0] sm:$0xff]  ;;  %v3565_v61 = vpop.permute.xlu1 %526  ;;  %v3567_v18 = vpop.permute.xlu0 %523  ;;  %v2153_v58 = vadd.f32 %v2111_v2, %v2069_v49  ;;  %v2114_v49 = vsel %vm5372_vm3, 1.0, %v2839_v1  ;;  %v2076_v2 = vld [vmem:[#allocation4 + $0x110] sm:$0xff]  ;;  %vm5380_vm3 = vcmp.ne.s32.totalorder %v3248_v40, 4294967295 }
  0xbb   :  { %2188 = vst.msk [vmem:[#allocation4 + $0xa0] sm:$0xff] %vm59_vm0, %v2146_v50  ;;  %v2109_v50 = vsel %vm5498_vm14, 1.0, %v2839_v1 }
  0xbc   :  { %2187 = vst.msk [vmem:[#allocation4 + $0x98] sm:$0xff] %vm59_vm0, %v2145_v14  ;;  %v2152_v14 = vadd.f32 %v2110_v57, %v2068_v10  ;;  %v2151_v0 = vadd.f32 %v2109_v50, %v2067_v17  ;;  %v2113_v17 = vsel %vm5388_vm6, 1.0, %v2839_v1  ;;  %v2074_v10 = vld [vmem:[#allocation4 + $0x100] sm:$0xff]  ;;  %v670_v57 = vsel %vm5368_vm8, 1, %v5552_v6 }
  0xbd   :  { %2186 = vst.msk [vmem:[#allocation4 + $0x90] sm:$0xff] %vm59_vm0, %v2144_v15  ;;  %v2071_v15 = vld [vmem:[#allocation4 + $0xe8] sm:$0xff]  ;;  %vm5383_vm8 = vcmp.ne.s32.totalorder %v3209_v36, 4294967295  ;;  %745 = vperm.xlu1 %2652, %v670_v57  }
  0xbe   :  { %2191 = vst.msk [vmem:[#allocation4 + $0xb8] sm:$0xff] %vm59_vm0, %v2149_v60  ;;  %v671_v60 = vsel %vm5367_vm7, 1, %v5552_v6  ;;  %v2155_v11 = vadd.f32 %v2113_v17, %v2071_v15  ;;  %vm5371_vm7 = vcmp.ne.s32.totalorder %v3202_v35, 4294967295  ;;  %v2073_v17 = vld [vmem:[#allocation4 + $0xf8] sm:$0xff] }
  0xbf   :  { %2190 = vst.msk [vmem:[#allocation4 + $0xb0] sm:$0xff] %vm59_vm0, %v2148_v12  ;;  %v2112_v12 = vsel %vm5385_vm4, 1.0, %v2839_v1  ;;  %v2116_v15 = vsel %vm5371_vm7, 1.0, %v2839_v1  ;;  %748 = vperm.xlu2 %2653, %v671_v60   ;;  %vm5377_vm7 = vcmp.ne.s32.totalorder %v3243_v39, 4294967295  ;;  %v2075_v60 = vld [vmem:[#allocation4 + $0x108] sm:$0xff] }
  0xc0   :  { %2189 = vst.msk [vmem:[#allocation4 + $0xa8] sm:$0xff] %vm59_vm0, %v2147_v63  ;;  %v3582_v63 = vpop.permute.xlu2 %538  ;;  %v2154_v50 = vadd.f32 %v2112_v12, %v2070_v7  ;;  %v2158_v7 = vadd.f32 %v2116_v15, %v2074_v10  ;;  %v2077_v12 = vld [vmem:[#allocation4 + $0x118] sm:$0xff]  ;;  %v2118_v57 = vsel %vm5377_vm7, 1.0, %v2839_v1  ;;  %vm5382_vm7 = vcmp.ne.s32.totalorder %v3277_v42, 4294967295 }
  0xc1   :  { %2194 = vst.msk [vmem:[#allocation4 + $0xd0] sm:$0xff] %vm59_vm0, %v2152_v14  ;;  %v669_v14 = vsel %vm5370_vm10, 1, %v5552_v6  ;;  %vm5373_vm10 = vcmp.ne.s32.totalorder %v3236_v38, 4294967295 }
  0xc2   :  { %5554 = vst [vmem:[#allocation47_spill] sm:$0xff] %v3582_v63  ;;  %742 = vperm.xlu0 %2651, %v669_v14   ;;  %v3620_v15 = vpop.permute.xlu1 %535 }
  0xc3   :  { %2193 = vst.msk [vmem:[#allocation4 + $0xc8] sm:$0xff] %vm59_vm0, %v2151_v0  ;;  %v2072_v0 = vld [vmem:[#allocation4 + $0xf0] sm:$0xff] }
  0xc4   :  { %2192 = vst.msk [vmem:[#allocation4 + $0xc0] sm:$0xff] %vm59_vm0, %v2150_v3  ;;  %v2115_v3 = vsel %vm5383_vm8, 1.0, %v2839_v1  ;;  %v2156_v10 = vadd.f32 %v2114_v49, %v2072_v0  ;;  %v2079_v49 = vld [vmem:[#allocation4 + $0x128] sm:$0xff]  ;;  %vm5497_vm8 = vcmp.ne.s32.totalorder %v3318_v47, 4294967295 }
  0xc5   :  { %2197 = vst.msk [vmem:[#allocation4 + $0xe8] sm:$0xff] %vm59_vm0, %v2155_v11  ;;  %v2157_v11 = vadd.f32 %v2115_v3, %v2073_v17  ;;  %v3622_v17 = vpop.permute.xlu0 %532  ;;  %v2117_v3 = vsel %vm5380_vm3, 1.0, %v2839_v1  ;;  %vm5384_vm3 = vcmp.ne.s32.totalorder %v3282_v43, 4294967295 }
  0xc6   :  { %2196 = vst.msk [vmem:[#allocation4 + $0xe0] sm:$0xff] %vm59_vm0, %v2154_v50  ;;  %v2119_v50 = vsel %vm5373_vm10, 1.0, %v2839_v1  ;;  %vm5381_vm10 = vcmp.ne.s32.totalorder %v3270_v41, 4294967295  ;;  %v2159_v20 = vadd.f32 %v2117_v3, %v2075_v60  ;;  %v2120_v60 = vsel %vm5384_vm3, 1.0, %v2839_v1 }
  0xc7   :  { %2195 = vst.msk [vmem:[#allocation4 + $0xd8] sm:$0xff] %vm59_vm0, %v2153_v58  ;;  %v2080_v58 = vld [vmem:[#allocation4 + $0x130] sm:$0xff]  ;;  %v2161_v0 = vadd.f32 %v2119_v50, %v2077_v12  ;;  %v2122_v14 = vsel %vm5381_vm10, 1.0, %v2839_v1  ;;  %vm399_vm10 = vcmp.ne.s32.totalorder %v3306_v45, 4294967295  ;;  %v673_v45 = vsel %vm377_vm12, 1, %v5552_v6 }
  0xc8   :  { %2200 = vst.msk [vmem:[#allocation4 + $0x100] sm:$0xff] %vm59_vm0, %v2158_v7  ;;  %v2160_v7 = vadd.f32 %v2118_v57, %v2076_v2  ;;  %v2164_v12 = vadd.f32 %v2122_v14, %v2080_v58  ;;  %v2121_v2 = vsel %vm5382_vm7, 1.0, %v2839_v1  ;;  %v2082_v57 = vld [vmem:[#allocation4 + $0x140] sm:$0xff]  ;;  %v3645_v14 = vpop.permute.xlu2 %547  ;;  %v2162_v58 = vadd.f32 %v2120_v60, %v2078_v21  ;;  %754 = vperm.xlu1 %2652, %v673_v45  }
  0xc9   :  { %5555 = vst [vmem:[#allocation48_spill] sm:$0xff] %v3620_v15  ;;  %vm5496_vm7 = vcmp.ne.s32.totalorder %v3313_v46, 4294967295  ;;  %v678_v45 = vsel %vm5509_vm15, 1, %v5552_v6 }
  0xca   :  { %5556 = vst [vmem:[#allocation49_spill] sm:$0xff] %v3622_v17 }
  0xcb   :  { %2199 = vst.msk [vmem:[#allocation4 + $0xf8] sm:$0xff] %vm59_vm0, %v2157_v11  ;;  %v5557_v11 = vlaneseq }
  0xcc   :  { %2198 = vst.msk [vmem:[#allocation4 + $0xf0] sm:$0xff] %vm59_vm0, %v2156_v10  ;;  %v2163_v10 = vadd.f32 %v2121_v2, %v2079_v49  ;;  %v2123_v49 = vsel %vm5497_vm8, 1.0, %v2839_v1 }
  0xcd   :  { %2203 = vst.msk [vmem:[#allocation4 + $0x118] sm:$0xff] %vm59_vm0, %v2161_v0  ;;  %v273_v50 = vshrl.u32 %v5557_v11, 7  ;;  %v2081_v0 = vld [vmem:[#allocation4 + $0x138] sm:$0xff]  ;;  %v3667_v60 = vpop.permute.xlu0 %541 }
  0xce   :  { %2202 = vst.msk [vmem:[#allocation4 + $0x110] sm:$0xff] %vm59_vm0, %v2160_v7  ;;  %v2124_v7 = vsel %vm5496_vm7, 1.0, %v2839_v1  ;;  %v2165_v2 = vadd.f32 %v2123_v49, %v2081_v0  ;;  %v675_v49 = vsel %vm379_vm2, 1, %v5552_v6 }
  0xcf   :  { %5558 = vst [vmem:[#allocation50_spill] sm:$0xff] %v3645_v14  ;;  %v314_v3 = vadd.s32 328, %v273_v50  ;;  %v2166_v21 = vadd.f32 %v2124_v7, %v2082_v57  ;;  %v3665_v50 = vpop.permute.xlu1 %544  ;;  %v674_v57 = vsel %vm378_vm11, 1, %v5552_v6  ;;  %v676_v7 = vsel %vm5510_vm1, 1, %v5552_v6 }
  0xd0   :  { %2201 = vst.msk [vmem:[#allocation4 + $0x108] sm:$0xff] %vm59_vm0, %v2159_v20  ;;  %v2083_v20 = vld [vmem:[#allocation4 + $0x148] sm:$0xff]  ;;  %757 = vperm.xlu2 %2653, %v674_v57   ;;  %763 = vperm.xlu1 %2652, %v676_v7  }
  0xd1   :  { %2206 = vst.msk [vmem:[#allocation4 + $0x130] sm:$0xff] %vm59_vm0, %v2164_v12  ;;  %vm441_vm3 = vcmp.lt.s32.totalorder %v314_v3, 333  ;;  %v5559_v12 = vmov 0  ;;  %v677_v3 = vsel %vm5499_vm9, 1, %v5552_v6 }
  0xd2   :  { %2205 = vst.msk [vmem:[#allocation4 + $0x128] sm:$0xff] %vm59_vm0, %v2163_v10  ;;  %vm3661_vm4 = vmand %vm399_vm10, %vm441_vm3  ;;  %vm5570_vm3 = vcmp.ne.s32.totalorder %v3175_v33, 4294967295  ;;  %vm5571_vm10 = vcmp.ne.s32.totalorder %v3180_v34, 4294967295 }
  0xd3   :  { %2204 = vst.msk [vmem:[#allocation4 + $0x120] sm:$0xff] %vm59_vm0, %v2162_v58  ;;  %v5560_v12 = vsel %vm3661_vm4, 4294967295, %v5559_v12  ;;  %v2125_v10 = vsel %vm3661_vm4, 1.0, %v2839_v1  ;;  %v672_v58 = vsel %vm376_vm5, 1, %v5552_v6  ;;  %v3684_v1 = vpop.permute.xlu2 %556  ;;  %v682_v7 = vsel %vm5570_vm3, 1, %v5552_v6 }
  0xd4   :  { %5561 = vst [vmem:[#allocation51_spill] sm:$0xff] %v5560_v12  ;;  %v2167_v0 = vadd.f32 %v2125_v10, %v2083_v20  ;;  %751 = vperm.xlu0 %2651, %v672_v58   ;;  %v679_v10 = vsel %vm5498_vm14, 1, %v5552_v6  ;;  %vm5576_vm3 = vcmp.ne.s32.totalorder %v3209_v36, 4294967295 }
  0xd5   :  { %5562 = vst [vmem:[#allocation52_spill] sm:$0xff] %v3665_v50  ;;  %v685_v32 = vsel %vm5576_vm3, 1, %v5552_v6  ;;  %vm5582_vm3 = vcmp.ne.s32.totalorder %v3243_v39, 4294967295 }
  0xd6   :  { %5563 = vst [vmem:[#allocation53_spill] sm:$0xff] %v3667_v60  ;;  %v688_v36 = vsel %vm5582_vm3, 1, %v5552_v6  ;;  %vm5589_vm3 = vcmp.ne.s32.totalorder %v3282_v43, 4294967295 }
  0xd7   :  { %2208 = vst.msk [vmem:[#allocation4 + $0x140] sm:$0xff] %vm59_vm0, %v2166_v21  ;;  %v3695_v20 = vpop.permute.xlu1 %553  ;;  %v3697_v21 = vpop.permute.xlu0 %550 }
  0xd8   :  { %2207 = vst.msk [vmem:[#allocation4 + $0x138] sm:$0xff] %vm59_vm0, %v2165_v2  ;;  %766 = vperm.xlu2 %2653, %v677_v3   ;;  %v680_v2 = vsel %vm5397_vm13, 1, %v5552_v6  ;;  %772 = vperm.xlu1 %2652, %v679_v10   ;;  %v683_v3 = vsel %vm5388_vm6, 1, %v5552_v6  ;;  %vm5575_vm6 = vcmp.ne.s32.totalorder %v3202_v35, 4294967295  ;;  %vm5586_vm13 = vcmp.ne.s32.totalorder %v3270_v41, 4294967295 }
  0xd9   :  { %2209 = vst.msk [vmem:[#allocation4 + $0x148] sm:$0xff] %vm59_vm0, %v2167_v0 }
  0xda   :  { %5564 = vst [vmem:[#allocation54_spill] sm:$0xff] %v3684_v1 }
  0xdb   :  { %5565 = vst [vmem:[#allocation55_spill] sm:$0xff] %v3695_v20  ;;  %v3705_v57 = vpop.permute.xlu2 %565 }
  0xdc   :  { %5566 = vst [vmem:[#allocation56_spill] sm:$0xff] %v3697_v21  ;;  %760 = vperm.xlu0 %2651, %v675_v49   ;;  %v681_v49 = vsel %vm5571_vm10, 1, %v5552_v6  ;;  %vm5577_vm10 = vcmp.ne.s32.totalorder %v3214_v37, 4294967295  ;;  %v3960_v21 = vld [vmem:[%s5326_s0 + $0x90] sm:$0xff] }
  0xdd   :  { %5567 = vst [vmem:[#allocation57_spill] sm:$0xff] %v3705_v57  ;;  %v684_v33 = vsel %vm5577_vm10, 1, %v5552_v6  ;;  %vm5583_vm10 = vcmp.ne.s32.totalorder %v3248_v40, 4294967295  ;;  %v3917_v57 = vld [vmem:[%s5326_s0 + $0x70] sm:$0xff] }
  0xdf   :  { %v3710_v0 = vpop.permute.xlu1 %562  ;;  %v3712_v58 = vpop.permute.xlu0 %559 }
  0xe0   :  { %5568 = vst [vmem:[#allocation58_spill] sm:$0xff] %v3710_v0  ;;  %775 = vperm.xlu2 %2653, %v680_v2   ;;  %781 = vperm.xlu1 %2652, %v682_v7  }
  0xe1   :  { %5569 = vst [vmem:[#allocation59_spill] sm:$0xff] %v3712_v58  ;;  %v3940_v58 = vld [vmem:[%s5326_s0 + $0x88] sm:$0xff] }
  0xe3   :  { %v3723_v29 = vpop.permute.xlu2 %574 }
  0xe4   :  { %769 = vperm.xlu0 %2651, %v678_v45   ;;  %5572 = vst [vmem:[#allocation60_spill] sm:$0xff] %v3723_v29  ;;  %v686_v45 = vsel %vm5575_vm6, 1, %v5552_v6  ;;  %vm5581_vm6 = vcmp.ne.s32.totalorder %v3236_v38, 4294967295  ;;  %v692_v38 = vsel %vm5586_vm13, 1, %v5552_v6  ;;  %vm906_vm13 = vcmask 162816  }
  0xe5   :  { %v689_v35 = vsel %vm5581_vm6, 1, %v5552_v6  ;;  %vm5587_vm6 = vcmp.ne.s32.totalorder %v3277_v42, 4294967295  ;;  %v693_v42 = vsel %vm5497_vm8, 1, %v5552_v6  ;;  %v910_v27 = vsel %vm906_vm13, %v3813_v26, -inf }
  0xe6   :  { %v691_v39 = vsel %vm5587_vm6, 1, %v5552_v6  ;;  %v907_v24 = vsel %vm906_vm13, %v3822_v23, -inf  ;;  %v952_v1 = vsel %vm906_vm13, %v3933_v4, -inf  ;;  %v961_v50 = vsel %vm906_vm13, %v3960_v21, -inf }
  0xe7   :  { %v3725_v2 = vpop.permute.xlu1 %571  ;;  %v3727_v10 = vpop.permute.xlu0 %568 }
  0xe8   :  { %784 = vperm.xlu2 %2653, %v683_v3   ;;  %5573 = vst [vmem:[#allocation61_spill] sm:$0xff] %v3725_v2  ;;  %790 = vperm.xlu1 %2652, %v685_v32   ;;  %v3910_v2 = vld [vmem:[%s5326_s0 + $0x60] sm:$0xff] }
  0xe9   :  { %5574 = vst [vmem:[#allocation62_spill] sm:$0xff] %v3727_v10 }
  0xeb   :  { %v3738_v3 = vpop.permute.xlu2 %583 }
  0xec   :  { %778 = vperm.xlu0 %2651, %v681_v49   ;;  %5578 = vst [vmem:[#allocation63_spill] sm:$0xff] %v3738_v3 }
  0xef   :  { %v3740_v7 = vpop.permute.xlu1 %580  ;;  %v3742_v49 = vpop.permute.xlu0 %577 }
  0xf0   :  { %793 = vperm.xlu2 %2653, %v686_v45   ;;  %5579 = vst [vmem:[#allocation64_spill] sm:$0xff] %v3740_v7  ;;  %v687_v45 = vsel %vm5583_vm10, 1, %v5552_v6  ;;  %799 = vperm.xlu1 %2652, %v688_v36   ;;  %v695_v36 = vsel %vm3661_vm4, 1, %v5552_v6 }
  0xf1   :  { %5580 = vst [vmem:[#allocation65_spill] sm:$0xff] %v3742_v49 }
  0xf3   :  { %v3753_v32 = vpop.permute.xlu2 %592 }
  0xf4   :  { %787 = vperm.xlu0 %2651, %v684_v33   ;;  %5584 = vst [vmem:[#allocation66_spill] sm:$0xff] %v3753_v32 }
  0xf7   :  { %v3755_v33 = vpop.permute.xlu1 %589  ;;  %v3763_v37 = vpop.permute.xlu0 %586 }
  0xf8   :  { %802 = vperm.xlu2 %2653, %v689_v35   ;;  %5585 = vst [vmem:[#allocation67_spill] sm:$0xff] %v3755_v33  ;;  %v690_v35 = vsel %vm5589_vm3, 1, %v5552_v6  ;;  %808 = vperm.xlu1 %2652, %v691_v39  }
  0xf9   :  { %5588 = vst [vmem:[#allocation68_spill] sm:$0xff] %v3763_v37  ;;  %v3885_v37 = vld [vmem:[%s5326_s0 + $0x48] sm:$0xff] }
  0xfa   :  { %v934_v3 = vsel %vm906_vm13, %v3885_v37, -inf }
  0xfb   :  { %v3774_v41 = vpop.permute.xlu2 %601 }
  0xfc   :  { %796 = vperm.xlu0 %2651, %v687_v45   ;;  %v694_v45 = vsel %vm5496_vm7, 1, %v5552_v6  ;;  %5590 = vst [vmem:[#allocation69_spill] sm:$0xff] %v3774_v41  ;;  %v3858_v41 = vld [vmem:[%s5326_s0 + $0x30] sm:$0xff] }
  0xfd   :  { %v925_v19 = vsel %vm906_vm13, %v3858_v41, -inf }
  0xff   :  { %v3779_v40 = vpop.permute.xlu1 %598  ;;  %v3781_v43 = vpop.permute.xlu0 %595 }
 0x100   :  { %811 = vperm.xlu2 %2653, %v692_v38   ;;  %5591 = vst [vmem:[#allocation70_spill] sm:$0xff] %v3779_v40  ;;  %817 = vperm.xlu1 %2652, %v694_v45  }
 0x101   :  { %5592 = vst [vmem:[#allocation71_spill] sm:$0xff] %v3781_v43  ;;  %v3865_v43 = vld [vmem:[%s5326_s0 + $0x40] sm:$0xff] }
 0x103   :  { %v3783_v38 = vpop.permute.xlu2 %610 }
 0x104   :  { %805 = vperm.xlu0 %2651, %v690_v35   ;;  %5593 = vst [vmem:[#allocation72_spill] sm:$0xff] %v3783_v38 }
 0x107   :  { %v3785_v39 = vpop.permute.xlu1 %607  ;;  %v3787_v35 = vpop.permute.xlu0 %604 }
 0x108   :  { %820 = vperm.xlu2 %2653, %v695_v36   ;;  %5594 = vst [vmem:[#allocation73_spill] sm:$0xff] %v3785_v39  ;;  %v922_v39 = vsel %vm906_vm13, %v3838_v22, -inf }
 0x109   :  { %5595 = vst [vmem:[#allocation74_spill] sm:$0xff] %v3787_v35  ;;  %v916_v35 = vsel %vm906_vm13, %v3831_v25, -inf }
 0x10b   :  { %v3789_v12 = vpop.permute.xlu2 %703 }
 0x10c   :  { %814 = vperm.xlu0 %2651, %v693_v42   ;;  %v3804_v42 = vld [vmem:[%s5326_s0 + $0x10] sm:$0xff] }
 0x10d   :  { %v913_v45 = vsel %vm906_vm13, %v3804_v42, -inf }
 0x10f   :  { %v3791_v46 = vpop.permute.xlu1 %700  ;;  %v3793_v34 = vpop.permute.xlu0 %697 }
 0x110   :  { %vm822_vm10 = vcmp.eq.s32.totalorder %v3793_v34, 1  ;;  %vm823_vm6 = vcmp.eq.s32.totalorder %v3791_v46, 1 }
 0x113   :  { %v3795_v6 = vpop.permute.xlu2 %712 }
 0x117   :  { %v3797_v47 = vpop.permute.xlu1 %709  ;;  %v3799_v30 = vpop.permute.xlu0 %706 }
 0x11b   :  { %v3806_v36 = vpop.permute.xlu2 %721 }
 0x11f   :  { %v3815_v31 = vpop.permute.xlu1 %718  ;;  %v3824_v28 = vpop.permute.xlu0 %715 }
 0x127   :  { %v3851_v38 = vpop.permute.xlu1 %727  ;;  %v3853_v40 = vpop.permute.xlu0 %724 }
 0x128   :  { %vm832_vm9 = vcmp.eq.s32.totalorder %v3851_v38, 1 }
 0x12a   :  { %911 = vmax.xlane.f32.xlu1 %v910_v27  ;;  %v3847_v27 = vpop.permute.xlu2 %730 }
 0x12f   :  { %v3878_v33 = vpop.permute.xlu1 %736  ;;  %v3880_v16 = vpop.permute.xlu0 %733 }
 0x131   :  { %914 = vmax.xlane.f32.xlu2 %v913_v45 }
 0x132   :  { %923 = vmax.xlane.f32.xlu1 %v922_v39  ;;  %v931_v39 = vsel %vm906_vm13, %v3865_v43, -inf  ;;  %v3876_v32 = vpop.permute.xlu2 %739 }
 0x133   :  { %5596 = vst [vmem:[#allocation75_spill] sm:$0xff] %v3876_v32 }
 0x136   :  { %908 = vmax.xlane.f32.xlu0 %v907_v24  ;;  %v3845_v24 = vld [vmem:[%s5326_s0 + $0x20] sm:$0xff] }
 0x137   :  { %v919_v45 = vsel %vm906_vm13, %v3845_v24, -inf  ;;  %v3905_v29 = vpop.permute.xlu1 %745  ;;  %v3912_v10 = vpop.permute.xlu0 %742 }
 0x138   :  { %5598 = vst [vmem:[#allocation77_spill] sm:$0xff] %v3905_v29  ;;  %v4019_v29 = vld [vmem:[%s5326_s0 + $0xd0] sm:$0xff] }
 0x139   :  { %917 = vmax.xlane.f32.xlu2 %v916_v35  ;;  %v3870_v35 = vld [vmem:[%s5326_s0 + $0x38] sm:$0xff]  ;;  %5612 = vst [vmem:[#allocation91_spill] sm:$0xff] %v4019_v29 }
 0x13a   :  { %932 = vmax.xlane.f32.xlu1 %v931_v39  ;;  %v3903_v49 = vpop.permute.xlu2 %748 }
 0x13b   :  { %5597 = vst [vmem:[#allocation76_spill] sm:$0xff] %v3903_v49  ;;  %v3987_v49 = vld [vmem:[%s5326_s0 + $0xa8] sm:$0xff] }
 0x13e   :  { %920 = vmax.xlane.f32.xlu0 %v919_v45  ;;  %v928_v45 = vsel %vm906_vm13, %v3870_v35, -inf }
 0x13f   :  { %v3944_v20 = vpop.permute.xlu1 %754 }
 0x140   :  { %5600 = vst [vmem:[#allocation79_spill] sm:$0xff] %v3944_v20 }
 0x141   :  { %926 = vmax.xlane.f32.xlu2 %v925_v19  ;;  %v3892_v19 = vld [vmem:[%s5326_s0 + $0x58] sm:$0xff] }
 0x142   :  { %v940_v39 = vsel %vm906_vm13, %v3892_v19, -inf  ;;  %v3935_v0 = vpop.permute.xlu2 %757 }
 0x143   :  { %941 = vmax.xlane.f32.xlu1 %v940_v39  ;;  %v3926_v39 = vld [vmem:[%s5326_s0 + $0x68] sm:$0xff]  ;;  %5599 = vst [vmem:[#allocation78_spill] sm:$0xff] %v3935_v0  ;;  %v3965_v0 = vld [vmem:[%s5326_s0 + $0xa0] sm:$0xff] }
 0x144   :  { %v946_v9 = vsel %vm906_vm13, %v3926_v39, -inf  ;;  %5602 = vst [vmem:[#allocation81_spill] sm:$0xff] %v3965_v0  ;;  %v967_v20 = vsel %vm906_vm13, %v3965_v0, -inf }
 0x146   :  { %929 = vmax.xlane.f32.xlu0 %v928_v45  ;;  %v3899_v45 = vld [vmem:[%s5326_s0 + $0x50] sm:$0xff] }
 0x147   :  { %v937_v7 = vsel %vm906_vm13, %v3899_v45, -inf  ;;  %v3980_v63 = vpop.permute.xlu1 %763 }
 0x148   :  { %5604 = vst [vmem:[#allocation83_spill] sm:$0xff] %v3980_v63 }
 0x149   :  { %935 = vmax.xlane.f32.xlu2 %v934_v3  ;;  %v943_v3 = vsel %vm906_vm13, %v3910_v2, -inf }
 0x14e   :  { %938 = vmax.xlane.f32.xlu0 %v937_v7  ;;  %v949_v7 = vsel %vm906_vm13, %v3917_v57, -inf }
 0x14f   :  { %950 = vmax.xlane.f32.xlu1 %v949_v7  ;;  %v3953_v7 = vpop.permute.xlu0 %751 }
 0x150   :  { %5601 = vst [vmem:[#allocation80_spill] sm:$0xff] %v3953_v7  ;;  %v3992_v7 = vld [vmem:[%s5326_s0 + $0xb8] sm:$0xff] }
 0x151   :  { %944 = vmax.xlane.f32.xlu2 %v943_v3  ;;  %v3951_v3 = vld [vmem:[%s5326_s0 + $0x80] sm:$0xff]  ;;  %5606 = vst [vmem:[#allocation85_spill] sm:$0xff] %v3992_v7 }
 0x152   :  { %v955_v14 = vsel %vm906_vm13, %v3951_v3, -inf }
 0x156   :  { %947 = vmax.xlane.f32.xlu0 %v946_v9  ;;  %v958_v9 = vsel %vm906_vm13, %v3940_v58, -inf }
 0x157   :  { %959 = vmax.xlane.f32.xlu1 %v958_v9  ;;  %v3982_v60 = vpop.permute.xlu0 %760 }
 0x158   :  { %5605 = vst [vmem:[#allocation84_spill] sm:$0xff] %v3982_v60  ;;  %v4007_v60 = vpop.permute.xlu1 %772 }
 0x159   :  { %953 = vmax.xlane.f32.xlu2 %v952_v1  ;;  %v3976_v1 = vpop.permute.xlu2 %766  ;;  %5609 = vst [vmem:[#allocation88_spill] sm:$0xff] %v4007_v60 }
 0x15a   :  { %5603 = vst [vmem:[#allocation82_spill] sm:$0xff] %v3976_v1  ;;  %v970_v1 = vsel %vm906_vm13, %v3987_v49, -inf }
 0x15e   :  { %956 = vmax.xlane.f32.xlu0 %v955_v14  ;;  %v3974_v14 = vld [vmem:[%s5326_s0 + $0x98] sm:$0xff] }
 0x15f   :  { %v964_v9 = vsel %vm906_vm13, %v3974_v14, -inf  ;;  %968 = vmax.xlane.f32.xlu1 %v967_v20  ;;  %v4001_v20 = vld [vmem:[%s5326_s0 + $0xb0] sm:$0xff]  ;;  %v4009_v15 = vpop.permute.xlu0 %769 }
 0x160   :  { %5607 = vst [vmem:[#allocation86_spill] sm:$0xff] %v4001_v20 }
 0x161   :  { %962 = vmax.xlane.f32.xlu2 %v961_v50  ;;  %v976_v50 = vsel %vm906_vm13, %v3992_v7, -inf  ;;  %v4005_v63 = vpop.permute.xlu2 %775  ;;  %5610 = vst [vmem:[#allocation89_spill] sm:$0xff] %v4009_v15  ;;  %v4014_v7 = vld [vmem:[%s5326_s0 + $0xc0] sm:$0xff]  ;;  %v4034_v15 = vpop.permute.xlu1 %781 }
 0x162   :  { %5608 = vst [vmem:[#allocation87_spill] sm:$0xff] %v4005_v63 }
 0x163   :  { %5611 = vst [vmem:[#allocation90_spill] sm:$0xff] %v4014_v7 }
 0x164   :  { %5615 = vst [vmem:[#allocation94_spill] sm:$0xff] %v4034_v15  ;;  %v4062_v15 = vld [vmem:[%s5326_s0 + $0xf0] sm:$0xff] }
 0x165   :  { %5620 = vst [vmem:[#allocation99_spill] sm:$0xff] %v4062_v15 }
 0x166   :  { %965 = vmax.xlane.f32.xlu0 %v964_v9  ;;  %v973_v9 = vsel %vm906_vm13, %v4001_v20, -inf  ;;  %v4044_v20 = vld [vmem:[%s5326_s0 + $0xe8] sm:$0xff] }
 0x167   :  { %977 = vmax.xlane.f32.xlu1 %v976_v50  ;;  %v4026_v50 = vld [vmem:[%s5326_s0 + $0xc8] sm:$0xff]  ;;  %5617 = vst [vmem:[#allocation96_spill] sm:$0xff] %v4044_v20 }
 0x168   :  { %5613 = vst [vmem:[#allocation92_spill] sm:$0xff] %v4026_v50  ;;  %v982_v63 = vsel %vm906_vm13, %v4026_v50, -inf }
 0x169   :  { %971 = vmax.xlane.f32.xlu2 %v970_v1  ;;  %v979_v1 = vsel %vm906_vm13, %v4014_v7, -inf  ;;  %v4032_v60 = vpop.permute.xlu2 %784  ;;  %v4039_v7 = vld [vmem:[%s5326_s0 + $0xd8] sm:$0xff]  ;;  %v4073_v50 = vpop.permute.xlu1 %790 }
 0x16a   :  { %5614 = vst [vmem:[#allocation93_spill] sm:$0xff] %v4032_v60 }
 0x16b   :  { %5616 = vst [vmem:[#allocation95_spill] sm:$0xff] %v4039_v7 }
 0x16c   :  { %5623 = vst [vmem:[#allocation102_spill] sm:$0xff] %v4073_v50  ;;  %v4089_v50 = vld [vmem:[%s5326_s0 + $0x108] sm:$0xff] }
 0x16d   :  { %5626 = vst [vmem:[#allocation105_spill] sm:$0xff] %v4089_v50 }
 0x16e   :  { %974 = vmax.xlane.f32.xlu0 %v973_v9  ;;  %v985_v9 = vsel %vm906_vm13, %v4019_v29, -inf  ;;  %v4046_v29 = vpop.permute.xlu0 %778 }
 0x16f   :  { %986 = vmax.xlane.f32.xlu1 %v985_v9  ;;  %5618 = vst [vmem:[#allocation97_spill] sm:$0xff] %v4046_v29  ;;  %v994_v9 = vsel %vm906_vm13, %v4044_v20, -inf  ;;  %v997_v20 = vsel %vm906_vm13, %v4062_v15, -inf  ;;  %v221_v15 = vld [vmem:[%s5326_s0 + $0x118] sm:$0xff] }
 0x171   :  { %980 = vmax.xlane.f32.xlu2 %v979_v1  ;;  %v988_v1 = vsel %vm906_vm13, %v4039_v7, -inf  ;;  %v4064_v29 = vpop.permute.xlu2 %793  ;;  %v4069_v7 = vld [vmem:[%s5326_s0 + $0x100] sm:$0xff] }
 0x172   :  { %5621 = vst [vmem:[#allocation100_spill] sm:$0xff] %v4064_v29 }
 0x173   :  { %5622 = vst [vmem:[#allocation101_spill] sm:$0xff] %v4069_v7 }
 0x176   :  { %983 = vmax.xlane.f32.xlu0 %v982_v63  ;;  %v4053_v63 = vld [vmem:[%s5326_s0 + $0xe0] sm:$0xff] }
 0x177   :  { %5619 = vst [vmem:[#allocation98_spill] sm:$0xff] %v4053_v63  ;;  %v991_v60 = vsel %vm906_vm13, %v4053_v63, -inf  ;;  %995 = vmax.xlane.f32.xlu1 %v994_v9  ;;  %v4082_v9 = vpop.permute.xlu0 %787 }
 0x178   :  { %5625 = vst [vmem:[#allocation104_spill] sm:$0xff] %v4082_v9  ;;  %v220_v9 = vld [vmem:[%s5326_s0 + $0x110] sm:$0xff] }
 0x179   :  { %989 = vmax.xlane.f32.xlu2 %v988_v1  ;;  %v1003_v1 = vsel %vm906_vm13, %v4069_v7, -inf  ;;  %v1006_v7 = vsel %vm906_vm13, %v4089_v50, -inf  ;;  %v222_v50 = vld [vmem:[%s5326_s0 + $0x120] sm:$0xff] }
 0x17e   :  { %992 = vmax.xlane.f32.xlu0 %v991_v60  ;;  %v4078_v60 = vld [vmem:[%s5326_s0 + $0xf8] sm:$0xff] }
 0x17f   :  { %5624 = vst [vmem:[#allocation103_spill] sm:$0xff] %v4078_v60  ;;  %v1000_v29 = vsel %vm906_vm13, %v4078_v60, -inf  ;;  %1004 = vmax.xlane.f32.xlu1 %v1003_v1  ;;  %v4100_v1 = vpop.permute.xlu2 %802  ;;  %v4103_v60 = vpop.permute.xlu1 %799 }
 0x180   :  { %5627 = vst [vmem:[#allocation106_spill] sm:$0xff] %v4100_v1  ;;  %v4105_v63 = vpop.permute.xlu0 %796 }
 0x181   :  { %998 = vmax.xlane.f32.xlu2 %v997_v20  ;;  %v1012_v20 = vsel %vm906_vm13, %v221_v15, -inf  ;;  %5628 = vst [vmem:[#allocation107_spill] sm:$0xff] %v4103_v60  ;;  %v1015_v15 = vsel %vm906_vm13, %v222_v50, -inf  ;;  %v225_v50 = vld [vmem:[%s5326_s0 + $0x138] sm:$0xff] }
 0x182   :  { %5629 = vst [vmem:[#allocation108_spill] sm:$0xff] %v4105_v63  ;;  %v227_v63 = vld [vmem:[%s5326_s0 + $0x148] sm:$0xff] }
 0x186   :  { %1001 = vmax.xlane.f32.xlu0 %v1000_v29  ;;  %v1009_v29 = vsel %vm906_vm13, %v220_v9, -inf  ;;  %v223_v9 = vld [vmem:[%s5326_s0 + $0x128] sm:$0xff] }
 0x187   :  { %1013 = vmax.xlane.f32.xlu1 %v1012_v20  ;;  %v1018_v1 = vsel %vm906_vm13, %v223_v9, -inf  ;;  %v4119_v20 = vpop.permute.xlu2 %811  ;;  %v1030_v9 = vsel %vm906_vm13, %v227_v63, -inf }
 0x188   :  { %5630 = vst [vmem:[#allocation109_spill] sm:$0xff] %v4119_v20  ;;  %v4123_v60 = vpop.permute.xlu0 %805 }
 0x189   :  { %1007 = vmax.xlane.f32.xlu2 %v1006_v7  ;;  %v1021_v7 = vsel %vm906_vm13, %v224_v5, -inf  ;;  %5632 = vst [vmem:[#allocation111_spill] sm:$0xff] %v4123_v60  ;;  %v1024_v5 = vsel %vm906_vm13, %v225_v50, -inf }
 0x18e   :  { %1010 = vmax.xlane.f32.xlu0 %v1009_v29  ;;  %v4121_v29 = vpop.permute.xlu1 %808 }
 0x18f   :  { %1022 = vmax.xlane.f32.xlu1 %v1021_v7  ;;  %5631 = vst [vmem:[#allocation110_spill] sm:$0xff] %v4121_v29  ;;  %v4137_v7 = vpop.permute.xlu2 %820 }
 0x190   :  { %5633 = vst [vmem:[#allocation112_spill] sm:$0xff] %v4137_v7  ;;  %v4141_v20 = vpop.permute.xlu0 %814 }
 0x191   :  { %1016 = vmax.xlane.f32.xlu2 %v1015_v15  ;;  %v226_v15 = vld [vmem:[%s5326_s0 + $0x140] sm:$0xff]  ;;  %5635 = vst [vmem:[#allocation114_spill] sm:$0xff] %v4141_v20 }
 0x196   :  { %1019 = vmax.xlane.f32.xlu0 %v1018_v1  ;;  %v1027_v1 = vsel %vm906_vm13, %v226_v15, -inf  ;;  %v4139_v29 = vpop.permute.xlu1 %817 }
 0x197   :  { %1031 = vmax.xlane.f32.xlu1 %v1030_v9  ;;  %5634 = vst [vmem:[#allocation113_spill] sm:$0xff] %v4139_v29 }
 0x199   :  { %1025 = vmax.xlane.f32.xlu2 %v1024_v5 }
 0x19e   :  { %1028 = vmax.xlane.f32.xlu0 %v1027_v1  ;;  %v4147_v17 = vpop.xlane.xlu1 %911 }
 0x19f   :  { %5637 = vst [vmem:[#allocation116_spill] sm:$0xff] %v4147_v17  ;;  %v1034_v63 = vsub.f32 %v3813_v26, %v4147_v17 }
 0x1a1   :  { %v1077_v1 = vmul.f32 1.442695, %v1034_v63 }
 0x1a4   :  { %v4143_v60 = vpop.xlane.xlu2 %914 }
 0x1a5   :  { %5636 = vst [vmem:[#allocation115_spill] sm:$0xff] %v4143_v60  ;;  %v1035_v50 = vsub.f32 %v3804_v42, %v4143_v60 }
 0x1a6   :  { %v4159_v60 = vpop.xlane.xlu1 %923 }
 0x1a7   :  { %v1079_v5 = vmul.f32 1.442695, %v1035_v50  ;;  %5640 = vst [vmem:[#allocation119_spill] sm:$0xff] %v4159_v60  ;;  %v1038_v17 = vsub.f32 %v3838_v22, %v4159_v60 }
 0x1a9   :  { %v4151_v15 = vpop.xlane.xlu0 %908  ;;  %2654 = vpow2.f32 %v1079_v5 }
 0x1aa   :  { %5638 = vst [vmem:[#allocation117_spill] sm:$0xff] %v4151_v15  ;;  %v1033_v9 = vsub.f32 %v3822_v23, %v4151_v15  ;;  %2656 = vpow2.f32 %v1077_v1 }
 0x1ac   :  { %v1075_v29 = vmul.f32 1.442695, %v1033_v9  ;;  %v4155_v20 = vpop.xlane.xlu2 %917  ;;  %v1085_v9 = vmul.f32 1.442695, %v1038_v17 }
 0x1ad   :  { %5639 = vst [vmem:[#allocation118_spill] sm:$0xff] %v4155_v20  ;;  %v1036_v7 = vsub.f32 %v3831_v25, %v4155_v20 }
 0x1ae   :  { %2658 = vpow2.f32 %v1075_v29  ;;  %v4174_v17 = vpop.xlane.xlu1 %932 }
 0x1af   :  { %v2655_v50 = vpop.eup %2654  ;;  %v1081_v32 = vmul.f32 1.442695, %v1036_v7 }
 0x1b0   :  { %v2657_v5 = vpop.eup %2656  ;;  %v1165_v29 = vsel %vm906_vm13, %v2655_v50, 0.0 }
 0x1b1   :  { %v4163_v0 = vpop.xlane.xlu0 %920  ;;  %2660 = vpow2.f32 %v1081_v32  ;;  %1166 = vadd.xlane.f32.xlu1 %v1165_v29  ;;  %v1162_v20 = vsel %vm906_vm13, %v2657_v5, 0.0 }
 0x1b2   :  { %5641 = vst [vmem:[#allocation120_spill] sm:$0xff] %v4163_v0  ;;  %v1037_v63 = vsub.f32 %v3845_v24, %v4163_v0  ;;  %2662 = vpow2.f32 %v1085_v9  ;;  %1163 = vadd.xlane.f32.xlu0 %v1162_v20  ;;  %v4181_v20 = vand.u32 127, %v5557_v11 }
 0x1b4   :  { %v2659_v1 = vpop.eup %2658  ;;  %v1083_v15 = vmul.f32 1.442695, %v1037_v63  ;;  %v4170_v7 = vpop.xlane.xlu2 %926  ;;  %vm612_vm3 = vcmp.eq.s32.totalorder %v4181_v20, %v3367_v53  ;;  %vm613_vm7 = vcmp.eq.s32.totalorder %v4181_v20, %v3416_v56 }
 0x1b5   :  { %v1159_v60 = vsel %vm906_vm13, %v2659_v1, 0.0  ;;  %v1039_v0 = vsub.f32 %v3858_v41, %v4170_v7  ;;  %vm4192_vm8 = vmand %vm612_vm3, %vm822_vm10  ;;  %vm824_vm10 = vcmp.eq.s32.totalorder %v3789_v12, 1 }
 0x1b6   :  { %2664 = vpow2.f32 %v1083_v15  ;;  %1160 = vadd.xlane.f32.xlu2 %v1159_v60  ;;  %vm4196_vm14 = vmand %vm613_vm7, %vm823_vm6  ;;  %v4202_v53 = vpop.xlane.xlu1 %941  ;;  %vm825_vm7 = vcmp.eq.s32.totalorder %v3799_v30, 1  ;;  %vm615_vm6 = vcmp.eq.s32.totalorder %v4181_v20, %v3414_v54 }
 0x1b7   :  { %v2661_v32 = vpop.eup %2660  ;;  %v1087_v63 = vmul.f32 1.442695, %v1039_v0 }
 0x1b8   :  { %v2663_v9 = vpop.eup %2662  ;;  %v1168_v60 = vsel %vm906_vm13, %v2661_v32, 0.0 }
 0x1b9   :  { %v4176_v50 = vpop.xlane.xlu0 %929  ;;  %2666 = vpow2.f32 %v1087_v63  ;;  %v1174_v29 = vsel %vm906_vm13, %v2663_v9, 0.0  ;;  %v1412_v9 = vsel %vm4196_vm14, %v3813_v26, 0.0  ;;  %vm867_vm14 = vmand %vm615_vm6, %vm825_vm7  ;;  %vm826_vm7 = vcmp.eq.s32.totalorder %v3797_v47, 1 }
 0x1ba   :  { %v1040_v5 = vsub.f32 %v3870_v35, %v4176_v50  ;;  %1175 = vadd.xlane.f32.xlu1 %v1174_v29  ;;  %v1414_v54 = vsel %vm867_vm14, %v3831_v25, 0.0  ;;  %vm827_vm14 = vcmp.eq.s32.totalorder %v3795_v6, 1 }
 0x1bc   :  { %v2665_v15 = vpop.eup %2664  ;;  %v1089_v34 = vmul.f32 1.442695, %v1040_v5  ;;  %v4200_v1 = vpop.xlane.xlu2 %935  ;;  %v1411_v5 = vsel %vm4192_vm8, %v3822_v23, 0.0  ;;  %v1456_v23 = vsel %vm906_vm13, %v1412_v9, 0.0  ;;  %vm614_vm8 = vcmp.eq.s32.totalorder %v4181_v20, %v3365_v52 }
 0x1bd   :  { %v1171_v0 = vsel %vm906_vm13, %v2665_v15, 0.0  ;;  %v1042_v32 = vsub.f32 %v3885_v37, %v4200_v1  ;;  %v1453_v29 = vsel %vm906_vm13, %v1411_v5, 0.0  ;;  %vm866_vm3 = vmand %vm614_vm8, %vm824_vm10  ;;  %vm616_vm10 = vcmp.eq.s32.totalorder %v4181_v20, %v3295_v44 }
 0x1be   :  { %1169 = vadd.xlane.f32.xlu2 %v1168_v60  ;;  %1172 = vadd.xlane.f32.xlu0 %v1171_v0  ;;  %2668 = vpow2.f32 %v1089_v34  ;;  %v1041_v60 = vsub.f32 %v3865_v43, %v4174_v17  ;;  %v1413_v46 = vsel %vm866_vm3, %v3804_v42, 0.0  ;;  %vm4241_vm6 = vmand %vm616_vm10, %vm826_vm7  ;;  %vm828_vm8 = vcmp.eq.s32.totalorder %v3824_v28, 1 }
 0x1bf   :  { %v2667_v56 = vpop.eup %2666  ;;  %v1093_v0 = vmul.f32 1.442695, %v1042_v32  ;;  %v1459_v5 = vsel %vm906_vm13, %v1413_v46, 0.0  ;;  %vm618_vm3 = vcmp.eq.s32.totalorder %v4181_v20, %v3471_v8  ;;  %vm617_vm7 = vcmp.eq.s32.totalorder %v4181_v20, %v3338_v48 }
 0x1c0   :  { %v1177_v15 = vsel %vm906_vm13, %v2667_v56, 0.0  ;;  %v1091_v26 = vmul.f32 1.442695, %v1041_v60  ;;  %v1462_v56 = vsel %vm906_vm13, %v1414_v54, 0.0  ;;  %vm870_vm10 = vmand %vm618_vm3, %vm828_vm8  ;;  %vm829_vm8 = vcmp.eq.s32.totalorder %v3815_v31, 1 }
 0x1c1   :  { %v4206_v63 = vpop.xlane.xlu0 %938  ;;  %2670 = vpow2.f32 %v1093_v0  ;;  %v1415_v0 = vsel %vm4241_vm6, %v3845_v24, 0.0  ;;  %vm4267_vm6 = vmand %vm617_vm7, %vm827_vm14  ;;  %v1417_v8 = vsel %vm870_vm10, %v3858_v41, 0.0  ;;  %vm619_vm14 = vcmp.eq.s32.totalorder %v4181_v20, %v3469_v62 }
 0x1c2   :  { %1178 = vadd.xlane.f32.xlu1 %v1177_v15  ;;  %v4227_v34 = vpop.xlane.xlu1 %950  ;;  %2672 = vpow2.f32 %v1091_v26  ;;  %v1043_v52 = vsub.f32 %v3899_v45, %v4206_v63  ;;  %v1465_v54 = vsel %vm906_vm13, %v1415_v0, 0.0  ;;  %v1416_v48 = vsel %vm4267_vm6, %v3838_v22, 0.0  ;;  %vm4289_vm3 = vmand %vm619_vm14, %vm829_vm8 }
 0x1c3   :  { %v1468_v41 = vsel %vm906_vm13, %v1416_v48, 0.0  ;;  %v1418_v0 = vsel %vm4289_vm3, %v3870_v35, 0.0  ;;  %vm831_vm7 = vcmp.eq.s32.totalorder %v3853_v40, 1  ;;  %vm830_vm10 = vcmp.eq.s32.totalorder %v3806_v36, 1 }
 0x1c4   :  { %v4225_v30 = vpop.xlane.xlu2 %944  ;;  %v2669_v12 = vpop.eup %2668  ;;  %v1095_v25 = vmul.f32 1.442695, %v1043_v52  ;;  %vm621_vm6 = vcmp.eq.s32.totalorder %v4181_v20, %v3521_v51  ;;  %vm620_vm8 = vcmp.eq.s32.totalorder %v4181_v20, %v3378_v55 }
 0x1c5   :  { %v1180_v32 = vsel %vm906_vm13, %v2669_v12, 0.0  ;;  %v1044_v12 = vsub.f32 %v3892_v19, %v4202_v53  ;;  %vm873_vm14 = vmand %vm621_vm6, %vm831_vm7  ;;  %vm622_vm7 = vcmp.eq.s32.totalorder %v4181_v20, %v3519_v59  ;;  %vm834_vm6 = vcmp.eq.s32.totalorder %v3880_v16, 1 }
 0x1c6   :  { %1454 = vadd.xlane.f32.xlu2 %v1453_v29  ;;  %1457 = vadd.xlane.f32.xlu0 %v1456_v23  ;;  %v1045_v29 = vsub.f32 %v3910_v2, %v4225_v30  ;;  %2674 = vpow2.f32 %v1095_v25  ;;  %vm872_vm3 = vmand %vm620_vm8, %vm830_vm10  ;;  %v1420_v28 = vsel %vm873_vm14, %v3885_v37, 0.0  ;;  %vm833_vm8 = vcmp.eq.s32.totalorder %v3847_v27, 1 }
 0x1c7   :  { %v2671_v9 = vpop.eup %2670  ;;  %v1097_v24 = vmul.f32 1.442695, %v1044_v12  ;;  %vm874_vm10 = vmand %vm622_vm7, %vm832_vm9  ;;  %vm624_vm9 = vcmp.eq.s32.totalorder %v4181_v20, %v3567_v18  ;;  %vm623_vm14 = vcmp.eq.s32.totalorder %v4181_v20, %v3452_v13 }
 0x1c8   :  { %v2673_v15 = vpop.eup %2672  ;;  %v1186_v44 = vsel %vm906_vm13, %v2671_v9, 0.0  ;;  %v1099_v46 = vmul.f32 1.442695, %v1045_v29  ;;  %v1471_v9 = vsel %vm906_vm13, %v1417_v8, 0.0  ;;  %v1480_v8 = vsel %vm906_vm13, %v1420_v28, 0.0  ;;  %vm875_vm7 = vmand %vm623_vm14, %vm833_vm8 }
 0x1c9   :  { %v4230_v11 = vpop.xlane.xlu0 %947  ;;  %v1183_v26 = vsel %vm906_vm13, %v2673_v15, 0.0  ;;  %v1422_v13 = vsel %vm875_vm7, %v3892_v19, 0.0 }
 0x1ca   :  { %1463 = vadd.xlane.f32.xlu1 %v1462_v56  ;;  %v4247_v47 = vpop.xlane.xlu1 %959  ;;  %2676 = vpow2.f32 %v1099_v46  ;;  %v1046_v25 = vsub.f32 %v3926_v39, %v4230_v11  ;;  %v1474_v46 = vsel %vm906_vm13, %v1418_v0, 0.0 }
 0x1cb   :  { %2678 = vpow2.f32 %v1097_v24  ;;  %v1419_v24 = vsel %vm872_vm3, %v3865_v43, 0.0  ;;  %v1050_v22 = vsub.f32 %v3940_v58, %v4247_v47  ;;  %vm4347_vm3 = vmand %vm624_vm9, %vm834_vm6  ;;  %vm625_vm6 = vcmp.eq.s32.totalorder %v4181_v20, %v3565_v61 }
 0x1cc   :  { %v4245_v60 = vpop.xlane.xlu2 %953  ;;  %v2675_v6 = vpop.eup %2674  ;;  %v1101_v31 = vmul.f32 1.442695, %v1046_v25  ;;  %vm837_vm9 = vcmp.eq.s32.totalorder %v3912_v10, 1  ;;  %v5664_v10 = vld [vmem:[#allocation46_spill] sm:$0xff] }
 0x1cd   :  { %v1048_v62 = vsub.f32 %v3933_v4, %v4245_v60  ;;  %v1109_v0 = vmul.f32 1.442695, %v1050_v22  ;;  %vm626_vm7 = vcmp.eq.s32.totalorder %v4181_v20, %v5664_v10  ;;  %v5681_v22 = vld [vmem:[#allocation53_spill] sm:$0xff] }
 0x1ce   :  { %1460 = vadd.xlane.f32.xlu2 %v1459_v5  ;;  %1181 = vadd.xlane.f32.xlu0 %v1180_v32  ;;  %v1189_v5 = vsel %vm906_vm13, %v2675_v6, 0.0  ;;  %2680 = vpow2.f32 %v1101_v31 }
 0x1cf   :  { %v1105_v40 = vmul.f32 1.442695, %v1048_v62  ;;  %v1423_v62 = vsel %vm4347_vm3, %v3910_v2, 0.0  ;;  %v5673_v2 = vld [vmem:[#allocation48_spill] sm:$0xff] }
 0x1d0   :  { %v2677_v42 = vpop.eup %2676 }
 0x1d1   :  { %v4251_v23 = vpop.xlane.xlu0 %956  ;;  %v2679_v29 = vpop.eup %2678  ;;  %2682 = vpow2.f32 %v1105_v40  ;;  %v1486_v40 = vsel %vm906_vm13, %v1422_v13, 0.0  ;;  %v5671_v13 = vld [vmem:[#allocation77_spill] sm:$0xff] }
 0x1d2   :  { %1187 = vadd.xlane.f32.xlu1 %v1186_v44  ;;  %v4271_v52 = vpop.xlane.xlu1 %968  ;;  %v1195_v44 = vsel %vm906_vm13, %v2677_v42, 0.0  ;;  %v1192_v35 = vsel %vm906_vm13, %v2679_v29, 0.0  ;;  %v1049_v55 = vsub.f32 %v3951_v3, %v4251_v23 }
 0x1d4   :  { %v4274_v32 = vpop.xlane.xlu2 %962  ;;  %v2681_v6 = vpop.eup %2680  ;;  %v1107_v43 = vmul.f32 1.442695, %v1049_v55 }
 0x1d5   :  { %v1198_v37 = vsel %vm906_vm13, %v2681_v6, 0.0  ;;  %v1051_v42 = vsub.f32 %v3960_v21, %v4274_v32 }
 0x1d6   :  { %1184 = vadd.xlane.f32.xlu2 %v1183_v26  ;;  %1466 = vadd.xlane.f32.xlu0 %v1465_v54  ;;  %v1047_v54 = vsub.f32 %v3917_v57, %v4227_v34 }
 0x1d7   :  { %v2683_v38 = vpop.eup %2682  ;;  %v1111_v18 = vmul.f32 1.442695, %v1051_v42 }
 0x1d8   :  { %v1103_v36 = vmul.f32 1.442695, %v1047_v54  ;;  %v1204_v59 = vsel %vm906_vm13, %v2683_v38, 0.0 }
 0x1d9   :  { %v4276_v56 = vpop.xlane.xlu0 %965 }
 0x1da   :  { %1472 = vadd.xlane.f32.xlu1 %v1471_v9  ;;  %v4293_v15 = vpop.xlane.xlu1 %977  ;;  %2684 = vpow2.f32 %v1103_v36 }
 0x1db   :  { %2686 = vpow2.f32 %v1107_v43 }
 0x1dc   :  { %v4304_v12 = vpop.xlane.xlu2 %971  ;;  %2688 = vpow2.f32 %v1111_v18 }
 0x1dd   :  { %2690 = vpow2.f32 %v1109_v0  ;;  %v1054_v61 = vsub.f32 %v3987_v49, %v4304_v12 }
 0x1de   :  { %1469 = vadd.xlane.f32.xlu2 %v1468_v41  ;;  %1190 = vadd.xlane.f32.xlu0 %v1189_v5  ;;  %v1477_v5 = vsel %vm906_vm13, %v1419_v24, 0.0  ;;  %v1421_v41 = vsel %vm874_vm10, %v3899_v45, 0.0  ;;  %vm835_vm10 = vcmp.eq.s32.totalorder %v3878_v33, 1 }
 0x1df   :  { %v1483_v45 = vsel %vm906_vm13, %v1421_v41, 0.0  ;;  %vm4367_vm8 = vmand %vm625_vm6, %vm835_vm10 }
 0x1e0   :  { %v2685_v9 = vpop.eup %2684 }
 0x1e1   :  { %v4299_v26 = vpop.xlane.xlu0 %974  ;;  %v1201_v31 = vsel %vm906_vm13, %v2685_v9, 0.0  ;;  %v2687_v54 = vpop.eup %2686  ;;  %v5663_v9 = vld [vmem:[#allocation49_spill] sm:$0xff] }
 0x1e2   :  { %1196 = vadd.xlane.f32.xlu1 %v1195_v44  ;;  %v4317_v51 = vpop.xlane.xlu1 %986  ;;  %v1207_v36 = vsel %vm906_vm13, %v2687_v54, 0.0  ;;  %v2689_v6 = vpop.eup %2688  ;;  %vm627_vm3 = vcmp.eq.s32.totalorder %v4181_v20, %v5663_v9  ;;  %v5679_v9 = vld [vmem:[#allocation76_spill] sm:$0xff] }
 0x1e3   :  { %5652 = vst [vmem:[#allocation121_spill] sm:$0xff] %v4317_v51  ;;  %v2691_v55 = vpop.eup %2690  ;;  %v1213_v38 = vsel %vm906_vm13, %v2689_v6, 0.0  ;;  %vm4393_vm10 = vmand %vm627_vm3, %vm837_vm9  ;;  %vm628_vm9 = vcmp.eq.s32.totalorder %v4181_v20, %v5673_v2 }
 0x1e4   :  { %v4327_v25 = vpop.xlane.xlu2 %980  ;;  %v1210_v41 = vsel %vm906_vm13, %v2691_v55, 0.0 }
 0x1e6   :  { %1193 = vadd.xlane.f32.xlu2 %v1192_v35  ;;  %1475 = vadd.xlane.f32.xlu0 %v1474_v46  ;;  %v1052_v35 = vsub.f32 %v3974_v14, %v4276_v56  ;;  %v1489_v46 = vsel %vm906_vm13, %v1423_v62, 0.0 }
 0x1e8   :  { %v1113_v19 = vmul.f32 1.442695, %v1052_v35  ;;  %v5672_v35 = vld [vmem:[#allocation86_spill] sm:$0xff] }
 0x1e9   :  { %v4323_v48 = vpop.xlane.xlu0 %983 }
 0x1ea   :  { %1481 = vadd.xlane.f32.xlu1 %v1480_v8  ;;  %v4343_v16 = vpop.xlane.xlu1 %995  ;;  %v1424_v8 = vsel %vm4367_vm8, %v3926_v39, 0.0  ;;  %2692 = vpow2.f32 %v1113_v19  ;;  %vm838_vm8 = vcmp.eq.s32.totalorder %v5671_v13, 1 }
 0x1eb   :  { %5653 = vst [vmem:[#allocation122_spill] sm:$0xff] %v4343_v16  ;;  %v1492_v39 = vsel %vm906_vm13, %v1424_v8, 0.0 }
 0x1ec   :  { %v4353_v44 = vpop.xlane.xlu2 %989 }
 0x1ee   :  { %1478 = vadd.xlane.f32.xlu2 %v1477_v5  ;;  %1199 = vadd.xlane.f32.xlu0 %v1198_v37  ;;  %v5661_v5 = vld [vmem:[#allocation75_spill] sm:$0xff]  ;;  %v5662_v37 = vld [vmem:[#allocation81_spill] sm:$0xff] }
 0x1ef   :  { %vm836_vm14 = vcmp.eq.s32.totalorder %v5661_v5, 1  ;;  %v1053_v43 = vsub.f32 %v5662_v37, %v4271_v52  ;;  %v5677_v5 = vld [vmem:[#allocation90_spill] sm:$0xff] }
 0x1f0   :  { %vm4397_vm6 = vmand %vm626_vm7, %vm836_vm14  ;;  %v2693_v18 = vpop.eup %2692  ;;  %vm839_vm7 = vcmp.eq.s32.totalorder %v5679_v9, 1 }
 0x1f1   :  { %v4351_v29 = vpop.xlane.xlu0 %992  ;;  %v1425_v0 = vsel %vm4397_vm6, %v3917_v57, 0.0  ;;  %vm4421_vm14 = vmand %vm628_vm9, %vm838_vm8 }
 0x1f2   :  { %1205 = vadd.xlane.f32.xlu1 %v1204_v59  ;;  %5656 = vst [vmem:[#allocation123_spill] sm:$0xff] %v4351_v29  ;;  %v4371_v33 = vpop.xlane.xlu1 %1004  ;;  %v1117_v59 = vmul.f32 1.442695, %v1054_v61  ;;  %v1427_v8 = vsel %vm4421_vm14, %v3951_v3, 0.0  ;;  %v5676_v61 = vld [vmem:[#allocation80_spill] sm:$0xff] }
 0x1f3   :  { %vm840_vm3 = vcmp.eq.s32.totalorder %v5676_v61, 1 }
 0x1f4   :  { %v4375_v24 = vpop.xlane.xlu2 %998  ;;  %2694 = vpow2.f32 %v1117_v59  ;;  %v1501_v59 = vsel %vm906_vm13, %v1427_v8, 0.0 }
 0x1f5   :  { %5660 = vst [vmem:[#allocation125_spill] sm:$0xff] %v4375_v24 }
 0x1f6   :  { %1202 = vadd.xlane.f32.xlu2 %v1201_v31  ;;  %1484 = vadd.xlane.f32.xlu0 %v1483_v45  ;;  %v1115_v31 = vmul.f32 1.442695, %v1053_v43  ;;  %v1426_v45 = vsel %vm4393_vm10, %v3933_v4, 0.0  ;;  %v1057_v43 = vsub.f32 %v5677_v5, %v4327_v25  ;;  %vm630_vm10 = vcmp.eq.s32.totalorder %v4181_v20, %v5681_v22 }
 0x1f7   :  { %v1498_v4 = vsel %vm906_vm13, %v1426_v45, 0.0  ;;  %v5682_v45 = vld [vmem:[#allocation47_spill] sm:$0xff]  ;;  %vm882_vm8 = vmand %vm630_vm10, %vm840_vm3 }
 0x1f8   :  { %2696 = vpow2.f32 %v1115_v31  ;;  %vm629_vm6 = vcmp.eq.s32.totalorder %v4181_v20, %v5682_v45  ;;  %v1429_v13 = vsel %vm882_vm8, %v3960_v21, 0.0  ;;  %v5685_v21 = vld [vmem:[#allocation52_spill] sm:$0xff]  ;;  %v5691_v45 = vld [vmem:[#allocation78_spill] sm:$0xff] }
 0x1f9   :  { %v4373_v28 = vpop.xlane.xlu0 %1001  ;;  %vm881_vm9 = vmand %vm629_vm6, %vm839_vm7  ;;  %v1507_v57 = vsel %vm906_vm13, %v1429_v13, 0.0  ;;  %vm631_vm3 = vcmp.eq.s32.totalorder %v4181_v20, %v5685_v21  ;;  %vm842_vm6 = vcmp.eq.s32.totalorder %v5691_v45, 1 }
 0x1fa   :  { %1490 = vadd.xlane.f32.xlu1 %v1489_v46  ;;  %5659 = vst [vmem:[#allocation124_spill] sm:$0xff] %v4373_v28  ;;  %v4404_v27 = vpop.xlane.xlu1 %1013  ;;  %v1055_v46 = vsub.f32 %v5672_v35, %v4299_v26  ;;  %v2695_v6 = vpop.eup %2694 }
 0x1fb   :  { %5669 = vst [vmem:[#allocation75_spill] sm:$0xff] %v4404_v27  ;;  %v1222_v10 = vsel %vm906_vm13, %v2695_v6, 0.0 }
 0x1fc   :  { %v4411_v54 = vpop.xlane.xlu2 %1007  ;;  %v1119_v19 = vmul.f32 1.442695, %v1055_v46 }
 0x1fe   :  { %1487 = vadd.xlane.f32.xlu2 %v1486_v40  ;;  %1208 = vadd.xlane.f32.xlu0 %v1207_v36  ;;  %v1495_v40 = vsel %vm906_vm13, %v1425_v0, 0.0  ;;  %v1216_v36 = vsel %vm906_vm13, %v2693_v18, 0.0  ;;  %v2697_v55 = vpop.eup %2696  ;;  %2698 = vpow2.f32 %v1119_v19  ;;  %v1123_v18 = vmul.f32 1.442695, %v1057_v43 }
 0x1ff   :  { %v1219_v3 = vsel %vm906_vm13, %v2697_v55, 0.0 }
 0x200   :  { %2700 = vpow2.f32 %v1123_v18  ;;  %v5692_v18 = vld [vmem:[#allocation91_spill] sm:$0xff] }
 0x201   :  { %v4409_v62 = vpop.xlane.xlu0 %1010 }
 0x202   :  { %1214 = vadd.xlane.f32.xlu1 %v1213_v38  ;;  %5670 = vst [vmem:[#allocation81_spill] sm:$0xff] %v4409_v62  ;;  %v4431_v38 = vpop.xlane.xlu1 %1022 }
 0x203   :  { %5678 = vst [vmem:[#allocation49_spill] sm:$0xff] %v4431_v38 }
 0x204   :  { %v4443_v31 = vpop.xlane.xlu2 %1016  ;;  %v2699_v46 = vpop.eup %2698 }
 0x205   :  { %v1225_v6 = vsel %vm906_vm13, %v2699_v46, 0.0  ;;  %v5693_v46 = vld [vmem:[#allocation56_spill] sm:$0xff] }
 0x206   :  { %1211 = vadd.xlane.f32.xlu2 %v1210_v41  ;;  %1493 = vadd.xlane.f32.xlu0 %v1492_v39  ;;  %v5680_v41 = vld [vmem:[#allocation85_spill] sm:$0xff]  ;;  %v2701_v9 = vpop.eup %2700  ;;  %vm633_vm8 = vcmp.eq.s32.totalorder %v4181_v20, %v5693_v46 }
 0x207   :  { %v1056_v39 = vsub.f32 %v5680_v41, %v4293_v15  ;;  %v1231_v13 = vsel %vm906_vm13, %v2701_v9, 0.0 }
 0x209   :  { %v4437_v42 = vpop.xlane.xlu0 %1019  ;;  %v1121_v0 = vmul.f32 1.442695, %v1056_v39  ;;  %v5689_v39 = vld [vmem:[#allocation95_spill] sm:$0xff] }
 0x20a   :  { %1499 = vadd.xlane.f32.xlu1 %v1498_v4  ;;  %v1428_v4 = vsel %vm881_vm9, %v3940_v58, 0.0  ;;  %v4455_v55 = vpop.xlane.xlu1 %1031 }
 0x20b   :  { %2702 = vpow2.f32 %v1121_v0  ;;  %v1504_v19 = vsel %vm906_vm13, %v1428_v4, 0.0  ;;  %v1059_v0 = vsub.f32 %v5692_v18, %v4317_v51 }
 0x20c   :  { %v4465_v61 = vpop.xlane.xlu2 %1025 }
 0x20d   :  { %5688 = vst [vmem:[#allocation46_spill] sm:$0xff] %v4465_v61  ;;  %v1127_v21 = vmul.f32 1.442695, %v1059_v0  ;;  %v5701_v0 = vld [vmem:[#allocation55_spill] sm:$0xff] }
 0x20e   :  { %1496 = vadd.xlane.f32.xlu2 %v1495_v40  ;;  %1217 = vadd.xlane.f32.xlu0 %v1216_v36  ;;  %v5683_v40 = vld [vmem:[#allocation79_spill] sm:$0xff]  ;;  %v5684_v36 = vld [vmem:[#allocation92_spill] sm:$0xff] }
 0x20f   :  { %vm841_vm14 = vcmp.eq.s32.totalorder %v5683_v40, 1  ;;  %v1058_v2 = vsub.f32 %v5684_v36, %v4323_v48 }
 0x210   :  { %vm4461_vm7 = vmand %vm631_vm3, %vm841_vm14 }
 0x211   :  { %v4459_v58 = vpop.xlane.xlu0 %1028  ;;  %v1125_v43 = vmul.f32 1.442695, %v1058_v2  ;;  %v2703_v22 = vpop.eup %2702 }
 0x212   :  { %1223 = vadd.xlane.f32.xlu1 %v1222_v10  ;;  %v1060_v10 = vsub.f32 %v5689_v39, %v4353_v44  ;;  %v1228_v40 = vsel %vm906_vm13, %v2703_v22, 0.0  ;;  %v5699_v22 = vld [vmem:[#allocation83_spill] sm:$0xff] }
 0x213   :  { %2704 = vpow2.f32 %v1125_v43 }
 0x214   :  { %v1129_v4 = vmul.f32 1.442695, %v1060_v10 }
 0x216   :  { %1220 = vadd.xlane.f32.xlu2 %v1219_v3  ;;  %1502 = vadd.xlane.f32.xlu0 %v1501_v59  ;;  %v1430_v3 = vsel %vm4461_vm7, %v3974_v14, 0.0  ;;  %v5690_v59 = vld [vmem:[#allocation84_spill] sm:$0xff]  ;;  %v5694_v14 = vld [vmem:[#allocation50_spill] sm:$0xff]  ;;  %2706 = vpow2.f32 %v1129_v4  ;;  %vm844_vm7 = vcmp.eq.s32.totalorder %v5699_v22, 1 }
 0x217   :  { %vm843_vm10 = vcmp.eq.s32.totalorder %v5690_v59, 1  ;;  %v1510_v2 = vsel %vm906_vm13, %v1430_v3, 0.0  ;;  %vm632_vm9 = vcmp.eq.s32.totalorder %v4181_v20, %v5694_v14  ;;  %v5700_v3 = vld [vmem:[#allocation98_spill] sm:$0xff] }
 0x218   :  { %vm4483_vm14 = vmand %vm633_vm8, %vm843_vm10  ;;  %v1061_v59 = vsub.f32 %v5700_v3, %v4351_v29  ;;  %vm634_vm10 = vcmp.eq.s32.totalorder %v4181_v20, %v5701_v0  ;;  %v5711_v3 = vld [vmem:[#allocation99_spill] sm:$0xff] }
 0x219   :  { %vm4487_vm3 = vmand %vm632_vm9, %vm842_vm6  ;;  %v1432_v9 = vsel %vm4483_vm14, %v3987_v49, 0.0  ;;  %v2705_v39 = vpop.eup %2704 }
 0x21a   :  { %1508 = vadd.xlane.f32.xlu1 %v1507_v57  ;;  %v1431_v10 = vsel %vm4487_vm3, %v5662_v37, 0.0  ;;  %v1516_v45 = vsel %vm906_vm13, %v1432_v9, 0.0  ;;  %v1234_v49 = vsel %vm906_vm13, %v2705_v39, 0.0  ;;  %vm4506_vm8 = vmand %vm634_vm10, %vm844_vm7 }
 0x21b   :  { %v1513_v18 = vsel %vm906_vm13, %v1431_v10, 0.0  ;;  %v5708_v10 = vld [vmem:[#allocation59_spill] sm:$0xff] }
 0x21c   :  { %v2707_v37 = vpop.eup %2706  ;;  %vm636_vm3 = vcmp.eq.s32.totalorder %v4181_v20, %v5708_v10  ;;  %v5717_v10 = vld [vmem:[#allocation116_spill] sm:$0xff] }
 0x21e   :  { %1505 = vadd.xlane.f32.xlu2 %v1504_v19  ;;  %1226 = vadd.xlane.f32.xlu0 %v1225_v6  ;;  %v5706_v19 = vld [vmem:[#allocation54_spill] sm:$0xff] }
 0x21f   :  { %vm635_vm14 = vcmp.eq.s32.totalorder %v4181_v20, %v5706_v19 }
 0x222   :  { %1232 = vadd.xlane.f32.xlu1 %v1231_v13  ;;  %v5702_v13 = vld [vmem:[#allocation82_spill] sm:$0xff] }
 0x223   :  { %vm845_vm6 = vcmp.eq.s32.totalorder %v5702_v13, 1  ;;  %v1240_v13 = vsel %vm906_vm13, %v2707_v37, 0.0 }
 0x224   :  { %v1167_v6 = vpop.xlane.xlu1 %1166  ;;  %vm4519_vm7 = vmand %vm635_vm14, %vm845_vm6 }
 0x225   :  { %v1164_v8 = vpop.xlane.xlu0 %1163 }
 0x226   :  { %1229 = vadd.xlane.f32.xlu2 %v1228_v40  ;;  %1511 = vadd.xlane.f32.xlu0 %v1510_v2  ;;  %2708 = vlog2.f32 %v1164_v8  ;;  %v5705_v40 = vld [vmem:[#allocation89_spill] sm:$0xff]  ;;  %v1131_v2 = vmul.f32 1.442695, %v1061_v59  ;;  %v1063_v59 = vsub.f32 %v5711_v3, %v4375_v24 }
 0x227   :  { %vm846_vm9 = vcmp.eq.s32.totalorder %v5705_v40, 1  ;;  %v1790_v24 = vld [vmem:[#allocation3] sm:$0xff] }
 0x228   :  { %vm4528_vm10 = vmand %vm636_vm3, %vm846_vm9  ;;  %v1135_v46 = vmul.f32 1.442695, %v1063_v59  ;;  %v5718_v59 = vld [vmem:[#allocation88_spill] sm:$0xff] }
 0x229   :  { %v1161_v43 = vpop.xlane.xlu2 %1160 }
 0x22a   :  { %2710 = vlog2.f32 %v1161_v43  ;;  %1517 = vadd.xlane.f32.xlu1 %v1516_v45  ;;  %v1433_v45 = vsel %vm4506_vm8, %v5672_v35, 0.0  ;;  %v1435_v35 = vsel %vm4528_vm10, %v5677_v5, 0.0  ;;  %vm847_vm8 = vcmp.eq.s32.totalorder %v5718_v59, 1 }
 0x22b   :  { %2712 = vpow2.f32 %v1127_v21  ;;  %v5707_v21 = vld [vmem:[#allocation96_spill] sm:$0xff] }
 0x22c   :  { %v2709_v4 = vpop.eup %2708  ;;  %v1062_v8 = vsub.f32 %v5707_v21, %v4343_v16  ;;  %v1519_v21 = vsel %vm906_vm13, %v1433_v45, 0.0 }
 0x22d   :  { %v4511_v14 = vpop.xlane.xlu1 %1175  ;;  %v1288_v0 = vmul.f32 0.6931472, %v2709_v4  ;;  %v5714_v4 = vld [vmem:[#allocation103_spill] sm:$0xff] }
 0x22e   :  { %1514 = vadd.xlane.f32.xlu2 %v1513_v18  ;;  %1235 = vadd.xlane.f32.xlu0 %v1234_v49  ;;  %v1133_v40 = vmul.f32 1.442695, %v1062_v8  ;;  %v1064_v37 = vsub.f32 %v5714_v4, %v4373_v28  ;;  %v1580_v28 = vld [vmem:[#allocation2 + $0x8] sm:$0xff] }
 0x22f   :  { %v1370_v3 = vadd.f32 %v1288_v0, %v5717_v10 }
 0x230   :  { %v2711_v57 = vpop.eup %2710 }
 0x231   :  { %v1170_v43 = vpop.xlane.xlu2 %1169  ;;  %v1173_v9 = vpop.xlane.xlu0 %1172  ;;  %v1286_v49 = vmul.f32 0.6931472, %v2711_v57  ;;  %v5715_v57 = vld [vmem:[#allocation58_spill] sm:$0xff] }
 0x232   :  { %v2713_v39 = vpop.eup %2712  ;;  %2714 = vlog2.f32 %v1170_v43  ;;  %1241 = vadd.xlane.f32.xlu1 %v1240_v13  ;;  %vm637_vm6 = vcmp.eq.s32.totalorder %v4181_v20, %v5715_v57  ;;  %v5716_v43 = vld [vmem:[#allocation117_spill] sm:$0xff] }
 0x233   :  { %2716 = vlog2.f32 %v1167_v6  ;;  %v1237_v19 = vsel %vm906_vm13, %v2713_v39, 0.0  ;;  %v1434_v6 = vsel %vm4519_vm7, %v5680_v41, 0.0  ;;  %v1369_v39 = vadd.f32 %v1286_v49, %v5716_v43  ;;  %vm4559_vm3 = vmand %vm637_vm6, %vm847_vm8 }
 0x234   :  { %2718 = vpow2.f32 %v1131_v2  ;;  %v1525_v41 = vsel %vm906_vm13, %v1435_v35, 0.0  ;;  %v1522_v22 = vsel %vm906_vm13, %v1434_v6, 0.0  ;;  %v1137_v49 = vmul.f32 1.442695, %v1064_v37  ;;  %v5721_v35 = vld [vmem:[#allocation10_spill] sm:$0xff] }
 0x235   :  { %v1179_v8 = vpop.xlane.xlu1 %1178  ;;  %2720 = vpow2.f32 %v1133_v40  ;;  %v5719_v40 = vld [vmem:[#allocation7_spill] sm:$0xff]  ;;  %vm5722_vm14 = vcmp.ne.s32.totalorder %v5721_v35, 4294967295  ;;  %v1791_v37 = vld [vmem:[#allocation3 + $0x8] sm:$0xff] }
 0x236   :  { %1238 = vadd.xlane.f32.xlu2 %v1237_v19  ;;  %1520 = vadd.xlane.f32.xlu0 %v1519_v21  ;;  %2722 = vpow2.f32 %v1135_v46  ;;  %v1579_v19 = vld [vmem:[#allocation2] sm:$0xff]  ;;  %vm5720_vm9 = vcmp.ne.s32.totalorder %v5719_v40, 4294967295  ;;  %vm5728_vm8 = vmmov %vm5722_vm14 }
 0x237   :  { %2724 = vlog2.f32 %v1173_v9 }
 0x238   :  { %v2715_v2 = vpop.eup %2714  ;;  %2726 = vpow2.f32 %v1137_v49  ;;  %v5734_v49 = vld [vmem:[#allocation9_spill] sm:$0xff] }
 0x239   :  { %v2717_v5 = vpop.eup %2716  ;;  %v1455_v45 = vpop.xlane.xlu2 %1454  ;;  %v1292_v43 = vmul.f32 0.6931472, %v2715_v2  ;;  %2728 = vlog2.f32 %v1179_v8 }
 0x23a   :  { %v1458_v18 = vpop.xlane.xlu0 %1457  ;;  %v2719_v13 = vpop.eup %2718  ;;  %v1621_v21 = vsub.f32 %v1369_v39, %v1455_v45  ;;  %v1832_v4 = vsub.f32 1.0, %v1455_v45  ;;  %v1290_v10 = vmul.f32 0.6931472, %v2717_v5  ;;  %1526 = vadd.xlane.f32.xlu1 %v1525_v41  ;;  %v5725_v5 = vld [vmem:[#allocation57_spill] sm:$0xff]  ;;  %v5727_v45 = vld [vmem:[#allocation87_spill] sm:$0xff]  ;;  %2730 = vlog2.f32 %v4511_v14 }
 0x23b   :  { %v1622_v16 = vsub.f32 %v1370_v3, %v1458_v18  ;;  %v1833_v0 = vsub.f32 1.0, %v1458_v18  ;;  %v1243_v3 = vsel %vm906_vm13, %v2719_v13, 0.0  ;;  %vm638_vm7 = vcmp.eq.s32.totalorder %v4181_v20, %v5725_v5  ;;  %v2721_v59 = vpop.eup %2720  ;;  %v5729_v18 = vld [vmem:[#allocation118_spill] sm:$0xff] }
 0x23c   :  { %v1663_v29 = vsel %vm5720_vm9, %v1621_v21, 0.0  ;;  %v1874_v51 = vmul.f32 %v1832_v4, %v1832_v4  ;;  %vm848_vm6 = vcmp.eq.s32.totalorder %v5727_v45, 1  ;;  %v1372_v41 = vadd.f32 %v1292_v43, %v5729_v18  ;;  %v2723_v13 = vpop.eup %2722  ;;  %v5730_v21 = vld [vmem:[#allocation97_spill] sm:$0xff]  ;;  %v5731_v4 = vld [vmem:[#allocation115_spill] sm:$0xff]  ;;  %v1582_v43 = vld [vmem:[#allocation2 + $0x18] sm:$0xff] }
 0x23d   :  { %v1664_v6 = vsel %vm5722_vm14, %v1622_v16, 0.0  ;;  %v1705_v9 = vadd.f32 %v1663_v29, %v1579_v19  ;;  %v1875_v39 = vmul.f32 %v1833_v0, %v1833_v0  ;;  %v5726_v16 = vld [vmem:[#allocation62_spill] sm:$0xff]  ;;  %v1436_v19 = vsel %vm4559_vm3, %v5684_v36, 0.0  ;;  %v2725_v40 = vpop.eup %2724 }
 0x23e   :  { %v1706_v2 = vadd.f32 %v1664_v6, %v1580_v28  ;;  %vm639_vm10 = vcmp.eq.s32.totalorder %v4181_v20, %v5726_v16  ;;  %v1916_v57 = vsel %vm5720_vm9, %v1874_v51, 0.0  ;;  %1523 = vadd.xlane.f32.xlu2 %v1522_v22  ;;  %1244 = vadd.xlane.f32.xlu0 %v1243_v3  ;;  %vm849_vm14 = vcmp.eq.s32.totalorder %v5730_v21, 1  ;;  %v1464_v22 = vpop.xlane.xlu1 %1463  ;;  %v2822_v5 = vld [vmem:[%s5326_s0 + $0xd8] sm:$0xff] }
 0x23f   :  { %1748 = vst.msk [vmem:[#allocation2] sm:$0xff] %vm59_vm0, %v1705_v9  ;;  %v1958_v29 = vadd.f32 %v1916_v57, %v1790_v24  ;;  %v1917_v28 = vsel %vm5728_vm8, %v1875_v39, 0.0  ;;  %v1371_v0 = vadd.f32 %v1290_v10, %v5731_v4  ;;  %v5732_v24 = vld [vmem:[#allocation101_spill] sm:$0xff]  ;;  %v1624_v6 = vsub.f32 %v1372_v41, %v1464_v22  ;;  %v1793_v57 = vld [vmem:[#allocation3 + $0x18] sm:$0xff]  ;;  %v1792_v4 = vld [vmem:[#allocation3 + $0x10] sm:$0xff] }
 0x240   :  { %1749 = vst.msk [vmem:[#allocation2 + $0x8] sm:$0xff] %vm59_vm0, %v1706_v2  ;;  %v1959_v51 = vadd.f32 %v1917_v28, %v1791_v37  ;;  %v1065_v35 = vsub.f32 %v5732_v24, %v4371_v33  ;;  %v1835_v9 = vsub.f32 1.0, %v1464_v22  ;;  %v5733_v39 = vld [vmem:[#allocation105_spill] sm:$0xff]  ;;  %vm5735_vm3 = vcmp.ne.s32.totalorder %v5734_v49, 4294967295  ;;  %v5736_v24 = vld [vmem:[#allocation6_spill] sm:$0xff]  ;;  %vm4598_vm8 = vmand %vm639_vm10, %vm849_vm14 }
 0x241   :  { %2000 = vst.msk [vmem:[#allocation3] sm:$0xff] %vm59_vm0, %v1958_v29  ;;  %v1461_v46 = vpop.xlane.xlu2 %1460  ;;  %v1066_v3 = vsub.f32 %v5733_v39, %v4411_v54  ;;  %v1581_v37 = vld [vmem:[#allocation2 + $0x10] sm:$0xff]  ;;  %v1666_v29 = vsel %vm5735_vm3, %v1624_v6, 0.0  ;;  %v1249_v18 = vsel %vm906_vm13, %v2723_v13, 0.0  ;;  %v1294_v41 = vmul.f32 0.6931472, %v2725_v40 }
 0x242   :  { %v1182_v36 = vpop.xlane.xlu0 %1181  ;;  %2001 = vst.msk [vmem:[#allocation3 + $0x8] sm:$0xff] %vm59_vm0, %v1959_v51  ;;  %v1623_v10 = vsub.f32 %v1371_v0, %v1461_v46  ;;  %v1834_v2 = vsub.f32 1.0, %v1461_v46  ;;  %v1877_v28 = vmul.f32 %v1835_v9, %v1835_v9  ;;  %v1708_v22 = vadd.f32 %v1666_v29, %v1582_v43  ;;  %1250 = vadd.xlane.f32.xlu1 %v1249_v18  ;;  %v4634_v29 = vld [vmem:[%s5326_s0 + $0x110] sm:$0xff] }
 0x243   :  { %vm5737_vm9 = vcmp.ne.s32.totalorder %v5736_v24, 4294967295  ;;  %v1246_v0 = vsel %vm906_vm13, %v2721_v59, 0.0  ;;  %v1528_v40 = vsel %vm906_vm13, %v1436_v19, 0.0  ;;  %v1141_v21 = vmul.f32 1.442695, %v1066_v3  ;;  %v2727_v59 = vpop.eup %2726 }
 0x244   :  { %v1665_v8 = vsel %vm5737_vm9, %v1623_v10, 0.0  ;;  %v1876_v39 = vmul.f32 %v1834_v2, %v1834_v2  ;;  %v1919_v51 = vsel %vm5735_vm3, %v1877_v28, 0.0  ;;  %vm4611_vm9 = vmand %vm638_vm7, %vm848_vm6  ;;  %1751 = vst.msk [vmem:[#allocation2 + $0x18] sm:$0xff] %vm59_vm0, %v1708_v22  ;;  %vm5742_vm10 = vcmp.ne.s32.totalorder %v5736_v24, 4294967295  ;;  %v2729_v19 = vpop.eup %2728  ;;  %v1583_v22 = vld [vmem:[#allocation2 + $0x20] sm:$0xff] }
 0x245   :  { %v1707_v13 = vadd.f32 %v1665_v8, %v1581_v37  ;;  %v1961_v43 = vadd.f32 %v1919_v51, %v1793_v57  ;;  %v1438_v9 = vsel %vm4598_vm8, %v2822_v5, 0.0  ;;  %v1139_v46 = vmul.f32 1.442695, %v1065_v35  ;;  %v5743_v37 = vld [vmem:[#allocation120_spill] sm:$0xff]  ;;  %v2731_v2 = vpop.eup %2730  ;;  %v2823_v57 = vld [vmem:[%s5326_s0 + $0xd0] sm:$0xff] }
 0x246   :  { %v1918_v6 = vsel %vm5742_vm10, %v1876_v39, 0.0  ;;  %1247 = vadd.xlane.f32.xlu2 %v1246_v0  ;;  %1529 = vadd.xlane.f32.xlu0 %v1528_v40  ;;  %v1188_v3 = vpop.xlane.xlu1 %1187  ;;  %v1373_v10 = vadd.f32 %v1294_v41, %v5743_v37  ;;  %v1437_v49 = vsel %vm4611_vm9, %v2823_v57, 0.0  ;;  %v1067_v35 = vsub.f32 %v4634_v29, %v4409_v62  ;;  %v5744_v41 = vld [vmem:[#allocation94_spill] sm:$0xff]  ;;  %v5745_v8 = vld [vmem:[#allocation61_spill] sm:$0xff]  ;;  %v5751_v5 = vld [vmem:[#allocation60_spill] sm:$0xff] }
 0x247   :  { %1750 = vst.msk [vmem:[#allocation2 + $0x10] sm:$0xff] %vm59_vm0, %v1707_v13  ;;  %v1960_v45 = vadd.f32 %v1918_v6, %v1792_v4  ;;  %vm850_vm7 = vcmp.eq.s32.totalorder %v5744_v41, 1  ;;  %2732 = vpow2.f32 %v1141_v21  ;;  %vm640_vm6 = vcmp.eq.s32.totalorder %v4181_v20, %v5745_v8  ;;  %v1794_v13 = vld [vmem:[#allocation3 + $0x20] sm:$0xff] }
 0x248   :  { %2003 = vst.msk [vmem:[#allocation3 + $0x18] sm:$0xff] %vm59_vm0, %v1961_v43  ;;  %v1298_v39 = vmul.f32 0.6931472, %v2729_v19  ;;  %2734 = vlog2.f32 %v1182_v36  ;;  %v1534_v14 = vsel %vm906_vm13, %v1438_v9, 0.0  ;;  %v1296_v51 = vmul.f32 0.6931472, %v2731_v2  ;;  %vm4645_vm8 = vmand %vm640_vm6, %vm850_vm7 }
 0x249   :  { %2002 = vst.msk [vmem:[#allocation3 + $0x10] sm:$0xff] %vm59_vm0, %v1960_v45  ;;  %v1185_v28 = vpop.xlane.xlu2 %1184  ;;  %2736 = vpow2.f32 %v1139_v46  ;;  %v5746_v0 = vld [vmem:[#allocation5_spill] sm:$0xff]  ;;  %v1143_v21 = vmul.f32 1.442695, %v1067_v35  ;;  %v1531_v45 = vsel %vm906_vm13, %v1437_v49, 0.0  ;;  %v1252_v36 = vsel %vm906_vm13, %v2727_v59, 0.0 }
 0x24a   :  { %v1467_v18 = vpop.xlane.xlu0 %1466  ;;  %vm5747_vm14 = vcmp.ne.s32.totalorder %v5746_v0, 4294967295  ;;  %1535 = vadd.xlane.f32.xlu1 %v1534_v14  ;;  %vm641_vm9 = vcmp.eq.s32.totalorder %v4181_v20, %v5751_v5  ;;  %v5752_v9 = vld [vmem:[#allocation65_spill] sm:$0xff]  ;;  %v1375_v37 = vadd.f32 %v1298_v39, %v4170_v7  ;;  %v2825_v59 = vld [vmem:[%s5326_s0 + $0xe0] sm:$0xff]  ;;  %v5754_v49 = vld [vmem:[#allocation104_spill] sm:$0xff] }
 0x24b   :  { %v1625_v4 = vsub.f32 %v1373_v10, %v1467_v18  ;;  %v1836_v24 = vsub.f32 1.0, %v1467_v18  ;;  %vm5750_vm3 = vmmov %vm5747_vm14  ;;  %vm642_vm10 = vcmp.eq.s32.totalorder %v4181_v20, %v5752_v9  ;;  %v5753_v2 = vld [vmem:[#allocation93_spill] sm:$0xff]  ;;  %v1439_v57 = vsel %vm4645_vm8, %v2825_v59, 0.0  ;;  %v5755_v18 = vld [vmem:[#allocation119_spill] sm:$0xff] }
 0x24c   :  { %vm851_vm7 = vcmp.eq.s32.totalorder %v5753_v2, 1  ;;  %vm852_vm6 = vcmp.eq.s32.totalorder %v5754_v49, 1  ;;  %v1374_v41 = vadd.f32 %v1296_v51, %v5755_v18  ;;  %v4670_v7 = vld [vmem:[%s5326_s0 + $0x118] sm:$0xff]  ;;  %2738 = vpow2.f32 %v1143_v21  ;;  %v4678_v51 = vld [vmem:[%s5326_s0 + $0x120] sm:$0xff]  ;;  %v5758_v18 = vld [vmem:[#allocation8_spill] sm:$0xff] }
 0x24d   :  { %v1667_v40 = vsel %vm5747_vm14, %v1625_v4, 0.0  ;;  %v1878_v16 = vmul.f32 %v1836_v24, %v1836_v24  ;;  %v2733_v10 = vpop.eup %2732  ;;  %v1068_v4 = vsub.f32 %v4670_v7, %v4404_v27  ;;  %v1585_v24 = vld [vmem:[#allocation2 + $0x30] sm:$0xff]  ;;  %2740 = vlog2.f32 %v1188_v3  ;;  %v2828_v9 = vld [vmem:[%s5326_s0 + $0xe8] sm:$0xff] }
 0x24e   :  { %v1709_v6 = vadd.f32 %v1667_v40, %v1583_v22  ;;  %1532 = vadd.xlane.f32.xlu2 %v1531_v45  ;;  %1253 = vadd.xlane.f32.xlu0 %v1252_v36  ;;  %v1473_v35 = vpop.xlane.xlu1 %1472  ;;  %v2735_v22 = vpop.eup %2734  ;;  %v1069_v40 = vsub.f32 %v4678_v51, %v4443_v31  ;;  %2742 = vlog2.f32 %v1185_v28  ;;  %v5756_v45 = vld [vmem:[#allocation13_spill] sm:$0xff]  ;;  %vm5759_vm8 = vcmp.ne.s32.totalorder %v5758_v18, 4294967295 }
 0x24f   :  { %v1920_v19 = vsel %vm5750_vm3, %v1878_v16, 0.0  ;;  %v1627_v8 = vsub.f32 %v1375_v37, %v1473_v35  ;;  %v1838_v39 = vsub.f32 1.0, %v1473_v35  ;;  %v2737_v0 = vpop.eup %2736  ;;  %v1584_v16 = vld [vmem:[#allocation2 + $0x28] sm:$0xff]  ;;  %vm5757_vm14 = vcmp.ne.s32.totalorder %v5756_v45, 4294967295  ;;  %v1795_v35 = vld [vmem:[#allocation3 + $0x28] sm:$0xff]  ;;  %vm4692_vm3 = vmand %vm641_vm9, %vm851_vm7 }
 0x250   :  { %1752 = vst.msk [vmem:[#allocation2 + $0x20] sm:$0xff] %vm59_vm0, %v1709_v6  ;;  %v1962_v46 = vadd.f32 %v1920_v19, %v1794_v13  ;;  %v1796_v6 = vld [vmem:[#allocation3 + $0x30] sm:$0xff]  ;;  %v1300_v37 = vmul.f32 0.6931472, %v2735_v22  ;;  %v1537_v22 = vsel %vm906_vm13, %v1439_v57, 0.0  ;;  %vm5764_vm9 = vcmp.ne.s32.totalorder %v5758_v18, 4294967295 }
 0x251   :  { %v1470_v14 = vpop.xlane.xlu2 %1469  ;;  %v1669_v36 = vsel %vm5757_vm14, %v1627_v8, 0.0  ;;  %v1880_v19 = vmul.f32 %v1838_v39, %v1838_v39  ;;  %v1147_v2 = vmul.f32 1.442695, %v1069_v40  ;;  %v1440_v39 = vsel %vm4692_vm3, %v2828_v9, 0.0  ;;  %v5765_v45 = vld [vmem:[#allocation64_spill] sm:$0xff] }
 0x252   :  { %2004 = vst.msk [vmem:[#allocation3 + $0x20] sm:$0xff] %vm59_vm0, %v1962_v46  ;;  %v1191_v13 = vpop.xlane.xlu0 %1190  ;;  %v1626_v43 = vsub.f32 %v1374_v41, %v1470_v14  ;;  %v1837_v21 = vsub.f32 1.0, %v1470_v14  ;;  %v1258_v46 = vsel %vm906_vm13, %v2733_v10, 0.0  ;;  %v1711_v59 = vadd.f32 %v1669_v36, %v1585_v24  ;;  %v2739_v8 = vpop.eup %2738  ;;  %v5766_v36 = vld [vmem:[#allocation102_spill] sm:$0xff]  ;;  %v5772_v9 = vld [vmem:[#allocation68_spill] sm:$0xff] }
 0x253   :  { %v1922_v28 = vsel %vm5757_vm14, %v1880_v19, 0.0  ;;  %1259 = vadd.xlane.f32.xlu1 %v1258_v46  ;;  %v1255_v41 = vsel %vm906_vm13, %v2737_v0, 0.0  ;;  %v2741_v49 = vpop.eup %2740  ;;  %v1145_v14 = vmul.f32 1.442695, %v1068_v4  ;;  %vm853_vm7 = vcmp.eq.s32.totalorder %v5766_v36, 1  ;;  %v1586_v19 = vld [vmem:[#allocation2 + $0x38] sm:$0xff] }
 0x254   :  { %v1668_v27 = vsel %vm5759_vm8, %v1626_v43, 0.0  ;;  %v1879_v62 = vmul.f32 %v1837_v21, %v1837_v21  ;;  %vm4705_vm8 = vmand %vm642_vm10, %vm852_vm6  ;;  %1754 = vst.msk [vmem:[#allocation2 + $0x30] sm:$0xff] %vm59_vm0, %v1711_v59  ;;  %v1964_v24 = vadd.f32 %v1922_v28, %v1796_v6  ;;  %v2743_v40 = vpop.eup %2742  ;;  %v4728_v21 = vld [vmem:[%s5326_s0 + $0x128] sm:$0xff]  ;;  %vm643_vm10 = vcmp.eq.s32.totalorder %v4181_v20, %v5765_v45 }
 0x255   :  { %v1710_v10 = vadd.f32 %v1668_v27, %v1584_v16  ;;  %v2829_v16 = vld [vmem:[%s5326_s0 + $0xf0] sm:$0xff]  ;;  %v1070_v4 = vsub.f32 %v4728_v21, %v4437_v42  ;;  %2744 = vpow2.f32 %v1147_v2  ;;  %v1304_v59 = vmul.f32 0.6931472, %v2741_v49  ;;  %v5767_v28 = vld [vmem:[#allocation12_spill] sm:$0xff]  ;;  %vm4740_vm3 = vmand %vm643_vm10, %vm853_vm7 }
 0x256   :  { %v1921_v27 = vsel %vm5764_vm9, %v1879_v62, 0.0  ;;  %1256 = vadd.xlane.f32.xlu2 %v1255_v41  ;;  %1538 = vadd.xlane.f32.xlu0 %v1537_v22  ;;  %2006 = vst.msk [vmem:[#allocation3 + $0x30] sm:$0xff] %vm59_vm0, %v1964_v24  ;;  %v1197_v0 = vpop.xlane.xlu1 %1196  ;;  %v1376_v62 = vadd.f32 %v1300_v37, %v4176_v50  ;;  %v1441_v43 = vsel %vm4705_vm8, %v2829_v16, 0.0  ;;  %v2481_v37 = vld [vmem:[#allocation4] sm:$0xff]  ;;  %2746 = vlog2.f32 %v1191_v13  ;;  %v1797_v2 = vld [vmem:[#allocation3 + $0x38] sm:$0xff] }
 0x257   :  { %1753 = vst.msk [vmem:[#allocation2 + $0x28] sm:$0xff] %vm59_vm0, %v1710_v10  ;;  %v1963_v57 = vadd.f32 %v1921_v27, %v1795_v35  ;;  %v1540_v18 = vsel %vm906_vm13, %v1440_v39, 0.0  ;;  %2748 = vpow2.f32 %v1145_v14  ;;  %v1302_v3 = vmul.f32 0.6931472, %v2743_v40  ;;  %v5771_v49 = vld [vmem:[#allocation63_spill] sm:$0xff]  ;;  %v5773_v39 = vld [vmem:[#allocation100_spill] sm:$0xff] }
 0x258   :  { %vm5768_vm6 = vcmp.ne.s32.totalorder %v5767_v28, 4294967295  ;;  %v1543_v41 = vsel %vm906_vm13, %v1441_v43, 0.0  ;;  %v1149_v5 = vmul.f32 1.442695, %v1070_v4  ;;  %v1261_v13 = vsel %vm906_vm13, %v2739_v8, 0.0  ;;  %v2831_v40 = vld [vmem:[%s5326_s0 + $0xf8] sm:$0xff] }
 0x259   :  { %2005 = vst.msk [vmem:[#allocation3 + $0x28] sm:$0xff] %vm59_vm0, %v1963_v57  ;;  %v1194_v6 = vpop.xlane.xlu2 %1193  ;;  %v4746_v57 = vsel %vm59_vm0, %v2481_v37, 0.0  ;;  %vm644_vm14 = vcmp.eq.s32.totalorder %v4181_v20, %v5771_v49  ;;  %vm645_vm8 = vcmp.eq.s32.totalorder %v4181_v20, %v5772_v9  ;;  %vm854_vm9 = vcmp.eq.s32.totalorder %v5773_v39, 1  ;;  %vm5774_vm10 = vmmov %vm5768_vm6  ;;  %v5775_v43 = vld [vmem:[#allocation108_spill] sm:$0xff]  ;;  %v2834_v9 = vld [vmem:[%s5326_s0 + $0x100] sm:$0xff] }
 0x25a   :  { %v1476_v50 = vpop.xlane.xlu0 %1475  ;;  %v1378_v8 = vadd.f32 %v1304_v59, %v4200_v1  ;;  %v1442_v16 = vsel %vm4740_vm3, %v2831_v40, 0.0  ;;  %vm855_vm7 = vcmp.eq.s32.totalorder %v5775_v43, 1  ;;  %v1377_v45 = vadd.f32 %v1302_v3, %v4174_v17  ;;  %v4774_v17 = vld [vmem:[%s5326_s0 + $0x138] sm:$0xff] }
 0x25b   :  { %v1628_v46 = vsub.f32 %v1376_v62, %v1476_v50  ;;  %v1839_v35 = vsub.f32 1.0, %v1476_v50  ;;  %1544 = vadd.xlane.f32.xlu1 %v1543_v41  ;;  %v2745_v62 = vpop.eup %2744  ;;  %2750 = vpow2.f32 %v1149_v5  ;;  %v1072_v3 = vsub.f32 %v4774_v17, %v4465_v61  ;;  %v2482_v5 = vld [vmem:[#allocation4 + $0x8] sm:$0xff] }
 0x25c   :  { %v2747_v36 = vpop.eup %2746  ;;  %2752 = vlog2.f32 %v1197_v0 }
 0x25d   :  { %v1670_v10 = vsel %vm5768_vm6, %v1628_v46, 0.0  ;;  %v1881_v27 = vmul.f32 %v1839_v35, %v1839_v35  ;;  %v1588_v46 = vld [vmem:[#allocation2 + $0x48] sm:$0xff]  ;;  %v2749_v28 = vpop.eup %2748  ;;  %2754 = vlog2.f32 %v1194_v6  ;;  %v1153_v39 = vmul.f32 1.442695, %v1072_v3 }
 0x25e   :  { %v1712_v24 = vadd.f32 %v1670_v10, %v1586_v19  ;;  %1541 = vadd.xlane.f32.xlu2 %v1540_v18  ;;  %1262 = vadd.xlane.f32.xlu0 %v1261_v13  ;;  %v1482_v50 = vpop.xlane.xlu1 %1481  ;;  %v4767_v19 = vld [vmem:[%s5326_s0 + $0x130] sm:$0xff]  ;;  %v1587_v10 = vld [vmem:[#allocation2 + $0x40] sm:$0xff] }
 0x25f   :  { %v1923_v14 = vsel %vm5774_vm10, %v1881_v27, 0.0  ;;  %v1071_v1 = vsub.f32 %v4767_v19, %v4431_v38  ;;  %v1630_v37 = vsub.f32 %v1378_v8, %v1482_v50  ;;  %v1841_v59 = vsub.f32 1.0, %v1482_v50  ;;  %v1798_v50 = vld [vmem:[#allocation3 + $0x40] sm:$0xff]  ;;  %v5778_v38 = vld [vmem:[#allocation11_spill] sm:$0xff]  ;;  %vm4789_vm10 = vmand %vm644_vm14, %vm854_vm9 }
 0x260   :  { %1755 = vst.msk [vmem:[#allocation2 + $0x38] sm:$0xff] %vm59_vm0, %v1712_v24  ;;  %v1965_v4 = vadd.f32 %v1923_v14, %v1797_v2  ;;  %v1799_v2 = vld [vmem:[#allocation3 + $0x48] sm:$0xff]  ;;  %v5776_v24 = vld [vmem:[#allocation16_spill] sm:$0xff]  ;;  %v1267_v14 = vsel %vm906_vm13, %v2745_v62, 0.0  ;;  %v1306_v8 = vmul.f32 0.6931472, %v2747_v36  ;;  %vm4803_vm14 = vmand %vm645_vm8, %vm855_vm7  ;;  %2756 = vpow2.f32 %v1153_v39 }
 0x261   :  { %v1479_v35 = vpop.xlane.xlu2 %1478  ;;  %vm5777_vm6 = vcmp.ne.s32.totalorder %v5776_v24, 4294967295  ;;  %v1883_v13 = vmul.f32 %v1841_v59, %v1841_v59  ;;  %vm5779_vm3 = vcmp.ne.s32.totalorder %v5778_v38, 4294967295  ;;  %v1546_v36 = vsel %vm906_vm13, %v1442_v16, 0.0  ;;  %v2751_v16 = vpop.eup %2750  ;;  %v1800_v39 = vld [vmem:[#allocation3 + $0x50] sm:$0xff] }
 0x262   :  { %v1200_v18 = vpop.xlane.xlu0 %1199  ;;  %2007 = vst.msk [vmem:[#allocation3 + $0x38] sm:$0xff] %vm59_vm0, %v1965_v4  ;;  %v1629_v41 = vsub.f32 %v1377_v45, %v1479_v35  ;;  %v1840_v22 = vsub.f32 1.0, %v1479_v35  ;;  %v1672_v27 = vsel %vm5777_vm6, %v1630_v37, 0.0  ;;  %v1264_v45 = vsel %vm906_vm13, %v2749_v28, 0.0  ;;  %vm5784_vm9 = vmmov %vm5779_vm3  ;;  %v2753_v28 = vpop.eup %2752 }
 0x263   :  { %v1714_v40 = vadd.f32 %v1672_v27, %v1588_v46  ;;  %v1925_v4 = vsel %vm5777_vm6, %v1883_v13, 0.0  ;;  %1268 = vadd.xlane.f32.xlu1 %v1267_v14  ;;  %v2483_v46 = vld [vmem:[#allocation4 + $0x10] sm:$0xff]  ;;  %v2524_v37 = vsel %vm59_vm0, %v2482_v5, 0.0  ;;  %v1443_v3 = vsel %vm4789_vm10, %v2834_v9, 0.0  ;;  %v5786_v14 = vld [vmem:[#allocation107_spill] sm:$0xff]  ;;  %v5791_v9 = vld [vmem:[#allocation66_spill] sm:$0xff] }
 0x264   :  { %v1671_v0 = vsel %vm5779_vm3, %v1629_v41, 0.0  ;;  %v1882_v61 = vmul.f32 %v1840_v22, %v1840_v22  ;;  %v1967_v59 = vadd.f32 %v1925_v4, %v1799_v2  ;;  %v1379_v38 = vadd.f32 %v1306_v8, %v4206_v63  ;;  %v2835_v2 = vld [vmem:[%s5326_s0 + $0x108] sm:$0xff]  ;;  %v1589_v8 = vld [vmem:[#allocation2 + $0x50] sm:$0xff] }
 0x265   :  { %v1713_v62 = vadd.f32 %v1671_v0, %v1587_v10  ;;  %1757 = vst.msk [vmem:[#allocation2 + $0x48] sm:$0xff] %vm59_vm0, %v1714_v40  ;;  %v1151_v10 = vmul.f32 1.442695, %v1071_v1  ;;  %v2526_v22 = vsel %vm59_vm0, %v2483_v46, 0.0  ;;  %v2525_v5 = vadd.f32 %v2524_v37, %v4746_v57  ;;  %v4828_v1 = vld [vmem:[%s5326_s0 + $0x140] sm:$0xff] }
 0x266   :  { %v1924_v35 = vsel %vm5784_vm9, %v1882_v61, 0.0  ;;  %1265 = vadd.xlane.f32.xlu2 %v1264_v45  ;;  %1547 = vadd.xlane.f32.xlu0 %v1546_v36  ;;  %2009 = vst.msk [vmem:[#allocation3 + $0x48] sm:$0xff] %vm59_vm0, %v1967_v59  ;;  %v1206_v41 = vpop.xlane.xlu1 %1205  ;;  %v2755_v61 = vpop.eup %2754  ;;  %v1444_v24 = vsel %vm4803_vm14, %v2835_v2, 0.0  ;;  %v1073_v63 = vsub.f32 %v4828_v1, %v4459_v58  ;;  %v5785_v57 = vld [vmem:[#allocation67_spill] sm:$0xff]  ;;  %vm856_vm7 = vcmp.eq.s32.totalorder %v5786_v14, 1 }
 0x267   :  { %1756 = vst.msk [vmem:[#allocation2 + $0x40] sm:$0xff] %vm59_vm0, %v1713_v62  ;;  %v1966_v43 = vadd.f32 %v1924_v35, %v1798_v50  ;;  %vm646_vm8 = vcmp.eq.s32.totalorder %v4181_v20, %v5785_v57  ;;  %v2484_v50 = vld [vmem:[#allocation4 + $0x18] sm:$0xff]  ;;  %v1310_v0 = vmul.f32 0.6931472, %v2753_v28  ;;  %2758 = vlog2.f32 %v1200_v18  ;;  %v5787_v45 = vld [vmem:[#allocation15_spill] sm:$0xff] }
 0x268   :  { %v1549_v4 = vsel %vm906_vm13, %v1443_v3, 0.0  ;;  %2760 = vpow2.f32 %v1151_v10  ;;  %v1308_v62 = vmul.f32 0.6931472, %v2755_v61  ;;  %vm5788_vm3 = vcmp.ne.s32.totalorder %v5787_v45, 4294967295  ;;  %vm4840_vm10 = vmand %vm646_vm8, %vm856_vm7  ;;  %v5792_v3 = vld [vmem:[#allocation71_spill] sm:$0xff]  ;;  %v2757_v61 = vpop.eup %2756 }
 0x269   :  { %2008 = vst.msk [vmem:[#allocation3 + $0x40] sm:$0xff] %vm59_vm0, %v1966_v43  ;;  %v1203_v27 = vpop.xlane.xlu2 %1202  ;;  %v1552_v46 = vsel %vm906_vm13, %v1444_v24, 0.0  ;;  %v1155_v49 = vmul.f32 1.442695, %v1073_v63  ;;  %v1270_v18 = vsel %vm906_vm13, %v2751_v16, 0.0  ;;  %v2528_v43 = vsel %vm59_vm0, %v2484_v50, 0.0  ;;  %vm5793_vm9 = vmmov %vm5788_vm3 }
 0x26a   :  { %v1485_v13 = vpop.xlane.xlu0 %1484  ;;  %v2527_v28 = vadd.f32 %v2526_v22, %v2525_v5  ;;  %vm647_vm6 = vcmp.eq.s32.totalorder %v4181_v20, %v5791_v9  ;;  %vm648_vm14 = vcmp.eq.s32.totalorder %v4181_v20, %v5792_v3  ;;  %v5794_v16 = vld [vmem:[#allocation106_spill] sm:$0xff]  ;;  %v1445_v22 = vsel %vm4840_vm10, %v4634_v29, 0.0  ;;  %v1591_v57 = vld [vmem:[#allocation2 + $0x60] sm:$0xff]  ;;  %v5805_v3 = vld [vmem:[#allocation109_spill] sm:$0xff] }
 0x26b   :  { %v1631_v40 = vsub.f32 %v1379_v38, %v1485_v13  ;;  %v1842_v6 = vsub.f32 1.0, %v1485_v13  ;;  %1553 = vadd.xlane.f32.xlu1 %v1552_v46  ;;  %v1381_v38 = vadd.f32 %v1310_v0, %v4225_v30  ;;  %vm857_vm8 = vcmp.eq.s32.totalorder %v5794_v16, 1  ;;  %v5795_v13 = vld [vmem:[#allocation111_spill] sm:$0xff]  ;;  %v4863_v0 = vld [vmem:[%s5326_s0 + $0x148] sm:$0xff] }
 0x26c   :  { %v1380_v24 = vadd.f32 %v1308_v62, %v4202_v53  ;;  %vm858_vm7 = vcmp.eq.s32.totalorder %v5795_v13, 1  ;;  %2762 = vpow2.f32 %v1155_v49  ;;  %v1074_v29 = vsub.f32 %v4863_v0, %v4455_v55  ;;  %v1590_v53 = vld [vmem:[#allocation2 + $0x58] sm:$0xff]  ;;  %v1802_v62 = vld [vmem:[#allocation3 + $0x60] sm:$0xff]  ;;  %v5796_v45 = vld [vmem:[#allocation19_spill] sm:$0xff] }
 0x26d   :  { %v1673_v36 = vsel %vm5788_vm3, %v1631_v40, 0.0  ;;  %v1884_v35 = vmul.f32 %v1842_v6, %v1842_v6  ;;  %v2759_v63 = vpop.eup %2758  ;;  %2764 = vlog2.f32 %v1206_v41  ;;  %vm5797_vm3 = vcmp.ne.s32.totalorder %v5796_v45, 4294967295  ;;  %v2485_v49 = vld [vmem:[#allocation4 + $0x20] sm:$0xff]  ;;  %vm4876_vm10 = vmand %vm647_vm6, %vm857_vm8  ;;  %v2487_v41 = vld [vmem:[#allocation4 + $0x30] sm:$0xff] }
 0x26e   :  { %v1715_v59 = vadd.f32 %v1673_v36, %v1589_v8  ;;  %1550 = vadd.xlane.f32.xlu2 %v1549_v4  ;;  %1271 = vadd.xlane.f32.xlu0 %v1270_v18  ;;  %v1491_v2 = vpop.xlane.xlu1 %1490  ;;  %v2761_v50 = vpop.eup %2760  ;;  %2766 = vlog2.f32 %v1203_v27  ;;  %v1276_v37 = vsel %vm906_vm13, %v2757_v61, 0.0  ;;  %v1801_v27 = vld [vmem:[#allocation3 + $0x58] sm:$0xff]  ;;  %v1555_v9 = vsel %vm906_vm13, %v1445_v22, 0.0  ;;  %vm4891_vm6 = vmand %vm648_vm14, %vm858_vm7 }
 0x26f   :  { %v1926_v10 = vsel %vm5793_vm9, %v1884_v35, 0.0  ;;  %v1633_v14 = vsub.f32 %v1381_v38, %v1491_v2  ;;  %v1844_v8 = vsub.f32 1.0, %v1491_v2  ;;  %v5800_v35 = vld [vmem:[#allocation14_spill] sm:$0xff]  ;;  %v1273_v16 = vsel %vm906_vm13, %v2761_v50, 0.0 }
 0x270   :  { %1758 = vst.msk [vmem:[#allocation2 + $0x50] sm:$0xff] %vm59_vm0, %v1715_v59  ;;  %v1968_v5 = vadd.f32 %v1926_v10, %v1800_v39  ;;  %v1312_v39 = vmul.f32 0.6931472, %v2759_v63  ;;  %vm5801_vm9 = vcmp.ne.s32.totalorder %v5800_v35, 4294967295  ;;  %v2529_v2 = vadd.f32 %v2528_v43, %v2527_v28  ;;  %v5811_v35 = vld [vmem:[#allocation18_spill] sm:$0xff] }
 0x271   :  { %v1488_v40 = vpop.xlane.xlu2 %1487  ;;  %v1675_v36 = vsel %vm5797_vm3, %v1633_v14, 0.0  ;;  %v1886_v46 = vmul.f32 %v1844_v8, %v1844_v8  ;;  %vm5804_vm8 = vmmov %vm5801_vm9  ;;  %v2530_v43 = vsel %vm59_vm0, %v2485_v49, 0.0  ;;  %v1446_v28 = vsel %vm4876_vm10, %v4670_v7, 0.0 }
 0x272   :  { %v1209_v30 = vpop.xlane.xlu0 %1208  ;;  %2010 = vst.msk [vmem:[#allocation3 + $0x50] sm:$0xff] %vm59_vm0, %v1968_v5  ;;  %v1632_v6 = vsub.f32 %v1380_v24, %v1488_v40  ;;  %v1843_v4 = vsub.f32 1.0, %v1488_v40  ;;  %v1717_v59 = vadd.f32 %v1675_v36, %v1591_v57  ;;  %v2486_v5 = vld [vmem:[#allocation4 + $0x28] sm:$0xff]  ;;  %v2763_v22 = vpop.eup %2762  ;;  %vm860_vm14 = vcmp.eq.s32.totalorder %v5805_v3, 1  ;;  %v5807_v36 = vld [vmem:[#allocation70_spill] sm:$0xff] }
 0x273   :  { %v1928_v38 = vsel %vm5797_vm3, %v1886_v46, 0.0  ;;  %1277 = vadd.xlane.f32.xlu1 %v1276_v37  ;;  %v2765_v14 = vpop.eup %2764  ;;  %v1157_v8 = vmul.f32 1.442695, %v1074_v29  ;;  %v1382_v50 = vadd.f32 %v1312_v39, %v4230_v11  ;;  %v1447_v7 = vsel %vm4891_vm6, %v4678_v51, 0.0  ;;  %v1592_v46 = vld [vmem:[#allocation2 + $0x68] sm:$0xff]  ;;  %v5810_v51 = vld [vmem:[#allocation110_spill] sm:$0xff] }
 0x274   :  { %v1674_v18 = vsel %vm5801_vm9, %v1632_v6, 0.0  ;;  %v1885_v10 = vmul.f32 %v1843_v4, %v1843_v4  ;;  %1760 = vst.msk [vmem:[#allocation2 + $0x60] sm:$0xff] %vm59_vm0, %v1717_v59  ;;  %v1970_v63 = vadd.f32 %v1928_v38, %v1802_v62  ;;  %v2532_v6 = vsel %vm59_vm0, %v2486_v5, 0.0  ;;  %v5806_v4 = vld [vmem:[#allocation69_spill] sm:$0xff]  ;;  %v5815_v24 = vld [vmem:[#allocation72_spill] sm:$0xff] }
 0x275   :  { %v1716_v61 = vadd.f32 %v1674_v18, %v1590_v53  ;;  %v2767_v53 = vpop.eup %2766  ;;  %vm650_vm7 = vcmp.eq.s32.totalorder %v4181_v20, %v5806_v4  ;;  %v2531_v29 = vadd.f32 %v2530_v43, %v2529_v2  ;;  %vm649_vm10 = vcmp.eq.s32.totalorder %v4181_v20, %v5807_v36 }
 0x276   :  { %v1927_v57 = vsel %vm5804_vm8, %v1885_v10, 0.0  ;;  %1274 = vadd.xlane.f32.xlu2 %v1273_v16  ;;  %1556 = vadd.xlane.f32.xlu0 %v1555_v9  ;;  %2012 = vst.msk [vmem:[#allocation3 + $0x60] sm:$0xff] %vm59_vm0, %v1970_v63  ;;  %v1215_v40 = vpop.xlane.xlu1 %1214  ;;  %vm4917_vm9 = vmand %vm650_vm7, %vm860_vm14  ;;  %v1558_v49 = vsel %vm906_vm13, %v1446_v28, 0.0  ;;  %vm859_vm3 = vcmp.eq.s32.totalorder %v5810_v51, 1  ;;  %v1316_v39 = vmul.f32 0.6931472, %v2765_v14 }
 0x277   :  { %1759 = vst.msk [vmem:[#allocation2 + $0x58] sm:$0xff] %vm59_vm0, %v1716_v61  ;;  %v1969_v13 = vadd.f32 %v1927_v57, %v1801_v27  ;;  %2768 = vlog2.f32 %v1209_v30  ;;  %v1314_v27 = vmul.f32 0.6931472, %v2767_v53  ;;  %vm5812_vm6 = vcmp.ne.s32.totalorder %v5811_v35, 4294967295  ;;  %v1803_v61 = vld [vmem:[#allocation3 + $0x68] sm:$0xff]  ;;  %vm4936_vm8 = vmand %vm649_vm10, %vm859_vm3 }
 0x278   :  { %2770 = vpow2.f32 %v1157_v8  ;;  %v1561_v10 = vsel %vm906_vm13, %v1447_v7, 0.0  ;;  %v1449_v38 = vsel %vm4917_vm9, %v4767_v19, 0.0  ;;  %v1279_v5 = vsel %vm906_vm13, %v2763_v22, 0.0  ;;  %vm5816_vm7 = vmmov %vm5812_vm6  ;;  %v5817_v22 = vld [vmem:[#allocation73_spill] sm:$0xff]  ;;  %v5818_v8 = vld [vmem:[#allocation112_spill] sm:$0xff] }
 0x279   :  { %2011 = vst.msk [vmem:[#allocation3 + $0x58] sm:$0xff] %vm59_vm0, %v1969_v13  ;;  %v1212_v62 = vpop.xlane.xlu2 %1211  ;;  %v2534_v30 = vsel %vm59_vm0, %v2487_v41, 0.0  ;;  %v2533_v19 = vadd.f32 %v2532_v6, %v2531_v29  ;;  %vm653_vm14 = vcmp.eq.s32.totalorder %v4181_v20, %v5815_v24  ;;  %v1384_v57 = vadd.f32 %v1316_v39, %v4245_v60  ;;  %v1594_v53 = vld [vmem:[#allocation2 + $0x78] sm:$0xff]  ;;  %v5819_v29 = vld [vmem:[#allocation113_spill] sm:$0xff] }
 0x27a   :  { %v1494_v45 = vpop.xlane.xlu0 %1493  ;;  %vm652_vm9 = vcmp.eq.s32.totalorder %v4181_v20, %v5817_v22  ;;  %v1383_v3 = vadd.f32 %v1314_v27, %v4227_v34  ;;  %v1567_v13 = vsel %vm906_vm13, %v1449_v38, 0.0  ;;  %vm863_vm10 = vcmp.eq.s32.totalorder %v5818_v8, 1  ;;  %v1593_v34 = vld [vmem:[#allocation2 + $0x70] sm:$0xff] }
 0x27b   :  { %v1634_v37 = vsub.f32 %v1382_v50, %v1494_v45  ;;  %v1845_v59 = vsub.f32 1.0, %v1494_v45  ;;  %1562 = vadd.xlane.f32.xlu1 %v1561_v10  ;;  %v1448_v50 = vsel %vm4936_vm8, %v4728_v21, 0.0  ;;  %vm862_vm3 = vcmp.eq.s32.totalorder %v5819_v29, 1  ;;  %v5823_v27 = vld [vmem:[#allocation17_spill] sm:$0xff]  ;;  %vm4966_vm15 = vmand %vm653_vm14, %vm863_vm10 }
 0x27c   :  { %2772 = vlog2.f32 %v1215_v40  ;;  %vm4981_vm14 = vmand %vm652_vm9, %vm862_vm3  ;;  %v1452_v8 = vsel %vm4966_vm15, %v4863_v0, 0.0 }
 0x27d   :  { %v1676_v18 = vsel %vm5812_vm6, %v1634_v37, 0.0  ;;  %v1887_v9 = vmul.f32 %v1845_v59, %v1845_v59  ;;  %v2769_v14 = vpop.eup %2768  ;;  %2774 = vlog2.f32 %v1212_v62  ;;  %v1805_v37 = vld [vmem:[#allocation3 + $0x78] sm:$0xff]  ;;  %v1804_v59 = vld [vmem:[#allocation3 + $0x70] sm:$0xff] }
 0x27e   :  { %v1718_v16 = vadd.f32 %v1676_v18, %v1592_v46  ;;  %1559 = vadd.xlane.f32.xlu2 %v1558_v49  ;;  %1280 = vadd.xlane.f32.xlu0 %v1279_v5  ;;  %v1500_v28 = vpop.xlane.xlu1 %1499  ;;  %v2771_v45 = vpop.eup %2770  ;;  %v5820_v46 = vld [vmem:[#allocation114_spill] sm:$0xff]  ;;  %v1318_v51 = vmul.f32 0.6931472, %v2769_v14 }
 0x27f   :  { %v1929_v63 = vsel %vm5816_vm7, %v1887_v9, 0.0  ;;  %v1636_v6 = vsub.f32 %v1384_v57, %v1500_v28  ;;  %v1847_v4 = vsub.f32 1.0, %v1500_v28  ;;  %vm861_vm6 = vcmp.eq.s32.totalorder %v5820_v46, 1  ;;  %v5821_v49 = vld [vmem:[#allocation22_spill] sm:$0xff]  ;;  %v1806_v46 = vld [vmem:[#allocation3 + $0x80] sm:$0xff] }
 0x280   :  { %1761 = vst.msk [vmem:[#allocation2 + $0x68] sm:$0xff] %vm59_vm0, %v1718_v16  ;;  %v1971_v43 = vadd.f32 %v1929_v63, %v1803_v61  ;;  %vm5822_vm8 = vcmp.ne.s32.totalorder %v5821_v49, 4294967295  ;;  %vm5824_vm7 = vcmp.ne.s32.totalorder %v5823_v27, 4294967295  ;;  %v1282_v38 = vsel %vm906_vm13, %v2771_v45, 0.0  ;;  %v2488_v16 = vld [vmem:[#allocation4 + $0x38] sm:$0xff] }
 0x281   :  { %v1497_v60 = vpop.xlane.xlu2 %1496  ;;  %v1678_v21 = vsel %vm5822_vm8, %v1636_v6, 0.0  ;;  %v1889_v41 = vmul.f32 %v1847_v4, %v1847_v4  ;;  %vm5827_vm1 = vmmov %vm5822_vm8  ;;  %v1564_v61 = vsel %vm906_vm13, %v1448_v50, 0.0  ;;  %v5828_v9 = vld [vmem:[#allocation74_spill] sm:$0xff]  ;;  %v2536_v14 = vsel %vm59_vm0, %v2488_v16, 0.0  ;;  %v2489_v4 = vld [vmem:[#allocation4 + $0x40] sm:$0xff] }
 0x282   :  { %v1218_v7 = vpop.xlane.xlu0 %1217  ;;  %2013 = vst.msk [vmem:[#allocation3 + $0x68] sm:$0xff] %vm59_vm0, %v1971_v43  ;;  %v1635_v36 = vsub.f32 %v1383_v3, %v1497_v60  ;;  %v1846_v11 = vsub.f32 1.0, %v1497_v60  ;;  %v1720_v39 = vadd.f32 %v1678_v21, %v1594_v53  ;;  %vm651_vm8 = vcmp.eq.s32.totalorder %v4181_v20, %v5828_v9  ;;  %v2773_v22 = vpop.eup %2772  ;;  %v2348_v63 = vld [vmem:[#allocation3 + $0x8] sm:$0xff] }
 0x283   :  { %v1931_v62 = vsel %vm5827_vm1, %v1889_v41, 0.0  ;;  %1568 = vadd.xlane.f32.xlu1 %v1567_v13  ;;  %vm5831_vm1 = vmmov %vm5824_vm7  ;;  %v2535_v43 = vadd.f32 %v2534_v30, %v2533_v19  ;;  %v1385_v3 = vadd.f32 %v1318_v51, %v4251_v23  ;;  %v2775_v13 = vpop.eup %2774  ;;  %v1451_v30 = vsel %vm4981_vm14, %v4828_v1, 0.0  ;;  %v1595_v23 = vld [vmem:[#allocation2 + $0x80] sm:$0xff]  ;;  %v2490_v41 = vld [vmem:[#allocation4 + $0x48] sm:$0xff] }
 0x284   :  { %v1677_v35 = vsel %vm5824_vm7, %v1635_v36, 0.0  ;;  %v1888_v40 = vmul.f32 %v1846_v11, %v1846_v11  ;;  %1763 = vst.msk [vmem:[#allocation2 + $0x78] sm:$0xff] %vm59_vm0, %v1720_v39  ;;  %v1973_v2 = vadd.f32 %v1931_v62, %v1805_v37  ;;  %vm4990_vm10 = vmand %vm651_vm8, %vm861_vm6  ;;  %v1322_v60 = vmul.f32 0.6931472, %v2773_v22 }
 0x285   :  { %v1719_v10 = vadd.f32 %v1677_v35, %v1593_v34  ;;  %v1450_v19 = vsel %vm4990_vm10, %v4774_v17, 0.0  ;;  %2776 = vlog2.f32 %v1218_v7  ;;  %v2537_v29 = vadd.f32 %v2536_v14, %v2535_v43  ;;  %v5834_v34 = vld [vmem:[#allocation21_spill] sm:$0xff]  ;;  %v2213_v7 = vld [vmem:[#allocation2] sm:$0xff] }
 0x286   :  { %v1930_v24 = vsel %vm5831_vm1, %v1888_v40, 0.0  ;;  %1283 = vadd.xlane.f32.xlu2 %v1282_v38  ;;  %1565 = vadd.xlane.f32.xlu0 %v1564_v61  ;;  %2015 = vst.msk [vmem:[#allocation3 + $0x78] sm:$0xff] %vm59_vm0, %v1973_v2  ;;  %v1224_v28 = vpop.xlane.xlu1 %1223  ;;  %v1320_v0 = vmul.f32 0.6931472, %v2775_v13  ;;  %vm5835_vm15 = vcmp.ne.s32.totalorder %v5834_v34, 4294967295  ;;  %v1576_v11 = vsel %vm906_vm13, %v1452_v8, 0.0 }
 0x287   :  { %1762 = vst.msk [vmem:[#allocation2 + $0x70] sm:$0xff] %vm59_vm0, %v1719_v10  ;;  %v1972_v57 = vadd.f32 %v1930_v24, %v1804_v59  ;;  %v1570_v49 = vsel %vm906_vm13, %v1450_v19, 0.0  ;;  %v1573_v17 = vsel %vm906_vm13, %v1451_v30, 0.0  ;;  %v2538_v21 = vsel %vm59_vm0, %v2489_v4, 0.0  ;;  %vm5836_vm9 = vmmov %vm5835_vm15  ;;  %v2214_v59 = vld [vmem:[#allocation2 + $0x8] sm:$0xff]  ;;  %v1597_v38 = vld [vmem:[#allocation2 + $0x90] sm:$0xff] }
 0x288   :  { %v1387_v39 = vadd.f32 %v1322_v60, %v4274_v32  ;;  %v1386_v40 = vadd.f32 %v1320_v0, %v4247_v47  ;;  %v2540_v62 = vsel %vm59_vm0, %v2490_v41, 0.0  ;;  %v2539_v10 = vadd.f32 %v2538_v21, %v2537_v29  ;;  %v2347_v24 = vld [vmem:[#allocation3] sm:$0xff]  ;;  %v1596_v32 = vld [vmem:[#allocation2 + $0x88] sm:$0xff]  ;;  %v2349_v30 = vld [vmem:[#allocation3 + $0x10] sm:$0xff] }
 0x289   :  { %2014 = vst.msk [vmem:[#allocation3 + $0x70] sm:$0xff] %vm59_vm0, %v1972_v57  ;;  %v1221_v50 = vpop.xlane.xlu2 %1220  ;;  %v2255_v2 = vsel %vm59_vm0, %v2213_v7, 0.0  ;;  %2778 = vlog2.f32 %v1224_v28  ;;  %v2256_v47 = vsel %vm59_vm0, %v2214_v59, 0.0  ;;  %v2215_v43 = vld [vmem:[#allocation2 + $0x10] sm:$0xff]  ;;  %v5838_v28 = vld [vmem:[#allocation20_spill] sm:$0xff]  ;;  %v2390_v29 = vsel %vm59_vm0, %v2348_v63, 0.0 }
 0x28a   :  { %v1503_v53 = vpop.xlane.xlu0 %1502  ;;  %2780 = vlog2.f32 %v1221_v50  ;;  %vm5839_vm13 = vcmp.ne.s32.totalorder %v5838_v28, 4294967295  ;;  %v2541_v34 = vadd.f32 %v2540_v62, %v2539_v10 }
 0x28b   :  { %v1637_v6 = vsub.f32 %v1385_v3, %v1503_v53  ;;  %v1848_v45 = vsub.f32 1.0, %v1503_v53  ;;  %1577 = vadd.xlane.f32.xlu1 %v1576_v11  ;;  %v2777_v18 = vpop.eup %2776  ;;  %v1808_v3 = vld [vmem:[#allocation3 + $0x90] sm:$0xff]  ;;  %v2491_v53 = vld [vmem:[#allocation4 + $0x50] sm:$0xff]  ;;  %vm5840_vm3 = vmmov %vm5839_vm13 }
 0x28c   :  { %v1324_v19 = vmul.f32 0.6931472, %v2777_v18  ;;  %v2217_v18 = vld [vmem:[#allocation2 + $0x20] sm:$0xff] }
 0x28d   :  { %v1679_v36 = vsel %vm5835_vm15, %v1637_v6, 0.0  ;;  %v1890_v1 = vmul.f32 %v1848_v45, %v1848_v45  ;;  %v1807_v6 = vld [vmem:[#allocation3 + $0x88] sm:$0xff]  ;;  %v2389_v45 = vsel %vm59_vm0, %v2347_v24, 0.0 }
 0x28e   :  { %v1721_v37 = vadd.f32 %v1679_v36, %v1595_v23  ;;  %1571 = vadd.xlane.f32.xlu2 %v1570_v49  ;;  %1574 = vadd.xlane.f32.xlu0 %v1573_v17  ;;  %v1509_v35 = vpop.xlane.xlu1 %1508  ;;  %v2258_v36 = vsel %vm59_vm0, %v2215_v43, 0.0  ;;  %v2257_v49 = vadd.f32 %v2256_v47, %v2255_v2  ;;  %v2392_v17 = vsel %vm59_vm0, %v2349_v30, 0.0  ;;  %v1598_v2 = vld [vmem:[#allocation2 + $0x98] sm:$0xff]  ;;  %v2219_v30 = vld [vmem:[#allocation2 + $0x30] sm:$0xff] }
 0x28f   :  { %v1932_v51 = vsel %vm5836_vm9, %v1890_v1, 0.0  ;;  %v1639_v61 = vsub.f32 %v1387_v39, %v1509_v35  ;;  %v1850_v16 = vsub.f32 1.0, %v1509_v35  ;;  %v2542_v1 = vsel %vm59_vm0, %v2491_v53, 0.0  ;;  %v2779_v41 = vpop.eup %2778  ;;  %v2350_v35 = vld [vmem:[#allocation3 + $0x18] sm:$0xff]  ;;  %v2352_v43 = vld [vmem:[#allocation3 + $0x28] sm:$0xff] }
 0x290   :  { %1764 = vst.msk [vmem:[#allocation2 + $0x80] sm:$0xff] %vm59_vm0, %v1721_v37  ;;  %v1974_v27 = vadd.f32 %v1932_v51, %v1806_v46  ;;  %v2492_v37 = vld [vmem:[#allocation4 + $0x58] sm:$0xff]  ;;  %v2391_v7 = vadd.f32 %v2390_v29, %v2389_v45  ;;  %v1388_v59 = vadd.f32 %v1324_v19, %v4276_v56  ;;  %v2262_v47 = vsel %vm59_vm0, %v2217_v18, 0.0  ;;  %v1809_v19 = vld [vmem:[#allocation3 + $0x98] sm:$0xff] }
 0x291   :  { %v1506_v9 = vpop.xlane.xlu2 %1505  ;;  %v1681_v14 = vsel %vm376_vm5, %v1639_v61, 0.0  ;;  %v1892_v8 = vmul.f32 %v1850_v16, %v1850_v16  ;;  %v2216_v51 = vld [vmem:[#allocation2 + $0x18] sm:$0xff]  ;;  %v2543_v61 = vadd.f32 %v2542_v1, %v2541_v34  ;;  %v2398_v29 = vsel %vm59_vm0, %v2352_v43, 0.0 }
 0x292   :  { %v1227_v5 = vpop.xlane.xlu0 %1226  ;;  %2016 = vst.msk [vmem:[#allocation3 + $0x80] sm:$0xff] %vm59_vm0, %v1974_v27  ;;  %v1638_v57 = vsub.f32 %v1386_v40, %v1506_v9  ;;  %v1849_v22 = vsub.f32 1.0, %v1506_v9  ;;  %v1723_v23 = vadd.f32 %v1681_v14, %v1597_v38  ;;  %v2781_v27 = vpop.eup %2780  ;;  %v2259_v40 = vadd.f32 %v2258_v36, %v2257_v49  ;;  %v2351_v9 = vld [vmem:[#allocation3 + $0x20] sm:$0xff] }
 0x293   :  { %v1934_v50 = vsel %vm376_vm5, %v1892_v8, 0.0  ;;  %v2544_v38 = vsel %vm59_vm0, %v2492_v37, 0.0  ;;  %v2393_v16 = vadd.f32 %v2392_v17, %v2391_v7  ;;  %v2260_v63 = vsel %vm59_vm0, %v2216_v51, 0.0 }
 0x294   :  { %v1680_v4 = vsel %vm5839_vm13, %v1638_v57, 0.0  ;;  %v1891_v60 = vmul.f32 %v1849_v22, %v1849_v22  ;;  %1766 = vst.msk [vmem:[#allocation2 + $0x90] sm:$0xff] %vm59_vm0, %v1723_v23  ;;  %v1976_v11 = vadd.f32 %v1934_v50, %v1808_v3  ;;  %v1328_v57 = vmul.f32 0.6931472, %v2779_v41  ;;  %v1600_v41 = vld [vmem:[#allocation2 + $0xa8] sm:$0xff] }
 0x295   :  { %v1722_v0 = vadd.f32 %v1680_v4, %v1596_v32  ;;  %v2218_v32 = vld [vmem:[#allocation2 + $0x28] sm:$0xff]  ;;  %2782 = vlog2.f32 %v1227_v5  ;;  %v2394_v22 = vsel %vm59_vm0, %v2350_v35, 0.0  ;;  %v1326_v3 = vmul.f32 0.6931472, %v2781_v27  ;;  %v2353_v4 = vld [vmem:[#allocation3 + $0x30] sm:$0xff] }
 0x296   :  { %v1933_v46 = vsel %vm5840_vm3, %v1891_v60, 0.0  ;;  %2018 = vst.msk [vmem:[#allocation3 + $0x90] sm:$0xff] %vm59_vm0, %v1976_v11  ;;  %v1233_v39 = vpop.xlane.xlu1 %1232  ;;  %v2261_v8 = vadd.f32 %v2260_v63, %v2259_v40  ;;  %v2396_v53 = vsel %vm59_vm0, %v2351_v9, 0.0  ;;  %v5048_v28 = vadd.f32 %v2544_v38, %v2543_v61  ;;  %v2220_v11 = vld [vmem:[#allocation2 + $0x38] sm:$0xff]  ;;  %v2354_v40 = vld [vmem:[#allocation3 + $0x38] sm:$0xff]  ;;  %v2355_v63 = vld [vmem:[#allocation3 + $0x40] sm:$0xff] }
 0x297   :  { %1765 = vst.msk [vmem:[#allocation2 + $0x88] sm:$0xff] %vm59_vm0, %v1722_v0  ;;  %v1975_v21 = vadd.f32 %v1933_v46, %v1807_v6  ;;  %v2395_v5 = vadd.f32 %v2394_v22, %v2393_v16  ;;  %v2264_v60 = vsel %vm59_vm0, %v2218_v32, 0.0  ;;  %v1390_v0 = vadd.f32 %v1328_v57, %v4304_v12  ;;  %v1599_v12 = vld [vmem:[#allocation2 + $0xa0] sm:$0xff]  ;;  %v1811_v61 = vld [vmem:[#allocation3 + $0xa8] sm:$0xff] }
 0x298   :  { %v2263_v45 = vadd.f32 %v2262_v47, %v2261_v8  ;;  %v2266_v36 = vsel %vm59_vm0, %v2219_v30, 0.0  ;;  %v1389_v1 = vadd.f32 %v1326_v3, %v4271_v52  ;;  %v2400_v17 = vsel %vm59_vm0, %v2353_v4, 0.0  ;;  %v2221_v52 = vld [vmem:[#allocation2 + $0x40] sm:$0xff] }
 0x299   :  { %2017 = vst.msk [vmem:[#allocation3 + $0x88] sm:$0xff] %vm59_vm0, %v1975_v21  ;;  %v1230_v62 = vpop.xlane.xlu2 %1229  ;;  %v2397_v34 = vadd.f32 %v2396_v53, %v2395_v5  ;;  %2784 = vlog2.f32 %v1233_v39  ;;  %v2268_v38 = vsel %vm59_vm0, %v2220_v11, 0.0  ;;  %v2402_v3 = vsel %vm59_vm0, %v2354_v40, 0.0  ;;  %v2359_v39 = vld [vmem:[#allocation3 + $0x60] sm:$0xff] }
 0x29a   :  { %v1512_v10 = vpop.xlane.xlu0 %1511  ;;  %v2265_v21 = vadd.f32 %v2264_v60, %v2263_v45  ;;  %2786 = vlog2.f32 %v1230_v62  ;;  %v2270_v8 = vsel %vm59_vm0, %v2221_v52, 0.0  ;;  %v2404_v5 = vsel %vm59_vm0, %v2355_v63, 0.0 }
 0x29b   :  { %v1640_v24 = vsub.f32 %v1388_v59, %v1512_v10  ;;  %v1851_v56 = vsub.f32 1.0, %v1512_v10  ;;  %v2783_v49 = vpop.eup %2782  ;;  %v2399_v35 = vadd.f32 %v2398_v29, %v2397_v34  ;;  %v2222_v29 = vld [vmem:[#allocation2 + $0x48] sm:$0xff] }
 0x29c   :  { %v1330_v32 = vmul.f32 0.6931472, %v2783_v49  ;;  %v2267_v43 = vadd.f32 %v2266_v36, %v2265_v21  ;;  %v2356_v36 = vld [vmem:[#allocation3 + $0x48] sm:$0xff] }
 0x29d   :  { %v1682_v14 = vsel %vm377_vm12, %v1640_v24, 0.0  ;;  %v1893_v6 = vmul.f32 %v1851_v56, %v1851_v56  ;;  %v2493_v24 = vld [vmem:[#allocation4 + $0x60] sm:$0xff]  ;;  %v1810_v56 = vld [vmem:[#allocation3 + $0xa0] sm:$0xff] }
 0x29e   :  { %v1724_v23 = vadd.f32 %v1682_v14, %v1598_v2  ;;  %v1518_v37 = vpop.xlane.xlu1 %1517  ;;  %v2401_v14 = vadd.f32 %v2400_v17, %v2399_v35  ;;  %v2272_v35 = vsel %vm59_vm0, %v2222_v29, 0.0 }
 0x29f   :  { %v1935_v50 = vsel %vm377_vm12, %v1893_v6, 0.0  ;;  %v1642_v7 = vsub.f32 %v1390_v0, %v1518_v37  ;;  %v1853_v51 = vsub.f32 1.0, %v1518_v37  ;;  %v2269_v6 = vadd.f32 %v2268_v38, %v2267_v43  ;;  %v2785_v60 = vpop.eup %2784  ;;  %v2358_v38 = vld [vmem:[#allocation3 + $0x58] sm:$0xff] }
 0x2a0   :  { %1767 = vst.msk [vmem:[#allocation2 + $0x98] sm:$0xff] %vm59_vm0, %v1724_v23  ;;  %v1977_v46 = vadd.f32 %v1935_v50, %v1809_v19  ;;  %v2494_v19 = vld [vmem:[#allocation4 + $0x68] sm:$0xff]  ;;  %v2546_v23 = vsel %vm59_vm0, %v2493_v24, 0.0  ;;  %v2403_v45 = vadd.f32 %v2402_v3, %v2401_v14  ;;  %v1391_v0 = vadd.f32 %v1330_v32, %v4299_v26  ;;  %v2787_v34 = vpop.eup %2786  ;;  %v2224_v26 = vld [vmem:[#allocation2 + $0x58] sm:$0xff]  ;;  %v1812_v24 = vld [vmem:[#allocation3 + $0xb0] sm:$0xff] }
 0x2a1   :  { %v1515_v59 = vpop.xlane.xlu2 %1514  ;;  %v1684_v9 = vsel %vm379_vm2, %v1642_v7, 0.0  ;;  %v1895_v2 = vmul.f32 %v1853_v51, %v1853_v51  ;;  %v2271_v11 = vadd.f32 %v2270_v8, %v2269_v6  ;;  %v2548_v49 = vsel %vm59_vm0, %v2494_v19, 0.0  ;;  %v1601_v7 = vld [vmem:[#allocation2 + $0xb0] sm:$0xff]  ;;  %v2226_v8 = vld [vmem:[#allocation2 + $0x68] sm:$0xff] }
 0x2a2   :  { %v1236_v27 = vpop.xlane.xlu0 %1235  ;;  %2019 = vst.msk [vmem:[#allocation3 + $0x98] sm:$0xff] %vm59_vm0, %v1977_v46  ;;  %v1641_v18 = vsub.f32 %v1389_v1, %v1515_v59  ;;  %v1852_v10 = vsub.f32 1.0, %v1515_v59  ;;  %v1726_v57 = vadd.f32 %v1684_v9, %v1600_v41  ;;  %v2223_v46 = vld [vmem:[#allocation2 + $0x50] sm:$0xff]  ;;  %v2547_v17 = vadd.f32 %v2546_v23, %v5048_v28  ;;  %v2357_v41 = vld [vmem:[#allocation3 + $0x50] sm:$0xff] }
 0x2a3   :  { %v1937_v62 = vsel %vm379_vm2, %v1895_v2, 0.0  ;;  %v2405_v21 = vadd.f32 %v2404_v5, %v2403_v45  ;;  %v2495_v59 = vld [vmem:[#allocation4 + $0x70] sm:$0xff]  ;;  %v1334_v40 = vmul.f32 0.6931472, %v2785_v60  ;;  %2788 = vlog2.f32 %v1236_v27  ;;  %v2225_v2 = vld [vmem:[#allocation2 + $0x60] sm:$0xff] }
 0x2a4   :  { %v1683_v22 = vsel %vm378_vm11, %v1641_v18, 0.0  ;;  %v1894_v47 = vmul.f32 %v1852_v10, %v1852_v10  ;;  %1769 = vst.msk [vmem:[#allocation2 + $0xa8] sm:$0xff] %vm59_vm0, %v1726_v57  ;;  %v1979_v53 = vadd.f32 %v1937_v62, %v1811_v61  ;;  %v2406_v18 = vsel %vm59_vm0, %v2356_v36, 0.0  ;;  %v5844_v61 = vld [vmem:[#allocation27_spill] sm:$0xff]  ;;  %v2360_v36 = vld [vmem:[#allocation3 + $0x68] sm:$0xff] }
 0x2a5   :  { %v1725_v13 = vadd.f32 %v1683_v22, %v1599_v12  ;;  %v2274_v10 = vsel %vm59_vm0, %v2223_v46, 0.0  ;;  %v1332_v52 = vmul.f32 0.6931472, %v2787_v34  ;;  %vm5845_vm2 = vcmp.ne.s32.totalorder %v5844_v61, 4294967295 }
 0x2a6   :  { %v1936_v30 = vsel %vm378_vm11, %v1894_v47, 0.0  ;;  %2021 = vst.msk [vmem:[#allocation3 + $0xa8] sm:$0xff] %vm59_vm0, %v1979_v53  ;;  %v1242_v50 = vpop.xlane.xlu1 %1241  ;;  %v2273_v16 = vadd.f32 %v2272_v35, %v2271_v11  ;;  %v2408_v9 = vsel %vm59_vm0, %v2357_v41, 0.0  ;;  %v2550_v57 = vsel %vm59_vm0, %v2495_v59, 0.0  ;;  %vm5846_vm5 = vmmov %vm5845_vm2  ;;  %v1813_v35 = vld [vmem:[#allocation3 + $0xb8] sm:$0xff] }
 0x2a7   :  { %1768 = vst.msk [vmem:[#allocation2 + $0xa0] sm:$0xff] %vm59_vm0, %v1725_v13  ;;  %v1978_v4 = vadd.f32 %v1936_v30, %v1810_v56  ;;  %v2549_v27 = vadd.f32 %v2548_v49, %v2547_v17  ;;  %v2407_v56 = vadd.f32 %v2406_v18, %v2405_v21  ;;  %v2276_v22 = vsel %vm59_vm0, %v2224_v26, 0.0  ;;  %v1814_v49 = vld [vmem:[#allocation3 + $0xc0] sm:$0xff]  ;;  %v5847_v17 = vld [vmem:[#allocation31_spill] sm:$0xff]  ;;  %v5849_v26 = vld [vmem:[#allocation26_spill] sm:$0xff] }
 0x2a8   :  { %v2275_v47 = vadd.f32 %v2274_v10, %v2273_v16  ;;  %v2410_v43 = vsel %vm59_vm0, %v2358_v38, 0.0  ;;  %v1393_v62 = vadd.f32 %v1334_v40, %v4327_v25  ;;  %v2278_v14 = vsel %vm59_vm0, %v2225_v2, 0.0  ;;  %v1602_v25 = vld [vmem:[#allocation2 + $0xb8] sm:$0xff] }
 0x2a9   :  { %2020 = vst.msk [vmem:[#allocation3 + $0xa0] sm:$0xff] %vm59_vm0, %v1978_v4  ;;  %v1239_v37 = vpop.xlane.xlu2 %1238  ;;  %v2409_v13 = vadd.f32 %v2408_v9, %v2407_v56  ;;  %v1392_v19 = vadd.f32 %v1332_v52, %v4293_v15  ;;  %v2789_v23 = vpop.eup %2788  ;;  %v2412_v6 = vsel %vm59_vm0, %v2359_v39, 0.0  ;;  %v1603_v4 = vld [vmem:[#allocation2 + $0xc0] sm:$0xff]  ;;  %2790 = vlog2.f32 %v1242_v50  ;;  %v2227_v15 = vld [vmem:[#allocation2 + $0x70] sm:$0xff] }
 0x2aa   :  { %v1521_v1 = vpop.xlane.xlu0 %1520  ;;  %v2277_v5 = vadd.f32 %v2276_v22, %v2275_v47  ;;  %2792 = vlog2.f32 %v1239_v37  ;;  %vm5848_vm11 = vcmp.ne.s32.totalorder %v5847_v17, 4294967295  ;;  %vm5850_vm12 = vcmp.ne.s32.totalorder %v5849_v26, 4294967295  ;;  %v2497_v9 = vld [vmem:[#allocation4 + $0x80] sm:$0xff]  ;;  %v2228_v47 = vld [vmem:[#allocation2 + $0x78] sm:$0xff] }
 0x2ab   :  { %v1643_v51 = vsub.f32 %v1391_v0, %v1521_v1  ;;  %v1854_v12 = vsub.f32 1.0, %v1521_v1  ;;  %v2411_v34 = vadd.f32 %v2410_v43, %v2409_v13  ;;  %v2280_v1 = vsel %vm59_vm0, %v2226_v8, 0.0  ;;  %vm5851_vm6 = vmmov %vm5848_vm11 }
 0x2ac   :  { %v2279_v18 = vadd.f32 %v2278_v14, %v2277_v5  ;;  %v2414_v10 = vsel %vm59_vm0, %v2360_v36, 0.0  ;;  %v2282_v61 = vsel %vm59_vm0, %v2227_v15, 0.0  ;;  %vm5852_vm7 = vmmov %vm5850_vm12  ;;  %v2551_v2 = vadd.f32 %v2550_v57, %v2549_v27  ;;  %v2229_v14 = vld [vmem:[#allocation2 + $0x80] sm:$0xff]  ;;  %v2364_v36 = vld [vmem:[#allocation3 + $0x88] sm:$0xff] }
 0x2ad   :  { %v1685_v28 = vsel %vm5845_vm2, %v1643_v51, 0.0  ;;  %v1896_v32 = vmul.f32 %v1854_v12, %v1854_v12  ;;  %v1336_v51 = vmul.f32 0.6931472, %v2789_v23  ;;  %v2496_v12 = vld [vmem:[#allocation4 + $0x78] sm:$0xff]  ;;  %v2413_v52 = vadd.f32 %v2412_v6, %v2411_v34  ;;  %v1604_v23 = vld [vmem:[#allocation2 + $0xc8] sm:$0xff] }
 0x2ae   :  { %v1727_v63 = vadd.f32 %v1685_v28, %v1601_v7  ;;  %v1527_v30 = vpop.xlane.xlu1 %1526  ;;  %v2361_v7 = vld [vmem:[#allocation3 + $0x70] sm:$0xff]  ;;  %v2552_v39 = vsel %vm59_vm0, %v2496_v12, 0.0  ;;  %v2554_v8 = vsel %vm59_vm0, %v2497_v9, 0.0  ;;  %v2286_v34 = vsel %vm59_vm0, %v2229_v14, 0.0 }
 0x2af   :  { %v1938_v3 = vsel %vm5846_vm5, %v1896_v32, 0.0  ;;  %v1645_v60 = vsub.f32 %v1393_v62, %v1527_v30  ;;  %v1856_v45 = vsub.f32 1.0, %v1527_v30  ;;  %v2791_v56 = vpop.eup %2790  ;;  %v2415_v22 = vadd.f32 %v2414_v10, %v2413_v52  ;;  %v2232_v52 = vld [vmem:[#allocation2 + $0x98] sm:$0xff] }
 0x2b0   :  { %1770 = vst.msk [vmem:[#allocation2 + $0xb0] sm:$0xff] %vm59_vm0, %v1727_v63  ;;  %v1980_v53 = vadd.f32 %v1938_v3, %v1812_v24  ;;  %v2281_v24 = vadd.f32 %v2280_v1, %v2279_v18  ;;  %v2416_v63 = vsel %vm59_vm0, %v2361_v7, 0.0  ;;  %v1394_v3 = vadd.f32 %v1336_v51, %v4323_v48  ;;  %v2793_v62 = vpop.eup %2792  ;;  %v2230_v48 = vld [vmem:[#allocation2 + $0x88] sm:$0xff] }
 0x2b1   :  { %v1524_v29 = vpop.xlane.xlu2 %1523  ;;  %v1687_v21 = vsel %vm5848_vm11, %v1645_v60, 0.0  ;;  %v1898_v41 = vmul.f32 %v1856_v45, %v1856_v45  ;;  %v2417_v30 = vadd.f32 %v2416_v63, %v2415_v22  ;;  %v2553_v60 = vadd.f32 %v2552_v39, %v2551_v2  ;;  %v1606_v63 = vld [vmem:[#allocation2 + $0xd8] sm:$0xff] }
 0x2b2   :  { %v1245_v0 = vpop.xlane.xlu0 %1244  ;;  %2022 = vst.msk [vmem:[#allocation3 + $0xb0] sm:$0xff] %vm59_vm0, %v1980_v53  ;;  %v1644_v11 = vsub.f32 %v1392_v19, %v1524_v29  ;;  %v1855_v46 = vsub.f32 1.0, %v1524_v29  ;;  %v1729_v59 = vadd.f32 %v1687_v21, %v1603_v4  ;;  %v2283_v13 = vadd.f32 %v2282_v61, %v2281_v24  ;;  %v2362_v53 = vld [vmem:[#allocation3 + $0x78] sm:$0xff]  ;;  %v2363_v19 = vld [vmem:[#allocation3 + $0x80] sm:$0xff] }
 0x2b3   :  { %v1940_v37 = vsel %vm5851_vm6, %v1898_v41, 0.0  ;;  %v2498_v4 = vld [vmem:[#allocation4 + $0x88] sm:$0xff]  ;;  %v2284_v45 = vsel %vm59_vm0, %v2228_v47, 0.0  ;;  %v1340_v29 = vmul.f32 0.6931472, %v2791_v56  ;;  %2794 = vlog2.f32 %v1245_v0  ;;  %v2231_v41 = vld [vmem:[#allocation2 + $0x90] sm:$0xff] }
 0x2b4   :  { %v1686_v50 = vsel %vm5850_vm12, %v1644_v11, 0.0  ;;  %v1897_v40 = vmul.f32 %v1855_v46, %v1855_v46  ;;  %1772 = vst.msk [vmem:[#allocation2 + $0xc0] sm:$0xff] %vm59_vm0, %v1729_v59  ;;  %v1982_v28 = vadd.f32 %v1940_v37, %v1814_v49  ;;  %v1815_v11 = vld [vmem:[#allocation3 + $0xc8] sm:$0xff]  ;;  %v2418_v49 = vsel %vm59_vm0, %v2362_v53, 0.0  ;;  %v2365_v0 = vld [vmem:[#allocation3 + $0x90] sm:$0xff]  ;;  %v2366_v47 = vld [vmem:[#allocation3 + $0x98] sm:$0xff] }
 0x2b5   :  { %v1728_v38 = vadd.f32 %v1686_v50, %v1602_v25  ;;  %v1338_v25 = vmul.f32 0.6931472, %v2793_v62  ;;  %v5853_v46 = vld [vmem:[#allocation30_spill] sm:$0xff]  ;;  %v2285_v17 = vadd.f32 %v2284_v45, %v2283_v13  ;;  %v2420_v21 = vsel %vm59_vm0, %v2363_v19, 0.0 }
 0x2b6   :  { %v1939_v16 = vsel %vm5852_vm7, %v1897_v40, 0.0  ;;  %2024 = vst.msk [vmem:[#allocation3 + $0xc0] sm:$0xff] %vm59_vm0, %v1982_v28  ;;  %v1251_v43 = vpop.xlane.xlu1 %1250  ;;  %vm5854_vm8 = vcmp.ne.s32.totalorder %v5853_v46, 4294967295  ;;  %v2556_v51 = vsel %vm59_vm0, %v2498_v4, 0.0  ;;  %v2419_v59 = vadd.f32 %v2418_v49, %v2417_v30  ;;  %v5856_v28 = vld [vmem:[#allocation121_spill] sm:$0xff]  ;;  %v5857_v53 = vld [vmem:[#allocation34_spill] sm:$0xff] }
 0x2b7   :  { %1771 = vst.msk [vmem:[#allocation2 + $0xb8] sm:$0xff] %vm59_vm0, %v1728_v38  ;;  %v1981_v32 = vadd.f32 %v1939_v16, %v1813_v35  ;;  %v2288_v35 = vsel %vm59_vm0, %v2230_v48, 0.0  ;;  %vm5855_vm14 = vmmov %vm5854_vm8  ;;  %v2287_v50 = vadd.f32 %v2286_v34, %v2285_v17  ;;  %v2422_v40 = vsel %vm59_vm0, %v2364_v36, 0.0  ;;  %v1816_v4 = vld [vmem:[#allocation3 + $0xd0] sm:$0xff]  ;;  %v2499_v48 = vld [vmem:[#allocation4 + $0x90] sm:$0xff] }
 0x2b8   :  { %v1396_v18 = vadd.f32 %v1340_v29, %v4353_v44  ;;  %v2555_v10 = vadd.f32 %v2554_v8, %v2553_v60  ;;  %v2421_v37 = vadd.f32 %v2420_v21, %v2419_v59  ;;  %v2290_v38 = vsel %vm59_vm0, %v2231_v41, 0.0  ;;  %v1817_v8 = vld [vmem:[#allocation3 + $0xd8] sm:$0xff]  ;;  %v5859_v60 = vld [vmem:[#allocation29_spill] sm:$0xff] }
 0x2b9   :  { %2023 = vst.msk [vmem:[#allocation3 + $0xb8] sm:$0xff] %vm59_vm0, %v1981_v32  ;;  %v1248_v57 = vpop.xlane.xlu2 %1247  ;;  %v1395_v16 = vadd.f32 %v1338_v25, %v5856_v28  ;;  %v2795_v9 = vpop.eup %2794  ;;  %v2424_v2 = vsel %vm59_vm0, %v2365_v0, 0.0  ;;  %v2289_v24 = vadd.f32 %v2288_v35, %v2287_v50  ;;  %2796 = vlog2.f32 %v1251_v43  ;;  %v2234_v35 = vld [vmem:[#allocation2 + $0xa8] sm:$0xff]  ;;  %v5863_v50 = vld [vmem:[#allocation123_spill] sm:$0xff] }
 0x2ba   :  { %v1530_v27 = vpop.xlane.xlu0 %1529  ;;  %v2423_v44 = vadd.f32 %v2422_v40, %v2421_v37  ;;  %v2292_v14 = vsel %vm59_vm0, %v2232_v52, 0.0  ;;  %2798 = vlog2.f32 %v1248_v57  ;;  %vm5858_vm1 = vcmp.ne.s32.totalorder %v5857_v53, 4294967295  ;;  %v1607_v28 = vld [vmem:[#allocation2 + $0xe0] sm:$0xff] }
 0x2bb   :  { %v1646_v6 = vsub.f32 %v1394_v3, %v1530_v27  ;;  %v1857_v5 = vsub.f32 1.0, %v1530_v27  ;;  %v1605_v3 = vld [vmem:[#allocation2 + $0xd0] sm:$0xff]  ;;  %v2233_v27 = vld [vmem:[#allocation2 + $0xa0] sm:$0xff]  ;;  %vm5860_vm10 = vcmp.ne.s32.totalorder %v5859_v60, 4294967295  ;;  %v2291_v29 = vadd.f32 %v2290_v38, %v2289_v24  ;;  %vm5861_vm15 = vmmov %vm5858_vm1 }
 0x2bc   :  { %v2426_v34 = vsel %vm59_vm0, %v2366_v47, 0.0  ;;  %v2425_v25 = vadd.f32 %v2424_v2, %v2423_v44  ;;  %vm5862_vm9 = vmmov %vm5860_vm10  ;;  %v2558_v59 = vsel %vm59_vm0, %v2499_v48, 0.0  ;;  %v2368_v38 = vld [vmem:[#allocation3 + $0xa8] sm:$0xff]  ;;  %v1818_v47 = vld [vmem:[#allocation3 + $0xe0] sm:$0xff] }
 0x2bd   :  { %v1688_v1 = vsel %vm5854_vm8, %v1646_v6, 0.0  ;;  %v1899_v15 = vmul.f32 %v1857_v5, %v1857_v5  ;;  %v1342_v6 = vmul.f32 0.6931472, %v2795_v9  ;;  %v2293_v49 = vadd.f32 %v2292_v14, %v2291_v29  ;;  %v5867_v60 = vld [vmem:[#allocation125_spill] sm:$0xff] }
 0x2be   :  { %v1730_v7 = vadd.f32 %v1688_v1, %v1604_v23  ;;  %v1536_v61 = vpop.xlane.xlu1 %1535  ;;  %v2367_v23 = vld [vmem:[#allocation3 + $0xa0] sm:$0xff]  ;;  %v2427_v0 = vadd.f32 %v2426_v34, %v2425_v25  ;;  %v2430_v14 = vsel %vm59_vm0, %v2368_v38, 0.0  ;;  %v5868_v34 = vld [vmem:[#allocation122_spill] sm:$0xff] }
 0x2bf   :  { %v1941_v26 = vsel %vm5855_vm14, %v1899_v15, 0.0  ;;  %v1648_v32 = vsub.f32 %v1396_v18, %v1536_v61  ;;  %v1859_v56 = vsub.f32 1.0, %v1536_v61  ;;  %v2557_v15 = vadd.f32 %v2556_v51, %v2555_v10  ;;  %v2797_v41 = vpop.eup %2796  ;;  %v2235_v51 = vld [vmem:[#allocation2 + $0xb0] sm:$0xff]  ;;  %v2369_v61 = vld [vmem:[#allocation3 + $0xb0] sm:$0xff] }
 0x2c0   :  { %1773 = vst.msk [vmem:[#allocation2 + $0xc8] sm:$0xff] %vm59_vm0, %v1730_v7  ;;  %v1983_v12 = vadd.f32 %v1941_v26, %v1815_v11  ;;  %v2294_v11 = vsel %vm59_vm0, %v2233_v27, 0.0  ;;  %v2428_v17 = vsel %vm59_vm0, %v2367_v23, 0.0  ;;  %v2500_v7 = vld [vmem:[#allocation4 + $0x98] sm:$0xff]  ;;  %v1397_v40 = vadd.f32 %v1342_v6, %v5863_v50  ;;  %v2370_v23 = vld [vmem:[#allocation3 + $0xb8] sm:$0xff]  ;;  %v1820_v50 = vld [vmem:[#allocation3 + $0xf0] sm:$0xff] }
 0x2c1   :  { %v1533_v39 = vpop.xlane.xlu2 %1532  ;;  %v1690_v30 = vsel %vm5858_vm1, %v1648_v32, 0.0  ;;  %v1901_v19 = vmul.f32 %v1859_v56, %v1859_v56  ;;  %v2295_v18 = vadd.f32 %v2294_v11, %v2293_v49  ;;  %v2429_v52 = vadd.f32 %v2428_v17, %v2427_v0  ;;  %v2236_v32 = vld [vmem:[#allocation2 + $0xb8] sm:$0xff]  ;;  %v2502_v11 = vld [vmem:[#allocation4 + $0xa8] sm:$0xff] }
 0x2c2   :  { %2025 = vst.msk [vmem:[#allocation3 + $0xc8] sm:$0xff] %vm59_vm0, %v1983_v12  ;;  %v1254_v22 = vpop.xlane.xlu0 %1253  ;;  %v1647_v62 = vsub.f32 %v1395_v16, %v1533_v39  ;;  %v1858_v13 = vsub.f32 1.0, %v1533_v39  ;;  %v1732_v5 = vadd.f32 %v1690_v30, %v1606_v63  ;;  %v2799_v12 = vpop.eup %2798  ;;  %v2560_v2 = vsel %vm59_vm0, %v2500_v7, 0.0 }
 0x2c3   :  { %v1943_v57 = vsel %vm5861_vm15, %v1901_v19, 0.0  ;;  %2800 = vlog2.f32 %v1254_v22  ;;  %v2559_v24 = vadd.f32 %v2558_v59, %v2557_v15  ;;  %v2296_v63 = vsel %vm59_vm0, %v2234_v35, 0.0  ;;  %v5864_v22 = vld [vmem:[#allocation33_spill] sm:$0xff]  ;;  %v1608_v59 = vld [vmem:[#allocation2 + $0xe8] sm:$0xff] }
 0x2c4   :  { %v1689_v45 = vsel %vm5860_vm10, %v1647_v62, 0.0  ;;  %v1900_v43 = vmul.f32 %v1858_v13, %v1858_v13  ;;  %1775 = vst.msk [vmem:[#allocation2 + $0xd8] sm:$0xff] %vm59_vm0, %v1732_v5  ;;  %v1985_v46 = vadd.f32 %v1943_v57, %v1817_v8  ;;  %v1346_v56 = vmul.f32 0.6931472, %v2797_v41  ;;  %v2501_v13 = vld [vmem:[#allocation4 + $0xa0] sm:$0xff] }
 0x2c5   :  { %v1731_v36 = vadd.f32 %v1689_v45, %v1605_v3  ;;  %v2298_v39 = vsel %vm59_vm0, %v2235_v51, 0.0  ;;  %v1344_v44 = vmul.f32 0.6931472, %v2799_v12  ;;  %vm5865_vm13 = vcmp.ne.s32.totalorder %v5864_v22, 4294967295 }
 0x2c6   :  { %v1942_v1 = vsel %vm5862_vm9, %v1900_v43, 0.0  ;;  %2027 = vst.msk [vmem:[#allocation3 + $0xd8] sm:$0xff] %vm59_vm0, %v1985_v46  ;;  %v1260_v26 = vpop.xlane.xlu1 %1259  ;;  %v2297_v8 = vadd.f32 %v2296_v63, %v2295_v18  ;;  %v2432_v53 = vsel %vm59_vm0, %v2369_v61, 0.0  ;;  %vm5866_vm3 = vmmov %vm5865_vm13  ;;  %v2300_v19 = vsel %vm59_vm0, %v2236_v32, 0.0  ;;  %v1609_v46 = vld [vmem:[#allocation2 + $0xf0] sm:$0xff]  ;;  %v5871_v61 = vld [vmem:[#allocation32_spill] sm:$0xff] }
 0x2c7   :  { %1774 = vst.msk [vmem:[#allocation2 + $0xd0] sm:$0xff] %vm59_vm0, %v1731_v36  ;;  %v1984_v21 = vadd.f32 %v1942_v1, %v1816_v4  ;;  %v2431_v6 = vadd.f32 %v2430_v14, %v2429_v52  ;;  %v1399_v45 = vadd.f32 %v1346_v56, %v5867_v60  ;;  %v2562_v48 = vsel %vm59_vm0, %v2501_v13, 0.0  ;;  %v1819_v52 = vld [vmem:[#allocation3 + $0xe8] sm:$0xff]  ;;  %v2371_v56 = vld [vmem:[#allocation3 + $0xc0] sm:$0xff] }
 0x2c8   :  { %v2299_v43 = vadd.f32 %v2298_v39, %v2297_v8  ;;  %v1398_v57 = vadd.f32 %v1344_v44, %v5868_v34  ;;  %v2561_v36 = vadd.f32 %v2560_v2, %v2559_v24  ;;  %v2434_v41 = vsel %vm59_vm0, %v2370_v23, 0.0  ;;  %v2238_v2 = vld [vmem:[#allocation2 + $0xc8] sm:$0xff] }
 0x2c9   :  { %2026 = vst.msk [vmem:[#allocation3 + $0xd0] sm:$0xff] %vm59_vm0, %v1984_v21  ;;  %v1257_v10 = vpop.xlane.xlu2 %1256  ;;  %v2801_v5 = vpop.eup %2800  ;;  %v2433_v25 = vadd.f32 %v2432_v53, %v2431_v6  ;;  %2802 = vlog2.f32 %v1260_v26  ;;  %vm5872_vm5 = vcmp.ne.s32.totalorder %v5871_v61, 4294967295  ;;  %v2564_v26 = vsel %vm59_vm0, %v2502_v11, 0.0  ;;  %v2505_v6 = vld [vmem:[#allocation4 + $0xc0] sm:$0xff] }
 0x2ca   :  { %v1539_v37 = vpop.xlane.xlu0 %1538  ;;  %v2301_v21 = vadd.f32 %v2300_v19, %v2299_v43  ;;  %v1348_v7 = vmul.f32 0.6931472, %v2801_v5  ;;  %2804 = vlog2.f32 %v1257_v10  ;;  %v2563_v51 = vadd.f32 %v2562_v48, %v2561_v36  ;;  %vm5874_vm12 = vmmov %vm5872_vm5  ;;  %v5875_v19 = vld [vmem:[#allocation124_spill] sm:$0xff]  ;;  %v1610_v36 = vld [vmem:[#allocation2 + $0xf8] sm:$0xff] }
 0x2cb   :  { %v1649_v16 = vsub.f32 %v1397_v40, %v1539_v37  ;;  %v1860_v9 = vsub.f32 1.0, %v1539_v37  ;;  %v5869_v40 = vld [vmem:[#allocation37_spill] sm:$0xff]  ;;  %v2237_v37 = vld [vmem:[#allocation2 + $0xc0] sm:$0xff]  ;;  %v2304_v8 = vsel %vm59_vm0, %v2238_v2, 0.0  ;;  %v2436_v60 = vsel %vm59_vm0, %v2371_v56, 0.0 }
 0x2cc   :  { %vm5870_vm2 = vcmp.ne.s32.totalorder %v5869_v40, 4294967295  ;;  %v2565_v63 = vadd.f32 %v2564_v26, %v2563_v51  ;;  %v1400_v23 = vadd.f32 %v1348_v7, %v5875_v19  ;;  %v2570_v34 = vsel %vm59_vm0, %v2505_v6, 0.0 }
 0x2cd   :  { %v1691_v3 = vsel %vm5865_vm13, %v1649_v16, 0.0  ;;  %v1902_v62 = vmul.f32 %v1860_v9, %v1860_v9  ;;  %v2503_v9 = vld [vmem:[#allocation4 + $0xb0] sm:$0xff]  ;;  %vm5873_vm11 = vmmov %vm5870_vm2 }
 0x2ce   :  { %v1733_v27 = vadd.f32 %v1691_v3, %v1607_v28  ;;  %v1545_v29 = vpop.xlane.xlu1 %1544  ;;  %v2566_v32 = vsel %vm59_vm0, %v2503_v9, 0.0  ;;  %v2239_v22 = vld [vmem:[#allocation2 + $0xd0] sm:$0xff]  ;;  %v2302_v3 = vsel %vm59_vm0, %v2237_v37, 0.0  ;;  %v2508_v9 = vld [vmem:[#allocation4 + $0xd8] sm:$0xff] }
 0x2cf   :  { %v1944_v30 = vsel %vm5866_vm3, %v1902_v62, 0.0  ;;  %v1651_v1 = vsub.f32 %v1399_v45, %v1545_v29  ;;  %v1862_v15 = vsub.f32 1.0, %v1545_v29  ;;  %v2435_v62 = vadd.f32 %v2434_v41, %v2433_v25  ;;  %v2803_v53 = vpop.eup %2802 }
 0x2d0   :  { %1776 = vst.msk [vmem:[#allocation2 + $0xe0] sm:$0xff] %vm59_vm0, %v1733_v27  ;;  %v1986_v4 = vadd.f32 %v1944_v30, %v1818_v47  ;;  %v2504_v47 = vld [vmem:[#allocation4 + $0xb8] sm:$0xff]  ;;  %v2567_v14 = vadd.f32 %v2566_v32, %v2565_v63  ;;  %v2303_v5 = vadd.f32 %v2302_v3, %v2301_v21  ;;  %v2805_v45 = vpop.eup %2804  ;;  %v1352_v21 = vmul.f32 0.6931472, %v2803_v53 }
 0x2d1   :  { %v1542_v49 = vpop.xlane.xlu2 %1541  ;;  %v1693_v12 = vsel %vm5870_vm2, %v1651_v1, 0.0  ;;  %v1904_v18 = vmul.f32 %v1862_v15, %v1862_v15  ;;  %v2568_v27 = vsel %vm59_vm0, %v2504_v47, 0.0  ;;  %v2373_v15 = vld [vmem:[#allocation3 + $0xd0] sm:$0xff]  ;;  %v2576_v56 = vsel %vm59_vm0, %v2508_v9, 0.0 }
 0x2d2   :  { %2028 = vst.msk [vmem:[#allocation3 + $0xe0] sm:$0xff] %vm59_vm0, %v1986_v4  ;;  %v1263_v17 = vpop.xlane.xlu0 %1262  ;;  %v1650_v0 = vsub.f32 %v1398_v57, %v1542_v49  ;;  %v1861_v35 = vsub.f32 1.0, %v1542_v49  ;;  %v1735_v38 = vadd.f32 %v1693_v12, %v1609_v46  ;;  %v2372_v4 = vld [vmem:[#allocation3 + $0xc8] sm:$0xff]  ;;  %v2569_v29 = vadd.f32 %v2568_v27, %v2567_v14  ;;  %v2506_v46 = vld [vmem:[#allocation4 + $0xc8] sm:$0xff]  ;;  %v2509_v47 = vld [vmem:[#allocation4 + $0xe0] sm:$0xff] }
 0x2d3   :  { %v1946_v10 = vsel %vm5873_vm11, %v1904_v18, 0.0  ;;  %2806 = vlog2.f32 %v1263_v17  ;;  %v2306_v57 = vsel %vm59_vm0, %v2239_v22, 0.0  ;;  %v2305_v1 = vadd.f32 %v2304_v8, %v2303_v5  ;;  %v2507_v18 = vld [vmem:[#allocation4 + $0xd0] sm:$0xff] }
 0x2d4   :  { %v1692_v28 = vsel %vm5872_vm5, %v1650_v0, 0.0  ;;  %v1903_v16 = vmul.f32 %v1861_v35, %v1861_v35  ;;  %1778 = vst.msk [vmem:[#allocation2 + $0xf0] sm:$0xff] %vm59_vm0, %v1735_v38  ;;  %v1988_v39 = vadd.f32 %v1946_v10, %v1820_v50  ;;  %v2437_v49 = vadd.f32 %v2436_v60, %v2435_v62  ;;  %v1821_v35 = vld [vmem:[#allocation3 + $0xf8] sm:$0xff] }
 0x2d5   :  { %v1734_v24 = vadd.f32 %v1692_v28, %v1608_v59  ;;  %v2571_v41 = vadd.f32 %v2570_v34, %v2569_v29  ;;  %v2572_v7 = vsel %vm59_vm0, %v2506_v46, 0.0  ;;  %v2240_v59 = vld [vmem:[#allocation2 + $0xd8] sm:$0xff]  ;;  %v2438_v17 = vsel %vm59_vm0, %v2372_v4, 0.0  ;;  %v5876_v50 = vld [vmem:[#allocation36_spill] sm:$0xff] }
 0x2d6   :  { %v1945_v44 = vsel %vm5874_vm12, %v1903_v16, 0.0  ;;  %2030 = vst.msk [vmem:[#allocation3 + $0xf0] sm:$0xff] %vm59_vm0, %v1988_v39  ;;  %v1269_v30 = vpop.xlane.xlu1 %1268  ;;  %v1350_v0 = vmul.f32 0.6931472, %v2805_v45  ;;  %vm5877_vm6 = vcmp.ne.s32.totalorder %v5876_v50, 4294967295  ;;  %v2307_v51 = vadd.f32 %v2306_v57, %v2305_v1  ;;  %v1823_v4 = vld [vmem:[#allocation3 + $0x108] sm:$0xff] }
 0x2d7   :  { %1777 = vst.msk [vmem:[#allocation2 + $0xe8] sm:$0xff] %vm59_vm0, %v1734_v24  ;;  %v1987_v13 = vadd.f32 %v1945_v44, %v1819_v52  ;;  %v2573_v38 = vadd.f32 %v2572_v7, %v2571_v41  ;;  %v2574_v52 = vsel %vm59_vm0, %v2507_v18, 0.0  ;;  %v2241_v61 = vld [vmem:[#allocation2 + $0xe0] sm:$0xff]  ;;  %v2440_v28 = vsel %vm59_vm0, %v2373_v15, 0.0  ;;  %vm5878_vm7 = vmmov %vm5877_vm6  ;;  %v5879_v60 = vld [vmem:[#allocation40_spill] sm:$0xff] }
 0x2d8   :  { %v2308_v26 = vsel %vm59_vm0, %v2240_v59, 0.0  ;;  %v2439_v2 = vadd.f32 %v2438_v17, %v2437_v49  ;;  %v1402_v63 = vadd.f32 %v1352_v21, %v4411_v54  ;;  %v1401_v44 = vadd.f32 %v1350_v0, %v4371_v33  ;;  %v2510_v33 = vld [vmem:[#allocation4 + $0xe8] sm:$0xff]  ;;  %v1822_v57 = vld [vmem:[#allocation3 + $0x100] sm:$0xff]  ;;  %v2512_v0 = vld [vmem:[#allocation4 + $0xf8] sm:$0xff] }
 0x2d9   :  { %2029 = vst.msk [vmem:[#allocation3 + $0xe8] sm:$0xff] %vm59_vm0, %v1987_v13  ;;  %v1266_v43 = vpop.xlane.xlu2 %1265  ;;  %v2807_v10 = vpop.eup %2806  ;;  %v2575_v32 = vadd.f32 %v2574_v52, %v2573_v38  ;;  %v2309_v22 = vadd.f32 %v2308_v26, %v2307_v51  ;;  %v2310_v3 = vsel %vm59_vm0, %v2241_v61, 0.0  ;;  %2808 = vlog2.f32 %v1269_v30  ;;  %v1612_v13 = vld [vmem:[#allocation2 + $0x108] sm:$0xff]  ;;  %v2375_v7 = vld [vmem:[#allocation3 + $0xe0] sm:$0xff]  ;;  %v2513_v26 = vld [vmem:[#allocation4 + $0x100] sm:$0xff] }
 0x2da   :  { %v1548_v48 = vpop.xlane.xlu0 %1547  ;;  %v2441_v62 = vadd.f32 %v2440_v28, %v2439_v2  ;;  %v1354_v19 = vmul.f32 0.6931472, %v2807_v10  ;;  %2810 = vlog2.f32 %v1266_v43  ;;  %vm5880_vm8 = vcmp.ne.s32.totalorder %v5879_v60, 4294967295  ;;  %v2511_v43 = vld [vmem:[#allocation4 + $0xf0] sm:$0xff]  ;;  %v2374_v1 = vld [vmem:[#allocation3 + $0xd8] sm:$0xff] }
 0x2db   :  { %v1652_v25 = vsub.f32 %v1400_v23, %v1548_v48  ;;  %v1863_v11 = vsub.f32 1.0, %v1548_v48  ;;  %v2577_v54 = vadd.f32 %v2576_v56, %v2575_v32  ;;  %v1611_v23 = vld [vmem:[#allocation2 + $0x100] sm:$0xff]  ;;  %v2578_v30 = vsel %vm59_vm0, %v2509_v47, 0.0  ;;  %vm5883_vm1 = vmmov %vm5880_vm8  ;;  %v2243_v50 = vld [vmem:[#allocation2 + $0xf0] sm:$0xff] }
 0x2dc   :  { %v2580_v21 = vsel %vm59_vm0, %v2510_v33, 0.0  ;;  %v2582_v41 = vsel %vm59_vm0, %v2511_v43, 0.0  ;;  %v2311_v38 = vadd.f32 %v2310_v3, %v2309_v22  ;;  %v2442_v52 = vsel %vm59_vm0, %v2374_v1, 0.0  ;;  %v5886_v33 = vld [vmem:[#allocation39_spill] sm:$0xff] }
 0x2dd   :  { %v1694_v40 = vsel %vm5877_vm6, %v1652_v25, 0.0  ;;  %v1905_v12 = vmul.f32 %v1863_v11, %v1863_v11  ;;  %v2579_v46 = vadd.f32 %v2578_v30, %v2577_v54  ;;  %v2314_v22 = vsel %vm59_vm0, %v2243_v50, 0.0 }
 0x2de   :  { %v1736_v37 = vadd.f32 %v1694_v40, %v1610_v36  ;;  %v1554_v39 = vpop.xlane.xlu1 %1553  ;;  %v2242_v29 = vld [vmem:[#allocation2 + $0xe8] sm:$0xff]  ;;  %v5881_v36 = vld [vmem:[#allocation35_spill] sm:$0xff]  ;;  %vm5887_vm15 = vcmp.ne.s32.totalorder %v5886_v33, 4294967295 }
 0x2df   :  { %v1947_v16 = vsel %vm5878_vm7, %v1905_v12, 0.0  ;;  %v1654_v14 = vsub.f32 %v1402_v63, %v1554_v39  ;;  %v1865_v27 = vsub.f32 1.0, %v1554_v39  ;;  %vm5882_vm14 = vcmp.ne.s32.totalorder %v5881_v36, 4294967295  ;;  %v2809_v18 = vpop.eup %2808  ;;  %vm5888_vm9 = vmmov %vm5887_vm15 }
 0x2e0   :  { %1779 = vst.msk [vmem:[#allocation2 + $0xf8] sm:$0xff] %vm59_vm0, %v1736_v37  ;;  %v1989_v24 = vadd.f32 %v1947_v16, %v1821_v35  ;;  %vm5884_vm10 = vmmov %vm5882_vm14  ;;  %v2581_v35 = vadd.f32 %v2580_v21, %v2579_v46  ;;  %v2312_v40 = vsel %vm59_vm0, %v2242_v29, 0.0  ;;  %v2376_v12 = vld [vmem:[#allocation3 + $0xe8] sm:$0xff]  ;;  %v2584_v37 = vsel %vm59_vm0, %v2512_v0, 0.0  ;;  %v2811_v61 = vpop.eup %2810  ;;  %v5885_v16 = vld [vmem:[#allocation81_spill] sm:$0xff] }
 0x2e1   :  { %v1551_v8 = vpop.xlane.xlu2 %1550  ;;  %v1696_v45 = vsel %vm5880_vm8, %v1654_v14, 0.0  ;;  %v1907_v48 = vmul.f32 %v1865_v27, %v1865_v27  ;;  %v1403_v9 = vadd.f32 %v1354_v19, %v5885_v16  ;;  %v2444_v63 = vsel %vm59_vm0, %v2375_v7, 0.0  ;;  %v2514_v19 = vld [vmem:[#allocation4 + $0x108] sm:$0xff] }
 0x2e2   :  { %2031 = vst.msk [vmem:[#allocation3 + $0xf8] sm:$0xff] %vm59_vm0, %v1989_v24  ;;  %v1272_v53 = vpop.xlane.xlu0 %1271  ;;  %v1653_v6 = vsub.f32 %v1401_v44, %v1551_v8  ;;  %v1864_v5 = vsub.f32 1.0, %v1551_v8  ;;  %v1738_v34 = vadd.f32 %v1696_v45, %v1612_v13  ;;  %v2583_v2 = vadd.f32 %v2582_v41, %v2581_v35  ;;  %v1613_v13 = vld [vmem:[#allocation2 + $0x110] sm:$0xff]  ;;  %v5889_v41 = vld [vmem:[#allocation75_spill] sm:$0xff] }
 0x2e3   :  { %2812 = vlog2.f32 %v1272_v53  ;;  %v1949_v15 = vsel %vm5883_vm1, %v1907_v48, 0.0  ;;  %v2443_v24 = vadd.f32 %v2442_v52, %v2441_v62  ;;  %v2586_v44 = vsel %vm59_vm0, %v2513_v26, 0.0  ;;  %v2377_v62 = vld [vmem:[#allocation3 + $0xf0] sm:$0xff]  ;;  %v2515_v45 = vld [vmem:[#allocation4 + $0x110] sm:$0xff] }
 0x2e4   :  { %v1695_v25 = vsel %vm5882_vm14, %v1653_v6, 0.0  ;;  %v1906_v11 = vmul.f32 %v1864_v5, %v1864_v5  ;;  %1781 = vst.msk [vmem:[#allocation2 + $0x108] sm:$0xff] %vm59_vm0, %v1738_v34  ;;  %v1991_v59 = vadd.f32 %v1949_v15, %v1823_v4  ;;  %v2313_v47 = vadd.f32 %v2312_v40, %v2311_v38  ;;  %v1824_v5 = vld [vmem:[#allocation3 + $0x110] sm:$0xff] }
 0x2e5   :  { %v1737_v49 = vadd.f32 %v1695_v25, %v1611_v23  ;;  %v2446_v3 = vsel %vm59_vm0, %v2376_v12, 0.0  ;;  %v2585_v8 = vadd.f32 %v2584_v37, %v2583_v2  ;;  %v1358_v53 = vmul.f32 0.6931472, %v2809_v18  ;;  %v1615_v18 = vld [vmem:[#allocation2 + $0x120] sm:$0xff] }
 0x2e6   :  { %v1948_v17 = vsel %vm5884_vm10, %v1906_v11, 0.0  ;;  %2033 = vst.msk [vmem:[#allocation3 + $0x108] sm:$0xff] %vm59_vm0, %v1991_v59  ;;  %v1278_v28 = vpop.xlane.xlu1 %1277  ;;  %v1356_v54 = vmul.f32 0.6931472, %v2811_v61  ;;  %v2445_v6 = vadd.f32 %v2444_v63, %v2443_v24  ;;  %v2588_v30 = vsel %vm59_vm0, %v2514_v19, 0.0  ;;  %v2517_v59 = vld [vmem:[#allocation4 + $0x120] sm:$0xff] }
 0x2e7   :  { %1780 = vst.msk [vmem:[#allocation2 + $0x100] sm:$0xff] %vm59_vm0, %v1737_v49  ;;  %v1990_v51 = vadd.f32 %v1948_v17, %v1822_v57  ;;  %v2244_v10 = vld [vmem:[#allocation2 + $0xf8] sm:$0xff]  ;;  %v2587_v48 = vadd.f32 %v2586_v44, %v2585_v8  ;;  %v2590_v36 = vsel %vm59_vm0, %v2515_v45, 0.0  ;;  %v2315_v1 = vadd.f32 %v2314_v22, %v2313_v47  ;;  %v2518_v61 = vld [vmem:[#allocation4 + $0x128] sm:$0xff]  ;;  %v1826_v63 = vld [vmem:[#allocation3 + $0x120] sm:$0xff] }
 0x2e8   :  { %v2316_v23 = vsel %vm59_vm0, %v2244_v10, 0.0  ;;  %v2516_v57 = vld [vmem:[#allocation4 + $0x118] sm:$0xff]  ;;  %v2447_v11 = vadd.f32 %v2446_v3, %v2445_v6  ;;  %v2448_v15 = vsel %vm59_vm0, %v2377_v62, 0.0  ;;  %v1405_v21 = vadd.f32 %v1358_v53, %v4443_v31  ;;  %v2519_v10 = vld [vmem:[#allocation4 + $0x130] sm:$0xff]  ;;  %v2521_v47 = vld [vmem:[#allocation4 + $0x140] sm:$0xff] }
 0x2e9   :  { %v2813_v32 = vpop.eup %2812  ;;  %2032 = vst.msk [vmem:[#allocation3 + $0x100] sm:$0xff] %vm59_vm0, %v1990_v51  ;;  %v1275_v56 = vpop.xlane.xlu2 %1274  ;;  %v2378_v25 = vld [vmem:[#allocation3 + $0xf8] sm:$0xff]  ;;  %v2589_v46 = vadd.f32 %v2588_v30, %v2587_v48  ;;  %v1404_v7 = vadd.f32 %v1356_v54, %v5889_v41  ;;  %v2592_v50 = vsel %vm59_vm0, %v2516_v57, 0.0  ;;  %v5238_v40 = vadd.f32 %v2316_v23, %v2315_v1  ;;  %v2520_v44 = vld [vmem:[#allocation4 + $0x138] sm:$0xff] }
 0x2ea   :  { %v1557_v39 = vpop.xlane.xlu0 %1556  ;;  %2814 = vlog2.f32 %v1275_v56  ;;  %v1360_v29 = vmul.f32 0.6931472, %v2813_v32  ;;  %v2450_v12 = vsel %vm59_vm0, %v2378_v25, 0.0  ;;  %v2594_v24 = vsel %vm59_vm0, %v2517_v59, 0.0  ;;  %v5890_v32 = vld [vmem:[#allocation43_spill] sm:$0xff]  ;;  %v1825_v3 = vld [vmem:[#allocation3 + $0x118] sm:$0xff] }
 0x2eb   :  { %v1655_v14 = vsub.f32 %v1403_v9, %v1557_v39  ;;  %v1866_v27 = vsub.f32 1.0, %v1557_v39  ;;  %2816 = vlog2.f32 %v1278_v28  ;;  %v2591_v35 = vadd.f32 %v2590_v36, %v2589_v46  ;;  %v1614_v9 = vld [vmem:[#allocation2 + $0x118] sm:$0xff]  ;;  %v2522_v23 = vld [vmem:[#allocation4 + $0x148] sm:$0xff] }
 0x2ec   :  { %v5243_v31 = vadd.f32 %v1360_v29, %v4437_v42  ;;  %v2449_v28 = vadd.f32 %v2448_v15, %v2447_v11  ;;  %vm5891_vm13 = vcmp.ne.s32.totalorder %v5890_v32, 4294967295  ;;  %v2596_v8 = vsel %vm59_vm0, %v2518_v61, 0.0  ;;  %v2246_v33 = vld [vmem:[#allocation2 + $0x108] sm:$0xff]  ;;  %v5897_v61 = vld [vmem:[#allocation41_spill] sm:$0xff] }
 0x2ed   :  { %v1697_v4 = vsel %vm5887_vm15, %v1655_v14, 0.0  ;;  %v1908_v60 = vmul.f32 %v1866_v27, %v1866_v27  ;;  %v2593_v22 = vadd.f32 %v2592_v50, %v2591_v35  ;;  %vm5894_vm2 = vmmov %vm5891_vm13  ;;  %v2600_v48 = vsel %vm59_vm0, %v2520_v44, 0.0  ;;  %v1616_v50 = vld [vmem:[#allocation2 + $0x128] sm:$0xff] }
 0x2ee   :  { %v1739_v34 = vadd.f32 %v1697_v4, %v1613_v13  ;;  %v1563_v0 = vpop.xlane.xlu1 %1562  ;;  %v5892_v13 = vld [vmem:[#allocation38_spill] sm:$0xff]  ;;  %v2245_v62 = vld [vmem:[#allocation2 + $0x100] sm:$0xff]  ;;  %v2602_v30 = vsel %vm59_vm0, %v2521_v47, 0.0  ;;  %v2604_v46 = vsel %vm59_vm0, %v2522_v23, 0.0  ;;  %v2320_v1 = vsel %vm59_vm0, %v2246_v33, 0.0 }
 0x2ef   :  { %v1950_v43 = vsel %vm5888_vm9, %v1908_v60, 0.0  ;;  %v1657_v51 = vsub.f32 %v1405_v21, %v1563_v0  ;;  %v1868_v37 = vsub.f32 1.0, %v1563_v0  ;;  %vm5893_vm3 = vcmp.ne.s32.totalorder %v5892_v13, 4294967295  ;;  %v1617_v21 = vld [vmem:[#allocation2 + $0x130] sm:$0xff]  ;;  %v5903_v23 = vld [vmem:[#allocation46_spill] sm:$0xff] }
 0x2f0   :  { %1782 = vst.msk [vmem:[#allocation2 + $0x110] sm:$0xff] %vm59_vm0, %v1739_v34  ;;  %v1992_v49 = vadd.f32 %v1950_v43, %v1824_v5  ;;  %v2815_v17 = vpop.eup %2814  ;;  %v2595_v6 = vadd.f32 %v2594_v24, %v2593_v22  ;;  %v2598_v5 = vsel %vm59_vm0, %v2519_v10, 0.0  ;;  %v2379_v4 = vld [vmem:[#allocation3 + $0x100] sm:$0xff]  ;;  %vm5895_vm5 = vmmov %vm5893_vm3  ;;  %v2318_v25 = vsel %vm59_vm0, %v2245_v62, 0.0 }
 0x2f1   :  { %v1560_v38 = vpop.xlane.xlu2 %1559  ;;  %v1362_v16 = vmul.f32 0.6931472, %v2815_v17  ;;  %v1699_v56 = vsel %vm5891_vm13, %v1657_v51, 0.0  ;;  %v1910_v39 = vmul.f32 %v1868_v37, %v1868_v37  ;;  %v2817_v53 = vpop.eup %2816  ;;  %v5896_v34 = vld [vmem:[#allocation49_spill] sm:$0xff]  ;;  %v2452_v15 = vsel %vm59_vm0, %v2379_v4, 0.0 }
 0x2f2   :  { %2034 = vst.msk [vmem:[#allocation3 + $0x110] sm:$0xff] %vm59_vm0, %v1992_v49  ;;  %v1281_v52 = vpop.xlane.xlu0 %1280  ;;  %v1656_v26 = vsub.f32 %v1404_v7, %v1560_v38  ;;  %v1867_v2 = vsub.f32 1.0, %v1560_v38  ;;  %v1741_v42 = vadd.f32 %v1699_v56, %v1615_v18  ;;  %v2597_v36 = vadd.f32 %v2596_v8, %v2595_v6  ;;  %v2380_v38 = vld [vmem:[#allocation3 + $0x108] sm:$0xff] }
 0x2f3   :  { %2818 = vlog2.f32 %v1281_v52  ;;  %v1952_v54 = vsel %vm5894_vm2, %v1910_v39, 0.0  ;;  %v1407_v57 = vadd.f32 %v1362_v16, %v5896_v34  ;;  %v1364_v11 = vmul.f32 0.6931472, %v2817_v53  ;;  %v1828_v52 = vld [vmem:[#allocation3 + $0x130] sm:$0xff] }
 0x2f4   :  { %v1698_v14 = vsel %vm5893_vm3, %v1656_v26, 0.0  ;;  %v1909_v27 = vmul.f32 %v1867_v2, %v1867_v2  ;;  %1784 = vst.msk [vmem:[#allocation2 + $0x120] sm:$0xff] %vm59_vm0, %v1741_v42  ;;  %v1994_v60 = vadd.f32 %v1952_v54, %v1826_v63  ;;  %v2599_v0 = vadd.f32 %v2598_v5, %v2597_v36 }
 0x2f5   :  { %v1740_v19 = vadd.f32 %v1698_v14, %v1614_v9  ;;  %v2451_v35 = vadd.f32 %v2450_v12, %v2449_v28  ;;  %v2319_v37 = vadd.f32 %v2318_v25, %v5238_v40  ;;  %vm5898_vm11 = vcmp.ne.s32.totalorder %v5897_v61, 4294967295  ;;  %v1827_v12 = vld [vmem:[#allocation3 + $0x128] sm:$0xff]  ;;  %v1830_v61 = vld [vmem:[#allocation3 + $0x140] sm:$0xff] }
 0x2f6   :  { %v1951_v45 = vsel %vm5895_vm5, %v1909_v27, 0.0  ;;  %2036 = vst.msk [vmem:[#allocation3 + $0x120] sm:$0xff] %vm59_vm0, %v1994_v60  ;;  %v1569_v43 = vpop.xlane.xlu1 %1568  ;;  %v2601_v26 = vadd.f32 %v2600_v48, %v2599_v0  ;;  %v5899_v28 = vld [vmem:[#allocation42_spill] sm:$0xff]  ;;  %vm5901_vm6 = vmmov %vm5898_vm11  ;;  %v2454_v47 = vsel %vm59_vm0, %v2380_v38, 0.0  ;;  %v1408_v6 = vadd.f32 %v1364_v11, %v5903_v23  ;;  %v1619_v0 = vld [vmem:[#allocation2 + $0x140] sm:$0xff] }
 0x2f7   :  { %1783 = vst.msk [vmem:[#allocation2 + $0x118] sm:$0xff] %vm59_vm0, %v1740_v19  ;;  %v1993_v29 = vadd.f32 %v1951_v45, %v1825_v3  ;;  %v1659_v41 = vsub.f32 %v1407_v57, %v1569_v43  ;;  %v1870_v7 = vsub.f32 1.0, %v1569_v43  ;;  %v2247_v2 = vld [vmem:[#allocation2 + $0x110] sm:$0xff]  ;;  %v2453_v24 = vadd.f32 %v2452_v15, %v2451_v35  ;;  %v1618_v57 = vld [vmem:[#allocation2 + $0x138] sm:$0xff]  ;;  %v5906_v35 = vld [vmem:[#allocation44_spill] sm:$0xff] }
 0x2f8   :  { %vm5900_vm12 = vcmp.ne.s32.totalorder %v5899_v28, 4294967295  ;;  %v2603_v44 = vadd.f32 %v2602_v30, %v2601_v26  ;;  %v2322_v13 = vsel %vm59_vm0, %v2247_v2, 0.0  ;;  %v2321_v62 = vadd.f32 %v2320_v1, %v2319_v37  ;;  %v1831_v1 = vld [vmem:[#allocation3 + $0x148] sm:$0xff] }
 0x2f9   :  { %v2819_v49 = vpop.eup %2818  ;;  %2035 = vst.msk [vmem:[#allocation3 + $0x118] sm:$0xff] %vm59_vm0, %v1993_v29  ;;  %v1284_v59 = vpop.xlane.xlu2 %1283  ;;  %v1701_v16 = vsel %vm5898_vm11, %v1659_v41, 0.0  ;;  %v1912_v9 = vmul.f32 %v1870_v7, %v1870_v7  ;;  %v2381_v10 = vld [vmem:[#allocation3 + $0x110] sm:$0xff]  ;;  %vm5902_vm7 = vmmov %vm5900_vm12  ;;  %v2455_v53 = vadd.f32 %v2454_v47, %v2453_v24  ;;  %v1829_v41 = vld [vmem:[#allocation3 + $0x138] sm:$0xff]  ;;  %vm5907_vm14 = vcmp.ne.s32.totalorder %v5906_v35, 4294967295 }
 0x2fa   :  { %v1566_v17 = vpop.xlane.xlu0 %1565  ;;  %2820 = vlog2.f32 %v1284_v59  ;;  %v1366_v63 = vmul.f32 0.6931472, %v2819_v49  ;;  %v1743_v32 = vadd.f32 %v1701_v16, %v1617_v21  ;;  %v2456_v14 = vsel %vm59_vm0, %v2381_v10, 0.0  ;;  %v5904_v7 = vld [vmem:[#allocation45_spill] sm:$0xff]  ;;  %vm5910_vm10 = vmmov %vm5907_vm14 }
 0x2fb   :  { %v1658_v18 = vsub.f32 %v5243_v31, %v1566_v17  ;;  %v1869_v51 = vsub.f32 1.0, %v1566_v17  ;;  %v1954_v40 = vsel %vm5901_vm6, %v1912_v9, 0.0  ;;  %v2605_v8 = vadd.f32 %v2604_v46, %v2603_v44  ;;  %v2249_v11 = vld [vmem:[#allocation2 + $0x120] sm:$0xff] }
 0x2fc   :  { %1786 = vst.msk [vmem:[#allocation2 + $0x130] sm:$0xff] %vm59_vm0, %v1743_v32  ;;  %v1996_v22 = vadd.f32 %v1954_v40, %v1828_v52  ;;  %v1409_v5 = vadd.f32 %v1366_v63, %v4459_v58  ;;  %v2323_v29 = vadd.f32 %v2322_v13, %v2321_v62  ;;  %v2457_v34 = vadd.f32 %v2456_v14, %v2455_v53 }
 0x2fd   :  { %v1700_v56 = vsel %vm5900_vm12, %v1658_v18, 0.0  ;;  %v1911_v31 = vmul.f32 %v1869_v51, %v1869_v51  ;;  %2606 = vadd.xlane.f32.xlu1 %v2605_v8  ;;  %vm5905_vm8 = vcmp.ne.s32.totalorder %v5904_v7, 4294967295  ;;  %v1620_v51 = vld [vmem:[#allocation2 + $0x148] sm:$0xff]  ;;  %v2326_v16 = vsel %vm59_vm0, %v2249_v11, 0.0  ;;  %v2383_v24 = vld [vmem:[#allocation3 + $0x120] sm:$0xff] }
 0x2fe   :  { %v1742_v39 = vadd.f32 %v1700_v56, %v1616_v50  ;;  %v2248_v3 = vld [vmem:[#allocation2 + $0x118] sm:$0xff]  ;;  %2038 = vst.msk [vmem:[#allocation3 + $0x130] sm:$0xff] %vm59_vm0, %v1996_v22  ;;  %v1578_v19 = vpop.xlane.xlu1 %1577  ;;  %vm5909_vm1 = vmmov %vm5905_vm8  ;;  %v2460_v47 = vsel %vm59_vm0, %v2383_v24, 0.0  ;;  %vm2622_vm15 = vcmp.eq.s32.totalorder %v4181_v20, 2 }
 0x2ff   :  { %v1953_v42 = vsel %vm5902_vm7, %v1911_v31, 0.0  ;;  %v2324_v33 = vsel %vm59_vm0, %v2248_v3, 0.0  ;;  %v1873_v45 = vsub.f32 1.0, %v1578_v19 }
 0x300   :  { %1785 = vst.msk [vmem:[#allocation2 + $0x128] sm:$0xff] %vm59_vm0, %v1742_v39  ;;  %v1995_v27 = vadd.f32 %v1953_v42, %v1827_v12  ;;  %v2821_v54 = vpop.eup %2820  ;;  %v2382_v4 = vld [vmem:[#allocation3 + $0x118] sm:$0xff]  ;;  %v2325_v49 = vadd.f32 %v2324_v33, %v2323_v29 }
 0x301   :  { %v1368_v60 = vmul.f32 0.6931472, %v2821_v54  ;;  %v1572_v48 = vpop.xlane.xlu2 %1571  ;;  %v1915_v15 = vmul.f32 %v1873_v45, %v1873_v45  ;;  %v2458_v21 = vsel %vm59_vm0, %v2382_v4, 0.0 }
 0x302   :  { %2037 = vst.msk [vmem:[#allocation3 + $0x128] sm:$0xff] %vm59_vm0, %v1995_v27  ;;  %v1575_v30 = vpop.xlane.xlu0 %1574  ;;  %v1660_v36 = vsub.f32 %v1408_v6, %v1572_v48  ;;  %v1871_v25 = vsub.f32 1.0, %v1572_v48  ;;  %v2459_v63 = vadd.f32 %v2458_v21, %v2457_v34  ;;  %v2327_v39 = vadd.f32 %v2326_v16, %v2325_v49 }
 0x303   :  { %v1661_v43 = vsub.f32 %v1409_v5, %v1575_v30  ;;  %v1872_v46 = vsub.f32 1.0, %v1575_v30  ;;  %v1410_v58 = vadd.f32 %v1368_v60, %v4455_v55  ;;  %v1957_v52 = vsel %vm3661_vm4, %v1915_v15, 0.0  ;;  %v2251_v42 = vld [vmem:[#allocation2 + $0x130] sm:$0xff] }
 0x304   :  { %v1702_v59 = vsel %vm5905_vm8, %v1660_v36, 0.0  ;;  %v1913_v17 = vmul.f32 %v1871_v25, %v1871_v25  ;;  %v1999_v9 = vadd.f32 %v1957_v52, %v1831_v1  ;;  %v2461_v13 = vadd.f32 %v2460_v47, %v2459_v63 }
 0x305   :  { %v1703_v50 = vsel %vm5907_vm14, %v1661_v43, 0.0  ;;  %v1914_v18 = vmul.f32 %v1872_v46, %v1872_v46  ;;  %v1662_v37 = vsub.f32 %v1410_v58, %v1578_v19  ;;  %v1744_v55 = vadd.f32 %v1702_v59, %v1618_v57  ;;  %v2385_v14 = vld [vmem:[#allocation3 + $0x130] sm:$0xff] }
 0x306   :  { %v1955_v26 = vsel %vm5909_vm1, %v1913_v17, 0.0  ;;  %v1745_v28 = vadd.f32 %v1703_v50, %v1619_v0  ;;  %2041 = vst.msk [vmem:[#allocation3 + $0x148] sm:$0xff] %vm59_vm0, %v1999_v9  ;;  %v2330_v8 = vsel %vm59_vm0, %v2251_v42, 0.0  ;;  %v2464_v19 = vsel %vm59_vm0, %v2385_v14, 0.0 }
 0x307   :  { %v1956_v2 = vsel %vm5910_vm10, %v1914_v18, 0.0  ;;  %v2250_v10 = vld [vmem:[#allocation2 + $0x128] sm:$0xff]  ;;  %v1704_v32 = vsel %vm3661_vm4, %v1662_v37, 0.0  ;;  %1787 = vst.msk [vmem:[#allocation2 + $0x138] sm:$0xff] %vm59_vm0, %v1744_v55  ;;  %v1997_v12 = vadd.f32 %v1955_v26, %v1829_v41  ;;  %vm2618_vm4 = vcmp.eq.s32.totalorder %v4181_v20, 1 }
 0x308   :  { %v2328_v56 = vsel %vm59_vm0, %v2250_v10, 0.0  ;;  %v1746_v31 = vadd.f32 %v1704_v32, %v1620_v51  ;;  %v1998_v40 = vadd.f32 %v1956_v2, %v1830_v61  ;;  %1788 = vst.msk [vmem:[#allocation2 + $0x140] sm:$0xff] %vm59_vm0, %v1745_v28 }
 0x309   :  { %v2384_v44 = vld [vmem:[#allocation3 + $0x128] sm:$0xff]  ;;  %2039 = vst.msk [vmem:[#allocation3 + $0x138] sm:$0xff] %vm59_vm0, %v1997_v12  ;;  %v2329_v3 = vadd.f32 %v2328_v56, %v2327_v39 }
 0x30a   :  { %v2462_v22 = vsel %vm59_vm0, %v2384_v44, 0.0  ;;  %1789 = vst.msk [vmem:[#allocation2 + $0x148] sm:$0xff] %vm59_vm0, %v1746_v31 }
 0x30b   :  { %2040 = vst.msk [vmem:[#allocation3 + $0x140] sm:$0xff] %vm59_vm0, %v1998_v40  ;;  %v2463_v27 = vadd.f32 %v2462_v22, %v2461_v13  ;;  %v2331_v53 = vadd.f32 %v2330_v8, %v2329_v3 }
 0x30d   :  { %v2465_v5 = vadd.f32 %v2464_v19, %v2463_v27  ;;  %v2388_v34 = vld [vmem:[#allocation3 + $0x148] sm:$0xff] }
 0x30e   :  { %v2252_v62 = vld [vmem:[#allocation2 + $0x138] sm:$0xff]  ;;  %v2470_v46 = vsel %vm59_vm0, %v2388_v34, 0.0 }
 0x30f   :  { %v2332_v54 = vsel %vm59_vm0, %v2252_v62, 0.0  ;;  %v2253_v60 = vld [vmem:[#allocation2 + $0x140] sm:$0xff] }
 0x310   :  { %v2333_v23 = vadd.f32 %v2332_v54, %v2331_v53  ;;  %v2386_v6 = vld [vmem:[#allocation3 + $0x138] sm:$0xff]  ;;  %v2334_v48 = vsel %vm59_vm0, %v2253_v60, 0.0 }
 0x311   :  { %v2254_v33 = vld [vmem:[#allocation2 + $0x148] sm:$0xff]  ;;  %v2466_v4 = vsel %vm59_vm0, %v2386_v6, 0.0 }
 0x312   :  { %v2467_v45 = vadd.f32 %v2466_v4, %v2465_v5  ;;  %v2336_v30 = vsel %vm59_vm0, %v2254_v33, 0.0  ;;  %v2387_v29 = vld [vmem:[#allocation3 + $0x140] sm:$0xff]  ;;  %v2335_v57 = vadd.f32 %v2334_v48, %v2333_v23 }
 0x313   :  { %v2468_v36 = vsel %vm59_vm0, %v2387_v29, 0.0  ;;  %vm2615_vm0 = vcmp.eq.s32.totalorder %v4181_v20, 0 }
 0x314   :  { %v2469_v25 = vadd.f32 %v2468_v36, %v2467_v45  ;;  %v2337_v43 = vadd.f32 %v2336_v30, %v2335_v57 }
 0x316   :  { %v2471_v11 = vadd.f32 %v2470_v46, %v2469_v25  ;;  %2338 = vadd.xlane.f32.xlu2 %v2337_v43 }
 0x318   :  { %2472 = vadd.xlane.f32.xlu0 %v2471_v11 }
 0x370   :  { %v2607_v1 = vpop.xlane.xlu1 %2606 }
 0x371   :  { %v2608_v58 = vrot.slane %v2607_v1, 4 }
 0x373   :  { %v2609_v15 = vadd.f32 %v2608_v58, %v2607_v1 }
 0x375   :  { %v2610_v21 = vrot.slane %v2609_v15, 2 }
 0x377   :  { %v2611_v35 = vadd.f32 %v2610_v21, %v2609_v15 }
 0x379   :  { %v2612_v52 = vrot.slane %v2611_v35, 1 }
 0x37b   :  { %v2613_v9 = vadd.f32 %v2612_v52, %v2611_v35 }
 0x389   :  { %v2339_v49 = vpop.xlane.xlu2 %2338 }
 0x38a   :  { %v2340_v41 = vrot.slane %v2339_v49, 4 }
 0x38b   :  { %v2473_v7 = vpop.xlane.xlu0 %2472 }
 0x38c   :  { %v2474_v59 = vrot.slane %v2473_v7, 4  ;;  %v2341_v17 = vadd.f32 %v2340_v41, %v2339_v49 }
 0x38e   :  { %v2475_v0 = vadd.f32 %v2474_v59, %v2473_v7  ;;  %v2342_v50 = vrot.slane %v2341_v17, 2 }
 0x390   :  { %v2476_v18 = vrot.slane %v2475_v0, 2  ;;  %v2343_v51 = vadd.f32 %v2342_v50, %v2341_v17 }
 0x392   :  { %v2477_v37 = vadd.f32 %v2476_v18, %v2475_v0  ;;  %v2344_v38 = vrot.slane %v2343_v51, 1 }
 0x394   :  { %v2478_v55 = vrot.slane %v2477_v37, 1  ;;  %v2345_v61 = vadd.f32 %v2344_v38, %v2343_v51 }
 0x396   :  { %v2479_v16 = vadd.f32 %v2478_v55, %v2477_v37  ;;  %2643 = vpush %v2345_v61 }
 0x398   :  { %2645 = vpush %v2479_v16 }
 0x399   :  { %2647 = vpush %v2613_v9 }
 0x3c7   :  { %s2644_s0 = spop %2643 }
 0x3c8   :  { %v2616_v26 = vstv %s2644_s0 }
 0x3c9   :  { %s2646_s1 = spop %2645  ;;  %v2617_v10 = vsel %vm2615_vm0, %v2616_v26, 0.0 }
 0x3ca   :  { %v2619_v2 = vstv %s2646_s1  ;;  %s2648_s9 = spop %2647 }
 0x3cb   :  { %v2620_v24 = vsel %vm2618_vm4, %v2619_v2, 0.0  ;;  %v2623_v63 = vstv %s2648_s9 }
 0x3cc   :  { %v2621_v32 = vadd.f32 %v2620_v24, %v2617_v10  ;;  %v2624_v12 = vsel %vm2622_vm15, %v2623_v63, 0.0 }
 0x3ce   :  { %v2625_v28 = vadd.f32 %v2624_v12, %v2621_v32 }
 0x3d0   :  { %2626 = vst [vmem:[%s5327_s2] sm:$0x1] %v2625_v28 }

</bundles_post_ra>
